<compile_context>
chip_gen: v6e
topology: v6e:2x2x1
jax: 0.10.0
libtpu: 0.0.40
codegen_flags: <defaults>
</compile_context>

<pallas_src>
import jax
import jax.numpy as jnp
import numpy as np
from jax import lax
from jax.experimental import pallas as pl
from jax.experimental.pallas import tpu as pltpu

K = 4  # every ConvTranspose2d in the Generator uses a 4x4 kernel


# ------------------------------------------------------------------ in-kernel layer bodies
def _deconv_stride2(xp_ref, w_ref, b_ref, dst_ref, *, act, final):
    """One ConvTranspose2d(k=4, stride=2, pad=1) + activation in polyphase form.

    xp_ref : (H+2, Cin, W+2) f32   padded input (border rows/cols are zero)
    w_ref  : (2, 2, Cout, 4*Cin)   bf16 per-(row-phase, col-phase) im2col weight
    b_ref  : (Cout, 1) f32
    dst_ref: final=False -> (2H+2, Cout, 2W+2) padded VMEM buffer (next layer's input)
             final=True  -> (2H, Cout, 2W)     kernel output block
    """
    hp, _, wp = xp_ref.shape
    H, W = hp - 2, wp - 2
    cout = w_ref.shape[2]
    off = 0 if final else 1            # lane offset of the interior inside dst rows
    wrow = 2 * W + 2 * off             # stored row width (full padded width for buffers)

    # Constant 0/1 scatter matrices: column-phase pw lands at lane off + 2j + pw.
    # Doing the interleave as an MXU matmul keeps the row store dense (no masked/strided
    # lane writes) and leaves the padded side columns exactly zero.
    rr = lax.broadcasted_iota(jnp.int32, (W, wrow), 0)
    cc = lax.broadcasted_iota(jnp.int32, (W, wrow), 1)
    scat = [(cc == 2 * rr + off + pw).astype(jnp.float32) for pw in (0, 1)]
    bias = b_ref[...]                                        # (Cout, 1)

    if not final:                                            # top/bottom zero-padding rows
        zrow = jnp.zeros((cout, wrow), jnp.float32)
        dst_ref[0] = zrow
        dst_ref[dst_ref.shape[0] - 1] = zrow

    @pl.loop(0, H)
    def _(i):                               # input row i -> output rows 2i and 2i+1
        for ph in range(2):                 # output row phase (static unroll)
            row = jnp.zeros((cout, wrow), jnp.float32)
            for pw in range(2):             # output column phase (static unroll)
                # polyphase taps: kernel index kh = 3 - 2*dh - ph, kw = 3 - 2*dw - pw
                blocks = [xp_ref[i + ph + dh, :, pl.ds(pw + dw, W)]
                          for dh in range(2) for dw in range(2)]          # 4 x (Cin, W)
                patch = jnp.concatenate(blocks, axis=0).astype(w_ref.dtype)  # (4Cin, W)
                acc = jnp.dot(w_ref[ph, pw], patch,
                              preferred_element_type=jnp.float32) + bias     # (Cout, W)
                acc = jnp.maximum(acc, 0.0) if act == "relu" else jnp.tanh(acc)
                # scatter this column phase into the dense interleaved output row
                row = row + jnp.dot(acc, scat[pw], preferred_element_type=jnp.float32)
            ho = 2 * i + ph
            if final:
                dst_ref[ho] = row.astype(dst_ref.dtype)
            else:
                dst_ref[1 + ho] = row       # interior row of the padded buffer


def _generator_kernel(z_ref, w1_ref,
                      w2_ref, b2_ref, w3_ref, b3_ref, w4_ref, b4_ref,
                      w5_ref, b5_ref, w6_ref, b6_ref,
                      o_ref, buf1, buf2, buf3, buf4, buf5):
    c1 = buf1.shape[1]

    # ---- layer 1: ConvTranspose2d(z_dims, C1, 4, stride=1, pad=0): 1x1 -> 4x4, ReLU.
    # out[co, h, w] = relu(sum_ci z[ci] * w1[ci, co, h, w] + b[co])
    # w1_ref is (16*C1, Zdim+1) with the bias folded in (z augmented with a constant 1).
    r = jnp.dot(w1_ref[...], z_ref[...], preferred_element_type=jnp.float32)  # (16*C1, 1)
    r = jnp.maximum(r, 0.0)
    buf1[...] = jnp.zeros_like(buf1)            # buffer is padded; border must stay zero
    for p in range(16):
        h, w = divmod(p, 4)
        buf1[1 + h, :, pl.ds(1 + w, 1)] = r[p * c1:(p + 1) * c1, :]

    # ---- layers 2..6: stride-2 polyphase deconvs, everything VMEM resident.
    _deconv_stride2(buf1, w2_ref, b2_ref, buf2, act="relu", final=False)   # 4  -> 8
    _deconv_stride2(buf2, w3_ref, b3_ref, buf3, act="relu", final=False)   # 8  -> 16
    _deconv_stride2(buf3, w4_ref, b4_ref, buf4, act="relu", final=False)   # 16 -> 32
    _deconv_stride2(buf4, w5_ref, b5_ref, buf5, act="relu", final=False)   # 32 -> 64
    _deconv_stride2(buf5, w6_ref, b6_ref, o_ref, act="tanh", final=True)   # 64 -> 128


# --------------------------------------------------------------------- weight preparation
def _prep_stride2_weight(w, b):
    """PyTorch ConvTranspose2d weight (Cin, Cout, 4, 4) -> (2, 2, Cout, 4*Cin) bf16
    polyphase/im2col weight (ph, pw, co, (dh, dw, ci)) and (Cout, 1) f32 bias."""
    cout = w.shape[1]
    wt = jnp.transpose(w, (2, 3, 1, 0))                       # (kh, kw, Cout, Cin)
    phase_rows = []
    for ph in range(2):
        phase_cols = []
        for pw in range(2):
            taps = [wt[3 - 2 * dh - ph, 3 - 2 * dw - pw]
                    for dh in range(2) for dw in range(2)]    # 4 x (Cout, Cin)
            phase_cols.append(jnp.concatenate(taps, axis=-1)) # (Cout, 4*Cin)
        phase_rows.append(jnp.stack(phase_cols, axis=0))
    wim = jnp.stack(phase_rows, axis=0)                       # (2, 2, Cout, 4*Cin)
    return wim.astype(jnp.bfloat16), b.reshape(cout, 1).astype(jnp.float32)


# ------------------------------------------------------------------------- full forward
def generator_forward(z, params):
    """z: (B, z_dims) or (B, z_dims, 1, 1).  Returns (B, 3, 128, 128) float32."""
    B = z.shape[0]
    z2 = z.reshape(B, -1).astype(jnp.float32)
    zdim = z2.shape[1]

    # layer 1 weight reshaped to (16*C1, Zdim); bias folded in via a constant-1 input row.
    w1, b1 = params[0]["w"], params[0]["b"]
    c1 = w1.shape[1]
    w1r = jnp.transpose(w1, (2, 3, 1, 0)).reshape(16 * c1, zdim)
    w1a = jnp.concatenate([w1r, jnp.tile(b1, 16)[:, None]], axis=1)      # (16*C1, Zdim+1)
    z_aug = jnp.concatenate([z2, jnp.ones((B, 1), jnp.float32)], axis=1)[..., None]

    args = [z_aug, w1a]
    in_specs = [pl.BlockSpec((None, zdim + 1, 1), lambda b: (b, 0, 0)),
                pl.BlockSpec(w1a.shape, lambda b: (0, 0))]
    couts = []
    for i in range(1, 6):
        wim, bb = _prep_stride2_weight(params[i]["w"], params[i]["b"])
        args += [wim, bb]
        in_specs += [pl.BlockSpec(wim.shape, lambda b: (0, 0, 0, 0)),
                     pl.BlockSpec(bb.shape, lambda b: (0, 0))]
        couts.append(params[i]["w"].shape[1])

    # padded intermediate activation buffers (H+2, C, W+2): outputs of layers 1..5
    spat = [4, 8, 16, 32, 64]
    chans = [c1] + couts[:-1]
    scratch = [pltpu.VMEM((s + 2, c, s + 2), jnp.float32) for s, c in zip(spat, chans)]

    h_out, c_out = 2 * spat[-1], couts[-1]                    # 128, 3
    out = pl.pallas_call(
        _generator_kernel,
        out_shape=jax.ShapeDtypeStruct((B, h_out, c_out, h_out), jnp.float32),
        grid=(B,),
        in_specs=in_specs,
        out_specs=pl.BlockSpec((None, h_out, c_out, h_out), lambda b: (b, 0, 0, 0)),
        scratch_shapes=scratch,
        compiler_params=pltpu.CompilerParams(
            dimension_semantics=("parallel",),
            vmem_limit_bytes=32 * 1024 * 1024),
    )(*args)
    return jnp.transpose(out, (0, 2, 1, 3))                   # (B, H, C, W) -> NCHW


# -------------------------------------------------------------------- parameter setup
def spectral_norm_weight(w, key, n_power_iterations=1, eps=1e-12):
    """PyTorch nn.utils.spectral_norm semantics (dim=1 for ConvTranspose2d)."""
    cout = w.shape[1]
    w_mat = jnp.transpose(w, (1, 0, 2, 3)).reshape(cout, -1)
    u = jax.random.normal(key, (cout,), jnp.float32)
    u = u / (jnp.linalg.norm(u) + eps)
    v = w_mat.T @ u
    for _ in range(n_power_iterations):
        v = w_mat.T @ u
        v = v / (jnp.linalg.norm(v) + eps)
        u = w_mat @ v
        u = u / (jnp.linalg.norm(u) + eps)
    sigma = u @ (w_mat @ v)
    return w / sigma


def init_generator_params(key, z_dims=32, d=8):
    cfg = [
        (z_dims, d * 8, 1, 0, "relu", True),   # deconv1 (spectral_norm)
        (d * 8,  d * 8, 2, 1, "relu", True),   # deconv2
        (d * 8,  d * 4, 2, 1, "relu", True),   # deconv3
        (d * 4,  d * 2, 2, 1, "relu", True),   # deconv4
        (d * 2,  d,     2, 1, "relu", True),   # deconv5
        (d,      3,     2, 1, "tanh", False),  # deconv6 (no spectral norm)
    ]
    params = []
    for cin, cout, s, p, act, use_sn in cfg:
        key, kw, kb, ku = jax.random.split(key, 4)
        w = 0.05 * jax.random.normal(kw, (cin, cout, K, K), jnp.float32)
        b = 0.01 * jax.random.normal(kb, (cout,), jnp.float32)
        if use_sn:
            w = spectral_norm_weight(w, ku)
        params.append(dict(w=w, b=b, stride=s, padding=p, act=act))
    return params


# ------------------------------------------------------------- pure-JAX reference
def _ref_conv_transpose(x_nchw, w, b, stride, padding):
    w_oihw = jnp.transpose(w[:, :, ::-1, ::-1], (1, 0, 2, 3))
    q = K - 1 - padding
    y = lax.conv_general_dilated(
        x_nchw, w_oihw, window_strides=(1, 1),
        padding=[(q, q), (q, q)], lhs_dilation=(stride, stride),
        dimension_numbers=("NCHW", "OIHW", "NCHW"))
    return y + b.reshape(1, -1, 1, 1)


def generator_forward_ref(z, params):
    B = z.shape[0]
    x = z.reshape(B, -1, 1, 1)
    for p in params:
        x = _ref_conv_transpose(x, p["w"], p["b"], p["stride"], p["padding"])
        x = jnp.maximum(x, 0.0) if p["act"] == "relu" else jnp.tanh(x)
    return x


# --------------------------------------------------------------------------- main
if __name__ == "__main__":
    # small deterministic configuration (module defaults z_dims=512, d=64 scaled down)
    Z_DIMS, D, BATCH = 32, 8, 2
    key = jax.random.PRNGKey(0)
    pkey, zkey = jax.random.split(key)
    params = init_generator_params(pkey, z_dims=Z_DIMS, d=D)
    z = jax.random.normal(zkey, (BATCH, Z_DIMS, 1, 1), jnp.float32)

    out = jax.block_until_ready(generator_forward(z, params))
    assert out.shape == (BATCH, 3, 128, 128), out.shape
    assert bool(jnp.all(jnp.isfinite(out)))

    # sanity check vs. the f32 XLA reference (kernel uses bf16 weights for the stride-2
    # layers with f32 accumulation, hence the slightly loose tolerance)
    ref = jax.block_until_ready(generator_forward_ref(z, params))
    np.testing.assert_allclose(np.asarray(out), np.asarray(ref), rtol=5e-2, atol=5e-3)

    print("KERNEL_OK")
</pallas_src>

<mosaic_0001>
module attributes {stable_mosaic.version = 11 : i64} {
  func.func @_generator_kernel(%arg0: i32, %arg1: memref<1x33x1xf32, #tpu.memory_space<vmem>>, %arg2: memref<1024x33xf32, #tpu.memory_space<vmem>>, %arg3: memref<2x2x64x256xbf16, #tpu.memory_space<vmem>>, %arg4: memref<64x1xf32, #tpu.memory_space<vmem>>, %arg5: memref<2x2x32x256xbf16, #tpu.memory_space<vmem>>, %arg6: memref<32x1xf32, #tpu.memory_space<vmem>>, %arg7: memref<2x2x16x128xbf16, #tpu.memory_space<vmem>>, %arg8: memref<16x1xf32, #tpu.memory_space<vmem>>, %arg9: memref<2x2x8x64xbf16, #tpu.memory_space<vmem>>, %arg10: memref<8x1xf32, #tpu.memory_space<vmem>>, %arg11: memref<2x2x3x32xbf16, #tpu.memory_space<vmem>>, %arg12: memref<3x1xf32, #tpu.memory_space<vmem>>, %arg13: memref<1x128x3x128xf32, #tpu.memory_space<vmem>>, %arg14: memref<6x64x6xf32, #tpu.memory_space<vmem>>, %arg15: memref<10x64x10xf32, #tpu.memory_space<vmem>>, %arg16: memref<18x32x18xf32, #tpu.memory_space<vmem>>, %arg17: memref<34x16x34xf32, #tpu.memory_space<vmem>>, %arg18: memref<66x8x66xf32, #tpu.memory_space<vmem>>) attributes {dimension_semantics = [#tpu.dimension_semantics<parallel>], iteration_bounds = array<i64: 2>, scalar_prefetch = 0 : i64, scratch_operands = 5 : i64, tpu.core_type = #tpu.core_type<tc>, window_params = [{transform_indices = @transform_0, window_bounds = array<i64: 1, 33, 1>}, {pipeline_mode = #tpu.pipeline_mode<synchronous>, transform_indices = @transform_1, window_bounds = array<i64: 1024, 33>}, {pipeline_mode = #tpu.pipeline_mode<synchronous>, transform_indices = @transform_2, window_bounds = array<i64: 2, 2, 64, 256>}, {pipeline_mode = #tpu.pipeline_mode<synchronous>, transform_indices = @transform_3, window_bounds = array<i64: 64, 1>}, {pipeline_mode = #tpu.pipeline_mode<synchronous>, transform_indices = @transform_4, window_bounds = array<i64: 2, 2, 32, 256>}, {pipeline_mode = #tpu.pipeline_mode<synchronous>, transform_indices = @transform_5, window_bounds = array<i64: 32, 1>}, {pipeline_mode = #tpu.pipeline_mode<synchronous>, transform_indices = @transform_6, window_bounds = array<i64: 2, 2, 16, 128>}, {pipeline_mode = #tpu.pipeline_mode<synchronous>, transform_indices = @transform_7, window_bounds = array<i64: 16, 1>}, {pipeline_mode = #tpu.pipeline_mode<synchronous>, transform_indices = @transform_8, window_bounds = array<i64: 2, 2, 8, 64>}, {pipeline_mode = #tpu.pipeline_mode<synchronous>, transform_indices = @transform_9, window_bounds = array<i64: 8, 1>}, {pipeline_mode = #tpu.pipeline_mode<synchronous>, transform_indices = @transform_10, window_bounds = array<i64: 2, 2, 3, 32>}, {pipeline_mode = #tpu.pipeline_mode<synchronous>, transform_indices = @transform_11, window_bounds = array<i64: 3, 1>}, {transform_indices = @transform_12, window_bounds = array<i64: 1, 128, 3, 128>}]} {
    %c0 = arith.constant 0 : index
    %c0_0 = arith.constant 0 : index
    %0 = vector.load %arg2[%c0, %c0_0] : memref<1024x33xf32, #tpu.memory_space<vmem>>, vector<1024x33xf32>
    %c0_1 = arith.constant 0 : index
    %c0_2 = arith.constant 0 : index
    %c0_3 = arith.constant 0 : index
    %1 = vector.load %arg1[%c0_1, %c0_2, %c0_3] : memref<1x33x1xf32, #tpu.memory_space<vmem>>, vector<1x33x1xf32>
    %2 = vector.shape_cast %1 : vector<1x33x1xf32> to vector<33x1xf32>
    %cst = arith.constant dense<0.000000e+00> : vector<1024x1xf32>
    %3 = tpu.matmul %0, %2, %cst {dimension_numbers = #tpu.dot_dimension_numbers<[1], [0], [0], [1], [0, 0, 1, 1], [], []>} : vector<1024x33xf32>, vector<33x1xf32>, vector<1024x1xf32> -> vector<1024x1xf32>
    %cst_4 = arith.constant 0.000000e+00 : f32
    %4 = vector.broadcast %cst_4 : f32 to vector<1024x1xf32>
    %5 = arith.maximumf %3, %4 : vector<1024x1xf32>
    %cst_5 = arith.constant 0.000000e+00 : f32
    %6 = vector.broadcast %cst_5 : f32 to vector<6x64x6xf32>
    %c0_6 = arith.constant 0 : index
    %c0_7 = arith.constant 0 : index
    %c0_8 = arith.constant 0 : index
    %7 = vector.load %arg14[%c0_6, %c0_7, %c0_8] : memref<6x64x6xf32, #tpu.memory_space<vmem>>, vector<6x64x6xf32>
    tpu.vector_store %arg14[%c0_6, %c0_7, %c0_8], %6 {strides = array<i32>} : memref<6x64x6xf32, #tpu.memory_space<vmem>>, vector<6x64x6xf32>,
    %8 = vector.extract_strided_slice %5 {offsets = [0, 0], sizes = [64, 1], strides = [1, 1]} : vector<1024x1xf32> to vector<64x1xf32>
    %c1 = arith.constant 1 : index
    %c0_9 = arith.constant 0 : index
    %c1_10 = arith.constant 1 : index
    %9 = vector.load %arg14[%c1, %c0_9, %c1_10] : memref<6x64x6xf32, #tpu.memory_space<vmem>>, vector<1x64x1xf32>
    %10 = vector.shape_cast %9 : vector<1x64x1xf32> to vector<64x1xf32>
    %11 = vector.shape_cast %8 : vector<64x1xf32> to vector<1x64x1xf32>
    tpu.vector_store %arg14[%c1, %c0_9, %c1_10], %11 {strides = array<i32>} : memref<6x64x6xf32, #tpu.memory_space<vmem>>, vector<1x64x1xf32>,
    %12 = vector.extract_strided_slice %5 {offsets = [64, 0], sizes = [64, 1], strides = [1, 1]} : vector<1024x1xf32> to vector<64x1xf32>
    %c1_11 = arith.constant 1 : index
    %c0_12 = arith.constant 0 : index
    %c2 = arith.constant 2 : index
    %13 = vector.load %arg14[%c1_11, %c0_12, %c2] : memref<6x64x6xf32, #tpu.memory_space<vmem>>, vector<1x64x1xf32>
    %14 = vector.shape_cast %13 : vector<1x64x1xf32> to vector<64x1xf32>
    %15 = vector.shape_cast %12 : vector<64x1xf32> to vector<1x64x1xf32>
    tpu.vector_store %arg14[%c1_11, %c0_12, %c2], %15 {strides = array<i32>} : memref<6x64x6xf32, #tpu.memory_space<vmem>>, vector<1x64x1xf32>,
    %16 = vector.extract_strided_slice %5 {offsets = [128, 0], sizes = [64, 1], strides = [1, 1]} : vector<1024x1xf32> to vector<64x1xf32>
    %c1_13 = arith.constant 1 : index
    %c0_14 = arith.constant 0 : index
    %c3 = arith.constant 3 : index
    %17 = vector.load %arg14[%c1_13, %c0_14, %c3] : memref<6x64x6xf32, #tpu.memory_space<vmem>>, vector<1x64x1xf32>
    %18 = vector.shape_cast %17 : vector<1x64x1xf32> to vector<64x1xf32>
    %19 = vector.shape_cast %16 : vector<64x1xf32> to vector<1x64x1xf32>
    tpu.vector_store %arg14[%c1_13, %c0_14, %c3], %19 {strides = array<i32>} : memref<6x64x6xf32, #tpu.memory_space<vmem>>, vector<1x64x1xf32>,
    %20 = vector.extract_strided_slice %5 {offsets = [192, 0], sizes = [64, 1], strides = [1, 1]} : vector<1024x1xf32> to vector<64x1xf32>
    %c1_15 = arith.constant 1 : index
    %c0_16 = arith.constant 0 : index
    %c4 = arith.constant 4 : index
    %21 = vector.load %arg14[%c1_15, %c0_16, %c4] : memref<6x64x6xf32, #tpu.memory_space<vmem>>, vector<1x64x1xf32>
    %22 = vector.shape_cast %21 : vector<1x64x1xf32> to vector<64x1xf32>
    %23 = vector.shape_cast %20 : vector<64x1xf32> to vector<1x64x1xf32>
    tpu.vector_store %arg14[%c1_15, %c0_16, %c4], %23 {strides = array<i32>} : memref<6x64x6xf32, #tpu.memory_space<vmem>>, vector<1x64x1xf32>,
    %24 = vector.extract_strided_slice %5 {offsets = [256, 0], sizes = [64, 1], strides = [1, 1]} : vector<1024x1xf32> to vector<64x1xf32>
    %c2_17 = arith.constant 2 : index
    %c0_18 = arith.constant 0 : index
    %c1_19 = arith.constant 1 : index
    %25 = vector.load %arg14[%c2_17, %c0_18, %c1_19] : memref<6x64x6xf32, #tpu.memory_space<vmem>>, vector<1x64x1xf32>
    %26 = vector.shape_cast %25 : vector<1x64x1xf32> to vector<64x1xf32>
    %27 = vector.shape_cast %24 : vector<64x1xf32> to vector<1x64x1xf32>
    tpu.vector_store %arg14[%c2_17, %c0_18, %c1_19], %27 {strides = array<i32>} : memref<6x64x6xf32, #tpu.memory_space<vmem>>, vector<1x64x1xf32>,
    %28 = vector.extract_strided_slice %5 {offsets = [320, 0], sizes = [64, 1], strides = [1, 1]} : vector<1024x1xf32> to vector<64x1xf32>
    %c2_20 = arith.constant 2 : index
    %c0_21 = arith.constant 0 : index
    %c2_22 = arith.constant 2 : index
    %29 = vector.load %arg14[%c2_20, %c0_21, %c2_22] : memref<6x64x6xf32, #tpu.memory_space<vmem>>, vector<1x64x1xf32>
    %30 = vector.shape_cast %29 : vector<1x64x1xf32> to vector<64x1xf32>
    %31 = vector.shape_cast %28 : vector<64x1xf32> to vector<1x64x1xf32>
    tpu.vector_store %arg14[%c2_20, %c0_21, %c2_22], %31 {strides = array<i32>} : memref<6x64x6xf32, #tpu.memory_space<vmem>>, vector<1x64x1xf32>,
    %32 = vector.extract_strided_slice %5 {offsets = [384, 0], sizes = [64, 1], strides = [1, 1]} : vector<1024x1xf32> to vector<64x1xf32>
    %c2_23 = arith.constant 2 : index
    %c0_24 = arith.constant 0 : index
    %c3_25 = arith.constant 3 : index
    %33 = vector.load %arg14[%c2_23, %c0_24, %c3_25] : memref<6x64x6xf32, #tpu.memory_space<vmem>>, vector<1x64x1xf32>
    %34 = vector.shape_cast %33 : vector<1x64x1xf32> to vector<64x1xf32>
    %35 = vector.shape_cast %32 : vector<64x1xf32> to vector<1x64x1xf32>
    tpu.vector_store %arg14[%c2_23, %c0_24, %c3_25], %35 {strides = array<i32>} : memref<6x64x6xf32, #tpu.memory_space<vmem>>, vector<1x64x1xf32>,
    %36 = vector.extract_strided_slice %5 {offsets = [448, 0], sizes = [64, 1], strides = [1, 1]} : vector<1024x1xf32> to vector<64x1xf32>
    %c2_26 = arith.constant 2 : index
    %c0_27 = arith.constant 0 : index
    %c4_28 = arith.constant 4 : index
    %37 = vector.load %arg14[%c2_26, %c0_27, %c4_28] : memref<6x64x6xf32, #tpu.memory_space<vmem>>, vector<1x64x1xf32>
    %38 = vector.shape_cast %37 : vector<1x64x1xf32> to vector<64x1xf32>
    %39 = vector.shape_cast %36 : vector<64x1xf32> to vector<1x64x1xf32>
    tpu.vector_store %arg14[%c2_26, %c0_27, %c4_28], %39 {strides = array<i32>} : memref<6x64x6xf32, #tpu.memory_space<vmem>>, vector<1x64x1xf32>,
    %40 = vector.extract_strided_slice %5 {offsets = [512, 0], sizes = [64, 1], strides = [1, 1]} : vector<1024x1xf32> to vector<64x1xf32>
    %c3_29 = arith.constant 3 : index
    %c0_30 = arith.constant 0 : index
    %c1_31 = arith.constant 1 : index
    %41 = vector.load %arg14[%c3_29, %c0_30, %c1_31] : memref<6x64x6xf32, #tpu.memory_space<vmem>>, vector<1x64x1xf32>
    %42 = vector.shape_cast %41 : vector<1x64x1xf32> to vector<64x1xf32>
    %43 = vector.shape_cast %40 : vector<64x1xf32> to vector<1x64x1xf32>
    tpu.vector_store %arg14[%c3_29, %c0_30, %c1_31], %43 {strides = array<i32>} : memref<6x64x6xf32, #tpu.memory_space<vmem>>, vector<1x64x1xf32>,
    %44 = vector.extract_strided_slice %5 {offsets = [576, 0], sizes = [64, 1], strides = [1, 1]} : vector<1024x1xf32> to vector<64x1xf32>
    %c3_32 = arith.constant 3 : index
    %c0_33 = arith.constant 0 : index
    %c2_34 = arith.constant 2 : index
    %45 = vector.load %arg14[%c3_32, %c0_33, %c2_34] : memref<6x64x6xf32, #tpu.memory_space<vmem>>, vector<1x64x1xf32>
    %46 = vector.shape_cast %45 : vector<1x64x1xf32> to vector<64x1xf32>
    %47 = vector.shape_cast %44 : vector<64x1xf32> to vector<1x64x1xf32>
    tpu.vector_store %arg14[%c3_32, %c0_33, %c2_34], %47 {strides = array<i32>} : memref<6x64x6xf32, #tpu.memory_space<vmem>>, vector<1x64x1xf32>,
    %48 = vector.extract_strided_slice %5 {offsets = [640, 0], sizes = [64, 1], strides = [1, 1]} : vector<1024x1xf32> to vector<64x1xf32>
    %c3_35 = arith.constant 3 : index
    %c0_36 = arith.constant 0 : index
    %c3_37 = arith.constant 3 : index
    %49 = vector.load %arg14[%c3_35, %c0_36, %c3_37] : memref<6x64x6xf32, #tpu.memory_space<vmem>>, vector<1x64x1xf32>
    %50 = vector.shape_cast %49 : vector<1x64x1xf32> to vector<64x1xf32>
    %51 = vector.shape_cast %48 : vector<64x1xf32> to vector<1x64x1xf32>
    tpu.vector_store %arg14[%c3_35, %c0_36, %c3_37], %51 {strides = array<i32>} : memref<6x64x6xf32, #tpu.memory_space<vmem>>, vector<1x64x1xf32>,
    %52 = vector.extract_strided_slice %5 {offsets = [704, 0], sizes = [64, 1], strides = [1, 1]} : vector<1024x1xf32> to vector<64x1xf32>
    %c3_38 = arith.constant 3 : index
    %c0_39 = arith.constant 0 : index
    %c4_40 = arith.constant 4 : index
    %53 = vector.load %arg14[%c3_38, %c0_39, %c4_40] : memref<6x64x6xf32, #tpu.memory_space<vmem>>, vector<1x64x1xf32>
    %54 = vector.shape_cast %53 : vector<1x64x1xf32> to vector<64x1xf32>
    %55 = vector.shape_cast %52 : vector<64x1xf32> to vector<1x64x1xf32>
    tpu.vector_store %arg14[%c3_38, %c0_39, %c4_40], %55 {strides = array<i32>} : memref<6x64x6xf32, #tpu.memory_space<vmem>>, vector<1x64x1xf32>,
    %56 = vector.extract_strided_slice %5 {offsets = [768, 0], sizes = [64, 1], strides = [1, 1]} : vector<1024x1xf32> to vector<64x1xf32>
    %c4_41 = arith.constant 4 : index
    %c0_42 = arith.constant 0 : index
    %c1_43 = arith.constant 1 : index
    %57 = vector.load %arg14[%c4_41, %c0_42, %c1_43] : memref<6x64x6xf32, #tpu.memory_space<vmem>>, vector<1x64x1xf32>
    %58 = vector.shape_cast %57 : vector<1x64x1xf32> to vector<64x1xf32>
    %59 = vector.shape_cast %56 : vector<64x1xf32> to vector<1x64x1xf32>
    tpu.vector_store %arg14[%c4_41, %c0_42, %c1_43], %59 {strides = array<i32>} : memref<6x64x6xf32, #tpu.memory_space<vmem>>, vector<1x64x1xf32>,
    %60 = vector.extract_strided_slice %5 {offsets = [832, 0], sizes = [64, 1], strides = [1, 1]} : vector<1024x1xf32> to vector<64x1xf32>
    %c4_44 = arith.constant 4 : index
    %c0_45 = arith.constant 0 : index
    %c2_46 = arith.constant 2 : index
    %61 = vector.load %arg14[%c4_44, %c0_45, %c2_46] : memref<6x64x6xf32, #tpu.memory_space<vmem>>, vector<1x64x1xf32>
    %62 = vector.shape_cast %61 : vector<1x64x1xf32> to vector<64x1xf32>
    %63 = vector.shape_cast %60 : vector<64x1xf32> to vector<1x64x1xf32>
    tpu.vector_store %arg14[%c4_44, %c0_45, %c2_46], %63 {strides = array<i32>} : memref<6x64x6xf32, #tpu.memory_space<vmem>>, vector<1x64x1xf32>,
    %64 = vector.extract_strided_slice %5 {offsets = [896, 0], sizes = [64, 1], strides = [1, 1]} : vector<1024x1xf32> to vector<64x1xf32>
    %c4_47 = arith.constant 4 : index
    %c0_48 = arith.constant 0 : index
    %c3_49 = arith.constant 3 : index
    %65 = vector.load %arg14[%c4_47, %c0_48, %c3_49] : memref<6x64x6xf32, #tpu.memory_space<vmem>>, vector<1x64x1xf32>
    %66 = vector.shape_cast %65 : vector<1x64x1xf32> to vector<64x1xf32>
    %67 = vector.shape_cast %64 : vector<64x1xf32> to vector<1x64x1xf32>
    tpu.vector_store %arg14[%c4_47, %c0_48, %c3_49], %67 {strides = array<i32>} : memref<6x64x6xf32, #tpu.memory_space<vmem>>, vector<1x64x1xf32>,
    %68 = vector.extract_strided_slice %5 {offsets = [960, 0], sizes = [64, 1], strides = [1, 1]} : vector<1024x1xf32> to vector<64x1xf32>
    %c4_50 = arith.constant 4 : index
    %c0_51 = arith.constant 0 : index
    %c4_52 = arith.constant 4 : index
    %69 = vector.load %arg14[%c4_50, %c0_51, %c4_52] : memref<6x64x6xf32, #tpu.memory_space<vmem>>, vector<1x64x1xf32>
    %70 = vector.shape_cast %69 : vector<1x64x1xf32> to vector<64x1xf32>
    %71 = vector.shape_cast %68 : vector<64x1xf32> to vector<1x64x1xf32>
    tpu.vector_store %arg14[%c4_50, %c0_51, %c4_52], %71 {strides = array<i32>} : memref<6x64x6xf32, #tpu.memory_space<vmem>>, vector<1x64x1xf32>,
    %72 = tpu.iota {dimensions = array<i32: 0>} : vector<4x10xi32>
    %73 = tpu.iota {dimensions = array<i32: 1>} : vector<4x10xi32>
    %c2_i32 = arith.constant 2 : i32
    %74 = vector.broadcast %c2_i32 : i32 to vector<4x10xi32>
    %75 = arith.muli %74, %72 : vector<4x10xi32>
    %c1_i32 = arith.constant 1 : i32
    %76 = vector.broadcast %c1_i32 : i32 to vector<4x10xi32>
    %77 = arith.addi %75, %76 : vector<4x10xi32>
    %c0_i32 = arith.constant 0 : i32
    %78 = vector.broadcast %c0_i32 : i32 to vector<4x10xi32>
    %79 = arith.addi %77, %78 : vector<4x10xi32>
    %80 = arith.cmpi eq, %73, %79 : vector<4x10xi32>
    %81 = arith.extui %80 : vector<4x10xi1> to vector<4x10xi32>
    %82 = arith.sitofp %81 : vector<4x10xi32> to vector<4x10xf32>
    %c2_i32_53 = arith.constant 2 : i32
    %83 = vector.broadcast %c2_i32_53 : i32 to vector<4x10xi32>
    %84 = arith.muli %83, %72 : vector<4x10xi32>
    %c1_i32_54 = arith.constant 1 : i32
    %85 = vector.broadcast %c1_i32_54 : i32 to vector<4x10xi32>
    %86 = arith.addi %84, %85 : vector<4x10xi32>
    %c1_i32_55 = arith.constant 1 : i32
    %87 = vector.broadcast %c1_i32_55 : i32 to vector<4x10xi32>
    %88 = arith.addi %86, %87 : vector<4x10xi32>
    %89 = arith.cmpi eq, %73, %88 : vector<4x10xi32>
    %90 = arith.extui %89 : vector<4x10xi1> to vector<4x10xi32>
    %91 = arith.sitofp %90 : vector<4x10xi32> to vector<4x10xf32>
    %c0_56 = arith.constant 0 : index
    %c0_57 = arith.constant 0 : index
    %92 = vector.load %arg4[%c0_56, %c0_57] : memref<64x1xf32, #tpu.memory_space<vmem>>, vector<64x1xf32>
    %cst_58 = arith.constant 0.000000e+00 : f32
    %93 = vector.broadcast %cst_58 : f32 to vector<64x10xf32>
    %c0_59 = arith.constant 0 : index
    %c0_60 = arith.constant 0 : index
    %c0_61 = arith.constant 0 : index
    %94 = vector.load %arg15[%c0_59, %c0_60, %c0_61] : memref<10x64x10xf32, #tpu.memory_space<vmem>>, vector<1x64x10xf32>
    %95 = vector.shape_cast %94 : vector<1x64x10xf32> to vector<64x10xf32>
    %96 = vector.shape_cast %93 : vector<64x10xf32> to vector<1x64x10xf32>
    tpu.vector_store %arg15[%c0_59, %c0_60, %c0_61], %96 {strides = array<i32>} : memref<10x64x10xf32, #tpu.memory_space<vmem>>, vector<1x64x10xf32>,
    %c9 = arith.constant 9 : index
    %c0_62 = arith.constant 0 : index
    %c0_63 = arith.constant 0 : index
    %97 = vector.load %arg15[%c9, %c0_62, %c0_63] : memref<10x64x10xf32, #tpu.memory_space<vmem>>, vector<1x64x10xf32>
    %98 = vector.shape_cast %97 : vector<1x64x10xf32> to vector<64x10xf32>
    %99 = vector.shape_cast %93 : vector<64x10xf32> to vector<1x64x10xf32>
    tpu.vector_store %arg15[%c9, %c0_62, %c0_63], %99 {strides = array<i32>} : memref<10x64x10xf32, #tpu.memory_space<vmem>>, vector<1x64x10xf32>,
    %c0_i32_64 = arith.constant 0 : i32
    %c4_i32 = arith.constant 4 : i32
    %100 = arith.addi %c0_i32_64, %c4_i32 : i32
    %c1_i32_65 = arith.constant 1 : i32
    scf.for %arg19 = %c0_i32_64 to %100 step %c1_i32_65  : i32 {
      %c1_i32_129 = arith.constant 1 : i32
      %210 = arith.muli %arg19, %c1_i32_129 : i32
      %c0_i32_130 = arith.constant 0 : i32
      %211 = arith.addi %c0_i32_130, %210 : i32
      %cst_131 = arith.constant 0.000000e+00 : f32
      %212 = vector.broadcast %cst_131 : f32 to vector<64x10xf32>
      %c0_i32_132 = arith.constant 0 : i32
      %213 = arith.addi %211, %c0_i32_132 : i32
      %c0_i32_133 = arith.constant 0 : i32
      %214 = arith.addi %213, %c0_i32_133 : i32
      %215 = arith.index_cast %214 : i32 to index
      %c0_134 = arith.constant 0 : index
      %c0_135 = arith.constant 0 : index
      %216 = vector.load %arg14[%215, %c0_134, %c0_135] : memref<6x64x6xf32, #tpu.memory_space<vmem>>, vector<1x64x4xf32>
      %217 = vector.shape_cast %216 : vector<1x64x4xf32> to vector<64x4xf32>
      %c0_i32_136 = arith.constant 0 : i32
      %218 = arith.addi %211, %c0_i32_136 : i32
      %c0_i32_137 = arith.constant 0 : i32
      %219 = arith.addi %218, %c0_i32_137 : i32
      %220 = arith.index_cast %219 : i32 to index
      %c0_138 = arith.constant 0 : index
      %c1_139 = arith.constant 1 : index
      %221 = vector.load %arg14[%220, %c0_138, %c1_139] : memref<6x64x6xf32, #tpu.memory_space<vmem>>, vector<1x64x4xf32>
      %222 = vector.shape_cast %221 : vector<1x64x4xf32> to vector<64x4xf32>
      %c0_i32_140 = arith.constant 0 : i32
      %223 = arith.addi %211, %c0_i32_140 : i32
      %c1_i32_141 = arith.constant 1 : i32
      %224 = arith.addi %223, %c1_i32_141 : i32
      %225 = arith.index_cast %224 : i32 to index
      %c0_142 = arith.constant 0 : index
      %c0_143 = arith.constant 0 : index
      %226 = vector.load %arg14[%225, %c0_142, %c0_143] : memref<6x64x6xf32, #tpu.memory_space<vmem>>, vector<1x64x4xf32>
      %227 = vector.shape_cast %226 : vector<1x64x4xf32> to vector<64x4xf32>
      %c0_i32_144 = arith.constant 0 : i32
      %228 = arith.addi %211, %c0_i32_144 : i32
      %c1_i32_145 = arith.constant 1 : i32
      %229 = arith.addi %228, %c1_i32_145 : i32
      %230 = arith.index_cast %229 : i32 to index
      %c0_146 = arith.constant 0 : index
      %c1_147 = arith.constant 1 : index
      %231 = vector.load %arg14[%230, %c0_146, %c1_147] : memref<6x64x6xf32, #tpu.memory_space<vmem>>, vector<1x64x4xf32>
      %232 = vector.shape_cast %231 : vector<1x64x4xf32> to vector<64x4xf32>
      %233 = tpu.concatenate %217, %222, %227, %232 in 0 : vector<64x4xf32>, vector<64x4xf32>, vector<64x4xf32>, vector<64x4xf32> -> vector<256x4xf32>
      %234 = arith.truncf %233 : vector<256x4xf32> to vector<256x4xbf16>
      %c0_148 = arith.constant 0 : index
      %c0_149 = arith.constant 0 : index
      %c0_150 = arith.constant 0 : index
      %c0_151 = arith.constant 0 : index
      %235 = vector.load %arg3[%c0_148, %c0_149, %c0_150, %c0_151] : memref<2x2x64x256xbf16, #tpu.memory_space<vmem>>, vector<1x1x64x256xbf16>
      %236 = vector.shape_cast %235 : vector<1x1x64x256xbf16> to vector<64x256xbf16>
      %cst_152 = arith.constant dense<0.000000e+00> : vector<64x4xf32>
      %237 = tpu.matmul %236, %234, %cst_152 {dimension_numbers = #tpu.dot_dimension_numbers<[1], [0], [0], [1], [0, 0, 1, 1], [], []>} : vector<64x256xbf16>, vector<256x4xbf16>, vector<64x4xf32> -> vector<64x4xf32>
      %238 = vector.broadcast %92 : vector<64x1xf32> to vector<64x4xf32>
      %239 = arith.addf %237, %238 : vector<64x4xf32>
      %cst_153 = arith.constant 0.000000e+00 : f32
      %240 = vector.broadcast %cst_153 : f32 to vector<64x4xf32>
      %241 = arith.maximumf %239, %240 : vector<64x4xf32>
      %cst_154 = arith.constant dense<0.000000e+00> : vector<64x10xf32>
      %242 = tpu.matmul %241, %82, %cst_154 {dimension_numbers = #tpu.dot_dimension_numbers<[1], [0], [0], [1], [0, 0, 1, 1], [], []>} : vector<64x4xf32>, vector<4x10xf32>, vector<64x10xf32> -> vector<64x10xf32>
      %243 = arith.addf %212, %242 : vector<64x10xf32>
      %c0_i32_155 = arith.constant 0 : i32
      %244 = arith.addi %211, %c0_i32_155 : i32
      %c0_i32_156 = arith.constant 0 : i32
      %245 = arith.addi %244, %c0_i32_156 : i32
      %246 = arith.index_cast %245 : i32 to index
      %c0_157 = arith.constant 0 : index
      %c1_158 = arith.constant 1 : index
      %247 = vector.load %arg14[%246, %c0_157, %c1_158] : memref<6x64x6xf32, #tpu.memory_space<vmem>>, vector<1x64x4xf32>
      %248 = vector.shape_cast %247 : vector<1x64x4xf32> to vector<64x4xf32>
      %c0_i32_159 = arith.constant 0 : i32
      %249 = arith.addi %211, %c0_i32_159 : i32
      %c0_i32_160 = arith.constant 0 : i32
      %250 = arith.addi %249, %c0_i32_160 : i32
      %251 = arith.index_cast %250 : i32 to index
      %c0_161 = arith.constant 0 : index
      %c2_162 = arith.constant 2 : index
      %252 = vector.load %arg14[%251, %c0_161, %c2_162] : memref<6x64x6xf32, #tpu.memory_space<vmem>>, vector<1x64x4xf32>
      %253 = vector.shape_cast %252 : vector<1x64x4xf32> to vector<64x4xf32>
      %c0_i32_163 = arith.constant 0 : i32
      %254 = arith.addi %211, %c0_i32_163 : i32
      %c1_i32_164 = arith.constant 1 : i32
      %255 = arith.addi %254, %c1_i32_164 : i32
      %256 = arith.index_cast %255 : i32 to index
      %c0_165 = arith.constant 0 : index
      %c1_166 = arith.constant 1 : index
      %257 = vector.load %arg14[%256, %c0_165, %c1_166] : memref<6x64x6xf32, #tpu.memory_space<vmem>>, vector<1x64x4xf32>
      %258 = vector.shape_cast %257 : vector<1x64x4xf32> to vector<64x4xf32>
      %c0_i32_167 = arith.constant 0 : i32
      %259 = arith.addi %211, %c0_i32_167 : i32
      %c1_i32_168 = arith.constant 1 : i32
      %260 = arith.addi %259, %c1_i32_168 : i32
      %261 = arith.index_cast %260 : i32 to index
      %c0_169 = arith.constant 0 : index
      %c2_170 = arith.constant 2 : index
      %262 = vector.load %arg14[%261, %c0_169, %c2_170] : memref<6x64x6xf32, #tpu.memory_space<vmem>>, vector<1x64x4xf32>
      %263 = vector.shape_cast %262 : vector<1x64x4xf32> to vector<64x4xf32>
      %264 = tpu.concatenate %248, %253, %258, %263 in 0 : vector<64x4xf32>, vector<64x4xf32>, vector<64x4xf32>, vector<64x4xf32> -> vector<256x4xf32>
      %265 = arith.truncf %264 : vector<256x4xf32> to vector<256x4xbf16>
      %c0_171 = arith.constant 0 : index
      %c1_172 = arith.constant 1 : index
      %c0_173 = arith.constant 0 : index
      %c0_174 = arith.constant 0 : index
      %266 = vector.load %arg3[%c0_171, %c1_172, %c0_173, %c0_174] : memref<2x2x64x256xbf16, #tpu.memory_space<vmem>>, vector<1x1x64x256xbf16>
      %267 = vector.shape_cast %266 : vector<1x1x64x256xbf16> to vector<64x256xbf16>
      %cst_175 = arith.constant dense<0.000000e+00> : vector<64x4xf32>
      %268 = tpu.matmul %267, %265, %cst_175 {dimension_numbers = #tpu.dot_dimension_numbers<[1], [0], [0], [1], [0, 0, 1, 1], [], []>} : vector<64x256xbf16>, vector<256x4xbf16>, vector<64x4xf32> -> vector<64x4xf32>
      %269 = vector.broadcast %92 : vector<64x1xf32> to vector<64x4xf32>
      %270 = arith.addf %268, %269 : vector<64x4xf32>
      %cst_176 = arith.constant 0.000000e+00 : f32
      %271 = vector.broadcast %cst_176 : f32 to vector<64x4xf32>
      %272 = arith.maximumf %270, %271 : vector<64x4xf32>
      %cst_177 = arith.constant dense<0.000000e+00> : vector<64x10xf32>
      %273 = tpu.matmul %272, %91, %cst_177 {dimension_numbers = #tpu.dot_dimension_numbers<[1], [0], [0], [1], [0, 0, 1, 1], [], []>} : vector<64x4xf32>, vector<4x10xf32>, vector<64x10xf32> -> vector<64x10xf32>
      %274 = arith.addf %243, %273 : vector<64x10xf32>
      %c2_i32_178 = arith.constant 2 : i32
      %275 = arith.muli %c2_i32_178, %211 : i32
      %c0_i32_179 = arith.constant 0 : i32
      %276 = arith.addi %275, %c0_i32_179 : i32
      %c1_i32_180 = arith.constant 1 : i32
      %277 = arith.addi %c1_i32_180, %276 : i32
      %278 = arith.index_cast %277 : i32 to index
      %c0_181 = arith.constant 0 : index
      %c0_182 = arith.constant 0 : index
      %279 = vector.load %arg15[%278, %c0_181, %c0_182] : memref<10x64x10xf32, #tpu.memory_space<vmem>>, vector<1x64x10xf32>
      %280 = vector.shape_cast %279 : vector<1x64x10xf32> to vector<64x10xf32>
      %281 = vector.shape_cast %274 : vector<64x10xf32> to vector<1x64x10xf32>
      tpu.vector_store %arg15[%278, %c0_181, %c0_182], %281 {strides = array<i32>} : memref<10x64x10xf32, #tpu.memory_space<vmem>>, vector<1x64x10xf32>,
      %cst_183 = arith.constant 0.000000e+00 : f32
      %282 = vector.broadcast %cst_183 : f32 to vector<64x10xf32>
      %c1_i32_184 = arith.constant 1 : i32
      %283 = arith.addi %211, %c1_i32_184 : i32
      %c0_i32_185 = arith.constant 0 : i32
      %284 = arith.addi %283, %c0_i32_185 : i32
      %285 = arith.index_cast %284 : i32 to index
      %c0_186 = arith.constant 0 : index
      %c0_187 = arith.constant 0 : index
      %286 = vector.load %arg14[%285, %c0_186, %c0_187] : memref<6x64x6xf32, #tpu.memory_space<vmem>>, vector<1x64x4xf32>
      %287 = vector.shape_cast %286 : vector<1x64x4xf32> to vector<64x4xf32>
      %c1_i32_188 = arith.constant 1 : i32
      %288 = arith.addi %211, %c1_i32_188 : i32
      %c0_i32_189 = arith.constant 0 : i32
      %289 = arith.addi %288, %c0_i32_189 : i32
      %290 = arith.index_cast %289 : i32 to index
      %c0_190 = arith.constant 0 : index
      %c1_191 = arith.constant 1 : index
      %291 = vector.load %arg14[%290, %c0_190, %c1_191] : memref<6x64x6xf32, #tpu.memory_space<vmem>>, vector<1x64x4xf32>
      %292 = vector.shape_cast %291 : vector<1x64x4xf32> to vector<64x4xf32>
      %c1_i32_192 = arith.constant 1 : i32
      %293 = arith.addi %211, %c1_i32_192 : i32
      %c1_i32_193 = arith.constant 1 : i32
      %294 = arith.addi %293, %c1_i32_193 : i32
      %295 = arith.index_cast %294 : i32 to index
      %c0_194 = arith.constant 0 : index
      %c0_195 = arith.constant 0 : index
      %296 = vector.load %arg14[%295, %c0_194, %c0_195] : memref<6x64x6xf32, #tpu.memory_space<vmem>>, vector<1x64x4xf32>
      %297 = vector.shape_cast %296 : vector<1x64x4xf32> to vector<64x4xf32>
      %c1_i32_196 = arith.constant 1 : i32
      %298 = arith.addi %211, %c1_i32_196 : i32
      %c1_i32_197 = arith.constant 1 : i32
      %299 = arith.addi %298, %c1_i32_197 : i32
      %300 = arith.index_cast %299 : i32 to index
      %c0_198 = arith.constant 0 : index
      %c1_199 = arith.constant 1 : index
      %301 = vector.load %arg14[%300, %c0_198, %c1_199] : memref<6x64x6xf32, #tpu.memory_space<vmem>>, vector<1x64x4xf32>
      %302 = vector.shape_cast %301 : vector<1x64x4xf32> to vector<64x4xf32>
      %303 = tpu.concatenate %287, %292, %297, %302 in 0 : vector<64x4xf32>, vector<64x4xf32>, vector<64x4xf32>, vector<64x4xf32> -> vector<256x4xf32>
      %304 = arith.truncf %303 : vector<256x4xf32> to vector<256x4xbf16>
      %c1_200 = arith.constant 1 : index
      %c0_201 = arith.constant 0 : index
      %c0_202 = arith.constant 0 : index
      %c0_203 = arith.constant 0 : index
      %305 = vector.load %arg3[%c1_200, %c0_201, %c0_202, %c0_203] : memref<2x2x64x256xbf16, #tpu.memory_space<vmem>>, vector<1x1x64x256xbf16>
      %306 = vector.shape_cast %305 : vector<1x1x64x256xbf16> to vector<64x256xbf16>
      %cst_204 = arith.constant dense<0.000000e+00> : vector<64x4xf32>
      %307 = tpu.matmul %306, %304, %cst_204 {dimension_numbers = #tpu.dot_dimension_numbers<[1], [0], [0], [1], [0, 0, 1, 1], [], []>} : vector<64x256xbf16>, vector<256x4xbf16>, vector<64x4xf32> -> vector<64x4xf32>
      %308 = vector.broadcast %92 : vector<64x1xf32> to vector<64x4xf32>
      %309 = arith.addf %307, %308 : vector<64x4xf32>
      %cst_205 = arith.constant 0.000000e+00 : f32
      %310 = vector.broadcast %cst_205 : f32 to vector<64x4xf32>
      %311 = arith.maximumf %309, %310 : vector<64x4xf32>
      %cst_206 = arith.constant dense<0.000000e+00> : vector<64x10xf32>
      %312 = tpu.matmul %311, %82, %cst_206 {dimension_numbers = #tpu.dot_dimension_numbers<[1], [0], [0], [1], [0, 0, 1, 1], [], []>} : vector<64x4xf32>, vector<4x10xf32>, vector<64x10xf32> -> vector<64x10xf32>
      %313 = arith.addf %282, %312 : vector<64x10xf32>
      %c1_i32_207 = arith.constant 1 : i32
      %314 = arith.addi %211, %c1_i32_207 : i32
      %c0_i32_208 = arith.constant 0 : i32
      %315 = arith.addi %314, %c0_i32_208 : i32
      %316 = arith.index_cast %315 : i32 to index
      %c0_209 = arith.constant 0 : index
      %c1_210 = arith.constant 1 : index
      %317 = vector.load %arg14[%316, %c0_209, %c1_210] : memref<6x64x6xf32, #tpu.memory_space<vmem>>, vector<1x64x4xf32>
      %318 = vector.shape_cast %317 : vector<1x64x4xf32> to vector<64x4xf32>
      %c1_i32_211 = arith.constant 1 : i32
      %319 = arith.addi %211, %c1_i32_211 : i32
      %c0_i32_212 = arith.constant 0 : i32
      %320 = arith.addi %319, %c0_i32_212 : i32
      %321 = arith.index_cast %320 : i32 to index
      %c0_213 = arith.constant 0 : index
      %c2_214 = arith.constant 2 : index
      %322 = vector.load %arg14[%321, %c0_213, %c2_214] : memref<6x64x6xf32, #tpu.memory_space<vmem>>, vector<1x64x4xf32>
      %323 = vector.shape_cast %322 : vector<1x64x4xf32> to vector<64x4xf32>
      %c1_i32_215 = arith.constant 1 : i32
      %324 = arith.addi %211, %c1_i32_215 : i32
      %c1_i32_216 = arith.constant 1 : i32
      %325 = arith.addi %324, %c1_i32_216 : i32
      %326 = arith.index_cast %325 : i32 to index
      %c0_217 = arith.constant 0 : index
      %c1_218 = arith.constant 1 : index
      %327 = vector.load %arg14[%326, %c0_217, %c1_218] : memref<6x64x6xf32, #tpu.memory_space<vmem>>, vector<1x64x4xf32>
      %328 = vector.shape_cast %327 : vector<1x64x4xf32> to vector<64x4xf32>
      %c1_i32_219 = arith.constant 1 : i32
      %329 = arith.addi %211, %c1_i32_219 : i32
      %c1_i32_220 = arith.constant 1 : i32
      %330 = arith.addi %329, %c1_i32_220 : i32
      %331 = arith.index_cast %330 : i32 to index
      %c0_221 = arith.constant 0 : index
      %c2_222 = arith.constant 2 : index
      %332 = vector.load %arg14[%331, %c0_221, %c2_222] : memref<6x64x6xf32, #tpu.memory_space<vmem>>, vector<1x64x4xf32>
      %333 = vector.shape_cast %332 : vector<1x64x4xf32> to vector<64x4xf32>
      %334 = tpu.concatenate %318, %323, %328, %333 in 0 : vector<64x4xf32>, vector<64x4xf32>, vector<64x4xf32>, vector<64x4xf32> -> vector<256x4xf32>
      %335 = arith.truncf %334 : vector<256x4xf32> to vector<256x4xbf16>
      %c1_223 = arith.constant 1 : index
      %c1_224 = arith.constant 1 : index
      %c0_225 = arith.constant 0 : index
      %c0_226 = arith.constant 0 : index
      %336 = vector.load %arg3[%c1_223, %c1_224, %c0_225, %c0_226] : memref<2x2x64x256xbf16, #tpu.memory_space<vmem>>, vector<1x1x64x256xbf16>
      %337 = vector.shape_cast %336 : vector<1x1x64x256xbf16> to vector<64x256xbf16>
      %cst_227 = arith.constant dense<0.000000e+00> : vector<64x4xf32>
      %338 = tpu.matmul %337, %335, %cst_227 {dimension_numbers = #tpu.dot_dimension_numbers<[1], [0], [0], [1], [0, 0, 1, 1], [], []>} : vector<64x256xbf16>, vector<256x4xbf16>, vector<64x4xf32> -> vector<64x4xf32>
      %339 = vector.broadcast %92 : vector<64x1xf32> to vector<64x4xf32>
      %340 = arith.addf %338, %339 : vector<64x4xf32>
      %cst_228 = arith.constant 0.000000e+00 : f32
      %341 = vector.broadcast %cst_228 : f32 to vector<64x4xf32>
      %342 = arith.maximumf %340, %341 : vector<64x4xf32>
      %cst_229 = arith.constant dense<0.000000e+00> : vector<64x10xf32>
      %343 = tpu.matmul %342, %91, %cst_229 {dimension_numbers = #tpu.dot_dimension_numbers<[1], [0], [0], [1], [0, 0, 1, 1], [], []>} : vector<64x4xf32>, vector<4x10xf32>, vector<64x10xf32> -> vector<64x10xf32>
      %344 = arith.addf %313, %343 : vector<64x10xf32>
      %c2_i32_230 = arith.constant 2 : i32
      %345 = arith.muli %c2_i32_230, %211 : i32
      %c1_i32_231 = arith.constant 1 : i32
      %346 = arith.addi %345, %c1_i32_231 : i32
      %c1_i32_232 = arith.constant 1 : i32
      %347 = arith.addi %c1_i32_232, %346 : i32
      %348 = arith.index_cast %347 : i32 to index
      %c0_233 = arith.constant 0 : index
      %c0_234 = arith.constant 0 : index
      %349 = vector.load %arg15[%348, %c0_233, %c0_234] : memref<10x64x10xf32, #tpu.memory_space<vmem>>, vector<1x64x10xf32>
      %350 = vector.shape_cast %349 : vector<1x64x10xf32> to vector<64x10xf32>
      %351 = vector.shape_cast %344 : vector<64x10xf32> to vector<1x64x10xf32>
      tpu.vector_store %arg15[%348, %c0_233, %c0_234], %351 {strides = array<i32>} : memref<10x64x10xf32, #tpu.memory_space<vmem>>, vector<1x64x10xf32>,
    }
    %c4_i32_66 = arith.constant 4 : i32
    %101 = tpu.iota {dimensions = array<i32: 0>} : vector<8x18xi32>
    %102 = tpu.iota {dimensions = array<i32: 1>} : vector<8x18xi32>
    %c2_i32_67 = arith.constant 2 : i32
    %103 = vector.broadcast %c2_i32_67 : i32 to vector<8x18xi32>
    %104 = arith.muli %103, %101 : vector<8x18xi32>
    %c1_i32_68 = arith.constant 1 : i32
    %105 = vector.broadcast %c1_i32_68 : i32 to vector<8x18xi32>
    %106 = arith.addi %104, %105 : vector<8x18xi32>
    %c0_i32_69 = arith.constant 0 : i32
    %107 = vector.broadcast %c0_i32_69 : i32 to vector<8x18xi32>
    %108 = arith.addi %106, %107 : vector<8x18xi32>
    %109 = arith.cmpi eq, %102, %108 : vector<8x18xi32>
    %110 = arith.extui %109 : vector<8x18xi1> to vector<8x18xi32>
    %111 = arith.sitofp %110 : vector<8x18xi32> to vector<8x18xf32>
    %c2_i32_70 = arith.constant 2 : i32
    %112 = vector.broadcast %c2_i32_70 : i32 to vector<8x18xi32>
    %113 = arith.muli %112, %101 : vector<8x18xi32>
    %c1_i32_71 = arith.constant 1 : i32
    %114 = vector.broadcast %c1_i32_71 : i32 to vector<8x18xi32>
    %115 = arith.addi %113, %114 : vector<8x18xi32>
    %c1_i32_72 = arith.constant 1 : i32
    %116 = vector.broadcast %c1_i32_72 : i32 to vector<8x18xi32>
    %117 = arith.addi %115, %116 : vector<8x18xi32>
    %118 = arith.cmpi eq, %102, %117 : vector<8x18xi32>
    %119 = arith.extui %118 : vector<8x18xi1> to vector<8x18xi32>
    %120 = arith.sitofp %119 : vector<8x18xi32> to vector<8x18xf32>
    %c0_73 = arith.constant 0 : index
    %c0_74 = arith.constant 0 : index
    %121 = vector.load %arg6[%c0_73, %c0_74] : memref<32x1xf32, #tpu.memory_space<vmem>>, vector<32x1xf32>
    %cst_75 = arith.constant 0.000000e+00 : f32
    %122 = vector.broadcast %cst_75 : f32 to vector<32x18xf32>
    %c0_76 = arith.constant 0 : index
    %c0_77 = arith.constant 0 : index
    %c0_78 = arith.constant 0 : index
    %123 = vector.load %arg16[%c0_76, %c0_77, %c0_78] : memref<18x32x18xf32, #tpu.memory_space<vmem>>, vector<1x32x18xf32>
    %124 = vector.shape_cast %123 : vector<1x32x18xf32> to vector<32x18xf32>
    %125 = vector.shape_cast %122 : vector<32x18xf32> to vector<1x32x18xf32>
    tpu.vector_store %arg16[%c0_76, %c0_77, %c0_78], %125 {strides = array<i32>} : memref<18x32x18xf32, #tpu.memory_space<vmem>>, vector<1x32x18xf32>,
    %c17 = arith.constant 17 : index
    %c0_79 = arith.constant 0 : index
    %c0_80 = arith.constant 0 : index
    %126 = vector.load %arg16[%c17, %c0_79, %c0_80] : memref<18x32x18xf32, #tpu.memory_space<vmem>>, vector<1x32x18xf32>
    %127 = vector.shape_cast %126 : vector<1x32x18xf32> to vector<32x18xf32>
    %128 = vector.shape_cast %122 : vector<32x18xf32> to vector<1x32x18xf32>
    tpu.vector_store %arg16[%c17, %c0_79, %c0_80], %128 {strides = array<i32>} : memref<18x32x18xf32, #tpu.memory_space<vmem>>, vector<1x32x18xf32>,
    %c0_i32_81 = arith.constant 0 : i32
    %c8_i32 = arith.constant 8 : i32
    %129 = arith.addi %c0_i32_81, %c8_i32 : i32
    %c1_i32_82 = arith.constant 1 : i32
    scf.for %arg19 = %c0_i32_81 to %129 step %c1_i32_82  : i32 {
      %c1_i32_129 = arith.constant 1 : i32
      %210 = arith.muli %arg19, %c1_i32_129 : i32
      %c0_i32_130 = arith.constant 0 : i32
      %211 = arith.addi %c0_i32_130, %210 : i32
      %cst_131 = arith.constant 0.000000e+00 : f32
      %212 = vector.broadcast %cst_131 : f32 to vector<32x18xf32>
      %c0_i32_132 = arith.constant 0 : i32
      %213 = arith.addi %211, %c0_i32_132 : i32
      %c0_i32_133 = arith.constant 0 : i32
      %214 = arith.addi %213, %c0_i32_133 : i32
      %215 = arith.index_cast %214 : i32 to index
      %c0_134 = arith.constant 0 : index
      %c0_135 = arith.constant 0 : index
      %216 = vector.load %arg15[%215, %c0_134, %c0_135] : memref<10x64x10xf32, #tpu.memory_space<vmem>>, vector<1x64x8xf32>
      %217 = vector.shape_cast %216 : vector<1x64x8xf32> to vector<64x8xf32>
      %c0_i32_136 = arith.constant 0 : i32
      %218 = arith.addi %211, %c0_i32_136 : i32
      %c0_i32_137 = arith.constant 0 : i32
      %219 = arith.addi %218, %c0_i32_137 : i32
      %220 = arith.index_cast %219 : i32 to index
      %c0_138 = arith.constant 0 : index
      %c1_139 = arith.constant 1 : index
      %221 = vector.load %arg15[%220, %c0_138, %c1_139] : memref<10x64x10xf32, #tpu.memory_space<vmem>>, vector<1x64x8xf32>
      %222 = vector.shape_cast %221 : vector<1x64x8xf32> to vector<64x8xf32>
      %c0_i32_140 = arith.constant 0 : i32
      %223 = arith.addi %211, %c0_i32_140 : i32
      %c1_i32_141 = arith.constant 1 : i32
      %224 = arith.addi %223, %c1_i32_141 : i32
      %225 = arith.index_cast %224 : i32 to index
      %c0_142 = arith.constant 0 : index
      %c0_143 = arith.constant 0 : index
      %226 = vector.load %arg15[%225, %c0_142, %c0_143] : memref<10x64x10xf32, #tpu.memory_space<vmem>>, vector<1x64x8xf32>
      %227 = vector.shape_cast %226 : vector<1x64x8xf32> to vector<64x8xf32>
      %c0_i32_144 = arith.constant 0 : i32
      %228 = arith.addi %211, %c0_i32_144 : i32
      %c1_i32_145 = arith.constant 1 : i32
      %229 = arith.addi %228, %c1_i32_145 : i32
      %230 = arith.index_cast %229 : i32 to index
      %c0_146 = arith.constant 0 : index
      %c1_147 = arith.constant 1 : index
      %231 = vector.load %arg15[%230, %c0_146, %c1_147] : memref<10x64x10xf32, #tpu.memory_space<vmem>>, vector<1x64x8xf32>
      %232 = vector.shape_cast %231 : vector<1x64x8xf32> to vector<64x8xf32>
      %233 = tpu.concatenate %217, %222, %227, %232 in 0 : vector<64x8xf32>, vector<64x8xf32>, vector<64x8xf32>, vector<64x8xf32> -> vector<256x8xf32>
      %234 = arith.truncf %233 : vector<256x8xf32> to vector<256x8xbf16>
      %c0_148 = arith.constant 0 : index
      %c0_149 = arith.constant 0 : index
      %c0_150 = arith.constant 0 : index
      %c0_151 = arith.constant 0 : index
      %235 = vector.load %arg5[%c0_148, %c0_149, %c0_150, %c0_151] : memref<2x2x32x256xbf16, #tpu.memory_space<vmem>>, vector<1x1x32x256xbf16>
      %236 = vector.shape_cast %235 : vector<1x1x32x256xbf16> to vector<32x256xbf16>
      %cst_152 = arith.constant dense<0.000000e+00> : vector<32x8xf32>
      %237 = tpu.matmul %236, %234, %cst_152 {dimension_numbers = #tpu.dot_dimension_numbers<[1], [0], [0], [1], [0, 0, 1, 1], [], []>} : vector<32x256xbf16>, vector<256x8xbf16>, vector<32x8xf32> -> vector<32x8xf32>
      %238 = vector.broadcast %121 : vector<32x1xf32> to vector<32x8xf32>
      %239 = arith.addf %237, %238 : vector<32x8xf32>
      %cst_153 = arith.constant 0.000000e+00 : f32
      %240 = vector.broadcast %cst_153 : f32 to vector<32x8xf32>
      %241 = arith.maximumf %239, %240 : vector<32x8xf32>
      %cst_154 = arith.constant dense<0.000000e+00> : vector<32x18xf32>
      %242 = tpu.matmul %241, %111, %cst_154 {dimension_numbers = #tpu.dot_dimension_numbers<[1], [0], [0], [1], [0, 0, 1, 1], [], []>} : vector<32x8xf32>, vector<8x18xf32>, vector<32x18xf32> -> vector<32x18xf32>
      %243 = arith.addf %212, %242 : vector<32x18xf32>
      %c0_i32_155 = arith.constant 0 : i32
      %244 = arith.addi %211, %c0_i32_155 : i32
      %c0_i32_156 = arith.constant 0 : i32
      %245 = arith.addi %244, %c0_i32_156 : i32
      %246 = arith.index_cast %245 : i32 to index
      %c0_157 = arith.constant 0 : index
      %c1_158 = arith.constant 1 : index
      %247 = vector.load %arg15[%246, %c0_157, %c1_158] : memref<10x64x10xf32, #tpu.memory_space<vmem>>, vector<1x64x8xf32>
      %248 = vector.shape_cast %247 : vector<1x64x8xf32> to vector<64x8xf32>
      %c0_i32_159 = arith.constant 0 : i32
      %249 = arith.addi %211, %c0_i32_159 : i32
      %c0_i32_160 = arith.constant 0 : i32
      %250 = arith.addi %249, %c0_i32_160 : i32
      %251 = arith.index_cast %250 : i32 to index
      %c0_161 = arith.constant 0 : index
      %c2_162 = arith.constant 2 : index
      %252 = vector.load %arg15[%251, %c0_161, %c2_162] : memref<10x64x10xf32, #tpu.memory_space<vmem>>, vector<1x64x8xf32>
      %253 = vector.shape_cast %252 : vector<1x64x8xf32> to vector<64x8xf32>
      %c0_i32_163 = arith.constant 0 : i32
      %254 = arith.addi %211, %c0_i32_163 : i32
      %c1_i32_164 = arith.constant 1 : i32
      %255 = arith.addi %254, %c1_i32_164 : i32
      %256 = arith.index_cast %255 : i32 to index
      %c0_165 = arith.constant 0 : index
      %c1_166 = arith.constant 1 : index
      %257 = vector.load %arg15[%256, %c0_165, %c1_166] : memref<10x64x10xf32, #tpu.memory_space<vmem>>, vector<1x64x8xf32>
      %258 = vector.shape_cast %257 : vector<1x64x8xf32> to vector<64x8xf32>
      %c0_i32_167 = arith.constant 0 : i32
      %259 = arith.addi %211, %c0_i32_167 : i32
      %c1_i32_168 = arith.constant 1 : i32
      %260 = arith.addi %259, %c1_i32_168 : i32
      %261 = arith.index_cast %260 : i32 to index
      %c0_169 = arith.constant 0 : index
      %c2_170 = arith.constant 2 : index
      %262 = vector.load %arg15[%261, %c0_169, %c2_170] : memref<10x64x10xf32, #tpu.memory_space<vmem>>, vector<1x64x8xf32>
      %263 = vector.shape_cast %262 : vector<1x64x8xf32> to vector<64x8xf32>
      %264 = tpu.concatenate %248, %253, %258, %263 in 0 : vector<64x8xf32>, vector<64x8xf32>, vector<64x8xf32>, vector<64x8xf32> -> vector<256x8xf32>
      %265 = arith.truncf %264 : vector<256x8xf32> to vector<256x8xbf16>
      %c0_171 = arith.constant 0 : index
      %c1_172 = arith.constant 1 : index
      %c0_173 = arith.constant 0 : index
      %c0_174 = arith.constant 0 : index
      %266 = vector.load %arg5[%c0_171, %c1_172, %c0_173, %c0_174] : memref<2x2x32x256xbf16, #tpu.memory_space<vmem>>, vector<1x1x32x256xbf16>
      %267 = vector.shape_cast %266 : vector<1x1x32x256xbf16> to vector<32x256xbf16>
      %cst_175 = arith.constant dense<0.000000e+00> : vector<32x8xf32>
      %268 = tpu.matmul %267, %265, %cst_175 {dimension_numbers = #tpu.dot_dimension_numbers<[1], [0], [0], [1], [0, 0, 1, 1], [], []>} : vector<32x256xbf16>, vector<256x8xbf16>, vector<32x8xf32> -> vector<32x8xf32>
      %269 = vector.broadcast %121 : vector<32x1xf32> to vector<32x8xf32>
      %270 = arith.addf %268, %269 : vector<32x8xf32>
      %cst_176 = arith.constant 0.000000e+00 : f32
      %271 = vector.broadcast %cst_176 : f32 to vector<32x8xf32>
      %272 = arith.maximumf %270, %271 : vector<32x8xf32>
      %cst_177 = arith.constant dense<0.000000e+00> : vector<32x18xf32>
      %273 = tpu.matmul %272, %120, %cst_177 {dimension_numbers = #tpu.dot_dimension_numbers<[1], [0], [0], [1], [0, 0, 1, 1], [], []>} : vector<32x8xf32>, vector<8x18xf32>, vector<32x18xf32> -> vector<32x18xf32>
      %274 = arith.addf %243, %273 : vector<32x18xf32>
      %c2_i32_178 = arith.constant 2 : i32
      %275 = arith.muli %c2_i32_178, %211 : i32
      %c0_i32_179 = arith.constant 0 : i32
      %276 = arith.addi %275, %c0_i32_179 : i32
      %c1_i32_180 = arith.constant 1 : i32
      %277 = arith.addi %c1_i32_180, %276 : i32
      %278 = arith.index_cast %277 : i32 to index
      %c0_181 = arith.constant 0 : index
      %c0_182 = arith.constant 0 : index
      %279 = vector.load %arg16[%278, %c0_181, %c0_182] : memref<18x32x18xf32, #tpu.memory_space<vmem>>, vector<1x32x18xf32>
      %280 = vector.shape_cast %279 : vector<1x32x18xf32> to vector<32x18xf32>
      %281 = vector.shape_cast %274 : vector<32x18xf32> to vector<1x32x18xf32>
      tpu.vector_store %arg16[%278, %c0_181, %c0_182], %281 {strides = array<i32>} : memref<18x32x18xf32, #tpu.memory_space<vmem>>, vector<1x32x18xf32>,
      %cst_183 = arith.constant 0.000000e+00 : f32
      %282 = vector.broadcast %cst_183 : f32 to vector<32x18xf32>
      %c1_i32_184 = arith.constant 1 : i32
      %283 = arith.addi %211, %c1_i32_184 : i32
      %c0_i32_185 = arith.constant 0 : i32
      %284 = arith.addi %283, %c0_i32_185 : i32
      %285 = arith.index_cast %284 : i32 to index
      %c0_186 = arith.constant 0 : index
      %c0_187 = arith.constant 0 : index
      %286 = vector.load %arg15[%285, %c0_186, %c0_187] : memref<10x64x10xf32, #tpu.memory_space<vmem>>, vector<1x64x8xf32>
      %287 = vector.shape_cast %286 : vector<1x64x8xf32> to vector<64x8xf32>
      %c1_i32_188 = arith.constant 1 : i32
      %288 = arith.addi %211, %c1_i32_188 : i32
      %c0_i32_189 = arith.constant 0 : i32
      %289 = arith.addi %288, %c0_i32_189 : i32
      %290 = arith.index_cast %289 : i32 to index
      %c0_190 = arith.constant 0 : index
      %c1_191 = arith.constant 1 : index
      %291 = vector.load %arg15[%290, %c0_190, %c1_191] : memref<10x64x10xf32, #tpu.memory_space<vmem>>, vector<1x64x8xf32>
      %292 = vector.shape_cast %291 : vector<1x64x8xf32> to vector<64x8xf32>
      %c1_i32_192 = arith.constant 1 : i32
      %293 = arith.addi %211, %c1_i32_192 : i32
      %c1_i32_193 = arith.constant 1 : i32
      %294 = arith.addi %293, %c1_i32_193 : i32
      %295 = arith.index_cast %294 : i32 to index
      %c0_194 = arith.constant 0 : index
      %c0_195 = arith.constant 0 : index
      %296 = vector.load %arg15[%295, %c0_194, %c0_195] : memref<10x64x10xf32, #tpu.memory_space<vmem>>, vector<1x64x8xf32>
      %297 = vector.shape_cast %296 : vector<1x64x8xf32> to vector<64x8xf32>
      %c1_i32_196 = arith.constant 1 : i32
      %298 = arith.addi %211, %c1_i32_196 : i32
      %c1_i32_197 = arith.constant 1 : i32
      %299 = arith.addi %298, %c1_i32_197 : i32
      %300 = arith.index_cast %299 : i32 to index
      %c0_198 = arith.constant 0 : index
      %c1_199 = arith.constant 1 : index
      %301 = vector.load %arg15[%300, %c0_198, %c1_199] : memref<10x64x10xf32, #tpu.memory_space<vmem>>, vector<1x64x8xf32>
      %302 = vector.shape_cast %301 : vector<1x64x8xf32> to vector<64x8xf32>
      %303 = tpu.concatenate %287, %292, %297, %302 in 0 : vector<64x8xf32>, vector<64x8xf32>, vector<64x8xf32>, vector<64x8xf32> -> vector<256x8xf32>
      %304 = arith.truncf %303 : vector<256x8xf32> to vector<256x8xbf16>
      %c1_200 = arith.constant 1 : index
      %c0_201 = arith.constant 0 : index
      %c0_202 = arith.constant 0 : index
      %c0_203 = arith.constant 0 : index
      %305 = vector.load %arg5[%c1_200, %c0_201, %c0_202, %c0_203] : memref<2x2x32x256xbf16, #tpu.memory_space<vmem>>, vector<1x1x32x256xbf16>
      %306 = vector.shape_cast %305 : vector<1x1x32x256xbf16> to vector<32x256xbf16>
      %cst_204 = arith.constant dense<0.000000e+00> : vector<32x8xf32>
      %307 = tpu.matmul %306, %304, %cst_204 {dimension_numbers = #tpu.dot_dimension_numbers<[1], [0], [0], [1], [0, 0, 1, 1], [], []>} : vector<32x256xbf16>, vector<256x8xbf16>, vector<32x8xf32> -> vector<32x8xf32>
      %308 = vector.broadcast %121 : vector<32x1xf32> to vector<32x8xf32>
      %309 = arith.addf %307, %308 : vector<32x8xf32>
      %cst_205 = arith.constant 0.000000e+00 : f32
      %310 = vector.broadcast %cst_205 : f32 to vector<32x8xf32>
      %311 = arith.maximumf %309, %310 : vector<32x8xf32>
      %cst_206 = arith.constant dense<0.000000e+00> : vector<32x18xf32>
      %312 = tpu.matmul %311, %111, %cst_206 {dimension_numbers = #tpu.dot_dimension_numbers<[1], [0], [0], [1], [0, 0, 1, 1], [], []>} : vector<32x8xf32>, vector<8x18xf32>, vector<32x18xf32> -> vector<32x18xf32>
      %313 = arith.addf %282, %312 : vector<32x18xf32>
      %c1_i32_207 = arith.constant 1 : i32
      %314 = arith.addi %211, %c1_i32_207 : i32
      %c0_i32_208 = arith.constant 0 : i32
      %315 = arith.addi %314, %c0_i32_208 : i32
      %316 = arith.index_cast %315 : i32 to index
      %c0_209 = arith.constant 0 : index
      %c1_210 = arith.constant 1 : index
      %317 = vector.load %arg15[%316, %c0_209, %c1_210] : memref<10x64x10xf32, #tpu.memory_space<vmem>>, vector<1x64x8xf32>
      %318 = vector.shape_cast %317 : vector<1x64x8xf32> to vector<64x8xf32>
      %c1_i32_211 = arith.constant 1 : i32
      %319 = arith.addi %211, %c1_i32_211 : i32
      %c0_i32_212 = arith.constant 0 : i32
      %320 = arith.addi %319, %c0_i32_212 : i32
      %321 = arith.index_cast %320 : i32 to index
      %c0_213 = arith.constant 0 : index
      %c2_214 = arith.constant 2 : index
      %322 = vector.load %arg15[%321, %c0_213, %c2_214] : memref<10x64x10xf32, #tpu.memory_space<vmem>>, vector<1x64x8xf32>
      %323 = vector.shape_cast %322 : vector<1x64x8xf32> to vector<64x8xf32>
      %c1_i32_215 = arith.constant 1 : i32
      %324 = arith.addi %211, %c1_i32_215 : i32
      %c1_i32_216 = arith.constant 1 : i32
      %325 = arith.addi %324, %c1_i32_216 : i32
      %326 = arith.index_cast %325 : i32 to index
      %c0_217 = arith.constant 0 : index
      %c1_218 = arith.constant 1 : index
      %327 = vector.load %arg15[%326, %c0_217, %c1_218] : memref<10x64x10xf32, #tpu.memory_space<vmem>>, vector<1x64x8xf32>
      %328 = vector.shape_cast %327 : vector<1x64x8xf32> to vector<64x8xf32>
      %c1_i32_219 = arith.constant 1 : i32
      %329 = arith.addi %211, %c1_i32_219 : i32
      %c1_i32_220 = arith.constant 1 : i32
      %330 = arith.addi %329, %c1_i32_220 : i32
      %331 = arith.index_cast %330 : i32 to index
      %c0_221 = arith.constant 0 : index
      %c2_222 = arith.constant 2 : index
      %332 = vector.load %arg15[%331, %c0_221, %c2_222] : memref<10x64x10xf32, #tpu.memory_space<vmem>>, vector<1x64x8xf32>
      %333 = vector.shape_cast %332 : vector<1x64x8xf32> to vector<64x8xf32>
      %334 = tpu.concatenate %318, %323, %328, %333 in 0 : vector<64x8xf32>, vector<64x8xf32>, vector<64x8xf32>, vector<64x8xf32> -> vector<256x8xf32>
      %335 = arith.truncf %334 : vector<256x8xf32> to vector<256x8xbf16>
      %c1_223 = arith.constant 1 : index
      %c1_224 = arith.constant 1 : index
      %c0_225 = arith.constant 0 : index
      %c0_226 = arith.constant 0 : index
      %336 = vector.load %arg5[%c1_223, %c1_224, %c0_225, %c0_226] : memref<2x2x32x256xbf16, #tpu.memory_space<vmem>>, vector<1x1x32x256xbf16>
      %337 = vector.shape_cast %336 : vector<1x1x32x256xbf16> to vector<32x256xbf16>
      %cst_227 = arith.constant dense<0.000000e+00> : vector<32x8xf32>
      %338 = tpu.matmul %337, %335, %cst_227 {dimension_numbers = #tpu.dot_dimension_numbers<[1], [0], [0], [1], [0, 0, 1, 1], [], []>} : vector<32x256xbf16>, vector<256x8xbf16>, vector<32x8xf32> -> vector<32x8xf32>
      %339 = vector.broadcast %121 : vector<32x1xf32> to vector<32x8xf32>
      %340 = arith.addf %338, %339 : vector<32x8xf32>
      %cst_228 = arith.constant 0.000000e+00 : f32
      %341 = vector.broadcast %cst_228 : f32 to vector<32x8xf32>
      %342 = arith.maximumf %340, %341 : vector<32x8xf32>
      %cst_229 = arith.constant dense<0.000000e+00> : vector<32x18xf32>
      %343 = tpu.matmul %342, %120, %cst_229 {dimension_numbers = #tpu.dot_dimension_numbers<[1], [0], [0], [1], [0, 0, 1, 1], [], []>} : vector<32x8xf32>, vector<8x18xf32>, vector<32x18xf32> -> vector<32x18xf32>
      %344 = arith.addf %313, %343 : vector<32x18xf32>
      %c2_i32_230 = arith.constant 2 : i32
      %345 = arith.muli %c2_i32_230, %211 : i32
      %c1_i32_231 = arith.constant 1 : i32
      %346 = arith.addi %345, %c1_i32_231 : i32
      %c1_i32_232 = arith.constant 1 : i32
      %347 = arith.addi %c1_i32_232, %346 : i32
      %348 = arith.index_cast %347 : i32 to index
      %c0_233 = arith.constant 0 : index
      %c0_234 = arith.constant 0 : index
      %349 = vector.load %arg16[%348, %c0_233, %c0_234] : memref<18x32x18xf32, #tpu.memory_space<vmem>>, vector<1x32x18xf32>
      %350 = vector.shape_cast %349 : vector<1x32x18xf32> to vector<32x18xf32>
      %351 = vector.shape_cast %344 : vector<32x18xf32> to vector<1x32x18xf32>
      tpu.vector_store %arg16[%348, %c0_233, %c0_234], %351 {strides = array<i32>} : memref<18x32x18xf32, #tpu.memory_space<vmem>>, vector<1x32x18xf32>,
    }
    %c8_i32_83 = arith.constant 8 : i32
    %130 = tpu.iota {dimensions = array<i32: 0>} : vector<16x34xi32>
    %131 = tpu.iota {dimensions = array<i32: 1>} : vector<16x34xi32>
    %c2_i32_84 = arith.constant 2 : i32
    %132 = vector.broadcast %c2_i32_84 : i32 to vector<16x34xi32>
    %133 = arith.muli %132, %130 : vector<16x34xi32>
    %c1_i32_85 = arith.constant 1 : i32
    %134 = vector.broadcast %c1_i32_85 : i32 to vector<16x34xi32>
    %135 = arith.addi %133, %134 : vector<16x34xi32>
    %c0_i32_86 = arith.constant 0 : i32
    %136 = vector.broadcast %c0_i32_86 : i32 to vector<16x34xi32>
    %137 = arith.addi %135, %136 : vector<16x34xi32>
    %138 = arith.cmpi eq, %131, %137 : vector<16x34xi32>
    %139 = arith.extui %138 : vector<16x34xi1> to vector<16x34xi32>
    %140 = arith.sitofp %139 : vector<16x34xi32> to vector<16x34xf32>
    %c2_i32_87 = arith.constant 2 : i32
    %141 = vector.broadcast %c2_i32_87 : i32 to vector<16x34xi32>
    %142 = arith.muli %141, %130 : vector<16x34xi32>
    %c1_i32_88 = arith.constant 1 : i32
    %143 = vector.broadcast %c1_i32_88 : i32 to vector<16x34xi32>
    %144 = arith.addi %142, %143 : vector<16x34xi32>
    %c1_i32_89 = arith.constant 1 : i32
    %145 = vector.broadcast %c1_i32_89 : i32 to vector<16x34xi32>
    %146 = arith.addi %144, %145 : vector<16x34xi32>
    %147 = arith.cmpi eq, %131, %146 : vector<16x34xi32>
    %148 = arith.extui %147 : vector<16x34xi1> to vector<16x34xi32>
    %149 = arith.sitofp %148 : vector<16x34xi32> to vector<16x34xf32>
    %c0_90 = arith.constant 0 : index
    %c0_91 = arith.constant 0 : index
    %150 = vector.load %arg8[%c0_90, %c0_91] : memref<16x1xf32, #tpu.memory_space<vmem>>, vector<16x1xf32>
    %cst_92 = arith.constant 0.000000e+00 : f32
    %151 = vector.broadcast %cst_92 : f32 to vector<16x34xf32>
    %c0_93 = arith.constant 0 : index
    %c0_94 = arith.constant 0 : index
    %c0_95 = arith.constant 0 : index
    %152 = vector.load %arg17[%c0_93, %c0_94, %c0_95] : memref<34x16x34xf32, #tpu.memory_space<vmem>>, vector<1x16x34xf32>
    %153 = vector.shape_cast %152 : vector<1x16x34xf32> to vector<16x34xf32>
    %154 = vector.shape_cast %151 : vector<16x34xf32> to vector<1x16x34xf32>
    tpu.vector_store %arg17[%c0_93, %c0_94, %c0_95], %154 {strides = array<i32>} : memref<34x16x34xf32, #tpu.memory_space<vmem>>, vector<1x16x34xf32>,
    %c33 = arith.constant 33 : index
    %c0_96 = arith.constant 0 : index
    %c0_97 = arith.constant 0 : index
    %155 = vector.load %arg17[%c33, %c0_96, %c0_97] : memref<34x16x34xf32, #tpu.memory_space<vmem>>, vector<1x16x34xf32>
    %156 = vector.shape_cast %155 : vector<1x16x34xf32> to vector<16x34xf32>
    %157 = vector.shape_cast %151 : vector<16x34xf32> to vector<1x16x34xf32>
    tpu.vector_store %arg17[%c33, %c0_96, %c0_97], %157 {strides = array<i32>} : memref<34x16x34xf32, #tpu.memory_space<vmem>>, vector<1x16x34xf32>,
    %c0_i32_98 = arith.constant 0 : i32
    %c16_i32 = arith.constant 16 : i32
    %158 = arith.addi %c0_i32_98, %c16_i32 : i32
    %c1_i32_99 = arith.constant 1 : i32
    scf.for %arg19 = %c0_i32_98 to %158 step %c1_i32_99  : i32 {
      %c1_i32_129 = arith.constant 1 : i32
      %210 = arith.muli %arg19, %c1_i32_129 : i32
      %c0_i32_130 = arith.constant 0 : i32
      %211 = arith.addi %c0_i32_130, %210 : i32
      %cst_131 = arith.constant 0.000000e+00 : f32
      %212 = vector.broadcast %cst_131 : f32 to vector<16x34xf32>
      %c0_i32_132 = arith.constant 0 : i32
      %213 = arith.addi %211, %c0_i32_132 : i32
      %c0_i32_133 = arith.constant 0 : i32
      %214 = arith.addi %213, %c0_i32_133 : i32
      %215 = arith.index_cast %214 : i32 to index
      %c0_134 = arith.constant 0 : index
      %c0_135 = arith.constant 0 : index
      %216 = vector.load %arg16[%215, %c0_134, %c0_135] : memref<18x32x18xf32, #tpu.memory_space<vmem>>, vector<1x32x16xf32>
      %217 = vector.shape_cast %216 : vector<1x32x16xf32> to vector<32x16xf32>
      %c0_i32_136 = arith.constant 0 : i32
      %218 = arith.addi %211, %c0_i32_136 : i32
      %c0_i32_137 = arith.constant 0 : i32
      %219 = arith.addi %218, %c0_i32_137 : i32
      %220 = arith.index_cast %219 : i32 to index
      %c0_138 = arith.constant 0 : index
      %c1_139 = arith.constant 1 : index
      %221 = vector.load %arg16[%220, %c0_138, %c1_139] : memref<18x32x18xf32, #tpu.memory_space<vmem>>, vector<1x32x16xf32>
      %222 = vector.shape_cast %221 : vector<1x32x16xf32> to vector<32x16xf32>
      %c0_i32_140 = arith.constant 0 : i32
      %223 = arith.addi %211, %c0_i32_140 : i32
      %c1_i32_141 = arith.constant 1 : i32
      %224 = arith.addi %223, %c1_i32_141 : i32
      %225 = arith.index_cast %224 : i32 to index
      %c0_142 = arith.constant 0 : index
      %c0_143 = arith.constant 0 : index
      %226 = vector.load %arg16[%225, %c0_142, %c0_143] : memref<18x32x18xf32, #tpu.memory_space<vmem>>, vector<1x32x16xf32>
      %227 = vector.shape_cast %226 : vector<1x32x16xf32> to vector<32x16xf32>
      %c0_i32_144 = arith.constant 0 : i32
      %228 = arith.addi %211, %c0_i32_144 : i32
      %c1_i32_145 = arith.constant 1 : i32
      %229 = arith.addi %228, %c1_i32_145 : i32
      %230 = arith.index_cast %229 : i32 to index
      %c0_146 = arith.constant 0 : index
      %c1_147 = arith.constant 1 : index
      %231 = vector.load %arg16[%230, %c0_146, %c1_147] : memref<18x32x18xf32, #tpu.memory_space<vmem>>, vector<1x32x16xf32>
      %232 = vector.shape_cast %231 : vector<1x32x16xf32> to vector<32x16xf32>
      %233 = tpu.concatenate %217, %222, %227, %232 in 0 : vector<32x16xf32>, vector<32x16xf32>, vector<32x16xf32>, vector<32x16xf32> -> vector<128x16xf32>
      %234 = arith.truncf %233 : vector<128x16xf32> to vector<128x16xbf16>
      %c0_148 = arith.constant 0 : index
      %c0_149 = arith.constant 0 : index
      %c0_150 = arith.constant 0 : index
      %c0_151 = arith.constant 0 : index
      %235 = vector.load %arg7[%c0_148, %c0_149, %c0_150, %c0_151] : memref<2x2x16x128xbf16, #tpu.memory_space<vmem>>, vector<1x1x16x128xbf16>
      %236 = vector.shape_cast %235 : vector<1x1x16x128xbf16> to vector<16x128xbf16>
      %cst_152 = arith.constant dense<0.000000e+00> : vector<16x16xf32>
      %237 = tpu.matmul %236, %234, %cst_152 {dimension_numbers = #tpu.dot_dimension_numbers<[1], [0], [0], [1], [0, 0, 1, 1], [], []>} : vector<16x128xbf16>, vector<128x16xbf16>, vector<16x16xf32> -> vector<16x16xf32>
      %238 = vector.broadcast %150 : vector<16x1xf32> to vector<16x16xf32>
      %239 = arith.addf %237, %238 : vector<16x16xf32>
      %cst_153 = arith.constant 0.000000e+00 : f32
      %240 = vector.broadcast %cst_153 : f32 to vector<16x16xf32>
      %241 = arith.maximumf %239, %240 : vector<16x16xf32>
      %cst_154 = arith.constant dense<0.000000e+00> : vector<16x34xf32>
      %242 = tpu.matmul %241, %140, %cst_154 {dimension_numbers = #tpu.dot_dimension_numbers<[1], [0], [0], [1], [0, 0, 1, 1], [], []>} : vector<16x16xf32>, vector<16x34xf32>, vector<16x34xf32> -> vector<16x34xf32>
      %243 = arith.addf %212, %242 : vector<16x34xf32>
      %c0_i32_155 = arith.constant 0 : i32
      %244 = arith.addi %211, %c0_i32_155 : i32
      %c0_i32_156 = arith.constant 0 : i32
      %245 = arith.addi %244, %c0_i32_156 : i32
      %246 = arith.index_cast %245 : i32 to index
      %c0_157 = arith.constant 0 : index
      %c1_158 = arith.constant 1 : index
      %247 = vector.load %arg16[%246, %c0_157, %c1_158] : memref<18x32x18xf32, #tpu.memory_space<vmem>>, vector<1x32x16xf32>
      %248 = vector.shape_cast %247 : vector<1x32x16xf32> to vector<32x16xf32>
      %c0_i32_159 = arith.constant 0 : i32
      %249 = arith.addi %211, %c0_i32_159 : i32
      %c0_i32_160 = arith.constant 0 : i32
      %250 = arith.addi %249, %c0_i32_160 : i32
      %251 = arith.index_cast %250 : i32 to index
      %c0_161 = arith.constant 0 : index
      %c2_162 = arith.constant 2 : index
      %252 = vector.load %arg16[%251, %c0_161, %c2_162] : memref<18x32x18xf32, #tpu.memory_space<vmem>>, vector<1x32x16xf32>
      %253 = vector.shape_cast %252 : vector<1x32x16xf32> to vector<32x16xf32>
      %c0_i32_163 = arith.constant 0 : i32
      %254 = arith.addi %211, %c0_i32_163 : i32
      %c1_i32_164 = arith.constant 1 : i32
      %255 = arith.addi %254, %c1_i32_164 : i32
      %256 = arith.index_cast %255 : i32 to index
      %c0_165 = arith.constant 0 : index
      %c1_166 = arith.constant 1 : index
      %257 = vector.load %arg16[%256, %c0_165, %c1_166] : memref<18x32x18xf32, #tpu.memory_space<vmem>>, vector<1x32x16xf32>
      %258 = vector.shape_cast %257 : vector<1x32x16xf32> to vector<32x16xf32>
      %c0_i32_167 = arith.constant 0 : i32
      %259 = arith.addi %211, %c0_i32_167 : i32
      %c1_i32_168 = arith.constant 1 : i32
      %260 = arith.addi %259, %c1_i32_168 : i32
      %261 = arith.index_cast %260 : i32 to index
      %c0_169 = arith.constant 0 : index
      %c2_170 = arith.constant 2 : index
      %262 = vector.load %arg16[%261, %c0_169, %c2_170] : memref<18x32x18xf32, #tpu.memory_space<vmem>>, vector<1x32x16xf32>
      %263 = vector.shape_cast %262 : vector<1x32x16xf32> to vector<32x16xf32>
      %264 = tpu.concatenate %248, %253, %258, %263 in 0 : vector<32x16xf32>, vector<32x16xf32>, vector<32x16xf32>, vector<32x16xf32> -> vector<128x16xf32>
      %265 = arith.truncf %264 : vector<128x16xf32> to vector<128x16xbf16>
      %c0_171 = arith.constant 0 : index
      %c1_172 = arith.constant 1 : index
      %c0_173 = arith.constant 0 : index
      %c0_174 = arith.constant 0 : index
      %266 = vector.load %arg7[%c0_171, %c1_172, %c0_173, %c0_174] : memref<2x2x16x128xbf16, #tpu.memory_space<vmem>>, vector<1x1x16x128xbf16>
      %267 = vector.shape_cast %266 : vector<1x1x16x128xbf16> to vector<16x128xbf16>
      %cst_175 = arith.constant dense<0.000000e+00> : vector<16x16xf32>
      %268 = tpu.matmul %267, %265, %cst_175 {dimension_numbers = #tpu.dot_dimension_numbers<[1], [0], [0], [1], [0, 0, 1, 1], [], []>} : vector<16x128xbf16>, vector<128x16xbf16>, vector<16x16xf32> -> vector<16x16xf32>
      %269 = vector.broadcast %150 : vector<16x1xf32> to vector<16x16xf32>
      %270 = arith.addf %268, %269 : vector<16x16xf32>
      %cst_176 = arith.constant 0.000000e+00 : f32
      %271 = vector.broadcast %cst_176 : f32 to vector<16x16xf32>
      %272 = arith.maximumf %270, %271 : vector<16x16xf32>
      %cst_177 = arith.constant dense<0.000000e+00> : vector<16x34xf32>
      %273 = tpu.matmul %272, %149, %cst_177 {dimension_numbers = #tpu.dot_dimension_numbers<[1], [0], [0], [1], [0, 0, 1, 1], [], []>} : vector<16x16xf32>, vector<16x34xf32>, vector<16x34xf32> -> vector<16x34xf32>
      %274 = arith.addf %243, %273 : vector<16x34xf32>
      %c2_i32_178 = arith.constant 2 : i32
      %275 = arith.muli %c2_i32_178, %211 : i32
      %c0_i32_179 = arith.constant 0 : i32
      %276 = arith.addi %275, %c0_i32_179 : i32
      %c1_i32_180 = arith.constant 1 : i32
      %277 = arith.addi %c1_i32_180, %276 : i32
      %278 = arith.index_cast %277 : i32 to index
      %c0_181 = arith.constant 0 : index
      %c0_182 = arith.constant 0 : index
      %279 = vector.load %arg17[%278, %c0_181, %c0_182] : memref<34x16x34xf32, #tpu.memory_space<vmem>>, vector<1x16x34xf32>
      %280 = vector.shape_cast %279 : vector<1x16x34xf32> to vector<16x34xf32>
      %281 = vector.shape_cast %274 : vector<16x34xf32> to vector<1x16x34xf32>
      tpu.vector_store %arg17[%278, %c0_181, %c0_182], %281 {strides = array<i32>} : memref<34x16x34xf32, #tpu.memory_space<vmem>>, vector<1x16x34xf32>,
      %cst_183 = arith.constant 0.000000e+00 : f32
      %282 = vector.broadcast %cst_183 : f32 to vector<16x34xf32>
      %c1_i32_184 = arith.constant 1 : i32
      %283 = arith.addi %211, %c1_i32_184 : i32
      %c0_i32_185 = arith.constant 0 : i32
      %284 = arith.addi %283, %c0_i32_185 : i32
      %285 = arith.index_cast %284 : i32 to index
      %c0_186 = arith.constant 0 : index
      %c0_187 = arith.constant 0 : index
      %286 = vector.load %arg16[%285, %c0_186, %c0_187] : memref<18x32x18xf32, #tpu.memory_space<vmem>>, vector<1x32x16xf32>
      %287 = vector.shape_cast %286 : vector<1x32x16xf32> to vector<32x16xf32>
      %c1_i32_188 = arith.constant 1 : i32
      %288 = arith.addi %211, %c1_i32_188 : i32
      %c0_i32_189 = arith.constant 0 : i32
      %289 = arith.addi %288, %c0_i32_189 : i32
      %290 = arith.index_cast %289 : i32 to index
      %c0_190 = arith.constant 0 : index
      %c1_191 = arith.constant 1 : index
      %291 = vector.load %arg16[%290, %c0_190, %c1_191] : memref<18x32x18xf32, #tpu.memory_space<vmem>>, vector<1x32x16xf32>
      %292 = vector.shape_cast %291 : vector<1x32x16xf32> to vector<32x16xf32>
      %c1_i32_192 = arith.constant 1 : i32
      %293 = arith.addi %211, %c1_i32_192 : i32
      %c1_i32_193 = arith.constant 1 : i32
      %294 = arith.addi %293, %c1_i32_193 : i32
      %295 = arith.index_cast %294 : i32 to index
      %c0_194 = arith.constant 0 : index
      %c0_195 = arith.constant 0 : index
      %296 = vector.load %arg16[%295, %c0_194, %c0_195] : memref<18x32x18xf32, #tpu.memory_space<vmem>>, vector<1x32x16xf32>
      %297 = vector.shape_cast %296 : vector<1x32x16xf32> to vector<32x16xf32>
      %c1_i32_196 = arith.constant 1 : i32
      %298 = arith.addi %211, %c1_i32_196 : i32
      %c1_i32_197 = arith.constant 1 : i32
      %299 = arith.addi %298, %c1_i32_197 : i32
      %300 = arith.index_cast %299 : i32 to index
      %c0_198 = arith.constant 0 : index
      %c1_199 = arith.constant 1 : index
      %301 = vector.load %arg16[%300, %c0_198, %c1_199] : memref<18x32x18xf32, #tpu.memory_space<vmem>>, vector<1x32x16xf32>
      %302 = vector.shape_cast %301 : vector<1x32x16xf32> to vector<32x16xf32>
      %303 = tpu.concatenate %287, %292, %297, %302 in 0 : vector<32x16xf32>, vector<32x16xf32>, vector<32x16xf32>, vector<32x16xf32> -> vector<128x16xf32>
      %304 = arith.truncf %303 : vector<128x16xf32> to vector<128x16xbf16>
      %c1_200 = arith.constant 1 : index
      %c0_201 = arith.constant 0 : index
      %c0_202 = arith.constant 0 : index
      %c0_203 = arith.constant 0 : index
      %305 = vector.load %arg7[%c1_200, %c0_201, %c0_202, %c0_203] : memref<2x2x16x128xbf16, #tpu.memory_space<vmem>>, vector<1x1x16x128xbf16>
      %306 = vector.shape_cast %305 : vector<1x1x16x128xbf16> to vector<16x128xbf16>
      %cst_204 = arith.constant dense<0.000000e+00> : vector<16x16xf32>
      %307 = tpu.matmul %306, %304, %cst_204 {dimension_numbers = #tpu.dot_dimension_numbers<[1], [0], [0], [1], [0, 0, 1, 1], [], []>} : vector<16x128xbf16>, vector<128x16xbf16>, vector<16x16xf32> -> vector<16x16xf32>
      %308 = vector.broadcast %150 : vector<16x1xf32> to vector<16x16xf32>
      %309 = arith.addf %307, %308 : vector<16x16xf32>
      %cst_205 = arith.constant 0.000000e+00 : f32
      %310 = vector.broadcast %cst_205 : f32 to vector<16x16xf32>
      %311 = arith.maximumf %309, %310 : vector<16x16xf32>
      %cst_206 = arith.constant dense<0.000000e+00> : vector<16x34xf32>
      %312 = tpu.matmul %311, %140, %cst_206 {dimension_numbers = #tpu.dot_dimension_numbers<[1], [0], [0], [1], [0, 0, 1, 1], [], []>} : vector<16x16xf32>, vector<16x34xf32>, vector<16x34xf32> -> vector<16x34xf32>
      %313 = arith.addf %282, %312 : vector<16x34xf32>
      %c1_i32_207 = arith.constant 1 : i32
      %314 = arith.addi %211, %c1_i32_207 : i32
      %c0_i32_208 = arith.constant 0 : i32
      %315 = arith.addi %314, %c0_i32_208 : i32
      %316 = arith.index_cast %315 : i32 to index
      %c0_209 = arith.constant 0 : index
      %c1_210 = arith.constant 1 : index
      %317 = vector.load %arg16[%316, %c0_209, %c1_210] : memref<18x32x18xf32, #tpu.memory_space<vmem>>, vector<1x32x16xf32>
      %318 = vector.shape_cast %317 : vector<1x32x16xf32> to vector<32x16xf32>
      %c1_i32_211 = arith.constant 1 : i32
      %319 = arith.addi %211, %c1_i32_211 : i32
      %c0_i32_212 = arith.constant 0 : i32
      %320 = arith.addi %319, %c0_i32_212 : i32
      %321 = arith.index_cast %320 : i32 to index
      %c0_213 = arith.constant 0 : index
      %c2_214 = arith.constant 2 : index
      %322 = vector.load %arg16[%321, %c0_213, %c2_214] : memref<18x32x18xf32, #tpu.memory_space<vmem>>, vector<1x32x16xf32>
      %323 = vector.shape_cast %322 : vector<1x32x16xf32> to vector<32x16xf32>
      %c1_i32_215 = arith.constant 1 : i32
      %324 = arith.addi %211, %c1_i32_215 : i32
      %c1_i32_216 = arith.constant 1 : i32
      %325 = arith.addi %324, %c1_i32_216 : i32
      %326 = arith.index_cast %325 : i32 to index
      %c0_217 = arith.constant 0 : index
      %c1_218 = arith.constant 1 : index
      %327 = vector.load %arg16[%326, %c0_217, %c1_218] : memref<18x32x18xf32, #tpu.memory_space<vmem>>, vector<1x32x16xf32>
      %328 = vector.shape_cast %327 : vector<1x32x16xf32> to vector<32x16xf32>
      %c1_i32_219 = arith.constant 1 : i32
      %329 = arith.addi %211, %c1_i32_219 : i32
      %c1_i32_220 = arith.constant 1 : i32
      %330 = arith.addi %329, %c1_i32_220 : i32
      %331 = arith.index_cast %330 : i32 to index
      %c0_221 = arith.constant 0 : index
      %c2_222 = arith.constant 2 : index
      %332 = vector.load %arg16[%331, %c0_221, %c2_222] : memref<18x32x18xf32, #tpu.memory_space<vmem>>, vector<1x32x16xf32>
      %333 = vector.shape_cast %332 : vector<1x32x16xf32> to vector<32x16xf32>
      %334 = tpu.concatenate %318, %323, %328, %333 in 0 : vector<32x16xf32>, vector<32x16xf32>, vector<32x16xf32>, vector<32x16xf32> -> vector<128x16xf32>
      %335 = arith.truncf %334 : vector<128x16xf32> to vector<128x16xbf16>
      %c1_223 = arith.constant 1 : index
      %c1_224 = arith.constant 1 : index
      %c0_225 = arith.constant 0 : index
      %c0_226 = arith.constant 0 : index
      %336 = vector.load %arg7[%c1_223, %c1_224, %c0_225, %c0_226] : memref<2x2x16x128xbf16, #tpu.memory_space<vmem>>, vector<1x1x16x128xbf16>
      %337 = vector.shape_cast %336 : vector<1x1x16x128xbf16> to vector<16x128xbf16>
      %cst_227 = arith.constant dense<0.000000e+00> : vector<16x16xf32>
      %338 = tpu.matmul %337, %335, %cst_227 {dimension_numbers = #tpu.dot_dimension_numbers<[1], [0], [0], [1], [0, 0, 1, 1], [], []>} : vector<16x128xbf16>, vector<128x16xbf16>, vector<16x16xf32> -> vector<16x16xf32>
      %339 = vector.broadcast %150 : vector<16x1xf32> to vector<16x16xf32>
      %340 = arith.addf %338, %339 : vector<16x16xf32>
      %cst_228 = arith.constant 0.000000e+00 : f32
      %341 = vector.broadcast %cst_228 : f32 to vector<16x16xf32>
      %342 = arith.maximumf %340, %341 : vector<16x16xf32>
      %cst_229 = arith.constant dense<0.000000e+00> : vector<16x34xf32>
      %343 = tpu.matmul %342, %149, %cst_229 {dimension_numbers = #tpu.dot_dimension_numbers<[1], [0], [0], [1], [0, 0, 1, 1], [], []>} : vector<16x16xf32>, vector<16x34xf32>, vector<16x34xf32> -> vector<16x34xf32>
      %344 = arith.addf %313, %343 : vector<16x34xf32>
      %c2_i32_230 = arith.constant 2 : i32
      %345 = arith.muli %c2_i32_230, %211 : i32
      %c1_i32_231 = arith.constant 1 : i32
      %346 = arith.addi %345, %c1_i32_231 : i32
      %c1_i32_232 = arith.constant 1 : i32
      %347 = arith.addi %c1_i32_232, %346 : i32
      %348 = arith.index_cast %347 : i32 to index
      %c0_233 = arith.constant 0 : index
      %c0_234 = arith.constant 0 : index
      %349 = vector.load %arg17[%348, %c0_233, %c0_234] : memref<34x16x34xf32, #tpu.memory_space<vmem>>, vector<1x16x34xf32>
      %350 = vector.shape_cast %349 : vector<1x16x34xf32> to vector<16x34xf32>
      %351 = vector.shape_cast %344 : vector<16x34xf32> to vector<1x16x34xf32>
      tpu.vector_store %arg17[%348, %c0_233, %c0_234], %351 {strides = array<i32>} : memref<34x16x34xf32, #tpu.memory_space<vmem>>, vector<1x16x34xf32>,
    }
    %c16_i32_100 = arith.constant 16 : i32
    %159 = tpu.iota {dimensions = array<i32: 0>} : vector<32x66xi32>
    %160 = tpu.iota {dimensions = array<i32: 1>} : vector<32x66xi32>
    %c2_i32_101 = arith.constant 2 : i32
    %161 = vector.broadcast %c2_i32_101 : i32 to vector<32x66xi32>
    %162 = arith.muli %161, %159 : vector<32x66xi32>
    %c1_i32_102 = arith.constant 1 : i32
    %163 = vector.broadcast %c1_i32_102 : i32 to vector<32x66xi32>
    %164 = arith.addi %162, %163 : vector<32x66xi32>
    %c0_i32_103 = arith.constant 0 : i32
    %165 = vector.broadcast %c0_i32_103 : i32 to vector<32x66xi32>
    %166 = arith.addi %164, %165 : vector<32x66xi32>
    %167 = arith.cmpi eq, %160, %166 : vector<32x66xi32>
    %168 = arith.extui %167 : vector<32x66xi1> to vector<32x66xi32>
    %169 = arith.sitofp %168 : vector<32x66xi32> to vector<32x66xf32>
    %c2_i32_104 = arith.constant 2 : i32
    %170 = vector.broadcast %c2_i32_104 : i32 to vector<32x66xi32>
    %171 = arith.muli %170, %159 : vector<32x66xi32>
    %c1_i32_105 = arith.constant 1 : i32
    %172 = vector.broadcast %c1_i32_105 : i32 to vector<32x66xi32>
    %173 = arith.addi %171, %172 : vector<32x66xi32>
    %c1_i32_106 = arith.constant 1 : i32
    %174 = vector.broadcast %c1_i32_106 : i32 to vector<32x66xi32>
    %175 = arith.addi %173, %174 : vector<32x66xi32>
    %176 = arith.cmpi eq, %160, %175 : vector<32x66xi32>
    %177 = arith.extui %176 : vector<32x66xi1> to vector<32x66xi32>
    %178 = arith.sitofp %177 : vector<32x66xi32> to vector<32x66xf32>
    %c0_107 = arith.constant 0 : index
    %c0_108 = arith.constant 0 : index
    %179 = vector.load %arg10[%c0_107, %c0_108] : memref<8x1xf32, #tpu.memory_space<vmem>>, vector<8x1xf32>
    %cst_109 = arith.constant 0.000000e+00 : f32
    %180 = vector.broadcast %cst_109 : f32 to vector<8x66xf32>
    %c0_110 = arith.constant 0 : index
    %c0_111 = arith.constant 0 : index
    %c0_112 = arith.constant 0 : index
    %181 = vector.load %arg18[%c0_110, %c0_111, %c0_112] : memref<66x8x66xf32, #tpu.memory_space<vmem>>, vector<1x8x66xf32>
    %182 = vector.shape_cast %181 : vector<1x8x66xf32> to vector<8x66xf32>
    %183 = vector.shape_cast %180 : vector<8x66xf32> to vector<1x8x66xf32>
    tpu.vector_store %arg18[%c0_110, %c0_111, %c0_112], %183 {strides = array<i32>} : memref<66x8x66xf32, #tpu.memory_space<vmem>>, vector<1x8x66xf32>,
    %c65 = arith.constant 65 : index
    %c0_113 = arith.constant 0 : index
    %c0_114 = arith.constant 0 : index
    %184 = vector.load %arg18[%c65, %c0_113, %c0_114] : memref<66x8x66xf32, #tpu.memory_space<vmem>>, vector<1x8x66xf32>
    %185 = vector.shape_cast %184 : vector<1x8x66xf32> to vector<8x66xf32>
    %186 = vector.shape_cast %180 : vector<8x66xf32> to vector<1x8x66xf32>
    tpu.vector_store %arg18[%c65, %c0_113, %c0_114], %186 {strides = array<i32>} : memref<66x8x66xf32, #tpu.memory_space<vmem>>, vector<1x8x66xf32>,
    %c0_i32_115 = arith.constant 0 : i32
    %c32_i32 = arith.constant 32 : i32
    %187 = arith.addi %c0_i32_115, %c32_i32 : i32
    %c1_i32_116 = arith.constant 1 : i32
    scf.for %arg19 = %c0_i32_115 to %187 step %c1_i32_116  : i32 {
      %c1_i32_129 = arith.constant 1 : i32
      %210 = arith.muli %arg19, %c1_i32_129 : i32
      %c0_i32_130 = arith.constant 0 : i32
      %211 = arith.addi %c0_i32_130, %210 : i32
      %cst_131 = arith.constant 0.000000e+00 : f32
      %212 = vector.broadcast %cst_131 : f32 to vector<8x66xf32>
      %c0_i32_132 = arith.constant 0 : i32
      %213 = arith.addi %211, %c0_i32_132 : i32
      %c0_i32_133 = arith.constant 0 : i32
      %214 = arith.addi %213, %c0_i32_133 : i32
      %215 = arith.index_cast %214 : i32 to index
      %c0_134 = arith.constant 0 : index
      %c0_135 = arith.constant 0 : index
      %216 = vector.load %arg17[%215, %c0_134, %c0_135] : memref<34x16x34xf32, #tpu.memory_space<vmem>>, vector<1x16x32xf32>
      %217 = vector.shape_cast %216 : vector<1x16x32xf32> to vector<16x32xf32>
      %c0_i32_136 = arith.constant 0 : i32
      %218 = arith.addi %211, %c0_i32_136 : i32
      %c0_i32_137 = arith.constant 0 : i32
      %219 = arith.addi %218, %c0_i32_137 : i32
      %220 = arith.index_cast %219 : i32 to index
      %c0_138 = arith.constant 0 : index
      %c1_139 = arith.constant 1 : index
      %221 = vector.load %arg17[%220, %c0_138, %c1_139] : memref<34x16x34xf32, #tpu.memory_space<vmem>>, vector<1x16x32xf32>
      %222 = vector.shape_cast %221 : vector<1x16x32xf32> to vector<16x32xf32>
      %c0_i32_140 = arith.constant 0 : i32
      %223 = arith.addi %211, %c0_i32_140 : i32
      %c1_i32_141 = arith.constant 1 : i32
      %224 = arith.addi %223, %c1_i32_141 : i32
      %225 = arith.index_cast %224 : i32 to index
      %c0_142 = arith.constant 0 : index
      %c0_143 = arith.constant 0 : index
      %226 = vector.load %arg17[%225, %c0_142, %c0_143] : memref<34x16x34xf32, #tpu.memory_space<vmem>>, vector<1x16x32xf32>
      %227 = vector.shape_cast %226 : vector<1x16x32xf32> to vector<16x32xf32>
      %c0_i32_144 = arith.constant 0 : i32
      %228 = arith.addi %211, %c0_i32_144 : i32
      %c1_i32_145 = arith.constant 1 : i32
      %229 = arith.addi %228, %c1_i32_145 : i32
      %230 = arith.index_cast %229 : i32 to index
      %c0_146 = arith.constant 0 : index
      %c1_147 = arith.constant 1 : index
      %231 = vector.load %arg17[%230, %c0_146, %c1_147] : memref<34x16x34xf32, #tpu.memory_space<vmem>>, vector<1x16x32xf32>
      %232 = vector.shape_cast %231 : vector<1x16x32xf32> to vector<16x32xf32>
      %233 = tpu.concatenate %217, %222, %227, %232 in 0 : vector<16x32xf32>, vector<16x32xf32>, vector<16x32xf32>, vector<16x32xf32> -> vector<64x32xf32>
      %234 = arith.truncf %233 : vector<64x32xf32> to vector<64x32xbf16>
      %c0_148 = arith.constant 0 : index
      %c0_149 = arith.constant 0 : index
      %c0_150 = arith.constant 0 : index
      %c0_151 = arith.constant 0 : index
      %235 = vector.load %arg9[%c0_148, %c0_149, %c0_150, %c0_151] : memref<2x2x8x64xbf16, #tpu.memory_space<vmem>>, vector<1x1x8x64xbf16>
      %236 = vector.shape_cast %235 : vector<1x1x8x64xbf16> to vector<8x64xbf16>
      %cst_152 = arith.constant dense<0.000000e+00> : vector<8x32xf32>
      %237 = tpu.matmul %236, %234, %cst_152 {dimension_numbers = #tpu.dot_dimension_numbers<[1], [0], [0], [1], [0, 0, 1, 1], [], []>} : vector<8x64xbf16>, vector<64x32xbf16>, vector<8x32xf32> -> vector<8x32xf32>
      %238 = vector.broadcast %179 : vector<8x1xf32> to vector<8x32xf32>
      %239 = arith.addf %237, %238 : vector<8x32xf32>
      %cst_153 = arith.constant 0.000000e+00 : f32
      %240 = vector.broadcast %cst_153 : f32 to vector<8x32xf32>
      %241 = arith.maximumf %239, %240 : vector<8x32xf32>
      %cst_154 = arith.constant dense<0.000000e+00> : vector<8x66xf32>
      %242 = tpu.matmul %241, %169, %cst_154 {dimension_numbers = #tpu.dot_dimension_numbers<[1], [0], [0], [1], [0, 0, 1, 1], [], []>} : vector<8x32xf32>, vector<32x66xf32>, vector<8x66xf32> -> vector<8x66xf32>
      %243 = arith.addf %212, %242 : vector<8x66xf32>
      %c0_i32_155 = arith.constant 0 : i32
      %244 = arith.addi %211, %c0_i32_155 : i32
      %c0_i32_156 = arith.constant 0 : i32
      %245 = arith.addi %244, %c0_i32_156 : i32
      %246 = arith.index_cast %245 : i32 to index
      %c0_157 = arith.constant 0 : index
      %c1_158 = arith.constant 1 : index
      %247 = vector.load %arg17[%246, %c0_157, %c1_158] : memref<34x16x34xf32, #tpu.memory_space<vmem>>, vector<1x16x32xf32>
      %248 = vector.shape_cast %247 : vector<1x16x32xf32> to vector<16x32xf32>
      %c0_i32_159 = arith.constant 0 : i32
      %249 = arith.addi %211, %c0_i32_159 : i32
      %c0_i32_160 = arith.constant 0 : i32
      %250 = arith.addi %249, %c0_i32_160 : i32
      %251 = arith.index_cast %250 : i32 to index
      %c0_161 = arith.constant 0 : index
      %c2_162 = arith.constant 2 : index
      %252 = vector.load %arg17[%251, %c0_161, %c2_162] : memref<34x16x34xf32, #tpu.memory_space<vmem>>, vector<1x16x32xf32>
      %253 = vector.shape_cast %252 : vector<1x16x32xf32> to vector<16x32xf32>
      %c0_i32_163 = arith.constant 0 : i32
      %254 = arith.addi %211, %c0_i32_163 : i32
      %c1_i32_164 = arith.constant 1 : i32
      %255 = arith.addi %254, %c1_i32_164 : i32
      %256 = arith.index_cast %255 : i32 to index
      %c0_165 = arith.constant 0 : index
      %c1_166 = arith.constant 1 : index
      %257 = vector.load %arg17[%256, %c0_165, %c1_166] : memref<34x16x34xf32, #tpu.memory_space<vmem>>, vector<1x16x32xf32>
      %258 = vector.shape_cast %257 : vector<1x16x32xf32> to vector<16x32xf32>
      %c0_i32_167 = arith.constant 0 : i32
      %259 = arith.addi %211, %c0_i32_167 : i32
      %c1_i32_168 = arith.constant 1 : i32
      %260 = arith.addi %259, %c1_i32_168 : i32
      %261 = arith.index_cast %260 : i32 to index
      %c0_169 = arith.constant 0 : index
      %c2_170 = arith.constant 2 : index
      %262 = vector.load %arg17[%261, %c0_169, %c2_170] : memref<34x16x34xf32, #tpu.memory_space<vmem>>, vector<1x16x32xf32>
      %263 = vector.shape_cast %262 : vector<1x16x32xf32> to vector<16x32xf32>
      %264 = tpu.concatenate %248, %253, %258, %263 in 0 : vector<16x32xf32>, vector<16x32xf32>, vector<16x32xf32>, vector<16x32xf32> -> vector<64x32xf32>
      %265 = arith.truncf %264 : vector<64x32xf32> to vector<64x32xbf16>
      %c0_171 = arith.constant 0 : index
      %c1_172 = arith.constant 1 : index
      %c0_173 = arith.constant 0 : index
      %c0_174 = arith.constant 0 : index
      %266 = vector.load %arg9[%c0_171, %c1_172, %c0_173, %c0_174] : memref<2x2x8x64xbf16, #tpu.memory_space<vmem>>, vector<1x1x8x64xbf16>
      %267 = vector.shape_cast %266 : vector<1x1x8x64xbf16> to vector<8x64xbf16>
      %cst_175 = arith.constant dense<0.000000e+00> : vector<8x32xf32>
      %268 = tpu.matmul %267, %265, %cst_175 {dimension_numbers = #tpu.dot_dimension_numbers<[1], [0], [0], [1], [0, 0, 1, 1], [], []>} : vector<8x64xbf16>, vector<64x32xbf16>, vector<8x32xf32> -> vector<8x32xf32>
      %269 = vector.broadcast %179 : vector<8x1xf32> to vector<8x32xf32>
      %270 = arith.addf %268, %269 : vector<8x32xf32>
      %cst_176 = arith.constant 0.000000e+00 : f32
      %271 = vector.broadcast %cst_176 : f32 to vector<8x32xf32>
      %272 = arith.maximumf %270, %271 : vector<8x32xf32>
      %cst_177 = arith.constant dense<0.000000e+00> : vector<8x66xf32>
      %273 = tpu.matmul %272, %178, %cst_177 {dimension_numbers = #tpu.dot_dimension_numbers<[1], [0], [0], [1], [0, 0, 1, 1], [], []>} : vector<8x32xf32>, vector<32x66xf32>, vector<8x66xf32> -> vector<8x66xf32>
      %274 = arith.addf %243, %273 : vector<8x66xf32>
      %c2_i32_178 = arith.constant 2 : i32
      %275 = arith.muli %c2_i32_178, %211 : i32
      %c0_i32_179 = arith.constant 0 : i32
      %276 = arith.addi %275, %c0_i32_179 : i32
      %c1_i32_180 = arith.constant 1 : i32
      %277 = arith.addi %c1_i32_180, %276 : i32
      %278 = arith.index_cast %277 : i32 to index
      %c0_181 = arith.constant 0 : index
      %c0_182 = arith.constant 0 : index
      %279 = vector.load %arg18[%278, %c0_181, %c0_182] : memref<66x8x66xf32, #tpu.memory_space<vmem>>, vector<1x8x66xf32>
      %280 = vector.shape_cast %279 : vector<1x8x66xf32> to vector<8x66xf32>
      %281 = vector.shape_cast %274 : vector<8x66xf32> to vector<1x8x66xf32>
      tpu.vector_store %arg18[%278, %c0_181, %c0_182], %281 {strides = array<i32>} : memref<66x8x66xf32, #tpu.memory_space<vmem>>, vector<1x8x66xf32>,
      %cst_183 = arith.constant 0.000000e+00 : f32
      %282 = vector.broadcast %cst_183 : f32 to vector<8x66xf32>
      %c1_i32_184 = arith.constant 1 : i32
      %283 = arith.addi %211, %c1_i32_184 : i32
      %c0_i32_185 = arith.constant 0 : i32
      %284 = arith.addi %283, %c0_i32_185 : i32
      %285 = arith.index_cast %284 : i32 to index
      %c0_186 = arith.constant 0 : index
      %c0_187 = arith.constant 0 : index
      %286 = vector.load %arg17[%285, %c0_186, %c0_187] : memref<34x16x34xf32, #tpu.memory_space<vmem>>, vector<1x16x32xf32>
      %287 = vector.shape_cast %286 : vector<1x16x32xf32> to vector<16x32xf32>
      %c1_i32_188 = arith.constant 1 : i32
      %288 = arith.addi %211, %c1_i32_188 : i32
      %c0_i32_189 = arith.constant 0 : i32
      %289 = arith.addi %288, %c0_i32_189 : i32
      %290 = arith.index_cast %289 : i32 to index
      %c0_190 = arith.constant 0 : index
      %c1_191 = arith.constant 1 : index
      %291 = vector.load %arg17[%290, %c0_190, %c1_191] : memref<34x16x34xf32, #tpu.memory_space<vmem>>, vector<1x16x32xf32>
      %292 = vector.shape_cast %291 : vector<1x16x32xf32> to vector<16x32xf32>
      %c1_i32_192 = arith.constant 1 : i32
      %293 = arith.addi %211, %c1_i32_192 : i32
      %c1_i32_193 = arith.constant 1 : i32
      %294 = arith.addi %293, %c1_i32_193 : i32
      %295 = arith.index_cast %294 : i32 to index
      %c0_194 = arith.constant 0 : index
      %c0_195 = arith.constant 0 : index
      %296 = vector.load %arg17[%295, %c0_194, %c0_195] : memref<34x16x34xf32, #tpu.memory_space<vmem>>, vector<1x16x32xf32>
      %297 = vector.shape_cast %296 : vector<1x16x32xf32> to vector<16x32xf32>
      %c1_i32_196 = arith.constant 1 : i32
      %298 = arith.addi %211, %c1_i32_196 : i32
      %c1_i32_197 = arith.constant 1 : i32
      %299 = arith.addi %298, %c1_i32_197 : i32
      %300 = arith.index_cast %299 : i32 to index
      %c0_198 = arith.constant 0 : index
      %c1_199 = arith.constant 1 : index
      %301 = vector.load %arg17[%300, %c0_198, %c1_199] : memref<34x16x34xf32, #tpu.memory_space<vmem>>, vector<1x16x32xf32>
      %302 = vector.shape_cast %301 : vector<1x16x32xf32> to vector<16x32xf32>
      %303 = tpu.concatenate %287, %292, %297, %302 in 0 : vector<16x32xf32>, vector<16x32xf32>, vector<16x32xf32>, vector<16x32xf32> -> vector<64x32xf32>
      %304 = arith.truncf %303 : vector<64x32xf32> to vector<64x32xbf16>
      %c1_200 = arith.constant 1 : index
      %c0_201 = arith.constant 0 : index
      %c0_202 = arith.constant 0 : index
      %c0_203 = arith.constant 0 : index
      %305 = vector.load %arg9[%c1_200, %c0_201, %c0_202, %c0_203] : memref<2x2x8x64xbf16, #tpu.memory_space<vmem>>, vector<1x1x8x64xbf16>
      %306 = vector.shape_cast %305 : vector<1x1x8x64xbf16> to vector<8x64xbf16>
      %cst_204 = arith.constant dense<0.000000e+00> : vector<8x32xf32>
      %307 = tpu.matmul %306, %304, %cst_204 {dimension_numbers = #tpu.dot_dimension_numbers<[1], [0], [0], [1], [0, 0, 1, 1], [], []>} : vector<8x64xbf16>, vector<64x32xbf16>, vector<8x32xf32> -> vector<8x32xf32>
      %308 = vector.broadcast %179 : vector<8x1xf32> to vector<8x32xf32>
      %309 = arith.addf %307, %308 : vector<8x32xf32>
      %cst_205 = arith.constant 0.000000e+00 : f32
      %310 = vector.broadcast %cst_205 : f32 to vector<8x32xf32>
      %311 = arith.maximumf %309, %310 : vector<8x32xf32>
      %cst_206 = arith.constant dense<0.000000e+00> : vector<8x66xf32>
      %312 = tpu.matmul %311, %169, %cst_206 {dimension_numbers = #tpu.dot_dimension_numbers<[1], [0], [0], [1], [0, 0, 1, 1], [], []>} : vector<8x32xf32>, vector<32x66xf32>, vector<8x66xf32> -> vector<8x66xf32>
      %313 = arith.addf %282, %312 : vector<8x66xf32>
      %c1_i32_207 = arith.constant 1 : i32
      %314 = arith.addi %211, %c1_i32_207 : i32
      %c0_i32_208 = arith.constant 0 : i32
      %315 = arith.addi %314, %c0_i32_208 : i32
      %316 = arith.index_cast %315 : i32 to index
      %c0_209 = arith.constant 0 : index
      %c1_210 = arith.constant 1 : index
      %317 = vector.load %arg17[%316, %c0_209, %c1_210] : memref<34x16x34xf32, #tpu.memory_space<vmem>>, vector<1x16x32xf32>
      %318 = vector.shape_cast %317 : vector<1x16x32xf32> to vector<16x32xf32>
      %c1_i32_211 = arith.constant 1 : i32
      %319 = arith.addi %211, %c1_i32_211 : i32
      %c0_i32_212 = arith.constant 0 : i32
      %320 = arith.addi %319, %c0_i32_212 : i32
      %321 = arith.index_cast %320 : i32 to index
      %c0_213 = arith.constant 0 : index
      %c2_214 = arith.constant 2 : index
      %322 = vector.load %arg17[%321, %c0_213, %c2_214] : memref<34x16x34xf32, #tpu.memory_space<vmem>>, vector<1x16x32xf32>
      %323 = vector.shape_cast %322 : vector<1x16x32xf32> to vector<16x32xf32>
      %c1_i32_215 = arith.constant 1 : i32
      %324 = arith.addi %211, %c1_i32_215 : i32
      %c1_i32_216 = arith.constant 1 : i32
      %325 = arith.addi %324, %c1_i32_216 : i32
      %326 = arith.index_cast %325 : i32 to index
      %c0_217 = arith.constant 0 : index
      %c1_218 = arith.constant 1 : index
      %327 = vector.load %arg17[%326, %c0_217, %c1_218] : memref<34x16x34xf32, #tpu.memory_space<vmem>>, vector<1x16x32xf32>
      %328 = vector.shape_cast %327 : vector<1x16x32xf32> to vector<16x32xf32>
      %c1_i32_219 = arith.constant 1 : i32
      %329 = arith.addi %211, %c1_i32_219 : i32
      %c1_i32_220 = arith.constant 1 : i32
      %330 = arith.addi %329, %c1_i32_220 : i32
      %331 = arith.index_cast %330 : i32 to index
      %c0_221 = arith.constant 0 : index
      %c2_222 = arith.constant 2 : index
      %332 = vector.load %arg17[%331, %c0_221, %c2_222] : memref<34x16x34xf32, #tpu.memory_space<vmem>>, vector<1x16x32xf32>
      %333 = vector.shape_cast %332 : vector<1x16x32xf32> to vector<16x32xf32>
      %334 = tpu.concatenate %318, %323, %328, %333 in 0 : vector<16x32xf32>, vector<16x32xf32>, vector<16x32xf32>, vector<16x32xf32> -> vector<64x32xf32>
      %335 = arith.truncf %334 : vector<64x32xf32> to vector<64x32xbf16>
      %c1_223 = arith.constant 1 : index
      %c1_224 = arith.constant 1 : index
      %c0_225 = arith.constant 0 : index
      %c0_226 = arith.constant 0 : index
      %336 = vector.load %arg9[%c1_223, %c1_224, %c0_225, %c0_226] : memref<2x2x8x64xbf16, #tpu.memory_space<vmem>>, vector<1x1x8x64xbf16>
      %337 = vector.shape_cast %336 : vector<1x1x8x64xbf16> to vector<8x64xbf16>
      %cst_227 = arith.constant dense<0.000000e+00> : vector<8x32xf32>
      %338 = tpu.matmul %337, %335, %cst_227 {dimension_numbers = #tpu.dot_dimension_numbers<[1], [0], [0], [1], [0, 0, 1, 1], [], []>} : vector<8x64xbf16>, vector<64x32xbf16>, vector<8x32xf32> -> vector<8x32xf32>
      %339 = vector.broadcast %179 : vector<8x1xf32> to vector<8x32xf32>
      %340 = arith.addf %338, %339 : vector<8x32xf32>
      %cst_228 = arith.constant 0.000000e+00 : f32
      %341 = vector.broadcast %cst_228 : f32 to vector<8x32xf32>
      %342 = arith.maximumf %340, %341 : vector<8x32xf32>
      %cst_229 = arith.constant dense<0.000000e+00> : vector<8x66xf32>
      %343 = tpu.matmul %342, %178, %cst_229 {dimension_numbers = #tpu.dot_dimension_numbers<[1], [0], [0], [1], [0, 0, 1, 1], [], []>} : vector<8x32xf32>, vector<32x66xf32>, vector<8x66xf32> -> vector<8x66xf32>
      %344 = arith.addf %313, %343 : vector<8x66xf32>
      %c2_i32_230 = arith.constant 2 : i32
      %345 = arith.muli %c2_i32_230, %211 : i32
      %c1_i32_231 = arith.constant 1 : i32
      %346 = arith.addi %345, %c1_i32_231 : i32
      %c1_i32_232 = arith.constant 1 : i32
      %347 = arith.addi %c1_i32_232, %346 : i32
      %348 = arith.index_cast %347 : i32 to index
      %c0_233 = arith.constant 0 : index
      %c0_234 = arith.constant 0 : index
      %349 = vector.load %arg18[%348, %c0_233, %c0_234] : memref<66x8x66xf32, #tpu.memory_space<vmem>>, vector<1x8x66xf32>
      %350 = vector.shape_cast %349 : vector<1x8x66xf32> to vector<8x66xf32>
      %351 = vector.shape_cast %344 : vector<8x66xf32> to vector<1x8x66xf32>
      tpu.vector_store %arg18[%348, %c0_233, %c0_234], %351 {strides = array<i32>} : memref<66x8x66xf32, #tpu.memory_space<vmem>>, vector<1x8x66xf32>,
    }
    %c32_i32_117 = arith.constant 32 : i32
    %188 = tpu.iota {dimensions = array<i32: 0>} : vector<64x128xi32>
    %189 = tpu.iota {dimensions = array<i32: 1>} : vector<64x128xi32>
    %c2_i32_118 = arith.constant 2 : i32
    %190 = vector.broadcast %c2_i32_118 : i32 to vector<64x128xi32>
    %191 = arith.muli %190, %188 : vector<64x128xi32>
    %c0_i32_119 = arith.constant 0 : i32
    %192 = vector.broadcast %c0_i32_119 : i32 to vector<64x128xi32>
    %193 = arith.addi %191, %192 : vector<64x128xi32>
    %c0_i32_120 = arith.constant 0 : i32
    %194 = vector.broadcast %c0_i32_120 : i32 to vector<64x128xi32>
    %195 = arith.addi %193, %194 : vector<64x128xi32>
    %196 = arith.cmpi eq, %189, %195 : vector<64x128xi32>
    %197 = arith.extui %196 : vector<64x128xi1> to vector<64x128xi32>
    %198 = arith.sitofp %197 : vector<64x128xi32> to vector<64x128xf32>
    %c2_i32_121 = arith.constant 2 : i32
    %199 = vector.broadcast %c2_i32_121 : i32 to vector<64x128xi32>
    %200 = arith.muli %199, %188 : vector<64x128xi32>
    %c0_i32_122 = arith.constant 0 : i32
    %201 = vector.broadcast %c0_i32_122 : i32 to vector<64x128xi32>
    %202 = arith.addi %200, %201 : vector<64x128xi32>
    %c1_i32_123 = arith.constant 1 : i32
    %203 = vector.broadcast %c1_i32_123 : i32 to vector<64x128xi32>
    %204 = arith.addi %202, %203 : vector<64x128xi32>
    %205 = arith.cmpi eq, %189, %204 : vector<64x128xi32>
    %206 = arith.extui %205 : vector<64x128xi1> to vector<64x128xi32>
    %207 = arith.sitofp %206 : vector<64x128xi32> to vector<64x128xf32>
    %c0_124 = arith.constant 0 : index
    %c0_125 = arith.constant 0 : index
    %208 = vector.load %arg12[%c0_124, %c0_125] : memref<3x1xf32, #tpu.memory_space<vmem>>, vector<3x1xf32>
    %c0_i32_126 = arith.constant 0 : i32
    %c64_i32 = arith.constant 64 : i32
    %209 = arith.addi %c0_i32_126, %c64_i32 : i32
    %c1_i32_127 = arith.constant 1 : i32
    scf.for %arg19 = %c0_i32_126 to %209 step %c1_i32_127  : i32 {
      %c1_i32_129 = arith.constant 1 : i32
      %210 = arith.muli %arg19, %c1_i32_129 : i32
      %c0_i32_130 = arith.constant 0 : i32
      %211 = arith.addi %c0_i32_130, %210 : i32
      %cst_131 = arith.constant 0.000000e+00 : f32
      %212 = vector.broadcast %cst_131 : f32 to vector<3x128xf32>
      %c0_i32_132 = arith.constant 0 : i32
      %213 = arith.addi %211, %c0_i32_132 : i32
      %c0_i32_133 = arith.constant 0 : i32
      %214 = arith.addi %213, %c0_i32_133 : i32
      %215 = arith.index_cast %214 : i32 to index
      %c0_134 = arith.constant 0 : index
      %c0_135 = arith.constant 0 : index
      %216 = vector.load %arg18[%215, %c0_134, %c0_135] : memref<66x8x66xf32, #tpu.memory_space<vmem>>, vector<1x8x64xf32>
      %217 = vector.shape_cast %216 : vector<1x8x64xf32> to vector<8x64xf32>
      %c0_i32_136 = arith.constant 0 : i32
      %218 = arith.addi %211, %c0_i32_136 : i32
      %c0_i32_137 = arith.constant 0 : i32
      %219 = arith.addi %218, %c0_i32_137 : i32
      %220 = arith.index_cast %219 : i32 to index
      %c0_138 = arith.constant 0 : index
      %c1_139 = arith.constant 1 : index
      %221 = vector.load %arg18[%220, %c0_138, %c1_139] : memref<66x8x66xf32, #tpu.memory_space<vmem>>, vector<1x8x64xf32>
      %222 = vector.shape_cast %221 : vector<1x8x64xf32> to vector<8x64xf32>
      %c0_i32_140 = arith.constant 0 : i32
      %223 = arith.addi %211, %c0_i32_140 : i32
      %c1_i32_141 = arith.constant 1 : i32
      %224 = arith.addi %223, %c1_i32_141 : i32
      %225 = arith.index_cast %224 : i32 to index
      %c0_142 = arith.constant 0 : index
      %c0_143 = arith.constant 0 : index
      %226 = vector.load %arg18[%225, %c0_142, %c0_143] : memref<66x8x66xf32, #tpu.memory_space<vmem>>, vector<1x8x64xf32>
      %227 = vector.shape_cast %226 : vector<1x8x64xf32> to vector<8x64xf32>
      %c0_i32_144 = arith.constant 0 : i32
      %228 = arith.addi %211, %c0_i32_144 : i32
      %c1_i32_145 = arith.constant 1 : i32
      %229 = arith.addi %228, %c1_i32_145 : i32
      %230 = arith.index_cast %229 : i32 to index
      %c0_146 = arith.constant 0 : index
      %c1_147 = arith.constant 1 : index
      %231 = vector.load %arg18[%230, %c0_146, %c1_147] : memref<66x8x66xf32, #tpu.memory_space<vmem>>, vector<1x8x64xf32>
      %232 = vector.shape_cast %231 : vector<1x8x64xf32> to vector<8x64xf32>
      %233 = tpu.concatenate %217, %222, %227, %232 in 0 : vector<8x64xf32>, vector<8x64xf32>, vector<8x64xf32>, vector<8x64xf32> -> vector<32x64xf32>
      %234 = arith.truncf %233 : vector<32x64xf32> to vector<32x64xbf16>
      %c0_148 = arith.constant 0 : index
      %c0_149 = arith.constant 0 : index
      %c0_150 = arith.constant 0 : index
      %c0_151 = arith.constant 0 : index
      %235 = vector.load %arg11[%c0_148, %c0_149, %c0_150, %c0_151] : memref<2x2x3x32xbf16, #tpu.memory_space<vmem>>, vector<1x1x3x32xbf16>
      %236 = vector.shape_cast %235 : vector<1x1x3x32xbf16> to vector<3x32xbf16>
      %cst_152 = arith.constant dense<0.000000e+00> : vector<3x64xf32>
      %237 = tpu.matmul %236, %234, %cst_152 {dimension_numbers = #tpu.dot_dimension_numbers<[1], [0], [0], [1], [0, 0, 1, 1], [], []>} : vector<3x32xbf16>, vector<32x64xbf16>, vector<3x64xf32> -> vector<3x64xf32>
      %238 = vector.broadcast %208 : vector<3x1xf32> to vector<3x64xf32>
      %239 = arith.addf %237, %238 : vector<3x64xf32>
      %240 = math.tanh %239 : vector<3x64xf32>
      %cst_153 = arith.constant dense<0.000000e+00> : vector<3x128xf32>
      %241 = tpu.matmul %240, %198, %cst_153 {dimension_numbers = #tpu.dot_dimension_numbers<[1], [0], [0], [1], [0, 0, 1, 1], [], []>} : vector<3x64xf32>, vector<64x128xf32>, vector<3x128xf32> -> vector<3x128xf32>
      %242 = arith.addf %212, %241 : vector<3x128xf32>
      %c0_i32_154 = arith.constant 0 : i32
      %243 = arith.addi %211, %c0_i32_154 : i32
      %c0_i32_155 = arith.constant 0 : i32
      %244 = arith.addi %243, %c0_i32_155 : i32
      %245 = arith.index_cast %244 : i32 to index
      %c0_156 = arith.constant 0 : index
      %c1_157 = arith.constant 1 : index
      %246 = vector.load %arg18[%245, %c0_156, %c1_157] : memref<66x8x66xf32, #tpu.memory_space<vmem>>, vector<1x8x64xf32>
      %247 = vector.shape_cast %246 : vector<1x8x64xf32> to vector<8x64xf32>
      %c0_i32_158 = arith.constant 0 : i32
      %248 = arith.addi %211, %c0_i32_158 : i32
      %c0_i32_159 = arith.constant 0 : i32
      %249 = arith.addi %248, %c0_i32_159 : i32
      %250 = arith.index_cast %249 : i32 to index
      %c0_160 = arith.constant 0 : index
      %c2_161 = arith.constant 2 : index
      %251 = vector.load %arg18[%250, %c0_160, %c2_161] : memref<66x8x66xf32, #tpu.memory_space<vmem>>, vector<1x8x64xf32>
      %252 = vector.shape_cast %251 : vector<1x8x64xf32> to vector<8x64xf32>
      %c0_i32_162 = arith.constant 0 : i32
      %253 = arith.addi %211, %c0_i32_162 : i32
      %c1_i32_163 = arith.constant 1 : i32
      %254 = arith.addi %253, %c1_i32_163 : i32
      %255 = arith.index_cast %254 : i32 to index
      %c0_164 = arith.constant 0 : index
      %c1_165 = arith.constant 1 : index
      %256 = vector.load %arg18[%255, %c0_164, %c1_165] : memref<66x8x66xf32, #tpu.memory_space<vmem>>, vector<1x8x64xf32>
      %257 = vector.shape_cast %256 : vector<1x8x64xf32> to vector<8x64xf32>
      %c0_i32_166 = arith.constant 0 : i32
      %258 = arith.addi %211, %c0_i32_166 : i32
      %c1_i32_167 = arith.constant 1 : i32
      %259 = arith.addi %258, %c1_i32_167 : i32
      %260 = arith.index_cast %259 : i32 to index
      %c0_168 = arith.constant 0 : index
      %c2_169 = arith.constant 2 : index
      %261 = vector.load %arg18[%260, %c0_168, %c2_169] : memref<66x8x66xf32, #tpu.memory_space<vmem>>, vector<1x8x64xf32>
      %262 = vector.shape_cast %261 : vector<1x8x64xf32> to vector<8x64xf32>
      %263 = tpu.concatenate %247, %252, %257, %262 in 0 : vector<8x64xf32>, vector<8x64xf32>, vector<8x64xf32>, vector<8x64xf32> -> vector<32x64xf32>
      %264 = arith.truncf %263 : vector<32x64xf32> to vector<32x64xbf16>
      %c0_170 = arith.constant 0 : index
      %c1_171 = arith.constant 1 : index
      %c0_172 = arith.constant 0 : index
      %c0_173 = arith.constant 0 : index
      %265 = vector.load %arg11[%c0_170, %c1_171, %c0_172, %c0_173] : memref<2x2x3x32xbf16, #tpu.memory_space<vmem>>, vector<1x1x3x32xbf16>
      %266 = vector.shape_cast %265 : vector<1x1x3x32xbf16> to vector<3x32xbf16>
      %cst_174 = arith.constant dense<0.000000e+00> : vector<3x64xf32>
      %267 = tpu.matmul %266, %264, %cst_174 {dimension_numbers = #tpu.dot_dimension_numbers<[1], [0], [0], [1], [0, 0, 1, 1], [], []>} : vector<3x32xbf16>, vector<32x64xbf16>, vector<3x64xf32> -> vector<3x64xf32>
      %268 = vector.broadcast %208 : vector<3x1xf32> to vector<3x64xf32>
      %269 = arith.addf %267, %268 : vector<3x64xf32>
      %270 = math.tanh %269 : vector<3x64xf32>
      %cst_175 = arith.constant dense<0.000000e+00> : vector<3x128xf32>
      %271 = tpu.matmul %270, %207, %cst_175 {dimension_numbers = #tpu.dot_dimension_numbers<[1], [0], [0], [1], [0, 0, 1, 1], [], []>} : vector<3x64xf32>, vector<64x128xf32>, vector<3x128xf32> -> vector<3x128xf32>
      %272 = arith.addf %242, %271 : vector<3x128xf32>
      %c2_i32_176 = arith.constant 2 : i32
      %273 = arith.muli %c2_i32_176, %211 : i32
      %c0_i32_177 = arith.constant 0 : i32
      %274 = arith.addi %273, %c0_i32_177 : i32
      %c0_178 = arith.constant 0 : index
      %275 = arith.index_cast %274 : i32 to index
      %c0_179 = arith.constant 0 : index
      %c0_180 = arith.constant 0 : index
      %276 = vector.load %arg13[%c0_178, %275, %c0_179, %c0_180] : memref<1x128x3x128xf32, #tpu.memory_space<vmem>>, vector<1x1x3x128xf32>
      %277 = vector.shape_cast %276 : vector<1x1x3x128xf32> to vector<3x128xf32>
      %278 = vector.shape_cast %272 : vector<3x128xf32> to vector<1x1x3x128xf32>
      tpu.vector_store %arg13[%c0_178, %275, %c0_179, %c0_180], %278 {strides = array<i32>} : memref<1x128x3x128xf32, #tpu.memory_space<vmem>>, vector<1x1x3x128xf32>,
      %cst_181 = arith.constant 0.000000e+00 : f32
      %279 = vector.broadcast %cst_181 : f32 to vector<3x128xf32>
      %c1_i32_182 = arith.constant 1 : i32
      %280 = arith.addi %211, %c1_i32_182 : i32
      %c0_i32_183 = arith.constant 0 : i32
      %281 = arith.addi %280, %c0_i32_183 : i32
      %282 = arith.index_cast %281 : i32 to index
      %c0_184 = arith.constant 0 : index
      %c0_185 = arith.constant 0 : index
      %283 = vector.load %arg18[%282, %c0_184, %c0_185] : memref<66x8x66xf32, #tpu.memory_space<vmem>>, vector<1x8x64xf32>
      %284 = vector.shape_cast %283 : vector<1x8x64xf32> to vector<8x64xf32>
      %c1_i32_186 = arith.constant 1 : i32
      %285 = arith.addi %211, %c1_i32_186 : i32
      %c0_i32_187 = arith.constant 0 : i32
      %286 = arith.addi %285, %c0_i32_187 : i32
      %287 = arith.index_cast %286 : i32 to index
      %c0_188 = arith.constant 0 : index
      %c1_189 = arith.constant 1 : index
      %288 = vector.load %arg18[%287, %c0_188, %c1_189] : memref<66x8x66xf32, #tpu.memory_space<vmem>>, vector<1x8x64xf32>
      %289 = vector.shape_cast %288 : vector<1x8x64xf32> to vector<8x64xf32>
      %c1_i32_190 = arith.constant 1 : i32
      %290 = arith.addi %211, %c1_i32_190 : i32
      %c1_i32_191 = arith.constant 1 : i32
      %291 = arith.addi %290, %c1_i32_191 : i32
      %292 = arith.index_cast %291 : i32 to index
      %c0_192 = arith.constant 0 : index
      %c0_193 = arith.constant 0 : index
      %293 = vector.load %arg18[%292, %c0_192, %c0_193] : memref<66x8x66xf32, #tpu.memory_space<vmem>>, vector<1x8x64xf32>
      %294 = vector.shape_cast %293 : vector<1x8x64xf32> to vector<8x64xf32>
      %c1_i32_194 = arith.constant 1 : i32
      %295 = arith.addi %211, %c1_i32_194 : i32
      %c1_i32_195 = arith.constant 1 : i32
      %296 = arith.addi %295, %c1_i32_195 : i32
      %297 = arith.index_cast %296 : i32 to index
      %c0_196 = arith.constant 0 : index
      %c1_197 = arith.constant 1 : index
      %298 = vector.load %arg18[%297, %c0_196, %c1_197] : memref<66x8x66xf32, #tpu.memory_space<vmem>>, vector<1x8x64xf32>
      %299 = vector.shape_cast %298 : vector<1x8x64xf32> to vector<8x64xf32>
      %300 = tpu.concatenate %284, %289, %294, %299 in 0 : vector<8x64xf32>, vector<8x64xf32>, vector<8x64xf32>, vector<8x64xf32> -> vector<32x64xf32>
      %301 = arith.truncf %300 : vector<32x64xf32> to vector<32x64xbf16>
      %c1_198 = arith.constant 1 : index
      %c0_199 = arith.constant 0 : index
      %c0_200 = arith.constant 0 : index
      %c0_201 = arith.constant 0 : index
      %302 = vector.load %arg11[%c1_198, %c0_199, %c0_200, %c0_201] : memref<2x2x3x32xbf16, #tpu.memory_space<vmem>>, vector<1x1x3x32xbf16>
      %303 = vector.shape_cast %302 : vector<1x1x3x32xbf16> to vector<3x32xbf16>
      %cst_202 = arith.constant dense<0.000000e+00> : vector<3x64xf32>
      %304 = tpu.matmul %303, %301, %cst_202 {dimension_numbers = #tpu.dot_dimension_numbers<[1], [0], [0], [1], [0, 0, 1, 1], [], []>} : vector<3x32xbf16>, vector<32x64xbf16>, vector<3x64xf32> -> vector<3x64xf32>
      %305 = vector.broadcast %208 : vector<3x1xf32> to vector<3x64xf32>
      %306 = arith.addf %304, %305 : vector<3x64xf32>
      %307 = math.tanh %306 : vector<3x64xf32>
      %cst_203 = arith.constant dense<0.000000e+00> : vector<3x128xf32>
      %308 = tpu.matmul %307, %198, %cst_203 {dimension_numbers = #tpu.dot_dimension_numbers<[1], [0], [0], [1], [0, 0, 1, 1], [], []>} : vector<3x64xf32>, vector<64x128xf32>, vector<3x128xf32> -> vector<3x128xf32>
      %309 = arith.addf %279, %308 : vector<3x128xf32>
      %c1_i32_204 = arith.constant 1 : i32
      %310 = arith.addi %211, %c1_i32_204 : i32
      %c0_i32_205 = arith.constant 0 : i32
      %311 = arith.addi %310, %c0_i32_205 : i32
      %312 = arith.index_cast %311 : i32 to index
      %c0_206 = arith.constant 0 : index
      %c1_207 = arith.constant 1 : index
      %313 = vector.load %arg18[%312, %c0_206, %c1_207] : memref<66x8x66xf32, #tpu.memory_space<vmem>>, vector<1x8x64xf32>
      %314 = vector.shape_cast %313 : vector<1x8x64xf32> to vector<8x64xf32>
      %c1_i32_208 = arith.constant 1 : i32
      %315 = arith.addi %211, %c1_i32_208 : i32
      %c0_i32_209 = arith.constant 0 : i32
      %316 = arith.addi %315, %c0_i32_209 : i32
      %317 = arith.index_cast %316 : i32 to index
      %c0_210 = arith.constant 0 : index
      %c2_211 = arith.constant 2 : index
      %318 = vector.load %arg18[%317, %c0_210, %c2_211] : memref<66x8x66xf32, #tpu.memory_space<vmem>>, vector<1x8x64xf32>
      %319 = vector.shape_cast %318 : vector<1x8x64xf32> to vector<8x64xf32>
      %c1_i32_212 = arith.constant 1 : i32
      %320 = arith.addi %211, %c1_i32_212 : i32
      %c1_i32_213 = arith.constant 1 : i32
      %321 = arith.addi %320, %c1_i32_213 : i32
      %322 = arith.index_cast %321 : i32 to index
      %c0_214 = arith.constant 0 : index
      %c1_215 = arith.constant 1 : index
      %323 = vector.load %arg18[%322, %c0_214, %c1_215] : memref<66x8x66xf32, #tpu.memory_space<vmem>>, vector<1x8x64xf32>
      %324 = vector.shape_cast %323 : vector<1x8x64xf32> to vector<8x64xf32>
      %c1_i32_216 = arith.constant 1 : i32
      %325 = arith.addi %211, %c1_i32_216 : i32
      %c1_i32_217 = arith.constant 1 : i32
      %326 = arith.addi %325, %c1_i32_217 : i32
      %327 = arith.index_cast %326 : i32 to index
      %c0_218 = arith.constant 0 : index
      %c2_219 = arith.constant 2 : index
      %328 = vector.load %arg18[%327, %c0_218, %c2_219] : memref<66x8x66xf32, #tpu.memory_space<vmem>>, vector<1x8x64xf32>
      %329 = vector.shape_cast %328 : vector<1x8x64xf32> to vector<8x64xf32>
      %330 = tpu.concatenate %314, %319, %324, %329 in 0 : vector<8x64xf32>, vector<8x64xf32>, vector<8x64xf32>, vector<8x64xf32> -> vector<32x64xf32>
      %331 = arith.truncf %330 : vector<32x64xf32> to vector<32x64xbf16>
      %c1_220 = arith.constant 1 : index
      %c1_221 = arith.constant 1 : index
      %c0_222 = arith.constant 0 : index
      %c0_223 = arith.constant 0 : index
      %332 = vector.load %arg11[%c1_220, %c1_221, %c0_222, %c0_223] : memref<2x2x3x32xbf16, #tpu.memory_space<vmem>>, vector<1x1x3x32xbf16>
      %333 = vector.shape_cast %332 : vector<1x1x3x32xbf16> to vector<3x32xbf16>
      %cst_224 = arith.constant dense<0.000000e+00> : vector<3x64xf32>
      %334 = tpu.matmul %333, %331, %cst_224 {dimension_numbers = #tpu.dot_dimension_numbers<[1], [0], [0], [1], [0, 0, 1, 1], [], []>} : vector<3x32xbf16>, vector<32x64xbf16>, vector<3x64xf32> -> vector<3x64xf32>
      %335 = vector.broadcast %208 : vector<3x1xf32> to vector<3x64xf32>
      %336 = arith.addf %334, %335 : vector<3x64xf32>
      %337 = math.tanh %336 : vector<3x64xf32>
      %cst_225 = arith.constant dense<0.000000e+00> : vector<3x128xf32>
      %338 = tpu.matmul %337, %207, %cst_225 {dimension_numbers = #tpu.dot_dimension_numbers<[1], [0], [0], [1], [0, 0, 1, 1], [], []>} : vector<3x64xf32>, vector<64x128xf32>, vector<3x128xf32> -> vector<3x128xf32>
      %339 = arith.addf %309, %338 : vector<3x128xf32>
      %c2_i32_226 = arith.constant 2 : i32
      %340 = arith.muli %c2_i32_226, %211 : i32
      %c1_i32_227 = arith.constant 1 : i32
      %341 = arith.addi %340, %c1_i32_227 : i32
      %c0_228 = arith.constant 0 : index
      %342 = arith.index_cast %341 : i32 to index
      %c0_229 = arith.constant 0 : index
      %c0_230 = arith.constant 0 : index
      %343 = vector.load %arg13[%c0_228, %342, %c0_229, %c0_230] : memref<1x128x3x128xf32, #tpu.memory_space<vmem>>, vector<1x1x3x128xf32>
      %344 = vector.shape_cast %343 : vector<1x1x3x128xf32> to vector<3x128xf32>
      %345 = vector.shape_cast %339 : vector<3x128xf32> to vector<1x1x3x128xf32>
      tpu.vector_store %arg13[%c0_228, %342, %c0_229, %c0_230], %345 {strides = array<i32>} : memref<1x128x3x128xf32, #tpu.memory_space<vmem>>, vector<1x1x3x128xf32>,
    }
    %c64_i32_128 = arith.constant 64 : i32
    return
  }
  func.func @transform_0(%arg0: i32) -> (i32, i32, i32) {
    %c0_i32 = arith.constant 0 : i32
    %c0_i32_0 = arith.constant 0 : i32
    %c0_i32_1 = arith.constant 0 : i32
    return %arg0, %c0_i32, %c0_i32_0 : i32, i32, i32
  }
  func.func @transform_1(%arg0: i32) -> (i32, i32) {
    %c0_i32 = arith.constant 0 : i32
    %c0_i32_0 = arith.constant 0 : i32
    %c0_i32_1 = arith.constant 0 : i32
    return %c0_i32, %c0_i32_0 : i32, i32
  }
  func.func @transform_2(%arg0: i32) -> (i32, i32, i32, i32) {
    %c0_i32 = arith.constant 0 : i32
    %c0_i32_0 = arith.constant 0 : i32
    %c0_i32_1 = arith.constant 0 : i32
    %c0_i32_2 = arith.constant 0 : i32
    %c0_i32_3 = arith.constant 0 : i32
    return %c0_i32, %c0_i32_0, %c0_i32_1, %c0_i32_2 : i32, i32, i32, i32
  }
  func.func @transform_3(%arg0: i32) -> (i32, i32) {
    %c0_i32 = arith.constant 0 : i32
    %c0_i32_0 = arith.constant 0 : i32
    %c0_i32_1 = arith.constant 0 : i32
    return %c0_i32, %c0_i32_0 : i32, i32
  }
  func.func @transform_4(%arg0: i32) -> (i32, i32, i32, i32) {
    %c0_i32 = arith.constant 0 : i32
    %c0_i32_0 = arith.constant 0 : i32
    %c0_i32_1 = arith.constant 0 : i32
    %c0_i32_2 = arith.constant 0 : i32
    %c0_i32_3 = arith.constant 0 : i32
    return %c0_i32, %c0_i32_0, %c0_i32_1, %c0_i32_2 : i32, i32, i32, i32
  }
  func.func @transform_5(%arg0: i32) -> (i32, i32) {
    %c0_i32 = arith.constant 0 : i32
    %c0_i32_0 = arith.constant 0 : i32
    %c0_i32_1 = arith.constant 0 : i32
    return %c0_i32, %c0_i32_0 : i32, i32
  }
  func.func @transform_6(%arg0: i32) -> (i32, i32, i32, i32) {
    %c0_i32 = arith.constant 0 : i32
    %c0_i32_0 = arith.constant 0 : i32
    %c0_i32_1 = arith.constant 0 : i32
    %c0_i32_2 = arith.constant 0 : i32
    %c0_i32_3 = arith.constant 0 : i32
    return %c0_i32, %c0_i32_0, %c0_i32_1, %c0_i32_2 : i32, i32, i32, i32
  }
  func.func @transform_7(%arg0: i32) -> (i32, i32) {
    %c0_i32 = arith.constant 0 : i32
    %c0_i32_0 = arith.constant 0 : i32
    %c0_i32_1 = arith.constant 0 : i32
    return %c0_i32, %c0_i32_0 : i32, i32
  }
  func.func @transform_8(%arg0: i32) -> (i32, i32, i32, i32) {
    %c0_i32 = arith.constant 0 : i32
    %c0_i32_0 = arith.constant 0 : i32
    %c0_i32_1 = arith.constant 0 : i32
    %c0_i32_2 = arith.constant 0 : i32
    %c0_i32_3 = arith.constant 0 : i32
    return %c0_i32, %c0_i32_0, %c0_i32_1, %c0_i32_2 : i32, i32, i32, i32
  }
  func.func @transform_9(%arg0: i32) -> (i32, i32) {
    %c0_i32 = arith.constant 0 : i32
    %c0_i32_0 = arith.constant 0 : i32
    %c0_i32_1 = arith.constant 0 : i32
    return %c0_i32, %c0_i32_0 : i32, i32
  }
  func.func @transform_10(%arg0: i32) -> (i32, i32, i32, i32) {
    %c0_i32 = arith.constant 0 : i32
    %c0_i32_0 = arith.constant 0 : i32
    %c0_i32_1 = arith.constant 0 : i32
    %c0_i32_2 = arith.constant 0 : i32
    %c0_i32_3 = arith.constant 0 : i32
    return %c0_i32, %c0_i32_0, %c0_i32_1, %c0_i32_2 : i32, i32, i32, i32
  }
  func.func @transform_11(%arg0: i32) -> (i32, i32) {
    %c0_i32 = arith.constant 0 : i32
    %c0_i32_0 = arith.constant 0 : i32
    %c0_i32_1 = arith.constant 0 : i32
    return %c0_i32, %c0_i32_0 : i32, i32
  }
  func.func @transform_12(%arg0: i32) -> (i32, i32, i32, i32) {
    %c0_i32 = arith.constant 0 : i32
    %c0_i32_0 = arith.constant 0 : i32
    %c0_i32_1 = arith.constant 0 : i32
    %c0_i32_2 = arith.constant 0 : i32
    return %arg0, %c0_i32, %c0_i32_0, %c0_i32_1 : i32, i32, i32, i32
  }
}

</mosaic_0001>

<bundles_post_ra>
// kernel: tpu_custom_call.1
= control target key start
LH: loop header
LB: loop body
LE: loop exit
PB: predicated region body
PF: predicated region fallthrough
CT: control target
= control target key end

     0   :  { %s9377_s21 = smov 0   ;;  %s11952_s0 = inlined_call_operand.vmem [shape: f32[2,33,1], index: 0, kind: input, shape index: {}]   ;;  %s11953_s1 = inlined_call_operand.vmem [shape: f32[1024,33], index: 1, kind: input, shape index: {}]   ;;  %s11954_s2 = inlined_call_operand.vmem [shape: bf16[2,2,64,256], index: 2, kind: input, shape index: {}]   ;;  %s11955_s3 = inlined_call_operand.vmem [shape: f32[64,1], index: 3, kind: input, shape index: {}]   ;;  %s11956_s4 = inlined_call_operand.vmem [shape: bf16[2,2,32,256], index: 4, kind: input, shape index: {}]   ;;  %s11957_s5 = inlined_call_operand.vmem [shape: f32[32,1], index: 5, kind: input, shape index: {}]   ;;  %s11958_s6 = inlined_call_operand.vmem [shape: bf16[2,2,16,128], index: 6, kind: input, shape index: {}]   ;;  %s11959_s7 = inlined_call_operand.vmem [shape: f32[16,1], index: 7, kind: input, shape index: {}]   ;;  %s11960_s8 = inlined_call_operand.vmem [shape: bf16[2,2,8,64], index: 8, kind: input, shape index: {}]   ;;  %s11961_s9 = inlined_call_operand.vmem [shape: f32[8,1], index: 9, kind: input, shape index: {}]   ;;  %s11962_s10 = inlined_call_operand.vmem [shape: bf16[2,2,3,32], index: 10, kind: input, shape index: {}]   ;;  %s11963_s11 = inlined_call_operand.vmem [shape: f32[3,1], index: 11, kind: input, shape index: {}]   ;;  %s11964_s12 = inlined_call_operand.vmem [shape: f32[2,128,3,128], index: 12, kind: output, shape index: {}]  }
   0x1 LB: > { %s7103_s22 = sadd.s32 4294967295, %s9265_s21   ;;  %p7107_p0 = scmp.ge.s32.totalorder %s9265_s21, 1  ;;  %s9265_s21 = sphi %s9377_s21, %s22_s21  }
   0x2   : > { %p362_p1 = scmp.lt.s32.totalorder %s9265_s21, 3 }
   0x4   : > { %p363_p2 = pnand %p7107_p0, %p362_p1 }
   0x5   : > { %p404_p3 = scmp.lt.s32.totalorder (!%p363_p2), %s7103_s22, 1  ;;  %s9288_s30 = smov (!%p363_p2), 1  }
   0x6   : > { %366 = sbr.rel (%p363_p2) target bundleno = 5098 (0x13ea), region = 68  ;;  %s9289_s14 = smov (!%p363_p2), 2  }
   0x7   : > { %s9290_s15 = smov (!%p363_p2), 3  }
   0xb   : > { %v415_v0 = vld [vmem:[%s11953_s1] sm:$0xff]  ;;  %vm548_vm0 = vcmask 269312   ;;  %s12005_s22 = smov (!%p404_p3, %s7103_s22), 1  ;;  %vm933_vm1 = vcmask 1040384   ;;  %v416_v7 = vld [vmem:[%s11953_s1 + $0x8] sm:$0xff]  ;;  %v417_v9 = vld [vmem:[%s11953_s1 + $0x10] sm:$0xff] }
   0xc   : > { %v479_v1 = vld [vmem:[%s11953_s1 + $0x200] sm:$0xff]  ;;  %8255 = vmatprep.mubr.msk.f32.mxu0 %vm548_vm0, %v415_v0  ;;  %s8853_s27 = smul.u32 40, %s12005_s22  ;;  %s7633_s28 = sshll.u32 %s12005_s22, 9  ;;  %v480_v8 = vld [vmem:[%s11953_s1 + $0x208] sm:$0xff]  ;;  %v481_v10 = vld [vmem:[%s11953_s1 + $0x210] sm:$0xff]  ;;  %vm1770_vm2 = vcmask 48128  }
   0xd   : > { %8351 = vmatprep.mubr.msk.f32.mxu1 %vm548_vm0, %v479_v1  ;;  %s9396_s13 = scalar_lea.vmem %s11964_s12, %s7633_s28  ;;  %v418_v11 = vld [vmem:[%s11953_s1 + $0x18] sm:$0xff]  ;;  %v419_v13 = vld [vmem:[%s11953_s1 + $0x20] sm:$0xff]  ;;  %v420_v15 = vld [vmem:[%s11953_s1 + $0x28] sm:$0xff]  ;;  %vm1852_vm3 = vcmask 15368   ;;  %vm1893_vm4 = vcmask 23568   ;;  %vm1934_vm5 = vcmask 31768  }
   0xe   : > { %s408_s16 = scalar_lea.vmem %s11952_s0, %s8853_s27  ;;  %v482_v12 = vld [vmem:[%s11953_s1 + $0x218] sm:$0xff]  ;;  %v483_v14 = vld [vmem:[%s11953_s1 + $0x220] sm:$0xff]  ;;  %v484_v16 = vld [vmem:[%s11953_s1 + $0x228] sm:$0xff]  ;;  %vm1975_vm6 = vcmask 39968   ;;  %vm2488_vm9 = vcmask 80896  }
   0xf   : > { %v547_v2 = vld [vmem:[%s408_s16 + $0x20] sm:$0x1]  ;;  %v546_v3 = vld [vmem:[%s408_s16 + $0x18] sm:$0xff]  ;;  %v545_v4 = vld [vmem:[%s408_s16 + $0x10] sm:$0xff] }
  0x10   : > { %8245 = vmatprep.subr.msk.mxu0 %vm933_vm1, %v547_v2  ;;  %8843 = vmatprep.subr.msk.mxu1 %vm933_vm1, %v547_v2  ;;  %v544_v5 = vld [vmem:[%s408_s16 + $0x8] sm:$0xff]  ;;  %v543_v6 = vld [vmem:[%s408_s16] sm:$0xff]  ;;  %v421_v17 = vld [vmem:[%s11953_s1 + $0x30] sm:$0xff]  ;;  %s9291_s16 = smov 4  }
  0x11   : > { %8246 = vmatpush3.msk.msra.mxu0 %vm933_vm1, %v547_v2  ;;  %8848 = vmatpush3.msk.msra.mxu1 %vm933_vm1, %v547_v2  ;;  %v485_v18 = vld [vmem:[%s11953_s1 + $0x230] sm:$0xff]  ;;  %v422_v19 = vld [vmem:[%s11953_s1 + $0x38] sm:$0xff]  ;;  %v423_v21 = vld [vmem:[%s11953_s1 + $0x40] sm:$0xff] }
  0x12   : > { %8247 = vmatprep.subr.mxu0 %v546_v3  ;;  %8844 = vmatprep.subr.mxu1 %v546_v3  ;;  %v486_v20 = vld [vmem:[%s11953_s1 + $0x238] sm:$0xff]  ;;  %v487_v22 = vld [vmem:[%s11953_s1 + $0x240] sm:$0xff]  ;;  %v424_v23 = vld [vmem:[%s11953_s1 + $0x48] sm:$0xff] }
  0x13   : > { %8248 = vmatpush3.msra.mxu0 %v546_v3  ;;  %8849 = vmatpush3.msra.mxu1 %v546_v3  ;;  %v488_v24 = vld [vmem:[%s11953_s1 + $0x248] sm:$0xff]  ;;  %v425_v25 = vld [vmem:[%s11953_s1 + $0x50] sm:$0xff]  ;;  %v426_v27 = vld [vmem:[%s11953_s1 + $0x58] sm:$0xff] }
  0x14   : > { %8249 = vmatprep.subr.mxu0 %v545_v4  ;;  %8845 = vmatprep.subr.mxu1 %v545_v4  ;;  %v489_v26 = vld [vmem:[%s11953_s1 + $0x250] sm:$0xff]  ;;  %v490_v28 = vld [vmem:[%s11953_s1 + $0x258] sm:$0xff]  ;;  %v427_v29 = vld [vmem:[%s11953_s1 + $0x60] sm:$0xff] }
  0x15   : > { %8250 = vmatpush3.msra.mxu0 %v545_v4  ;;  %8850 = vmatpush3.msra.mxu1 %v545_v4  ;;  %v491_v30 = vld [vmem:[%s11953_s1 + $0x260] sm:$0xff]  ;;  %v428_v31 = vld [vmem:[%s11953_s1 + $0x68] sm:$0xff]  ;;  %v429_v33 = vld [vmem:[%s11953_s1 + $0x70] sm:$0xff] }
  0x16   : > { %8251 = vmatprep.subr.mxu0 %v544_v5  ;;  %8846 = vmatprep.subr.mxu1 %v544_v5  ;;  %v492_v32 = vld [vmem:[%s11953_s1 + $0x268] sm:$0xff]  ;;  %v493_v34 = vld [vmem:[%s11953_s1 + $0x270] sm:$0xff]  ;;  %v430_v35 = vld [vmem:[%s11953_s1 + $0x78] sm:$0xff] }
  0x17   : > { %8252 = vmatpush3.msra.mxu0 %v544_v5  ;;  %8851 = vmatpush3.msra.mxu1 %v544_v5  ;;  %v494_v36 = vld [vmem:[%s11953_s1 + $0x278] sm:$0xff]  ;;  %v431_v37 = vld [vmem:[%s11953_s1 + $0x80] sm:$0xff]  ;;  %v432_v39 = vld [vmem:[%s11953_s1 + $0x88] sm:$0xff] }
  0x18   : > { %8253 = vmatprep.subr.mxu0 %v543_v6  ;;  %8847 = vmatprep.subr.mxu1 %v543_v6  ;;  %v495_v38 = vld [vmem:[%s11953_s1 + $0x280] sm:$0xff]  ;;  %v496_v40 = vld [vmem:[%s11953_s1 + $0x288] sm:$0xff]  ;;  %v433_v41 = vld [vmem:[%s11953_s1 + $0x90] sm:$0xff] }
  0x19   : > { %8254 = vmatpush3.msra.mxu0 %v543_v6  ;;  %8852 = vmatpush3.msra.mxu1 %v543_v6  ;;  %v497_v42 = vld [vmem:[%s11953_s1 + $0x290] sm:$0xff]  ;;  %v434_v43 = vld [vmem:[%s11953_s1 + $0x98] sm:$0xff]  ;;  %v435_v45 = vld [vmem:[%s11953_s1 + $0xa0] sm:$0xff] }
  0x1a   : > { %8256 = vmatmul.mubr.msk.f32.vlgmr.msra.gmra.mxu0 %vm548_vm0, %v416_v7  ;;  %8352 = vmatmul.mubr.msk.f32.vlgmr.msra.gmra.mxu1 %vm548_vm0, %v480_v8  ;;  %v498_v44 = vld [vmem:[%s11953_s1 + $0x298] sm:$0xff]  ;;  %v499_v46 = vld [vmem:[%s11953_s1 + $0x2a0] sm:$0xff]  ;;  %v436_v47 = vld [vmem:[%s11953_s1 + $0xa8] sm:$0xff] }
  0x1b   : > { %8258 = vmatprep.mubr.msk.f32.mxu0 %vm548_vm0, %v417_v9  ;;  %8354 = vmatprep.mubr.msk.f32.mxu1 %vm548_vm0, %v481_v10  ;;  %v500_v48 = vld [vmem:[%s11953_s1 + $0x2a8] sm:$0xff]  ;;  %v437_v49 = vld [vmem:[%s11953_s1 + $0xb0] sm:$0xff]  ;;  %v438_v51 = vld [vmem:[%s11953_s1 + $0xb8] sm:$0xff] }
  0x1c   : > { %v501_v50 = vld [vmem:[%s11953_s1 + $0x2b0] sm:$0xff]  ;;  %v502_v52 = vld [vmem:[%s11953_s1 + $0x2b8] sm:$0xff]  ;;  %v439_v53 = vld [vmem:[%s11953_s1 + $0xc0] sm:$0xff] }
  0x1d   : > { %v503_v54 = vld [vmem:[%s11953_s1 + $0x2c0] sm:$0xff]  ;;  %v440_v55 = vld [vmem:[%s11953_s1 + $0xc8] sm:$0xff]  ;;  %v441_v57 = vld [vmem:[%s11953_s1 + $0xd0] sm:$0xff] }
  0x1e   : > { %8259 = vmatmul.mubr.msk.f32.gmra.mxu0 %vm548_vm0, %v418_v11  ;;  %8355 = vmatmul.mubr.msk.f32.gmra.mxu1 %vm548_vm0, %v482_v12  ;;  %v504_v56 = vld [vmem:[%s11953_s1 + $0x2c8] sm:$0xff]  ;;  %v505_v58 = vld [vmem:[%s11953_s1 + $0x2d0] sm:$0xff]  ;;  %v442_v59 = vld [vmem:[%s11953_s1 + $0xd8] sm:$0xff] }
  0x1f   : > { %8261 = vmatprep.mubr.msk.f32.mxu0 %vm548_vm0, %v419_v13  ;;  %8357 = vmatprep.mubr.msk.f32.mxu1 %vm548_vm0, %v483_v14  ;;  %v506_v60 = vld [vmem:[%s11953_s1 + $0x2d8] sm:$0xff]  ;;  %v443_v61 = vld [vmem:[%s11953_s1 + $0xe0] sm:$0xff]  ;;  %v444_v63 = vld [vmem:[%s11953_s1 + $0xe8] sm:$0xff] }
  0x20   : > { %v507_v62 = vld [vmem:[%s11953_s1 + $0x2e0] sm:$0xff]  ;;  %v508_v0 = vld [vmem:[%s11953_s1 + $0x2e8] sm:$0xff]  ;;  %v445_v1 = vld [vmem:[%s11953_s1 + $0xf0] sm:$0xff] }
  0x21   : > { %v509_v2 = vld [vmem:[%s11953_s1 + $0x2f0] sm:$0xff]  ;;  %v446_v3 = vld [vmem:[%s11953_s1 + $0xf8] sm:$0xff]  ;;  %v447_v5 = vld [vmem:[%s11953_s1 + $0x100] sm:$0xff] }
  0x22   : > { %8262 = vmatmul.mubr.msk.f32.gmra.mxu0 %vm548_vm0, %v420_v15  ;;  %8358 = vmatmul.mubr.msk.f32.gmra.mxu1 %vm548_vm0, %v484_v16  ;;  %v510_v4 = vld [vmem:[%s11953_s1 + $0x2f8] sm:$0xff]  ;;  %v511_v6 = vld [vmem:[%s11953_s1 + $0x300] sm:$0xff]  ;;  %v448_v7 = vld [vmem:[%s11953_s1 + $0x108] sm:$0xff] }
  0x23   : > { %8264 = vmatprep.mubr.msk.f32.mxu0 %vm548_vm0, %v421_v17  ;;  %8360 = vmatprep.mubr.msk.f32.mxu1 %vm548_vm0, %v485_v18  ;;  %v512_v8 = vld [vmem:[%s11953_s1 + $0x308] sm:$0xff]  ;;  %v449_v9 = vld [vmem:[%s11953_s1 + $0x110] sm:$0xff]  ;;  %v450_v11 = vld [vmem:[%s11953_s1 + $0x118] sm:$0xff] }
  0x24   : > { %v513_v10 = vld [vmem:[%s11953_s1 + $0x310] sm:$0xff]  ;;  %v514_v12 = vld [vmem:[%s11953_s1 + $0x318] sm:$0xff]  ;;  %v451_v13 = vld [vmem:[%s11953_s1 + $0x120] sm:$0xff] }
  0x25   : > { %v515_v14 = vld [vmem:[%s11953_s1 + $0x320] sm:$0xff]  ;;  %v452_v15 = vld [vmem:[%s11953_s1 + $0x128] sm:$0xff]  ;;  %v453_v17 = vld [vmem:[%s11953_s1 + $0x130] sm:$0xff] }
  0x26   : > { %8265 = vmatmul.mubr.msk.f32.gmra.mxu0 %vm548_vm0, %v422_v19  ;;  %8361 = vmatmul.mubr.msk.f32.gmra.mxu1 %vm548_vm0, %v486_v20  ;;  %v516_v16 = vld [vmem:[%s11953_s1 + $0x328] sm:$0xff]  ;;  %v517_v18 = vld [vmem:[%s11953_s1 + $0x330] sm:$0xff]  ;;  %v454_v19 = vld [vmem:[%s11953_s1 + $0x138] sm:$0xff] }
  0x27   : > { %8267 = vmatprep.mubr.msk.f32.mxu0 %vm548_vm0, %v423_v21  ;;  %8363 = vmatprep.mubr.msk.f32.mxu1 %vm548_vm0, %v487_v22  ;;  %v518_v20 = vld [vmem:[%s11953_s1 + $0x338] sm:$0xff]  ;;  %v455_v21 = vld [vmem:[%s11953_s1 + $0x140] sm:$0xff] }
  0x28   : > { %v519_v22 = vld [vmem:[%s11953_s1 + $0x340] sm:$0xff] }
  0x2a   : > { %8268 = vmatmul.mubr.msk.f32.gmra.mxu0 %vm548_vm0, %v424_v23  ;;  %8364 = vmatmul.mubr.msk.f32.gmra.mxu1 %vm548_vm0, %v488_v24  ;;  %v456_v23 = vld [vmem:[%s11953_s1 + $0x148] sm:$0xff] }
  0x2b   : > { %8270 = vmatprep.mubr.msk.f32.mxu0 %vm548_vm0, %v425_v25  ;;  %8366 = vmatprep.mubr.msk.f32.mxu1 %vm548_vm0, %v489_v26  ;;  %v520_v24 = vld [vmem:[%s11953_s1 + $0x348] sm:$0xff]  ;;  %v457_v25 = vld [vmem:[%s11953_s1 + $0x150] sm:$0xff] }
  0x2c   : > { %v521_v26 = vld [vmem:[%s11953_s1 + $0x350] sm:$0xff] }
  0x2e   : > { %8271 = vmatmul.mubr.msk.f32.gmra.mxu0 %vm548_vm0, %v426_v27  ;;  %8367 = vmatmul.mubr.msk.f32.gmra.mxu1 %vm548_vm0, %v490_v28  ;;  %v458_v27 = vld [vmem:[%s11953_s1 + $0x158] sm:$0xff] }
  0x2f   : > { %8273 = vmatprep.mubr.msk.f32.mxu0 %vm548_vm0, %v427_v29  ;;  %8369 = vmatprep.mubr.msk.f32.mxu1 %vm548_vm0, %v491_v30  ;;  %v522_v28 = vld [vmem:[%s11953_s1 + $0x358] sm:$0xff]  ;;  %v459_v29 = vld [vmem:[%s11953_s1 + $0x160] sm:$0xff] }
  0x30   : > { %v523_v30 = vld [vmem:[%s11953_s1 + $0x360] sm:$0xff] }
  0x32   : > { %8274 = vmatmul.mubr.msk.f32.gmra.mxu0 %vm548_vm0, %v428_v31  ;;  %8370 = vmatmul.mubr.msk.f32.gmra.mxu1 %vm548_vm0, %v492_v32  ;;  %v460_v31 = vld [vmem:[%s11953_s1 + $0x168] sm:$0xff] }
  0x33   : > { %8276 = vmatprep.mubr.msk.f32.mxu0 %vm548_vm0, %v429_v33  ;;  %8372 = vmatprep.mubr.msk.f32.mxu1 %vm548_vm0, %v493_v34  ;;  %v524_v32 = vld [vmem:[%s11953_s1 + $0x368] sm:$0xff]  ;;  %v461_v33 = vld [vmem:[%s11953_s1 + $0x170] sm:$0xff] }
  0x34   : > { %v525_v34 = vld [vmem:[%s11953_s1 + $0x370] sm:$0xff] }
  0x36   : > { %8277 = vmatmul.mubr.msk.f32.gmra.mxu0 %vm548_vm0, %v430_v35  ;;  %8373 = vmatmul.mubr.msk.f32.gmra.mxu1 %vm548_vm0, %v494_v36  ;;  %v462_v35 = vld [vmem:[%s11953_s1 + $0x178] sm:$0xff] }
  0x37   : > { %8279 = vmatprep.mubr.msk.f32.mxu0 %vm548_vm0, %v431_v37  ;;  %8375 = vmatprep.mubr.msk.f32.mxu1 %vm548_vm0, %v495_v38  ;;  %v526_v36 = vld [vmem:[%s11953_s1 + $0x378] sm:$0xff]  ;;  %v463_v37 = vld [vmem:[%s11953_s1 + $0x180] sm:$0xff] }
  0x38   : > { %v527_v38 = vld [vmem:[%s11953_s1 + $0x380] sm:$0xff] }
  0x3a   : > { %8280 = vmatmul.mubr.msk.f32.gmra.mxu0 %vm548_vm0, %v432_v39  ;;  %8376 = vmatmul.mubr.msk.f32.gmra.mxu1 %vm548_vm0, %v496_v40  ;;  %v464_v39 = vld [vmem:[%s11953_s1 + $0x188] sm:$0xff] }
  0x3b   : > { %8282 = vmatprep.mubr.msk.f32.mxu0 %vm548_vm0, %v433_v41  ;;  %8378 = vmatprep.mubr.msk.f32.mxu1 %vm548_vm0, %v497_v42  ;;  %v528_v40 = vld [vmem:[%s11953_s1 + $0x388] sm:$0xff]  ;;  %v465_v41 = vld [vmem:[%s11953_s1 + $0x190] sm:$0xff] }
  0x3c   : > { %v529_v42 = vld [vmem:[%s11953_s1 + $0x390] sm:$0xff] }
  0x3e   : > { %8283 = vmatmul.mubr.msk.f32.gmra.mxu0 %vm548_vm0, %v434_v43  ;;  %8379 = vmatmul.mubr.msk.f32.gmra.mxu1 %vm548_vm0, %v498_v44  ;;  %v466_v43 = vld [vmem:[%s11953_s1 + $0x198] sm:$0xff] }
  0x3f   : > { %8285 = vmatprep.mubr.msk.f32.mxu0 %vm548_vm0, %v435_v45  ;;  %8381 = vmatprep.mubr.msk.f32.mxu1 %vm548_vm0, %v499_v46  ;;  %v530_v44 = vld [vmem:[%s11953_s1 + $0x398] sm:$0xff]  ;;  %v467_v45 = vld [vmem:[%s11953_s1 + $0x1a0] sm:$0xff] }
  0x40   : > { %v531_v46 = vld [vmem:[%s11953_s1 + $0x3a0] sm:$0xff] }
  0x42   : > { %8286 = vmatmul.mubr.msk.f32.gmra.mxu0 %vm548_vm0, %v436_v47  ;;  %8382 = vmatmul.mubr.msk.f32.gmra.mxu1 %vm548_vm0, %v500_v48  ;;  %v468_v47 = vld [vmem:[%s11953_s1 + $0x1a8] sm:$0xff] }
  0x43   : > { %8288 = vmatprep.mubr.msk.f32.mxu0 %vm548_vm0, %v437_v49  ;;  %8384 = vmatprep.mubr.msk.f32.mxu1 %vm548_vm0, %v501_v50  ;;  %v532_v48 = vld [vmem:[%s11953_s1 + $0x3a8] sm:$0xff]  ;;  %v469_v49 = vld [vmem:[%s11953_s1 + $0x1b0] sm:$0xff] }
  0x44   : > { %v533_v50 = vld [vmem:[%s11953_s1 + $0x3b0] sm:$0xff] }
  0x46   : > { %8289 = vmatmul.mubr.msk.f32.gmra.mxu0 %vm548_vm0, %v438_v51  ;;  %8385 = vmatmul.mubr.msk.f32.gmra.mxu1 %vm548_vm0, %v502_v52  ;;  %v470_v51 = vld [vmem:[%s11953_s1 + $0x1b8] sm:$0xff] }
  0x47   : > { %8291 = vmatprep.mubr.msk.f32.mxu0 %vm548_vm0, %v439_v53  ;;  %8387 = vmatprep.mubr.msk.f32.mxu1 %vm548_vm0, %v503_v54  ;;  %v534_v52 = vld [vmem:[%s11953_s1 + $0x3b8] sm:$0xff]  ;;  %v471_v53 = vld [vmem:[%s11953_s1 + $0x1c0] sm:$0xff] }
  0x48   : > { %v535_v54 = vld [vmem:[%s11953_s1 + $0x3c0] sm:$0xff] }
  0x4a   : > { %8292 = vmatmul.mubr.msk.f32.gmra.mxu0 %vm548_vm0, %v440_v55  ;;  %8388 = vmatmul.mubr.msk.f32.gmra.mxu1 %vm548_vm0, %v504_v56  ;;  %v472_v55 = vld [vmem:[%s11953_s1 + $0x1c8] sm:$0xff] }
  0x4b   : > { %8294 = vmatprep.mubr.msk.f32.mxu0 %vm548_vm0, %v441_v57  ;;  %8390 = vmatprep.mubr.msk.f32.mxu1 %vm548_vm0, %v505_v58  ;;  %v536_v56 = vld [vmem:[%s11953_s1 + $0x3c8] sm:$0xff]  ;;  %v473_v57 = vld [vmem:[%s11953_s1 + $0x1d0] sm:$0xff] }
  0x4c   : > { %v537_v58 = vld [vmem:[%s11953_s1 + $0x3d0] sm:$0xff] }
  0x4e   : > { %8295 = vmatmul.mubr.msk.f32.gmra.mxu0 %vm548_vm0, %v442_v59  ;;  %8391 = vmatmul.mubr.msk.f32.gmra.mxu1 %vm548_vm0, %v506_v60  ;;  %v474_v59 = vld [vmem:[%s11953_s1 + $0x1d8] sm:$0xff] }
  0x4f   : > { %8297 = vmatprep.mubr.msk.f32.mxu0 %vm548_vm0, %v443_v61  ;;  %8393 = vmatprep.mubr.msk.f32.mxu1 %vm548_vm0, %v507_v62  ;;  %v538_v60 = vld [vmem:[%s11953_s1 + $0x3d8] sm:$0xff]  ;;  %v475_v61 = vld [vmem:[%s11953_s1 + $0x1e0] sm:$0xff] }
  0x50   : > { %v539_v62 = vld [vmem:[%s11953_s1 + $0x3e0] sm:$0xff] }
  0x52   : > { %8298 = vmatmul.mubr.msk.f32.gmra.mxu0 %vm548_vm0, %v444_v63  ;;  %8394 = vmatmul.mubr.msk.f32.gmra.mxu1 %vm548_vm0, %v508_v0  ;;  %v476_v63 = vld [vmem:[%s11953_s1 + $0x1e8] sm:$0xff] }
  0x53   : > { %8300 = vmatprep.mubr.msk.f32.mxu0 %vm548_vm0, %v445_v1  ;;  %8396 = vmatprep.mubr.msk.f32.mxu1 %vm548_vm0, %v509_v2  ;;  %v540_v0 = vld [vmem:[%s11953_s1 + $0x3e8] sm:$0xff]  ;;  %v477_v1 = vld [vmem:[%s11953_s1 + $0x1f0] sm:$0xff] }
  0x54   : > { %v541_v2 = vld [vmem:[%s11953_s1 + $0x3f0] sm:$0xff] }
  0x56   : > { %8301 = vmatmul.mubr.msk.f32.gmra.mxu0 %vm548_vm0, %v446_v3  ;;  %8397 = vmatmul.mubr.msk.f32.gmra.mxu1 %vm548_vm0, %v510_v4  ;;  %v478_v3 = vld [vmem:[%s11953_s1 + $0x1f8] sm:$0xff] }
  0x57   : > { %8303 = vmatprep.mubr.msk.f32.mxu0 %vm548_vm0, %v447_v5  ;;  %8399 = vmatprep.mubr.msk.f32.mxu1 %vm548_vm0, %v511_v6  ;;  %v542_v4 = vld [vmem:[%s11953_s1 + $0x3f8] sm:$0xff]  ;;  %v9287_v5 = vmov 0.0  }
  0x58   : > { %1796 = vst.msk [vmem:[#allocation2 + $0xc8] sm:$0xff] %vm1770_vm2, %v9287_v5  ;;  %1771 = vst.msk [vmem:[#allocation2] sm:$0xff] %vm1770_vm2, %v9287_v5 }
  0x59   : > { %1772 = vst.msk [vmem:[#allocation2 + $0x8] sm:$0xff] %vm1770_vm2, %v9287_v5  ;;  %1773 = vst.msk [vmem:[#allocation2 + $0x10] sm:$0xff] %vm1770_vm2, %v9287_v5 }
  0x5a   : > { %8304 = vmatmul.mubr.msk.f32.gmra.mxu0 %vm548_vm0, %v448_v7  ;;  %8400 = vmatmul.mubr.msk.f32.gmra.mxu1 %vm548_vm0, %v512_v8  ;;  %1774 = vst.msk [vmem:[#allocation2 + $0x18] sm:$0xff] %vm1770_vm2, %v9287_v5  ;;  %1775 = vst.msk [vmem:[#allocation2 + $0x20] sm:$0xff] %vm1770_vm2, %v9287_v5 }
  0x5b   : > { %8306 = vmatprep.mubr.msk.f32.mxu0 %vm548_vm0, %v449_v9  ;;  %8402 = vmatprep.mubr.msk.f32.mxu1 %vm548_vm0, %v513_v10  ;;  %1776 = vst.msk [vmem:[#allocation2 + $0x28] sm:$0xff] %vm1770_vm2, %v9287_v5  ;;  %1777 = vst.msk [vmem:[#allocation2 + $0x30] sm:$0xff] %vm1770_vm2, %v9287_v5 }
  0x5c   : > { %1778 = vst.msk [vmem:[#allocation2 + $0x38] sm:$0xff] %vm1770_vm2, %v9287_v5  ;;  %1779 = vst.msk [vmem:[#allocation2 + $0x40] sm:$0xff] %vm1770_vm2, %v9287_v5 }
  0x5d   : > { %1780 = vst.msk [vmem:[#allocation2 + $0x48] sm:$0xff] %vm1770_vm2, %v9287_v5  ;;  %1781 = vst.msk [vmem:[#allocation2 + $0x50] sm:$0xff] %vm1770_vm2, %v9287_v5 }
  0x5e   : > { %8307 = vmatmul.mubr.msk.f32.gmra.mxu0 %vm548_vm0, %v450_v11  ;;  %8403 = vmatmul.mubr.msk.f32.gmra.mxu1 %vm548_vm0, %v514_v12  ;;  %1782 = vst.msk [vmem:[#allocation2 + $0x58] sm:$0xff] %vm1770_vm2, %v9287_v5  ;;  %1783 = vst.msk [vmem:[#allocation2 + $0x60] sm:$0xff] %vm1770_vm2, %v9287_v5 }
  0x5f   : > { %8309 = vmatprep.mubr.msk.f32.mxu0 %vm548_vm0, %v451_v13  ;;  %8405 = vmatprep.mubr.msk.f32.mxu1 %vm548_vm0, %v515_v14  ;;  %1784 = vst.msk [vmem:[#allocation2 + $0x68] sm:$0xff] %vm1770_vm2, %v9287_v5  ;;  %1785 = vst.msk [vmem:[#allocation2 + $0x70] sm:$0xff] %vm1770_vm2, %v9287_v5 }
  0x60   : > { %1786 = vst.msk [vmem:[#allocation2 + $0x78] sm:$0xff] %vm1770_vm2, %v9287_v5  ;;  %1787 = vst.msk [vmem:[#allocation2 + $0x80] sm:$0xff] %vm1770_vm2, %v9287_v5 }
  0x61   : > { %1788 = vst.msk [vmem:[#allocation2 + $0x88] sm:$0xff] %vm1770_vm2, %v9287_v5  ;;  %1789 = vst.msk [vmem:[#allocation2 + $0x90] sm:$0xff] %vm1770_vm2, %v9287_v5 }
  0x62   : > { %8310 = vmatmul.mubr.msk.f32.gmra.mxu0 %vm548_vm0, %v452_v15  ;;  %8406 = vmatmul.mubr.msk.f32.gmra.mxu1 %vm548_vm0, %v516_v16  ;;  %1790 = vst.msk [vmem:[#allocation2 + $0x98] sm:$0xff] %vm1770_vm2, %v9287_v5  ;;  %1791 = vst.msk [vmem:[#allocation2 + $0xa0] sm:$0xff] %vm1770_vm2, %v9287_v5 }
  0x63   : > { %8312 = vmatprep.mubr.msk.f32.mxu0 %vm548_vm0, %v453_v17  ;;  %8408 = vmatprep.mubr.msk.f32.mxu1 %vm548_vm0, %v517_v18  ;;  %1792 = vst.msk [vmem:[#allocation2 + $0xa8] sm:$0xff] %vm1770_vm2, %v9287_v5  ;;  %1793 = vst.msk [vmem:[#allocation2 + $0xb0] sm:$0xff] %vm1770_vm2, %v9287_v5 }
  0x64   : > { %1794 = vst.msk [vmem:[#allocation2 + $0xb8] sm:$0xff] %vm1770_vm2, %v9287_v5  ;;  %1795 = vst.msk [vmem:[#allocation2 + $0xc0] sm:$0xff] %vm1770_vm2, %v9287_v5 }
  0x65   : > { %1797 = vst.msk [vmem:[#allocation2 + $0xd0] sm:$0xff] %vm1770_vm2, %v9287_v5  ;;  %1798 = vst.msk [vmem:[#allocation2 + $0xd8] sm:$0xff] %vm1770_vm2, %v9287_v5 }
  0x66   : > { %8313 = vmatmul.mubr.msk.f32.gmra.mxu0 %vm548_vm0, %v454_v19  ;;  %8409 = vmatmul.mubr.msk.f32.gmra.mxu1 %vm548_vm0, %v518_v20  ;;  %1799 = vst.msk [vmem:[#allocation2 + $0xe0] sm:$0xff] %vm1770_vm2, %v9287_v5  ;;  %1800 = vst.msk [vmem:[#allocation2 + $0xe8] sm:$0xff] %vm1770_vm2, %v9287_v5 }
  0x67   : > { %8315 = vmatprep.mubr.msk.f32.mxu0 %vm548_vm0, %v455_v21  ;;  %8411 = vmatprep.mubr.msk.f32.mxu1 %vm548_vm0, %v519_v22  ;;  %1801 = vst.msk [vmem:[#allocation2 + $0xf0] sm:$0xff] %vm1770_vm2, %v9287_v5  ;;  %1802 = vst.msk [vmem:[#allocation2 + $0xf8] sm:$0xff] %vm1770_vm2, %v9287_v5 }
  0x68   : > { %1803 = vst.msk [vmem:[#allocation2 + $0x100] sm:$0xff] %vm1770_vm2, %v9287_v5  ;;  %1804 = vst.msk [vmem:[#allocation2 + $0x108] sm:$0xff] %vm1770_vm2, %v9287_v5 }
  0x69   : > { %1805 = vst.msk [vmem:[#allocation2 + $0x110] sm:$0xff] %vm1770_vm2, %v9287_v5  ;;  %1806 = vst.msk [vmem:[#allocation2 + $0x118] sm:$0xff] %vm1770_vm2, %v9287_v5 }
  0x6a   : > { %8316 = vmatmul.mubr.msk.f32.gmra.mxu0 %vm548_vm0, %v456_v23  ;;  %8412 = vmatmul.mubr.msk.f32.gmra.mxu1 %vm548_vm0, %v520_v24  ;;  %1807 = vst.msk [vmem:[#allocation2 + $0x120] sm:$0xff] %vm1770_vm2, %v9287_v5  ;;  %1808 = vst.msk [vmem:[#allocation2 + $0x128] sm:$0xff] %vm1770_vm2, %v9287_v5 }
  0x6b   : > { %8318 = vmatprep.mubr.msk.f32.mxu0 %vm548_vm0, %v457_v25  ;;  %8414 = vmatprep.mubr.msk.f32.mxu1 %vm548_vm0, %v521_v26  ;;  %1809 = vst.msk [vmem:[#allocation2 + $0x130] sm:$0xff] %vm1770_vm2, %v9287_v5  ;;  %1810 = vst.msk [vmem:[#allocation2 + $0x138] sm:$0xff] %vm1770_vm2, %v9287_v5 }
  0x6c   : > { %1811 = vst.msk [vmem:[#allocation2 + $0x140] sm:$0xff] %vm1770_vm2, %v9287_v5  ;;  %1812 = vst.msk [vmem:[#allocation2 + $0x148] sm:$0xff] %vm1770_vm2, %v9287_v5 }
  0x6d   : > { %1813 = vst.msk [vmem:[#allocation2 + $0x150] sm:$0xff] %vm1770_vm2, %v9287_v5  ;;  %1814 = vst.msk [vmem:[#allocation2 + $0x158] sm:$0xff] %vm1770_vm2, %v9287_v5 }
  0x6e   : > { %8319 = vmatmul.mubr.msk.f32.gmra.mxu0 %vm548_vm0, %v458_v27  ;;  %8415 = vmatmul.mubr.msk.f32.gmra.mxu1 %vm548_vm0, %v522_v28  ;;  %1815 = vst.msk [vmem:[#allocation2 + $0x160] sm:$0xff] %vm1770_vm2, %v9287_v5  ;;  %1816 = vst.msk [vmem:[#allocation2 + $0x168] sm:$0xff] %vm1770_vm2, %v9287_v5 }
  0x6f   : > { %8321 = vmatprep.mubr.msk.f32.mxu0 %vm548_vm0, %v459_v29  ;;  %8417 = vmatprep.mubr.msk.f32.mxu1 %vm548_vm0, %v523_v30  ;;  %1817 = vst.msk [vmem:[#allocation2 + $0x170] sm:$0xff] %vm1770_vm2, %v9287_v5  ;;  %1818 = vst.msk [vmem:[#allocation2 + $0x178] sm:$0xff] %vm1770_vm2, %v9287_v5 }
  0x70   : > { %2489 = vst.msk [vmem:[#allocation3] sm:$0xff] %vm2488_vm9, %v9287_v5  ;;  %2490 = vst.msk [vmem:[#allocation3 + $0x8] sm:$0xff] %vm2488_vm9, %v9287_v5 }
  0x71   : > { %2491 = vst.msk [vmem:[#allocation3 + $0x10] sm:$0xff] %vm2488_vm9, %v9287_v5  ;;  %2492 = vst.msk [vmem:[#allocation3 + $0x18] sm:$0xff] %vm2488_vm9, %v9287_v5 }
  0x72   : > { %8322 = vmatmul.mubr.msk.f32.gmra.mxu0 %vm548_vm0, %v460_v31  ;;  %8418 = vmatmul.mubr.msk.f32.gmra.mxu1 %vm548_vm0, %v524_v32  ;;  %2493 = vst.msk [vmem:[#allocation3 + $0x20] sm:$0xff] %vm2488_vm9, %v9287_v5  ;;  %2494 = vst.msk [vmem:[#allocation3 + $0x28] sm:$0xff] %vm2488_vm9, %v9287_v5 }
  0x73   : > { %8324 = vmatprep.mubr.msk.f32.mxu0 %vm548_vm0, %v461_v33  ;;  %8420 = vmatprep.mubr.msk.f32.mxu1 %vm548_vm0, %v525_v34  ;;  %2495 = vst.msk [vmem:[#allocation3 + $0x30] sm:$0xff] %vm2488_vm9, %v9287_v5  ;;  %2496 = vst.msk [vmem:[#allocation3 + $0x38] sm:$0xff] %vm2488_vm9, %v9287_v5 }
  0x74   : > { %2498 = vst.msk [vmem:[#allocation3 + $0x240] sm:$0xff] %vm2488_vm9, %v9287_v5  ;;  %2499 = vst.msk [vmem:[#allocation3 + $0x248] sm:$0xff] %vm2488_vm9, %v9287_v5 }
  0x75   : > { %2500 = vst.msk [vmem:[#allocation3 + $0x250] sm:$0xff] %vm2488_vm9, %v9287_v5  ;;  %2501 = vst.msk [vmem:[#allocation3 + $0x258] sm:$0xff] %vm2488_vm9, %v9287_v5 }
  0x76   : > { %8325 = vmatmul.mubr.msk.f32.gmra.mxu0 %vm548_vm0, %v462_v35  ;;  %8421 = vmatmul.mubr.msk.f32.gmra.mxu1 %vm548_vm0, %v526_v36  ;;  %2502 = vst.msk [vmem:[#allocation3 + $0x260] sm:$0xff] %vm2488_vm9, %v9287_v5  ;;  %2503 = vst.msk [vmem:[#allocation3 + $0x268] sm:$0xff] %vm2488_vm9, %v9287_v5 }
  0x77   : > { %8327 = vmatprep.mubr.msk.f32.mxu0 %vm548_vm0, %v463_v37  ;;  %8423 = vmatprep.mubr.msk.f32.mxu1 %vm548_vm0, %v527_v38  ;;  %2504 = vst.msk [vmem:[#allocation3 + $0x270] sm:$0xff] %vm2488_vm9, %v9287_v5  ;;  %2505 = vst.msk [vmem:[#allocation3 + $0x278] sm:$0xff] %vm2488_vm9, %v9287_v5 }
  0x7a   : > { %8328 = vmatmul.mubr.msk.f32.gmra.mxu0 %vm548_vm0, %v464_v39  ;;  %8424 = vmatmul.mubr.msk.f32.gmra.mxu1 %vm548_vm0, %v528_v40 }
  0x7b   : > { %8330 = vmatprep.mubr.msk.f32.mxu0 %vm548_vm0, %v465_v41  ;;  %8426 = vmatprep.mubr.msk.f32.mxu1 %vm548_vm0, %v529_v42 }
  0x7e   : > { %8331 = vmatmul.mubr.msk.f32.gmra.mxu0 %vm548_vm0, %v466_v43  ;;  %8427 = vmatmul.mubr.msk.f32.gmra.mxu1 %vm548_vm0, %v530_v44 }
  0x7f   : > { %8333 = vmatprep.mubr.msk.f32.mxu0 %vm548_vm0, %v467_v45  ;;  %8429 = vmatprep.mubr.msk.f32.mxu1 %vm548_vm0, %v531_v46 }
  0x82   : > { %8334 = vmatmul.mubr.msk.f32.gmra.mxu0 %vm548_vm0, %v468_v47  ;;  %8430 = vmatmul.mubr.msk.f32.gmra.mxu1 %vm548_vm0, %v532_v48 }
  0x83   : > { %8336 = vmatprep.mubr.msk.f32.mxu0 %vm548_vm0, %v469_v49  ;;  %8432 = vmatprep.mubr.msk.f32.mxu1 %vm548_vm0, %v533_v50 }
  0x86   : > { %8337 = vmatmul.mubr.msk.f32.gmra.mxu0 %vm548_vm0, %v470_v51  ;;  %8433 = vmatmul.mubr.msk.f32.gmra.mxu1 %vm548_vm0, %v534_v52 }
  0x87   : > { %8339 = vmatprep.mubr.msk.f32.mxu0 %vm548_vm0, %v471_v53  ;;  %8435 = vmatprep.mubr.msk.f32.mxu1 %vm548_vm0, %v535_v54 }
  0x8a   : > { %8340 = vmatmul.mubr.msk.f32.gmra.mxu0 %vm548_vm0, %v472_v55  ;;  %8436 = vmatmul.mubr.msk.f32.gmra.mxu1 %vm548_vm0, %v536_v56 }
  0x8b   : > { %8342 = vmatprep.mubr.msk.f32.mxu0 %vm548_vm0, %v473_v57  ;;  %8438 = vmatprep.mubr.msk.f32.mxu1 %vm548_vm0, %v537_v58 }
  0x8e   : > { %8343 = vmatmul.mubr.msk.f32.gmra.mxu0 %vm548_vm0, %v474_v59  ;;  %8439 = vmatmul.mubr.msk.f32.gmra.mxu1 %vm548_vm0, %v538_v60 }
  0x8f   : > { %8345 = vmatprep.mubr.msk.f32.mxu0 %vm548_vm0, %v475_v61  ;;  %8441 = vmatprep.mubr.msk.f32.mxu1 %vm548_vm0, %v539_v62 }
  0x92   : > { %8346 = vmatmul.mubr.msk.f32.gmra.mxu0 %vm548_vm0, %v476_v63  ;;  %8442 = vmatmul.mubr.msk.f32.gmra.mxu1 %vm548_vm0, %v540_v0 }
  0x93   : > { %8348 = vmatprep.mubr.msk.f32.mxu0 %vm548_vm0, %v477_v1  ;;  %8444 = vmatprep.mubr.msk.f32.mxu1 %vm548_vm0, %v541_v2 }
  0x96   : > { %8349 = vmatmul.mubr.msk.f32.gmra.mxu0 %vm548_vm0, %v478_v3  ;;  %8445 = vmatmul.mubr.msk.f32.gmra.mxu1 %vm548_vm0, %v542_v4 }
  0xda   : > { %v8257_v6 = vpop.f32.mrf.mxu0  ;;  %v8353_v7 = vpop.f32.mrf.mxu1 }
  0xdb   : > { %v1643_v8 = vmax.f32 %v8257_v6, 0.0  ;;  %v1707_v9 = vmax.f32 %v8353_v7, 0.0 }
  0xdc   : > { %v1003_v10 = vpop.f32.mrf.mxu0  ;;  %v1323_v11 = vpop.f32.mrf.mxu1 }
  0xdd   : > { %2155 = vrot.lane.b32.xlu1 %v1707_v9, %s9288_s30  ;;  %1829 = vrot.lane.b32.xlu0 %v1643_v8, %s9288_s30  ;;  %v1642_v13 = vmax.f32 %v1003_v10, 0.0  ;;  %v1706_v18 = vmax.f32 %v1323_v11, 0.0 }
  0xde   : > { %v8260_v12 = vpop.f32.mrf.mxu0  ;;  %v8356_v15 = vpop.f32.mrf.mxu1 }
  0xdf   : > { %v1645_v14 = vmax.f32 %v8260_v12, 0.0  ;;  %v1709_v16 = vmax.f32 %v8356_v15, 0.0 }
  0xe0   : > { %v1013_v17 = vpop.f32.mrf.mxu0  ;;  %v1333_v19 = vpop.f32.mrf.mxu1 }
  0xe1   : > { %1827 = vrot.lane.b32.xlu0 %v1642_v13, %s9288_s30  ;;  %1833 = vrot.lane.b32.xlu1 %v1645_v14, %s9288_s30  ;;  %v1644_v21 = vmax.f32 %v1013_v17, 0.0  ;;  %v1708_v22 = vmax.f32 %v1333_v19, 0.0 }
  0xe2   : > { %v8263_v20 = vpop.f32.mrf.mxu0  ;;  %v8359_v24 = vpop.f32.mrf.mxu1 }
  0xe3   : > { %v1647_v25 = vmax.f32 %v8263_v20, 0.0  ;;  %v1711_v29 = vmax.f32 %v8359_v24, 0.0 }
  0xe4   : > { %v1023_v23 = vpop.f32.mrf.mxu0  ;;  %v1343_v27 = vpop.f32.mrf.mxu1 }
  0xe5   : > { %2153 = vrot.lane.b32.xlu0 %v1706_v18, %s9288_s30  ;;  %2159 = vrot.lane.b32.xlu1 %v1709_v16, %s9288_s30  ;;  %v1646_v26 = vmax.f32 %v1023_v23, 0.0  ;;  %v1710_v30 = vmax.f32 %v1343_v27, 0.0 }
  0xe6   : > { %v8266_v28 = vpop.f32.mrf.mxu0  ;;  %v8362_v32 = vpop.f32.mrf.mxu1 }
  0xe7   : > { %v1649_v33 = vmax.f32 %v8266_v28, 0.0  ;;  %v1713_v37 = vmax.f32 %v8362_v32, 0.0 }
  0xe8   : > { %v1033_v31 = vpop.f32.mrf.mxu0  ;;  %v1353_v35 = vpop.f32.mrf.mxu1 }
  0xe9   : > { %2157 = vrot.lane.b32.xlu0 %v1708_v22, %s9288_s30  ;;  %1831 = vrot.lane.b32.xlu1 %v1644_v21, %s9288_s30  ;;  %v1648_v34 = vmax.f32 %v1033_v31, 0.0  ;;  %v1712_v38 = vmax.f32 %v1353_v35, 0.0 }
  0xea   : > { %v8269_v36 = vpop.f32.mrf.mxu0  ;;  %v8365_v40 = vpop.f32.mrf.mxu1 }
  0xeb   : > { %v1651_v41 = vmax.f32 %v8269_v36, 0.0  ;;  %v1715_v45 = vmax.f32 %v8365_v40, 0.0 }
  0xec   : > { %v1043_v39 = vpop.f32.mrf.mxu0  ;;  %v1363_v43 = vpop.f32.mrf.mxu1 }
  0xed   : > { %1837 = vrot.lane.b32.xlu1 %v1647_v25, %s9288_s30  ;;  %1835 = vrot.lane.b32.xlu0 %v1646_v26, %s9288_s30  ;;  %v1650_v42 = vmax.f32 %v1043_v39, 0.0  ;;  %v1714_v46 = vmax.f32 %v1363_v43, 0.0 }
  0xee   : > { %v8272_v44 = vpop.f32.mrf.mxu0  ;;  %v8368_v48 = vpop.f32.mrf.mxu1 }
  0xef   : > { %v1653_v49 = vmax.f32 %v8272_v44, 0.0  ;;  %v1717_v53 = vmax.f32 %v8368_v48, 0.0 }
  0xf0   : > { %v1053_v47 = vpop.f32.mrf.mxu0  ;;  %v1373_v51 = vpop.f32.mrf.mxu1 }
  0xf1   : > { %2163 = vrot.lane.b32.xlu1 %v1711_v29, %s9288_s30  ;;  %2161 = vrot.lane.b32.xlu0 %v1710_v30, %s9288_s30  ;;  %v1652_v50 = vmax.f32 %v1053_v47, 0.0  ;;  %v1716_v54 = vmax.f32 %v1373_v51, 0.0 }
  0xf2   : > { %v8275_v52 = vpop.f32.mrf.mxu0  ;;  %v8371_v56 = vpop.f32.mrf.mxu1 }
  0xf3   : > { %v1655_v57 = vmax.f32 %v8275_v52, 0.0  ;;  %v1719_v61 = vmax.f32 %v8371_v56, 0.0 }
  0xf4   : > { %v1063_v55 = vpop.f32.mrf.mxu0  ;;  %v1383_v59 = vpop.f32.mrf.mxu1 }
  0xf5   : > { %1841 = vrot.lane.b32.xlu1 %v1649_v33, %s9288_s30  ;;  %1839 = vrot.lane.b32.xlu0 %v1648_v34, %s9288_s30  ;;  %v1654_v58 = vmax.f32 %v1063_v55, 0.0  ;;  %v1718_v62 = vmax.f32 %v1383_v59, 0.0 }
  0xf6   : > { %v8278_v60 = vpop.f32.mrf.mxu0  ;;  %v8374_v0 = vpop.f32.mrf.mxu1 }
  0xf7   : > { %v1657_v1 = vmax.f32 %v8278_v60, 0.0  ;;  %v1721_v6 = vmax.f32 %v8374_v0, 0.0 }
  0xf8   : > { %v1073_v63 = vpop.f32.mrf.mxu0  ;;  %v1393_v3 = vpop.f32.mrf.mxu1 }
  0xf9   : > { %2167 = vrot.lane.b32.xlu1 %v1713_v37, %s9288_s30  ;;  %2165 = vrot.lane.b32.xlu0 %v1712_v38, %s9288_s30  ;;  %v1656_v2 = vmax.f32 %v1073_v63, 0.0  ;;  %v1720_v7 = vmax.f32 %v1393_v3, 0.0 }
  0xfa   : > { %v8281_v4 = vpop.f32.mrf.mxu0  ;;  %v8377_v9 = vpop.f32.mrf.mxu1 }
  0xfb   : > { %v1659_v10 = vmax.f32 %v8281_v4, 0.0  ;;  %v1723_v14 = vmax.f32 %v8377_v9, 0.0 }
  0xfc   : > { %v1083_v8 = vpop.f32.mrf.mxu0  ;;  %v1403_v12 = vpop.f32.mrf.mxu1 }
  0xfd   : > { %1871 = vrot.lane.b32.xlu1 %v1651_v41, %s9289_s14  ;;  %1869 = vrot.lane.b32.xlu0 %v1650_v42, %s9289_s14  ;;  %v1658_v11 = vmax.f32 %v1083_v8, 0.0  ;;  %v1722_v15 = vmax.f32 %v1403_v12, 0.0 }
  0xfe   : > { %v8284_v13 = vpop.f32.mrf.mxu0  ;;  %v8380_v17 = vpop.f32.mrf.mxu1 }
  0xff   : > { %v1661_v18 = vmax.f32 %v8284_v13, 0.0  ;;  %v1725_v22 = vmax.f32 %v8380_v17, 0.0 }
 0x100   : > { %v1093_v16 = vpop.f32.mrf.mxu0  ;;  %v1413_v20 = vpop.f32.mrf.mxu1 }
 0x101   : > { %2196 = vrot.lane.b32.xlu1 %v1715_v45, %s9289_s14  ;;  %2194 = vrot.lane.b32.xlu0 %v1714_v46, %s9289_s14  ;;  %v1660_v19 = vmax.f32 %v1093_v16, 0.0  ;;  %v1724_v23 = vmax.f32 %v1413_v20, 0.0 }
 0x102   : > { %v8287_v21 = vpop.f32.mrf.mxu0  ;;  %v8383_v25 = vpop.f32.mrf.mxu1 }
 0x103   : > { %v1663_v26 = vmax.f32 %v8287_v21, 0.0  ;;  %v1727_v30 = vmax.f32 %v8383_v25, 0.0 }
 0x104   : > { %v1103_v24 = vpop.f32.mrf.mxu0  ;;  %v1423_v28 = vpop.f32.mrf.mxu1 }
 0x105   : > { %1875 = vrot.lane.b32.xlu1 %v1653_v49, %s9289_s14  ;;  %1873 = vrot.lane.b32.xlu0 %v1652_v50, %s9289_s14  ;;  %v1662_v27 = vmax.f32 %v1103_v24, 0.0  ;;  %v1726_v31 = vmax.f32 %v1423_v28, 0.0 }
 0x106   : > { %v8290_v29 = vpop.f32.mrf.mxu0  ;;  %v8386_v33 = vpop.f32.mrf.mxu1 }
 0x107   : > { %v1665_v34 = vmax.f32 %v8290_v29, 0.0  ;;  %v1729_v38 = vmax.f32 %v8386_v33, 0.0 }
 0x108   : > { %v1113_v32 = vpop.f32.mrf.mxu0  ;;  %v1433_v36 = vpop.f32.mrf.mxu1 }
 0x109   : > { %2200 = vrot.lane.b32.xlu1 %v1717_v53, %s9289_s14  ;;  %2198 = vrot.lane.b32.xlu0 %v1716_v54, %s9289_s14  ;;  %v1664_v35 = vmax.f32 %v1113_v32, 0.0  ;;  %v1728_v39 = vmax.f32 %v1433_v36, 0.0 }
 0x10a   : > { %v8293_v37 = vpop.f32.mrf.mxu0  ;;  %v8389_v41 = vpop.f32.mrf.mxu1 }
 0x10b   : > { %v1667_v42 = vmax.f32 %v8293_v37, 0.0  ;;  %v1731_v46 = vmax.f32 %v8389_v41, 0.0 }
 0x10c   : > { %v1123_v40 = vpop.f32.mrf.mxu0  ;;  %v1443_v44 = vpop.f32.mrf.mxu1 }
 0x10d   : > { %1879 = vrot.lane.b32.xlu1 %v1655_v57, %s9289_s14  ;;  %1877 = vrot.lane.b32.xlu0 %v1654_v58, %s9289_s14  ;;  %v1666_v43 = vmax.f32 %v1123_v40, 0.0  ;;  %v1730_v47 = vmax.f32 %v1443_v44, 0.0 }
 0x10e   : > { %v8296_v45 = vpop.f32.mrf.mxu0  ;;  %v8392_v49 = vpop.f32.mrf.mxu1 }
 0x10f   : > { %v1669_v50 = vmax.f32 %v8296_v45, 0.0  ;;  %v1733_v54 = vmax.f32 %v8392_v49, 0.0 }
 0x110   : > { %v1133_v48 = vpop.f32.mrf.mxu0  ;;  %v1453_v52 = vpop.f32.mrf.mxu1 }
 0x111   : > { %2204 = vrot.lane.b32.xlu1 %v1719_v61, %s9289_s14  ;;  %2202 = vrot.lane.b32.xlu0 %v1718_v62, %s9289_s14  ;;  %v1668_v51 = vmax.f32 %v1133_v48, 0.0  ;;  %v1732_v55 = vmax.f32 %v1453_v52, 0.0 }
 0x112   : > { %v8299_v53 = vpop.f32.mrf.mxu0  ;;  %v8395_v57 = vpop.f32.mrf.mxu1 }
 0x113   : > { %v1671_v58 = vmax.f32 %v8299_v53, 0.0  ;;  %v1735_v62 = vmax.f32 %v8395_v57, 0.0 }
 0x114   : > { %v1143_v56 = vpop.f32.mrf.mxu0  ;;  %v1463_v60 = vpop.f32.mrf.mxu1 }
 0x115   : > { %1883 = vrot.lane.b32.xlu1 %v1657_v1, %s9289_s14  ;;  %1881 = vrot.lane.b32.xlu0 %v1656_v2, %s9289_s14  ;;  %v1670_v59 = vmax.f32 %v1143_v56, 0.0  ;;  %v1734_v63 = vmax.f32 %v1463_v60, 0.0 }
 0x116   : > { %v8302_v61 = vpop.f32.mrf.mxu0  ;;  %v8398_v3 = vpop.f32.mrf.mxu1 }
 0x117   : > { %v1673_v4 = vmax.f32 %v8302_v61, 0.0 }
 0x118   : > { %v1153_v2 = vpop.f32.mrf.mxu0  ;;  %v1473_v9 = vpop.f32.mrf.mxu1 }
 0x119   : > { %2208 = vrot.lane.b32.xlu1 %v1721_v6, %s9289_s14  ;;  %2206 = vrot.lane.b32.xlu0 %v1720_v7, %s9289_s14  ;;  %v1672_v6 = vmax.f32 %v1153_v2, 0.0  ;;  %v1736_v12 = vmax.f32 %v1473_v9, 0.0 }
 0x11a   : > { %v8401_v16 = vpop.f32.mrf.mxu1 }
 0x11c   : > { %v1483_v21 = vpop.f32.mrf.mxu1 }
 0x11d   : > { %1912 = vrot.lane.b32.xlu1 %v1659_v10, %s9290_s15  ;;  %1910 = vrot.lane.b32.xlu0 %v1658_v11, %s9290_s15  ;;  %v8305_v10 = vpop.f32.mrf.mxu0  ;;  %v1737_v11 = vmax.f32 %v8398_v3, 0.0  ;;  %v1738_v24 = vmax.f32 %v1483_v21, 0.0 }
 0x11e   : > { %v1675_v17 = vmax.f32 %v8305_v10, 0.0  ;;  %v8404_v28 = vpop.f32.mrf.mxu1 }
 0x120   : > { %v1493_v33 = vpop.f32.mrf.mxu1 }
 0x121   : > { %2236 = vrot.lane.b32.xlu1 %v1723_v14, %s9290_s15  ;;  %2234 = vrot.lane.b32.xlu0 %v1722_v15, %s9290_s15  ;;  %v1163_v15 = vpop.f32.mrf.mxu0  ;;  %v1740_v36 = vmax.f32 %v1493_v33, 0.0 }
 0x122   : > { %v8407_v40 = vpop.f32.mrf.mxu1 }
 0x124   : > { %v1503_v45 = vpop.f32.mrf.mxu1 }
 0x125   : > { %1916 = vrot.lane.b32.xlu1 %v1661_v18, %s9290_s15  ;;  %1914 = vrot.lane.b32.xlu0 %v1660_v19, %s9290_s15  ;;  %v1674_v18 = vmax.f32 %v1163_v15, 0.0  ;;  %v1742_v48 = vmax.f32 %v1503_v45, 0.0 }
 0x126   : > { %v8410_v52 = vpop.f32.mrf.mxu1 }
 0x128   : > { %v1513_v57 = vpop.f32.mrf.mxu1 }
 0x129   : > { %2240 = vrot.lane.b32.xlu1 %v1725_v22, %s9290_s15  ;;  %2238 = vrot.lane.b32.xlu0 %v1724_v23, %s9290_s15  ;;  %v8308_v22 = vpop.f32.mrf.mxu0  ;;  %v1739_v23 = vmax.f32 %v8401_v16, 0.0  ;;  %v1744_v60 = vmax.f32 %v1513_v57, 0.0 }
 0x12a   : > { %v1677_v29 = vmax.f32 %v8308_v22, 0.0 }
 0x12d   : > { %1920 = vrot.lane.b32.xlu1 %v1663_v26, %s9290_s15  ;;  %1918 = vrot.lane.b32.xlu0 %v1662_v27, %s9290_s15  ;;  %v1173_v27 = vpop.f32.mrf.mxu0 }
 0x131   : > { %2244 = vrot.lane.b32.xlu1 %v1727_v30, %s9290_s15  ;;  %2242 = vrot.lane.b32.xlu0 %v1726_v31, %s9290_s15  ;;  %v1676_v30 = vmax.f32 %v1173_v27, 0.0 }
 0x135   : > { %1924 = vrot.lane.b32.xlu1 %v1665_v34, %s9290_s15  ;;  %1922 = vrot.lane.b32.xlu0 %v1664_v35, %s9290_s15  ;;  %v8311_v34 = vpop.f32.mrf.mxu0  ;;  %v1741_v35 = vmax.f32 %v8404_v28, 0.0 }
 0x136   : > { %v1679_v41 = vmax.f32 %v8311_v34, 0.0 }
 0x139   : > { %2248 = vrot.lane.b32.xlu1 %v1729_v38, %s9290_s15  ;;  %2246 = vrot.lane.b32.xlu0 %v1728_v39, %s9290_s15  ;;  %v1183_v39 = vpop.f32.mrf.mxu0 }
 0x13d   : > { %1953 = vrot.lane.b32.xlu1 %v1667_v42, %s9291_s16  ;;  %1951 = vrot.lane.b32.xlu0 %v1666_v43, %s9291_s16  ;;  %v1678_v42 = vmax.f32 %v1183_v39, 0.0 }
 0x141   : > { %2276 = vrot.lane.b32.xlu1 %v1731_v46, %s9291_s16  ;;  %2274 = vrot.lane.b32.xlu0 %v1730_v47, %s9291_s16  ;;  %v8314_v46 = vpop.f32.mrf.mxu0  ;;  %v1743_v47 = vmax.f32 %v8407_v40, 0.0 }
 0x142   : > { %v1681_v53 = vmax.f32 %v8314_v46, 0.0 }
 0x145   : > { %1957 = vrot.lane.b32.xlu1 %v1669_v50, %s9291_s16  ;;  %1955 = vrot.lane.b32.xlu0 %v1668_v51, %s9291_s16  ;;  %v1193_v51 = vpop.f32.mrf.mxu0 }
 0x149   : > { %2280 = vrot.lane.b32.xlu1 %v1733_v54, %s9291_s16  ;;  %2278 = vrot.lane.b32.xlu0 %v1732_v55, %s9291_s16  ;;  %v1680_v54 = vmax.f32 %v1193_v51, 0.0 }
 0x14d   : > { %1961 = vrot.lane.b32.xlu1 %v1671_v58, %s9291_s16  ;;  %1959 = vrot.lane.b32.xlu0 %v1670_v59, %s9291_s16  ;;  %v8317_v58 = vpop.f32.mrf.mxu0  ;;  %v1745_v59 = vmax.f32 %v8410_v52, 0.0 }
 0x14f   : > { %v2156_v0 = vpop.permute.xlu1 %2155  ;;  %v1830_v1 = vpop.permute.xlu0 %1829 }
 0x150   : > { %2179 = vst.msk [vmem:[#allocation2 + $0xc8] sm:$0xff] %vm1852_vm3, %v2156_v0  ;;  %1854 = vst.msk [vmem:[#allocation2 + $0x48] sm:$0xff] %vm1852_vm3, %v1830_v1  ;;  %v8413_v0 = vpop.f32.mrf.mxu1  ;;  %v1683_v1 = vmax.f32 %v8317_v58, 0.0 }
 0x151   : > { %2284 = vrot.lane.b32.xlu1 %v1735_v62, %s9291_s16  ;;  %2282 = vrot.lane.b32.xlu0 %v1734_v63, %s9291_s16  ;;  %v1203_v63 = vpop.f32.mrf.mxu0 }
 0x152   : > { %v1682_v2 = vmax.f32 %v1203_v63, 0.0 }
 0x153   : > { %v1828_v7 = vpop.permute.xlu0 %1827  ;;  %v1834_v8 = vpop.permute.xlu1 %1833 }
 0x154   : > { %1853 = vst.msk [vmem:[#allocation2 + $0x40] sm:$0xff] %vm1852_vm3, %v1828_v7  ;;  %1856 = vst.msk [vmem:[#allocation2 + $0x58] sm:$0xff] %vm1852_vm3, %v1834_v8  ;;  %v8320_v7 = vpop.f32.mrf.mxu0  ;;  %v1747_v8 = vmax.f32 %v8413_v0, 0.0 }
 0x155   : > { %1965 = vrot.lane.b32.xlu1 %v1673_v4, %s9291_s16  ;;  %1963 = vrot.lane.b32.xlu0 %v1672_v6, %s9291_s16  ;;  %v1523_v6 = vpop.f32.mrf.mxu1 }
 0x156   : > { %v1746_v9 = vmax.f32 %v1523_v6, 0.0 }
 0x157   : > { %v2154_v13 = vpop.permute.xlu0 %2153  ;;  %v2160_v14 = vpop.permute.xlu1 %2159 }
 0x158   : > { %2178 = vst.msk [vmem:[#allocation2 + $0xc0] sm:$0xff] %vm1852_vm3, %v2154_v13  ;;  %2181 = vst.msk [vmem:[#allocation2 + $0xd8] sm:$0xff] %vm1852_vm3, %v2160_v14  ;;  %v8416_v13 = vpop.f32.mrf.mxu1  ;;  %v1685_v14 = vmax.f32 %v8320_v7, 0.0 }
 0x159   : > { %2288 = vrot.lane.b32.xlu1 %v1737_v11, %s9291_s16  ;;  %2286 = vrot.lane.b32.xlu0 %v1736_v12, %s9291_s16  ;;  %v1213_v12 = vpop.f32.mrf.mxu0 }
 0x15a   : > { %v1684_v15 = vmax.f32 %v1213_v12, 0.0 }
 0x15b   : > { %v2158_v19 = vpop.permute.xlu0 %2157  ;;  %v1832_v20 = vpop.permute.xlu1 %1831 }
 0x15c   : > { %2180 = vst.msk [vmem:[#allocation2 + $0xd0] sm:$0xff] %vm1852_vm3, %v2158_v19  ;;  %1855 = vst.msk [vmem:[#allocation2 + $0x50] sm:$0xff] %vm1852_vm3, %v1832_v20  ;;  %v8323_v19 = vpop.f32.mrf.mxu0  ;;  %v1749_v20 = vmax.f32 %v8416_v13, 0.0 }
 0x15d   : > { %1994 = vrot.lane.b32.xlu1 %v1675_v17, %s9288_s30  ;;  %1992 = vrot.lane.b32.xlu0 %v1674_v18, %s9288_s30  ;;  %v1533_v18 = vpop.f32.mrf.mxu1 }
 0x15e   : > { %v1748_v21 = vmax.f32 %v1533_v18, 0.0 }
 0x15f   : > { %v1838_v25 = vpop.permute.xlu1 %1837  ;;  %v1836_v26 = vpop.permute.xlu0 %1835 }
 0x160   : > { %1858 = vst.msk [vmem:[#allocation2 + $0x68] sm:$0xff] %vm1852_vm3, %v1838_v25  ;;  %1857 = vst.msk [vmem:[#allocation2 + $0x60] sm:$0xff] %vm1852_vm3, %v1836_v26  ;;  %v8419_v25 = vpop.f32.mrf.mxu1  ;;  %v1687_v26 = vmax.f32 %v8323_v19, 0.0 }
 0x161   : > { %2316 = vrot.lane.b32.xlu1 %v1739_v23, %s9288_s30  ;;  %2314 = vrot.lane.b32.xlu0 %v1738_v24, %s9288_s30  ;;  %v1223_v24 = vpop.f32.mrf.mxu0 }
 0x162   : > { %v1686_v27 = vmax.f32 %v1223_v24, 0.0 }
 0x163   : > { %v2164_v31 = vpop.permute.xlu1 %2163  ;;  %v2162_v32 = vpop.permute.xlu0 %2161 }
 0x164   : > { %2183 = vst.msk [vmem:[#allocation2 + $0xe8] sm:$0xff] %vm1852_vm3, %v2164_v31  ;;  %2182 = vst.msk [vmem:[#allocation2 + $0xe0] sm:$0xff] %vm1852_vm3, %v2162_v32  ;;  %v8326_v31 = vpop.f32.mrf.mxu0  ;;  %v1751_v32 = vmax.f32 %v8419_v25, 0.0 }
 0x165   : > { %1998 = vrot.lane.b32.xlu1 %v1677_v29, %s9288_s30  ;;  %1996 = vrot.lane.b32.xlu0 %v1676_v30, %s9288_s30  ;;  %v1543_v30 = vpop.f32.mrf.mxu1 }
 0x166   : > { %v1750_v33 = vmax.f32 %v1543_v30, 0.0 }
 0x167   : > { %v1842_v37 = vpop.permute.xlu1 %1841  ;;  %v1840_v38 = vpop.permute.xlu0 %1839 }
 0x168   : > { %1860 = vst.msk [vmem:[#allocation2 + $0x78] sm:$0xff] %vm1852_vm3, %v1842_v37  ;;  %1859 = vst.msk [vmem:[#allocation2 + $0x70] sm:$0xff] %vm1852_vm3, %v1840_v38  ;;  %v8422_v37 = vpop.f32.mrf.mxu1  ;;  %v1689_v38 = vmax.f32 %v8326_v31, 0.0 }
 0x169   : > { %2320 = vrot.lane.b32.xlu1 %v1741_v35, %s9288_s30  ;;  %2318 = vrot.lane.b32.xlu0 %v1740_v36, %s9288_s30  ;;  %v1233_v36 = vpop.f32.mrf.mxu0 }
 0x16a   : > { %v1688_v39 = vmax.f32 %v1233_v36, 0.0 }
 0x16b   : > { %v2168_v43 = vpop.permute.xlu1 %2167  ;;  %v2166_v44 = vpop.permute.xlu0 %2165 }
 0x16c   : > { %2185 = vst.msk [vmem:[#allocation2 + $0xf8] sm:$0xff] %vm1852_vm3, %v2168_v43  ;;  %2184 = vst.msk [vmem:[#allocation2 + $0xf0] sm:$0xff] %vm1852_vm3, %v2166_v44  ;;  %v8329_v43 = vpop.f32.mrf.mxu0  ;;  %v1753_v44 = vmax.f32 %v8422_v37, 0.0 }
 0x16d   : > { %2002 = vrot.lane.b32.xlu1 %v1679_v41, %s9288_s30  ;;  %2000 = vrot.lane.b32.xlu0 %v1678_v42, %s9288_s30  ;;  %v1553_v42 = vpop.f32.mrf.mxu1 }
 0x16e   : > { %v1752_v45 = vmax.f32 %v1553_v42, 0.0 }
 0x16f   : > { %v1872_v49 = vpop.permute.xlu1 %1871  ;;  %v1870_v50 = vpop.permute.xlu0 %1869 }
 0x170   : > { %1895 = vst.msk [vmem:[#allocation2 + $0x48] sm:$0xff] %vm1893_vm4, %v1872_v49  ;;  %1894 = vst.msk [vmem:[#allocation2 + $0x40] sm:$0xff] %vm1893_vm4, %v1870_v50  ;;  %v8425_v49 = vpop.f32.mrf.mxu1  ;;  %v1691_v50 = vmax.f32 %v8329_v43, 0.0 }
 0x171   : > { %2324 = vrot.lane.b32.xlu1 %v1743_v47, %s9288_s30  ;;  %2322 = vrot.lane.b32.xlu0 %v1742_v48, %s9288_s30  ;;  %v1243_v48 = vpop.f32.mrf.mxu0 }
 0x172   : > { %v1690_v51 = vmax.f32 %v1243_v48, 0.0 }
 0x173   : > { %v2197_v55 = vpop.permute.xlu1 %2196  ;;  %v2195_v56 = vpop.permute.xlu0 %2194 }
 0x174   : > { %2219 = vst.msk [vmem:[#allocation2 + $0xc8] sm:$0xff] %vm1893_vm4, %v2197_v55  ;;  %2218 = vst.msk [vmem:[#allocation2 + $0xc0] sm:$0xff] %vm1893_vm4, %v2195_v56  ;;  %v8332_v55 = vpop.f32.mrf.mxu0  ;;  %v1755_v56 = vmax.f32 %v8425_v49, 0.0 }
 0x175   : > { %2006 = vrot.lane.b32.xlu1 %v1681_v53, %s9288_s30  ;;  %2004 = vrot.lane.b32.xlu0 %v1680_v54, %s9288_s30  ;;  %v1563_v54 = vpop.f32.mrf.mxu1 }
 0x176   : > { %v1754_v57 = vmax.f32 %v1563_v54, 0.0 }
 0x177   : > { %v1876_v61 = vpop.permute.xlu1 %1875  ;;  %v1874_v62 = vpop.permute.xlu0 %1873 }
 0x178   : > { %1897 = vst.msk [vmem:[#allocation2 + $0x58] sm:$0xff] %vm1893_vm4, %v1876_v61  ;;  %1896 = vst.msk [vmem:[#allocation2 + $0x50] sm:$0xff] %vm1893_vm4, %v1874_v62  ;;  %v8428_v61 = vpop.f32.mrf.mxu1  ;;  %v1693_v62 = vmax.f32 %v8332_v55, 0.0 }
 0x179   : > { %2328 = vrot.lane.b32.xlu1 %v1745_v59, %s9288_s30  ;;  %2326 = vrot.lane.b32.xlu0 %v1744_v60, %s9288_s30  ;;  %v1253_v60 = vpop.f32.mrf.mxu0 }
 0x17a   : > { %v1692_v63 = vmax.f32 %v1253_v60, 0.0 }
 0x17b   : > { %v2201_v3 = vpop.permute.xlu1 %2200  ;;  %v2199_v4 = vpop.permute.xlu0 %2198 }
 0x17c   : > { %2221 = vst.msk [vmem:[#allocation2 + $0xd8] sm:$0xff] %vm1893_vm4, %v2201_v3  ;;  %2220 = vst.msk [vmem:[#allocation2 + $0xd0] sm:$0xff] %vm1893_vm4, %v2199_v4  ;;  %v8335_v3 = vpop.f32.mrf.mxu0  ;;  %v1757_v4 = vmax.f32 %v8428_v61, 0.0 }
 0x17d   : > { %2035 = vrot.lane.b32.xlu1 %v1683_v1, %s9289_s14  ;;  %2033 = vrot.lane.b32.xlu0 %v1682_v2, %s9289_s14  ;;  %v1573_v2 = vpop.f32.mrf.mxu1 }
 0x17e   : > { %v1756_v6 = vmax.f32 %v1573_v2, 0.0 }
 0x17f   : > { %v1880_v10 = vpop.permute.xlu1 %1879  ;;  %v1878_v11 = vpop.permute.xlu0 %1877 }
 0x180   : > { %1899 = vst.msk [vmem:[#allocation2 + $0x68] sm:$0xff] %vm1893_vm4, %v1880_v10  ;;  %1898 = vst.msk [vmem:[#allocation2 + $0x60] sm:$0xff] %vm1893_vm4, %v1878_v11  ;;  %v8431_v10 = vpop.f32.mrf.mxu1  ;;  %v1695_v11 = vmax.f32 %v8335_v3, 0.0 }
 0x181   : > { %2357 = vrot.lane.b32.xlu1 %v1747_v8, %s9289_s14  ;;  %2355 = vrot.lane.b32.xlu0 %v1746_v9, %s9289_s14  ;;  %v1263_v9 = vpop.f32.mrf.mxu0 }
 0x182   : > { %v1694_v12 = vmax.f32 %v1263_v9, 0.0 }
 0x183   : > { %v2205_v16 = vpop.permute.xlu1 %2204  ;;  %v2203_v17 = vpop.permute.xlu0 %2202 }
 0x184   : > { %2223 = vst.msk [vmem:[#allocation2 + $0xe8] sm:$0xff] %vm1893_vm4, %v2205_v16  ;;  %2222 = vst.msk [vmem:[#allocation2 + $0xe0] sm:$0xff] %vm1893_vm4, %v2203_v17  ;;  %v8338_v16 = vpop.f32.mrf.mxu0  ;;  %v1759_v17 = vmax.f32 %v8431_v10, 0.0 }
 0x185   : > { %2039 = vrot.lane.b32.xlu1 %v1685_v14, %s9289_s14  ;;  %2037 = vrot.lane.b32.xlu0 %v1684_v15, %s9289_s14  ;;  %v1583_v15 = vpop.f32.mrf.mxu1 }
 0x186   : > { %v1758_v18 = vmax.f32 %v1583_v15, 0.0  ;;  %v10264_v15 = vld [vmem:[%s11955_s3 + $0x18] sm:$0xff] }
 0x187   : > { %v1884_v22 = vpop.permute.xlu1 %1883  ;;  %v1882_v23 = vpop.permute.xlu0 %1881 }
 0x188   : > { %1901 = vst.msk [vmem:[#allocation2 + $0x78] sm:$0xff] %vm1893_vm4, %v1884_v22  ;;  %1900 = vst.msk [vmem:[#allocation2 + $0x70] sm:$0xff] %vm1893_vm4, %v1882_v23  ;;  %v8434_v22 = vpop.f32.mrf.mxu1  ;;  %v1697_v23 = vmax.f32 %v8338_v16, 0.0  ;;  %v10269_v16 = vld [vmem:[%s11955_s3 + $0x20] sm:$0xff] }
 0x189   : > { %2361 = vrot.lane.b32.xlu1 %v1749_v20, %s9289_s14  ;;  %2359 = vrot.lane.b32.xlu0 %v1748_v21, %s9289_s14  ;;  %v1273_v21 = vpop.f32.mrf.mxu0 }
 0x18a   : > { %v1696_v24 = vmax.f32 %v1273_v21, 0.0 }
 0x18b   : > { %v2209_v28 = vpop.permute.xlu1 %2208  ;;  %v2207_v29 = vpop.permute.xlu0 %2206 }
 0x18c   : > { %2225 = vst.msk [vmem:[#allocation2 + $0xf8] sm:$0xff] %vm1893_vm4, %v2209_v28  ;;  %2224 = vst.msk [vmem:[#allocation2 + $0xf0] sm:$0xff] %vm1893_vm4, %v2207_v29  ;;  %v8341_v28 = vpop.f32.mrf.mxu0  ;;  %v1761_v29 = vmax.f32 %v8434_v22, 0.0 }
 0x18d   : > { %2043 = vrot.lane.b32.xlu1 %v1687_v26, %s9289_s14  ;;  %2041 = vrot.lane.b32.xlu0 %v1686_v27, %s9289_s14  ;;  %v1593_v27 = vpop.f32.mrf.mxu1 }
 0x18e   : > { %v1760_v30 = vmax.f32 %v1593_v27, 0.0 }
 0x18f   : > { %v1913_v34 = vpop.permute.xlu1 %1912  ;;  %v1911_v35 = vpop.permute.xlu0 %1910 }
 0x190   : > { %1936 = vst.msk [vmem:[#allocation2 + $0x48] sm:$0xff] %vm1934_vm5, %v1913_v34  ;;  %1935 = vst.msk [vmem:[#allocation2 + $0x40] sm:$0xff] %vm1934_vm5, %v1911_v35  ;;  %v8437_v34 = vpop.f32.mrf.mxu1  ;;  %v1699_v35 = vmax.f32 %v8341_v28, 0.0 }
 0x191   : > { %2365 = vrot.lane.b32.xlu1 %v1751_v32, %s9289_s14  ;;  %2363 = vrot.lane.b32.xlu0 %v1750_v33, %s9289_s14  ;;  %v1283_v33 = vpop.f32.mrf.mxu0 }
 0x192   : > { %v1698_v36 = vmax.f32 %v1283_v33, 0.0 }
 0x193   : > { %v2237_v40 = vpop.permute.xlu1 %2236  ;;  %v2235_v41 = vpop.permute.xlu0 %2234 }
 0x194   : > { %2259 = vst.msk [vmem:[#allocation2 + $0xc8] sm:$0xff] %vm1934_vm5, %v2237_v40  ;;  %2258 = vst.msk [vmem:[#allocation2 + $0xc0] sm:$0xff] %vm1934_vm5, %v2235_v41  ;;  %v8344_v40 = vpop.f32.mrf.mxu0  ;;  %v1763_v41 = vmax.f32 %v8437_v34, 0.0 }
 0x195   : > { %2047 = vrot.lane.b32.xlu1 %v1689_v38, %s9289_s14  ;;  %2045 = vrot.lane.b32.xlu0 %v1688_v39, %s9289_s14  ;;  %v1603_v39 = vpop.f32.mrf.mxu1  ;;  %v1701_v48 = vmax.f32 %v8344_v40, 0.0 }
 0x196   : > { %v1762_v42 = vmax.f32 %v1603_v39, 0.0 }
 0x197   : > { %v1917_v46 = vpop.permute.xlu1 %1916  ;;  %v1915_v47 = vpop.permute.xlu0 %1914 }
 0x198   : > { %1938 = vst.msk [vmem:[#allocation2 + $0x58] sm:$0xff] %vm1934_vm5, %v1917_v46  ;;  %1937 = vst.msk [vmem:[#allocation2 + $0x50] sm:$0xff] %vm1934_vm5, %v1915_v47  ;;  %v8440_v46 = vpop.f32.mrf.mxu1  ;;  %v2467_v47 = vlaneseq }
 0x199   : > { %2369 = vrot.lane.b32.xlu1 %v1753_v44, %s9289_s14  ;;  %2367 = vrot.lane.b32.xlu0 %v1752_v45, %s9289_s14  ;;  %v1293_v45 = vpop.f32.mrf.mxu0 }
 0x19a   : > { %v1700_v49 = vmax.f32 %v1293_v45, 0.0 }
 0x19b   : > { %v2241_v52 = vpop.permute.xlu1 %2240  ;;  %v2239_v53 = vpop.permute.xlu0 %2238 }
 0x19c   : > { %2261 = vst.msk [vmem:[#allocation2 + $0xd8] sm:$0xff] %vm1934_vm5, %v2241_v52  ;;  %2260 = vst.msk [vmem:[#allocation2 + $0xd0] sm:$0xff] %vm1934_vm5, %v2239_v53  ;;  %v10175_v52 = vshrl.u32 %v2467_v47, 7  ;;  %v1613_v53 = vpop.f32.mrf.mxu1  ;;  %v8347_v54 = vpop.f32.mrf.mxu0 }
 0x19d   : > { %2075 = vrot.lane.b32.xlu1 %v1691_v50, %s9290_s15  ;;  %2073 = vrot.lane.b32.xlu0 %v1690_v51, %s9290_s15 }
 0x19e   : > { %v2471_v55 = vmul.u32 2, %v10175_v52  ;;  %v1303_v61 = vpop.f32.mrf.mxu0 }
 0x19f   : > { %v1921_v58 = vpop.permute.xlu1 %1920  ;;  %v1919_v59 = vpop.permute.xlu0 %1918  ;;  %v1702_v2 = vmax.f32 %v1303_v61, 0.0 }
 0x1a0   : > { %1940 = vst.msk [vmem:[#allocation2 + $0x68] sm:$0xff] %vm1934_vm5, %v1921_v58  ;;  %1939 = vst.msk [vmem:[#allocation2 + $0x60] sm:$0xff] %vm1934_vm5, %v1919_v59  ;;  %v2472_v60 = vadd.s32 1, %v2471_v55  ;;  %v8350_v9 = vpop.f32.mrf.mxu0 }
 0x1a1   : > { %2397 = vrot.lane.b32.xlu1 %v1755_v56, %s9290_s15  ;;  %2395 = vrot.lane.b32.xlu0 %v1754_v57, %s9290_s15  ;;  %v1765_v56 = vmax.f32 %v8440_v46, 0.0  ;;  %v1764_v57 = vmax.f32 %v1613_v53, 0.0 }
 0x1a3   : > { %v2245_v0 = vpop.permute.xlu1 %2244  ;;  %v2243_v1 = vpop.permute.xlu0 %2242 }
 0x1a4   : > { %2263 = vst.msk [vmem:[#allocation2 + $0xe8] sm:$0xff] %vm1934_vm5, %v2245_v0  ;;  %2262 = vst.msk [vmem:[#allocation2 + $0xe0] sm:$0xff] %vm1934_vm5, %v2243_v1  ;;  %v2476_v0 = vadd.s32 1, %v2472_v60  ;;  %v1703_v1 = vmax.f32 %v8347_v54, 0.0 }
 0x1a5   : > { %2079 = vrot.lane.b32.xlu1 %v1693_v62, %s9290_s15  ;;  %2077 = vrot.lane.b32.xlu0 %v1692_v63, %s9290_s15  ;;  %v8443_v62 = vpop.f32.mrf.mxu1  ;;  %v10188_v63 = vand.u32 127, %v2467_v47 }
 0x1a7   : > { %v1925_v7 = vpop.permute.xlu1 %1924  ;;  %v1923_v8 = vpop.permute.xlu0 %1922  ;;  %vm10191_vm7 = vcmp.eq.s32.totalorder %v10188_v63, %v2472_v60  ;;  %vm10196_vm8 = vcmp.eq.s32.totalorder %v10188_v63, %v2476_v0 }
 0x1a8   : > { %1942 = vst.msk [vmem:[#allocation2 + $0x78] sm:$0xff] %vm1934_vm5, %v1925_v7  ;;  %1941 = vst.msk [vmem:[#allocation2 + $0x70] sm:$0xff] %vm1934_vm5, %v1923_v8  ;;  %v1623_v8 = vpop.f32.mrf.mxu1  ;;  %v10205_v10 = vsel %vm10191_vm7, 1.0, %v9287_v5 }
 0x1a9   : > { %2401 = vrot.lane.b32.xlu1 %v1757_v4, %s9290_s15  ;;  %2399 = vrot.lane.b32.xlu0 %v1756_v6, %s9290_s15  ;;  %v1766_v21 = vmax.f32 %v1623_v8, 0.0 }
 0x1ab   : > { %v2249_v13 = vpop.permute.xlu1 %2248  ;;  %v2247_v14 = vpop.permute.xlu0 %2246 }
 0x1ac   : > { %2265 = vst.msk [vmem:[#allocation2 + $0xf8] sm:$0xff] %vm1934_vm5, %v2249_v13  ;;  %2264 = vst.msk [vmem:[#allocation2 + $0xf0] sm:$0xff] %vm1934_vm5, %v2247_v14  ;;  %v10220_v13 = vld [vmem:[%s11955_s3 + $0x8] sm:$0xff]  ;;  %v10225_v14 = vld [vmem:[%s11955_s3 + $0x10] sm:$0xff] }
 0x1ad   : > { %2083 = vrot.lane.b32.xlu1 %v1695_v11, %s9290_s15  ;;  %2081 = vrot.lane.b32.xlu0 %v1694_v12, %s9290_s15  ;;  %v10210_v11 = vsel %vm10196_vm8, 1.0, %v9287_v5  ;;  %v10215_v12 = vld [vmem:[%s11955_s3] sm:$0xff] }
 0x1af   : > { %v1954_v19 = vpop.permute.xlu1 %1953  ;;  %v1952_v20 = vpop.permute.xlu0 %1951 }
 0x1b0   : > { %1977 = vst.msk [vmem:[#allocation2 + $0x48] sm:$0xff] %vm1975_vm6, %v1954_v19  ;;  %1976 = vst.msk [vmem:[#allocation2 + $0x40] sm:$0xff] %vm1975_vm6, %v1952_v20  ;;  %v10284_v19 = vld [vmem:[%s11955_s3 + $0x38] sm:$0xff]  ;;  %v1767_v20 = vmax.f32 %v8443_v62, 0.0 }
 0x1b1   : > { %2405 = vrot.lane.b32.xlu1 %v1759_v17, %s9290_s15  ;;  %2403 = vrot.lane.b32.xlu0 %v1758_v18, %s9290_s15  ;;  %v10274_v17 = vld [vmem:[%s11955_s3 + $0x28] sm:$0xff]  ;;  %v10279_v18 = vld [vmem:[%s11955_s3 + $0x30] sm:$0xff] }
 0x1b3   : > { %v2277_v25 = vpop.permute.xlu1 %2276  ;;  %v2275_v26 = vpop.permute.xlu0 %2274 }
 0x1b4   : > { %2299 = vst.msk [vmem:[#allocation2 + $0xc8] sm:$0xff] %vm1975_vm6, %v2277_v25  ;;  %2298 = vst.msk [vmem:[#allocation2 + $0xc0] sm:$0xff] %vm1975_vm6, %v2275_v26  ;;  %v8446_v25 = vpop.f32.mrf.mxu1  ;;  %v1705_v26 = vmax.f32 %v8350_v9, 0.0 }
 0x1b5   : > { %2087 = vrot.lane.b32.xlu1 %v1697_v23, %s9290_s15  ;;  %2085 = vrot.lane.b32.xlu0 %v1696_v24, %s9290_s15  ;;  %v1313_v24 = vpop.f32.mrf.mxu0 }
 0x1b6   : > { %v1704_v27 = vmax.f32 %v1313_v24, 0.0 }
 0x1b7   : > { %v1958_v31 = vpop.permute.xlu1 %1957  ;;  %v1956_v32 = vpop.permute.xlu0 %1955 }
 0x1b8   : > { %1979 = vst.msk [vmem:[#allocation2 + $0x58] sm:$0xff] %vm1975_vm6, %v1958_v31  ;;  %1978 = vst.msk [vmem:[#allocation2 + $0x50] sm:$0xff] %vm1975_vm6, %v1956_v32  ;;  %v1769_v31 = vmax.f32 %v8446_v25, 0.0 }
 0x1b9   : > { %2409 = vrot.lane.b32.xlu1 %v1761_v29, %s9290_s15  ;;  %2407 = vrot.lane.b32.xlu0 %v1760_v30, %s9290_s15  ;;  %v1633_v30 = vpop.f32.mrf.mxu1 }
 0x1ba   : > { %v1768_v32 = vmax.f32 %v1633_v30, 0.0 }
 0x1bb   : > { %v2281_v37 = vpop.permute.xlu1 %2280  ;;  %v2279_v38 = vpop.permute.xlu0 %2278 }
 0x1bc   : > { %2301 = vst.msk [vmem:[#allocation2 + $0xd8] sm:$0xff] %vm1975_vm6, %v2281_v37  ;;  %2300 = vst.msk [vmem:[#allocation2 + $0xd0] sm:$0xff] %vm1975_vm6, %v2279_v38 }
 0x1bd   : > { %2115 = vrot.lane.b32.xlu1 %v1699_v35, %s9291_s16  ;;  %2113 = vrot.lane.b32.xlu0 %v1698_v36, %s9291_s16 }
 0x1bf   : > { %v1962_v43 = vpop.permute.xlu1 %1961  ;;  %v1960_v44 = vpop.permute.xlu0 %1959 }
 0x1c0   : > { %1981 = vst.msk [vmem:[#allocation2 + $0x68] sm:$0xff] %vm1975_vm6, %v1962_v43  ;;  %1980 = vst.msk [vmem:[#allocation2 + $0x60] sm:$0xff] %vm1975_vm6, %v1960_v44 }
 0x1c1   : > { %2437 = vrot.lane.b32.xlu1 %v1763_v41, %s9291_s16  ;;  %2435 = vrot.lane.b32.xlu0 %v1762_v42, %s9291_s16 }
 0x1c3   : > { %v2285_v50 = vpop.permute.xlu1 %2284  ;;  %v2283_v51 = vpop.permute.xlu0 %2282 }
 0x1c4   : > { %2303 = vst.msk [vmem:[#allocation2 + $0xe8] sm:$0xff] %vm1975_vm6, %v2285_v50  ;;  %2302 = vst.msk [vmem:[#allocation2 + $0xe0] sm:$0xff] %vm1975_vm6, %v2283_v51 }
 0x1c5   : > { %2119 = vrot.lane.b32.xlu1 %v1701_v48, %s9291_s16  ;;  %2117 = vrot.lane.b32.xlu0 %v1700_v49, %s9291_s16 }
 0x1c7   : > { %v1966_v58 = vpop.permute.xlu1 %1965  ;;  %v1964_v59 = vpop.permute.xlu0 %1963 }
 0x1c8   : > { %1983 = vst.msk [vmem:[#allocation2 + $0x78] sm:$0xff] %vm1975_vm6, %v1966_v58  ;;  %1982 = vst.msk [vmem:[#allocation2 + $0x70] sm:$0xff] %vm1975_vm6, %v1964_v59 }
 0x1c9   : > { %2441 = vrot.lane.b32.xlu1 %v1765_v56, %s9291_s16  ;;  %2439 = vrot.lane.b32.xlu0 %v1764_v57, %s9291_s16 }
 0x1cb   : > { %v2289_v3 = vpop.permute.xlu1 %2288  ;;  %v2287_v4 = vpop.permute.xlu0 %2286 }
 0x1cc   : > { %2305 = vst.msk [vmem:[#allocation2 + $0xf8] sm:$0xff] %vm1975_vm6, %v2289_v3  ;;  %2304 = vst.msk [vmem:[#allocation2 + $0xf0] sm:$0xff] %vm1975_vm6, %v2287_v4 }
 0x1cd   : > { %2123 = vrot.lane.b32.xlu1 %v1703_v1, %s9291_s16  ;;  %2121 = vrot.lane.b32.xlu0 %v1702_v2, %s9291_s16 }
 0x1cf   : > { %v1995_v22 = vpop.permute.xlu1 %1994  ;;  %v1993_v23 = vpop.permute.xlu0 %1992 }
 0x1d0   : > { %2018 = vst.msk [vmem:[#allocation2 + $0x88] sm:$0xff] %vm1852_vm3, %v1995_v22  ;;  %2017 = vst.msk [vmem:[#allocation2 + $0x80] sm:$0xff] %vm1852_vm3, %v1993_v23 }
 0x1d1   : > { %2445 = vrot.lane.b32.xlu1 %v1767_v20, %s9291_s16  ;;  %2443 = vrot.lane.b32.xlu0 %v1766_v21, %s9291_s16 }
 0x1d3   : > { %v2317_v28 = vpop.permute.xlu1 %2316  ;;  %v2315_v29 = vpop.permute.xlu0 %2314 }
 0x1d4   : > { %2340 = vst.msk [vmem:[#allocation2 + $0x108] sm:$0xff] %vm1852_vm3, %v2317_v28  ;;  %2339 = vst.msk [vmem:[#allocation2 + $0x100] sm:$0xff] %vm1852_vm3, %v2315_v29 }
 0x1d5   : > { %2127 = vrot.lane.b32.xlu1 %v1705_v26, %s9291_s16  ;;  %2125 = vrot.lane.b32.xlu0 %v1704_v27, %s9291_s16 }
 0x1d7   : > { %v1999_v33 = vpop.permute.xlu1 %1998  ;;  %v1997_v34 = vpop.permute.xlu0 %1996 }
 0x1d8   : > { %2020 = vst.msk [vmem:[#allocation2 + $0x98] sm:$0xff] %vm1852_vm3, %v1999_v33  ;;  %2019 = vst.msk [vmem:[#allocation2 + $0x90] sm:$0xff] %vm1852_vm3, %v1997_v34 }
 0x1d9   : > { %2449 = vrot.lane.b32.xlu1 %v1769_v31, %s9291_s16  ;;  %2447 = vrot.lane.b32.xlu0 %v1768_v32, %s9291_s16  ;;  %s10356_s16 = smov 0  }
 0x1db   : > { %v2321_v35 = vpop.permute.xlu1 %2320  ;;  %v2319_v36 = vpop.permute.xlu0 %2318 }
 0x1dc   : > { %2342 = vst.msk [vmem:[#allocation2 + $0x118] sm:$0xff] %vm1852_vm3, %v2321_v35  ;;  %2341 = vst.msk [vmem:[#allocation2 + $0x110] sm:$0xff] %vm1852_vm3, %v2319_v36 }
 0x1df   : > { %v2003_v37 = vpop.permute.xlu1 %2002  ;;  %v2001_v38 = vpop.permute.xlu0 %2000 }
 0x1e0   : > { %2022 = vst.msk [vmem:[#allocation2 + $0xa8] sm:$0xff] %vm1852_vm3, %v2003_v37  ;;  %2021 = vst.msk [vmem:[#allocation2 + $0xa0] sm:$0xff] %vm1852_vm3, %v2001_v38 }
 0x1e3   : > { %v2325_v39 = vpop.permute.xlu1 %2324  ;;  %v2323_v40 = vpop.permute.xlu0 %2322 }
 0x1e4   : > { %2344 = vst.msk [vmem:[#allocation2 + $0x128] sm:$0xff] %vm1852_vm3, %v2325_v39  ;;  %2343 = vst.msk [vmem:[#allocation2 + $0x120] sm:$0xff] %vm1852_vm3, %v2323_v40 }
 0x1e7   : > { %v2007_v41 = vpop.permute.xlu1 %2006  ;;  %v2005_v42 = vpop.permute.xlu0 %2004 }
 0x1e8   : > { %2024 = vst.msk [vmem:[#allocation2 + $0xb8] sm:$0xff] %vm1852_vm3, %v2007_v41  ;;  %2023 = vst.msk [vmem:[#allocation2 + $0xb0] sm:$0xff] %vm1852_vm3, %v2005_v42 }
 0x1eb   : > { %v2329_v43 = vpop.permute.xlu1 %2328  ;;  %v2327_v44 = vpop.permute.xlu0 %2326 }
 0x1ec   : > { %2346 = vst.msk [vmem:[#allocation2 + $0x138] sm:$0xff] %vm1852_vm3, %v2329_v43  ;;  %2345 = vst.msk [vmem:[#allocation2 + $0x130] sm:$0xff] %vm1852_vm3, %v2327_v44 }
 0x1ef   : > { %v2036_v45 = vpop.permute.xlu1 %2035  ;;  %v2034_v46 = vpop.permute.xlu0 %2033 }
 0x1f0   : > { %2058 = vst.msk [vmem:[#allocation2 + $0x88] sm:$0xff] %vm1893_vm4, %v2036_v45  ;;  %2057 = vst.msk [vmem:[#allocation2 + $0x80] sm:$0xff] %vm1893_vm4, %v2034_v46 }
 0x1f3   : > { %v2358_v47 = vpop.permute.xlu1 %2357  ;;  %v2356_v48 = vpop.permute.xlu0 %2355 }
 0x1f4   : > { %2380 = vst.msk [vmem:[#allocation2 + $0x108] sm:$0xff] %vm1893_vm4, %v2358_v47  ;;  %2379 = vst.msk [vmem:[#allocation2 + $0x100] sm:$0xff] %vm1893_vm4, %v2356_v48 }
 0x1f7   : > { %v2040_v49 = vpop.permute.xlu1 %2039  ;;  %v2038_v50 = vpop.permute.xlu0 %2037 }
 0x1f8   : > { %2060 = vst.msk [vmem:[#allocation2 + $0x98] sm:$0xff] %vm1893_vm4, %v2040_v49  ;;  %2059 = vst.msk [vmem:[#allocation2 + $0x90] sm:$0xff] %vm1893_vm4, %v2038_v50 }
 0x1fb   : > { %v2362_v51 = vpop.permute.xlu1 %2361  ;;  %v2360_v53 = vpop.permute.xlu0 %2359 }
 0x1fc   : > { %2382 = vst.msk [vmem:[#allocation2 + $0x118] sm:$0xff] %vm1893_vm4, %v2362_v51  ;;  %2381 = vst.msk [vmem:[#allocation2 + $0x110] sm:$0xff] %vm1893_vm4, %v2360_v53 }
 0x1ff   : > { %v2044_v54 = vpop.permute.xlu1 %2043  ;;  %v2042_v56 = vpop.permute.xlu0 %2041 }
 0x200   : > { %2062 = vst.msk [vmem:[#allocation2 + $0xa8] sm:$0xff] %vm1893_vm4, %v2044_v54  ;;  %2061 = vst.msk [vmem:[#allocation2 + $0xa0] sm:$0xff] %vm1893_vm4, %v2042_v56 }
 0x203   : > { %v2366_v57 = vpop.permute.xlu1 %2365  ;;  %v2364_v58 = vpop.permute.xlu0 %2363 }
 0x204   : > { %2384 = vst.msk [vmem:[#allocation2 + $0x128] sm:$0xff] %vm1893_vm4, %v2366_v57  ;;  %2383 = vst.msk [vmem:[#allocation2 + $0x120] sm:$0xff] %vm1893_vm4, %v2364_v58 }
 0x207   : > { %v2048_v59 = vpop.permute.xlu1 %2047  ;;  %v2046_v60 = vpop.permute.xlu0 %2045 }
 0x208   : > { %2064 = vst.msk [vmem:[#allocation2 + $0xb8] sm:$0xff] %vm1893_vm4, %v2048_v59  ;;  %2063 = vst.msk [vmem:[#allocation2 + $0xb0] sm:$0xff] %vm1893_vm4, %v2046_v60 }
 0x20b   : > { %v2370_v61 = vpop.permute.xlu1 %2369  ;;  %v2368_v62 = vpop.permute.xlu0 %2367 }
 0x20c   : > { %2386 = vst.msk [vmem:[#allocation2 + $0x138] sm:$0xff] %vm1893_vm4, %v2370_v61  ;;  %2385 = vst.msk [vmem:[#allocation2 + $0x130] sm:$0xff] %vm1893_vm4, %v2368_v62 }
 0x20f   : > { %v2076_v0 = vpop.permute.xlu1 %2075  ;;  %v2074_v1 = vpop.permute.xlu0 %2073 }
 0x210   : > { %2098 = vst.msk [vmem:[#allocation2 + $0x88] sm:$0xff] %vm1934_vm5, %v2076_v0  ;;  %2097 = vst.msk [vmem:[#allocation2 + $0x80] sm:$0xff] %vm1934_vm5, %v2074_v1 }
 0x213   : > { %v2398_v2 = vpop.permute.xlu1 %2397  ;;  %v2396_v3 = vpop.permute.xlu0 %2395 }
 0x214   : > { %2420 = vst.msk [vmem:[#allocation2 + $0x108] sm:$0xff] %vm1934_vm5, %v2398_v2  ;;  %2419 = vst.msk [vmem:[#allocation2 + $0x100] sm:$0xff] %vm1934_vm5, %v2396_v3 }
 0x217   : > { %v2080_v4 = vpop.permute.xlu1 %2079  ;;  %v2078_v8 = vpop.permute.xlu0 %2077 }
 0x218   : > { %2100 = vst.msk [vmem:[#allocation2 + $0x98] sm:$0xff] %vm1934_vm5, %v2080_v4  ;;  %2099 = vst.msk [vmem:[#allocation2 + $0x90] sm:$0xff] %vm1934_vm5, %v2078_v8 }
 0x21b   : > { %v2402_v9 = vpop.permute.xlu1 %2401  ;;  %v2400_v20 = vpop.permute.xlu0 %2399 }
 0x21c   : > { %2422 = vst.msk [vmem:[#allocation2 + $0x118] sm:$0xff] %vm1934_vm5, %v2402_v9  ;;  %2421 = vst.msk [vmem:[#allocation2 + $0x110] sm:$0xff] %vm1934_vm5, %v2400_v20 }
 0x21f   : > { %v2084_v21 = vpop.permute.xlu1 %2083  ;;  %v2082_v22 = vpop.permute.xlu0 %2081 }
 0x220   : > { %2102 = vst.msk [vmem:[#allocation2 + $0xa8] sm:$0xff] %vm1934_vm5, %v2084_v21  ;;  %2101 = vst.msk [vmem:[#allocation2 + $0xa0] sm:$0xff] %vm1934_vm5, %v2082_v22 }
 0x223   : > { %v2406_v23 = vpop.permute.xlu1 %2405  ;;  %v2404_v24 = vpop.permute.xlu0 %2403 }
 0x224   : > { %2424 = vst.msk [vmem:[#allocation2 + $0x128] sm:$0xff] %vm1934_vm5, %v2406_v23  ;;  %2423 = vst.msk [vmem:[#allocation2 + $0x120] sm:$0xff] %vm1934_vm5, %v2404_v24 }
 0x227   : > { %v2088_v25 = vpop.permute.xlu1 %2087  ;;  %v2086_v26 = vpop.permute.xlu0 %2085 }
 0x228   : > { %2104 = vst.msk [vmem:[#allocation2 + $0xb8] sm:$0xff] %vm1934_vm5, %v2088_v25  ;;  %2103 = vst.msk [vmem:[#allocation2 + $0xb0] sm:$0xff] %vm1934_vm5, %v2086_v26 }
 0x22b   : > { %v2410_v27 = vpop.permute.xlu1 %2409  ;;  %v2408_v28 = vpop.permute.xlu0 %2407 }
 0x22c   : > { %2426 = vst.msk [vmem:[#allocation2 + $0x138] sm:$0xff] %vm1934_vm5, %v2410_v27  ;;  %2425 = vst.msk [vmem:[#allocation2 + $0x130] sm:$0xff] %vm1934_vm5, %v2408_v28 }
 0x22f   : > { %v2116_v29 = vpop.permute.xlu1 %2115  ;;  %v2114_v30 = vpop.permute.xlu0 %2113 }
 0x230   : > { %2138 = vst.msk [vmem:[#allocation2 + $0x88] sm:$0xff] %vm1975_vm6, %v2116_v29  ;;  %2137 = vst.msk [vmem:[#allocation2 + $0x80] sm:$0xff] %vm1975_vm6, %v2114_v30 }
 0x233   : > { %v2438_v31 = vpop.permute.xlu1 %2437  ;;  %v2436_v32 = vpop.permute.xlu0 %2435 }
 0x234   : > { %2460 = vst.msk [vmem:[#allocation2 + $0x108] sm:$0xff] %vm1975_vm6, %v2438_v31  ;;  %2459 = vst.msk [vmem:[#allocation2 + $0x100] sm:$0xff] %vm1975_vm6, %v2436_v32 }
 0x237   : > { %v2120_v33 = vpop.permute.xlu1 %2119  ;;  %v2118_v34 = vpop.permute.xlu0 %2117 }
 0x238   : > { %2140 = vst.msk [vmem:[#allocation2 + $0x98] sm:$0xff] %vm1975_vm6, %v2120_v33  ;;  %2139 = vst.msk [vmem:[#allocation2 + $0x90] sm:$0xff] %vm1975_vm6, %v2118_v34 }
 0x23b   : > { %v2442_v35 = vpop.permute.xlu1 %2441  ;;  %v2440_v36 = vpop.permute.xlu0 %2439 }
 0x23c   : > { %2462 = vst.msk [vmem:[#allocation2 + $0x118] sm:$0xff] %vm1975_vm6, %v2442_v35  ;;  %2461 = vst.msk [vmem:[#allocation2 + $0x110] sm:$0xff] %vm1975_vm6, %v2440_v36 }
 0x23f   : > { %v2124_v37 = vpop.permute.xlu1 %2123  ;;  %v2122_v38 = vpop.permute.xlu0 %2121 }
 0x240   : > { %2142 = vst.msk [vmem:[#allocation2 + $0xa8] sm:$0xff] %vm1975_vm6, %v2124_v37  ;;  %2141 = vst.msk [vmem:[#allocation2 + $0xa0] sm:$0xff] %vm1975_vm6, %v2122_v38 }
 0x243   : > { %v2446_v39 = vpop.permute.xlu1 %2445  ;;  %v2444_v40 = vpop.permute.xlu0 %2443 }
 0x244   : > { %2464 = vst.msk [vmem:[#allocation2 + $0x128] sm:$0xff] %vm1975_vm6, %v2446_v39  ;;  %2463 = vst.msk [vmem:[#allocation2 + $0x120] sm:$0xff] %vm1975_vm6, %v2444_v40 }
 0x247   : > { %v2128_v41 = vpop.permute.xlu1 %2127  ;;  %v2126_v42 = vpop.permute.xlu0 %2125 }
 0x248   : > { %2144 = vst.msk [vmem:[#allocation2 + $0xb8] sm:$0xff] %vm1975_vm6, %v2128_v41  ;;  %2143 = vst.msk [vmem:[#allocation2 + $0xb0] sm:$0xff] %vm1975_vm6, %v2126_v42 }
 0x24b   : > { %v2450_v43 = vpop.permute.xlu1 %2449  ;;  %v2448_v44 = vpop.permute.xlu0 %2447 }
 0x24c   : > { %2466 = vst.msk [vmem:[#allocation2 + $0x138] sm:$0xff] %vm1975_vm6, %v2450_v43  ;;  %2465 = vst.msk [vmem:[#allocation2 + $0x130] sm:$0xff] %vm1975_vm6, %v2448_v44 }
 0x24d LB: >> { %s7242_s18 = sshll.u32 %s9269_s16, 6  ;;  %s9292_s20 = smov 127   ;;  %v9011_v29 = vld [vmem:[%s11954_s2 + $0x4] ss:$8 sps:$4 sm:$0xff]   ;;  %vm2985_vm10 = vcmask 1043456   ;;  %vm2960_vm11 = vcmask 31744   ;;  %s9269_s16 = sphi %s10356_s16, %s2511_s16  }
 0x24e   : >> { %s10362_s19 = scalar_lea.vmem [#allocation2], %s7242_s18  ;;  %2733 = vmatprep.mubr.bf16.mxu0 %v9011_v29  ;;  %s7634_s27 = sshll.u32 %s9269_s16, 7 }
 0x24f   : >> { %s10757_s28 = scalar_lea.vmem [#allocation3], %s7634_s27  ;;  %s2511_s16 = sadd.s32 1, %s9269_s16  }
 0x250   : >> { %p2508_p4 = scmp.ge.s32.totalorder %s2511_s16, 4  }
 0x251   : > { %vm3918_vm12 = vcmask (%p2508_p4), 146432   ;;  %s10852_s16 = smov (%p2508_p4), 0  }
 0x252   : > { %3919 = vst.msk [vmem:[#allocation4] sm:$0xff] (%p2508_p4), %vm3918_vm12, %v9287_v5  ;;  %3920 = vst.msk [vmem:[#allocation4 + $0x8] sm:$0xff] (%p2508_p4), %vm3918_vm12, %v9287_v5 }
 0x253   : >> { %v7250_v45 = vld [vmem:[%s10362_s19 + $0x70] sm:$0xff]  ;;  %v7251_v46 = vld [vmem:[%s10362_s19 + $0x78] sm:$0xff]  ;;  %v7248_v47 = vld [vmem:[%s10362_s19 + $0x60] sm:$0xff]  ;;  %3921 = vst.msk [vmem:[#allocation4 + $0x10] sm:$0xff] (%p2508_p4), %vm3918_vm12, %v9287_v5 }
 0x254   : >> { %v10367_v48 = vpack.i.bf16 %v7251_v46, %v7250_v45  ;;  %v10369_v49 = vpack.c.bf16 %v7251_v46, %v7250_v45  ;;  %v7249_v50 = vld [vmem:[%s10362_s19 + $0x68] sm:$0xff]  ;;  %v2520_v51 = vld [vmem:[%s10362_s19 + $0x30] sm:$0xff]  ;;  %v2521_v53 = vld [vmem:[%s10362_s19 + $0x38] sm:$0xff]  ;;  %3922 = vst.msk [vmem:[#allocation4 + $0x18] sm:$0xff] (%p2508_p4), %vm3918_vm12, %v9287_v5 }
 0x255   : >> { %v10374_v54 = vpack.i.bf16 %v7249_v50, %v7248_v47  ;;  %v10376_v56 = vpack.c.bf16 %v7249_v50, %v7248_v47  ;;  %v2518_v57 = vld [vmem:[%s10362_s19 + $0x20] sm:$0xff]  ;;  %v2519_v58 = vld [vmem:[%s10362_s19 + $0x28] sm:$0xff]  ;;  %v8932_v59 = vpack.i.bf16 %v2521_v53, %v2520_v51  ;;  %v7246_v61 = vld [vmem:[%s10362_s19 + $0x50] sm:$0xff]  ;;  %v10400_v22 = vpack.c.bf16 %v2521_v53, %v2520_v51  ;;  %3924 = vst.msk [vmem:[#allocation4 + $0x220] sm:$0xff] (%p2508_p4), %vm3918_vm12, %v9287_v5 }
 0x256   : >> { %8928 = vrot.lane.b32.xlu0 %v10367_v48, %s9292_s20  ;;  %v8942_v60 = vpack.i.bf16 %v2519_v58, %v2518_v57  ;;  %v7247_v62 = vld [vmem:[%s10362_s19 + $0x58] sm:$0xff]  ;;  %v2516_v0 = vld [vmem:[%s10362_s19 + $0x10] sm:$0xff]  ;;  %v7244_v2 = vld [vmem:[%s10362_s19 + $0x40] sm:$0xff]  ;;  %v10405_v24 = vpack.c.bf16 %v2519_v58, %v2518_v57  ;;  %3925 = vst.msk [vmem:[#allocation4 + $0x228] sm:$0xff] (%p2508_p4), %vm3918_vm12, %v9287_v5 }
 0x257   : >> { %8938 = vrot.lane.b32.xlu1 %v10374_v54, %s9292_s20  ;;  %v2517_v1 = vld [vmem:[%s10362_s19 + $0x18] sm:$0xff]  ;;  %v7245_v3 = vld [vmem:[%s10362_s19 + $0x48] sm:$0xff]  ;;  %v10391_v4 = vpack.i.bf16 %v7247_v62, %v7246_v61  ;;  %v2514_v8 = vld [vmem:[%s10362_s19] sm:$0xff]  ;;  %v10408_v25 = vpack.c.bf16 %v7247_v62, %v7246_v61  ;;  %3926 = vst.msk [vmem:[#allocation4 + $0x230] sm:$0xff] (%p2508_p4), %vm3918_vm12, %v9287_v5 }
 0x258   : >> { %v2515_v9 = vld [vmem:[%s10362_s19 + $0x8] sm:$0xff]  ;;  %v8952_v20 = vpack.i.bf16 %v2517_v1, %v2516_v0  ;;  %v10398_v21 = vpack.i.bf16 %v7245_v3, %v7244_v2  ;;  %v10410_v26 = vpack.c.bf16 %v2517_v1, %v2516_v0  ;;  %v10412_v27 = vpack.c.bf16 %v7245_v3, %v7244_v2  ;;  %v7320_v29 = vld [vmem:[%s10362_s19 + $0xb8] sm:$0xff]  ;;  %3927 = vst.msk [vmem:[#allocation4 + $0x238] sm:$0xff] (%p2508_p4), %vm3918_vm12, %v9287_v5 }
 0x259   : >> { %v8962_v23 = vpack.i.bf16 %v2515_v9, %v2514_v8  ;;  %v10414_v28 = vpack.c.bf16 %v2515_v9, %v2514_v8  ;;  %v9293_v8 = vmov 0  }
 0x25a   : >> { %8933 = vrot.lane.b32.xlu0 %v8932_v59, %s9292_s20  ;;  %9008 = vset.pattern.permute.xlu1 %v9293_v8 }
 0x25b   : >> { %8943 = vrot.lane.b32.xlu1 %v8942_v60, %s9292_s20  ;;  %9007 = vset.pattern.permute.xlu0 %v9293_v8 }
 0x25e   : >> { %8948 = vrot.lane.b32.xlu0 %v10391_v4, %s9292_s20 }
 0x25f   : >> { %8953 = vrot.lane.b32.xlu1 %v8952_v20, %s9292_s20  ;;  %v9023_v20 = vld [vmem:[%s11954_s2 + $0x44] ss:$8 sps:$4 sm:$0xff]  }
 0x260   : >> { %2919 = vmatprep.mubr.bf16.mxu1 %v9023_v20 }
 0x262   : >> { %8958 = vrot.lane.b32.xlu0 %v10398_v21, %s9292_s20 }
 0x263   : >> { %8963 = vrot.lane.b32.xlu1 %v8962_v23, %s9292_s20  ;;  %v7319_v23 = vld [vmem:[%s10362_s19 + $0xb0] sm:$0xff] }
 0x2c8   : >> { %v8929_v30 = vpop.permute.xlu0 %8928 }
 0x2c9   : >> { %v8931_v31 = vunpack.i.h.bf16 %v8929_v30  ;;  %v8930_v32 = vunpack.i.l.bf16 %v8929_v30  ;;  %v8939_v33 = vpop.permute.xlu1 %8938  ;;  %v10453_v30 = vld [vmem:[%s10362_s19 + $0xa0] sm:$0xff] }
 0x2ca   : >> { %v8941_v34 = vunpack.i.h.bf16 %v8939_v33  ;;  %v8940_v35 = vunpack.i.l.bf16 %v8939_v33  ;;  %v10472_v33 = vld [vmem:[%s10362_s19 + $0x90] sm:$0xff] }
 0x2cb   : >> { %v2612_v36 = vpack.c.bf16 %v8931_v31, %v8930_v32  ;;  %v10456_v31 = vld [vmem:[%s10362_s19 + $0xa8] sm:$0xff] }
 0x2cc   : >> { %v8934_v37 = vpop.permute.xlu0 %8933  ;;  %v2611_v38 = vpack.c.bf16 %v8941_v34, %v8940_v35  ;;  %v8977_v32 = vpack.i.bf16 %v10456_v31, %v10453_v30  ;;  %v10475_v34 = vld [vmem:[%s10362_s19 + $0x98] sm:$0xff] }
 0x2cd   : >> { %v8936_v39 = vunpack.i.h.bf16 %v8934_v37  ;;  %v8935_v40 = vunpack.i.l.bf16 %v8934_v37  ;;  %7777 = vmatprep.subr.bf16.mxu0 %v2612_v36  ;;  %2869 = vrot.lane.b32.xlu0 %v2612_v36, %s9292_s20  ;;  %v8944_v41 = vpop.permute.xlu1 %8943  ;;  %v8987_v35 = vpack.i.bf16 %v10475_v34, %v10472_v33  ;;  %v10483_v36 = vld [vmem:[%s10362_s19 + $0x80] sm:$0xff]  ;;  %v10486_v37 = vld [vmem:[%s10362_s19 + $0x88] sm:$0xff] }
 0x2ce   : >> { %v8946_v42 = vunpack.i.h.bf16 %v8944_v41  ;;  %v8945_v43 = vunpack.i.l.bf16 %v8944_v41 }
 0x2cf   : >> { %v2604_v44 = vpack.c.bf16 %v8936_v39, %v8935_v40  ;;  %v9015_v39 = vld [vmem:[%s11954_s2 + $0x24] ss:$8 sps:$4 sm:$0xff]   ;;  %v9018_v40 = vld [vmem:[%s11954_s2 + $0x34] ss:$8 sps:$4 sm:$0xff]  }
 0x2d0   : >> { %v8949_v45 = vpop.permute.xlu0 %8948  ;;  %v2603_v46 = vpack.c.bf16 %v8946_v42, %v8945_v43 }
 0x2d1   : >> { %2867 = vrot.lane.b32.xlu0 %v2611_v38, %s9292_s20  ;;  %7778 = vmatpush3.bf16.msra.mxu0 %v2604_v44  ;;  %v8951_v47 = vunpack.i.h.bf16 %v8949_v45  ;;  %v8950_v50 = vunpack.i.l.bf16 %v8949_v45  ;;  %v8954_v51 = vpop.permute.xlu1 %8953 }
 0x2d2   : >> { %2853 = vrot.lane.b32.xlu1 %v2604_v44, %s9292_s20  ;;  %7779 = vmatprep.subr.bf16.mxu0 %v2611_v38  ;;  %v8956_v53 = vunpack.i.h.bf16 %v8954_v51  ;;  %v8955_v57 = vunpack.i.l.bf16 %v8954_v51  ;;  %v8997_v38 = vpack.i.bf16 %v10486_v37, %v10483_v36 }
 0x2d3   : >> { %v2610_v58 = vpack.c.bf16 %v8951_v47, %v8950_v50 }
 0x2d4   : >> { %v8959_v59 = vpop.permute.xlu0 %8958  ;;  %v2602_v60 = vpack.c.bf16 %v8956_v53, %v8955_v57 }
 0x2d5   : >> { %7780 = vmatpush3.bf16.msra.mxu0 %v2603_v46  ;;  %v8961_v61 = vunpack.i.h.bf16 %v8959_v59  ;;  %v8960_v62 = vunpack.i.l.bf16 %v8959_v59  ;;  %2865 = vrot.lane.b32.xlu0 %v2610_v58, %s9292_s20  ;;  %v8964_v0 = vpop.permute.xlu1 %8963 }
 0x2d6   : >> { %2851 = vrot.lane.b32.xlu1 %v2603_v46, %s9292_s20  ;;  %7781 = vmatprep.subr.bf16.mxu0 %v2610_v58  ;;  %v8966_v1 = vunpack.i.h.bf16 %v8964_v0  ;;  %v8965_v2 = vunpack.i.l.bf16 %v8964_v0  ;;  %v9021_v0 = vld [vmem:[%s11954_s2 + $0x40] ss:$8 sps:$4 sm:$0xff]  }
 0x2d7   : >> { %v2609_v3 = vpack.c.bf16 %v8961_v61, %v8960_v62 }
 0x2d8   : >> { %v2601_v9 = vpack.c.bf16 %v8966_v1, %v8965_v2 }
 0x2d9   : >> { %7782 = vmatpush3.bf16.msra.mxu0 %v2602_v60  ;;  %2863 = vrot.lane.b32.xlu0 %v2609_v3, %s9292_s20 }
 0x2da   : >> { %2849 = vrot.lane.b32.xlu1 %v2602_v60, %s9292_s20  ;;  %7783 = vmatprep.subr.bf16.mxu0 %v2609_v3  ;;  %v9024_v3 = vld [vmem:[%s11954_s2 + $0x54] ss:$8 sps:$4 sm:$0xff]  }
 0x2dd   : >> { %7784 = vmatpush3.bf16.msra.mxu0 %v2601_v9  ;;  %2861 = vrot.lane.b32.xlu0 %v10369_v49, %s9292_s20 }
 0x2de   : >> { %2847 = vrot.lane.b32.xlu1 %v2601_v9, %s9292_s20  ;;  %7785 = vmatprep.subr.bf16.mxu0 %v10369_v49 }
 0x2e1   : >> { %2859 = vrot.lane.b32.xlu0 %v10376_v56, %s9292_s20  ;;  %7786 = vmatpush3.bf16.msra.mxu0 %v10400_v22 }
 0x2e2   : >> { %2845 = vrot.lane.b32.xlu1 %v10400_v22, %s9292_s20  ;;  %7787 = vmatprep.subr.bf16.mxu0 %v10376_v56  ;;  %v8967_v22 = vpack.i.bf16 %v7320_v29, %v7319_v23 }
 0x2e5   : >> { %2857 = vrot.lane.b32.xlu0 %v10408_v25, %s9292_s20  ;;  %7788 = vmatpush3.bf16.msra.mxu0 %v10405_v24 }
 0x2e6   : >> { %2843 = vrot.lane.b32.xlu1 %v10405_v24, %s9292_s20  ;;  %7789 = vmatprep.subr.bf16.mxu0 %v10408_v25  ;;  %v9009_v24 = vld [vmem:[%s11954_s2] ss:$8 sps:$4 sm:$0xff]  }
 0x2e9   : >> { %2855 = vrot.lane.b32.xlu0 %v10412_v27, %s9292_s20  ;;  %7790 = vmatpush3.bf16.msra.mxu0 %v10410_v26 }
 0x2ea   : >> { %2841 = vrot.lane.b32.xlu1 %v10410_v26, %s9292_s20  ;;  %7791 = vmatprep.subr.bf16.mxu0 %v10412_v27  ;;  %v9012_v26 = vld [vmem:[%s11954_s2 + $0x14] ss:$8 sps:$4 sm:$0xff]  }
 0x2ed   : >> { %8968 = vrot.lane.b32.xlu0 %v8967_v22, %s9292_s20  ;;  %7792 = vmatpush3.bf16.msra.mxu0 %v10414_v28 }
 0x2ee   : >> { %2839 = vrot.lane.b32.xlu1 %v10414_v28, %s9292_s20  ;;  %v9014_v28 = vld [vmem:[%s11954_s2 + $0x10] ss:$8 sps:$4 sm:$0xff]   ;;  %8447 = vmatprep.subr.msk.mxu0 %vm2985_vm10, %v10210_v11 }
 0x2f0   : >> { %2734 = vmatmul.mubr.bf16.vlgmr.msra.gmra.mxu0 %v9009_v24 }
 0x2f1   : >> { %8978 = vrot.lane.b32.xlu0 %v8977_v32, %s9292_s20  ;;  %2741 = vmatprep.mubr.bf16.mxu0 %v9012_v26 }
 0x2f2   : >> { %8973 = vrot.lane.b32.xlu1 %v10367_v48, %s9292_s20  ;;  %v9017_v48 = vld [vmem:[%s11954_s2 + $0x20] ss:$8 sps:$4 sm:$0xff]   ;;  %8448 = vmatpush3.msk.msra.mxu0 %vm2985_vm10, %v10210_v11 }
 0x2f5   : >> { %8988 = vrot.lane.b32.xlu0 %v8987_v35, %s9292_s20 }
 0x2f6   : >> { %8983 = vrot.lane.b32.xlu1 %v10374_v54, %s9292_s20  ;;  %v9020_v54 = vld [vmem:[%s11954_s2 + $0x30] ss:$8 sps:$4 sm:$0xff]  }
 0x2f8   : >> { %2742 = vmatmul.mubr.bf16.gmra.mxu0 %v9014_v28 }
 0x2f9   : >> { %8998 = vrot.lane.b32.xlu0 %v8997_v38, %s9292_s20  ;;  %2749 = vmatprep.mubr.bf16.mxu0 %v9015_v39 }
 0x2fa   : >> { %8993 = vrot.lane.b32.xlu1 %v10391_v4, %s9292_s20  ;;  %v10525_v4 = vpack.c.bf16 %v7320_v29, %v7319_v23 }
 0x2fd   : >> { %2623 = vperm.xlu0 %9007, %v10215_v12  }
 0x2fe   : >> { %9003 = vrot.lane.b32.xlu1 %v10398_v21, %s9292_s20 }
 0x300   : >> { %2750 = vmatmul.mubr.bf16.gmra.mxu0 %v9017_v48  ;;  %v9026_v48 = vld [vmem:[%s11954_s2 + $0x50] ss:$8 sps:$4 sm:$0xff]  }
 0x301   : >> { %2757 = vmatprep.mubr.bf16.mxu0 %v9018_v40  ;;  %2638 = vperm.xlu0 %9007, %v10264_v15  }
 0x302   : >> { %2628 = vperm.xlu1 %9008, %v10220_v13  }
 0x305   : >> { %2648 = vperm.xlu0 %9007, %v10274_v17  }
 0x306   : >> { %2633 = vperm.xlu1 %9008, %v10225_v14  }
 0x308   : >> { %2758 = vmatmul.mubr.bf16.gmra.mxu0 %v9020_v54 }
 0x309   : >> { %3530 = vrot.lane.b32.xlu0 %v10369_v49, %s9292_s20 }
 0x30a   : >> { %2643 = vperm.xlu1 %9008, %v10269_v16  }
 0x30e   : >> { %3546 = vrot.lane.b32.xlu1 %v10525_v4, %s9292_s20 }
 0x33f   : >> { %v2870_v21 = vpop.permute.xlu0 %2869 }
 0x340   : >> { %7817 = vmatprep.subr.bf16.mxu1 %v2870_v21  ;;  %v9027_v21 = vld [vmem:[%s11954_s2 + $0x64] ss:$8 sps:$4 sm:$0xff]  }
 0x343   : >> { %v2868_v41 = vpop.permute.xlu0 %2867 }
 0x344   : >> { %v2854_v42 = vpop.permute.xlu1 %2853 }
 0x345   : >> { %7818 = vmatpush3.bf16.msra.mxu1 %v2854_v42 }
 0x346   : >> { %7819 = vmatprep.subr.bf16.mxu1 %v2868_v41 }
 0x347   : >> { %v2866_v43 = vpop.permute.xlu0 %2865 }
 0x348   : >> { %v2852_v44 = vpop.permute.xlu1 %2851 }
 0x349   : >> { %7820 = vmatpush3.bf16.msra.mxu1 %v2852_v44 }
 0x34a   : >> { %7821 = vmatprep.subr.bf16.mxu1 %v2866_v43 }
 0x34b   : >> { %v2864_v45 = vpop.permute.xlu0 %2863 }
 0x34c   : >> { %v2850_v46 = vpop.permute.xlu1 %2849 }
 0x34d   : >> { %7822 = vmatpush3.bf16.msra.mxu1 %v2850_v46 }
 0x34e   : >> { %7823 = vmatprep.subr.bf16.mxu1 %v2864_v45 }
 0x34f   : >> { %v2862_v47 = vpop.permute.xlu0 %2861 }
 0x350   : >> { %v2848_v50 = vpop.permute.xlu1 %2847 }
 0x351   : >> { %7824 = vmatpush3.bf16.msra.mxu1 %v2848_v50 }
 0x352   : >> { %7825 = vmatprep.subr.bf16.mxu1 %v2862_v47 }
 0x353   : >> { %v2860_v51 = vpop.permute.xlu0 %2859 }
 0x354   : >> { %v2846_v53 = vpop.permute.xlu1 %2845 }
 0x355   : >> { %7826 = vmatpush3.bf16.msra.mxu1 %v2846_v53 }
 0x356   : >> { %7827 = vmatprep.subr.bf16.mxu1 %v2860_v51 }
 0x357   : >> { %v2858_v57 = vpop.permute.xlu0 %2857 }
 0x358   : >> { %v2844_v58 = vpop.permute.xlu1 %2843 }
 0x359   : >> { %7828 = vmatpush3.bf16.msra.mxu1 %v2844_v58  ;;  %v9029_v58 = vld [vmem:[%s11954_s2 + $0x60] ss:$8 sps:$4 sm:$0xff]  }
 0x35a   : >> { %7829 = vmatprep.subr.bf16.mxu1 %v2858_v57 }
 0x35b   : >> { %v2856_v59 = vpop.permute.xlu0 %2855 }
 0x35c   : >> { %v2842_v60 = vpop.permute.xlu1 %2841 }
 0x35d   : >> { %7830 = vmatpush3.bf16.msra.mxu1 %v2842_v60 }
 0x35e   : >> { %7831 = vmatprep.subr.bf16.mxu1 %v2856_v59 }
 0x35f   : >> { %v8969_v61 = vpop.permute.xlu0 %8968 }
 0x360   : >> { %v2840_v62 = vpop.permute.xlu1 %2839  ;;  %v8971_v1 = vunpack.i.h.bf16 %v8969_v61  ;;  %v8970_v2 = vunpack.i.l.bf16 %v8969_v61  ;;  %v9030_v61 = vld [vmem:[%s11954_s2 + $0x74] ss:$8 sps:$4 sm:$0xff]  }
 0x361   : >> { %7832 = vmatpush3.bf16.msra.mxu1 %v2840_v62 }
 0x362   : >> { %v3336_v8 = vpack.c.bf16 %v8971_v1, %v8970_v2  ;;  %8461 = vmatprep.subr.msk.mxu1 %vm2985_vm10, %v10205_v10  ;;  %v9032_v1 = vld [vmem:[%s11954_s2 + $0x70] ss:$8 sps:$4 sm:$0xff]   ;;  %v10592_v2 = vpack.c.bf16 %v10475_v34, %v10472_v33 }
 0x363   : >> { %v8979_v9 = vpop.permute.xlu0 %8978 }
 0x364   : >> { %2920 = vmatmul.mubr.bf16.vlgmr.msra.gmra.mxu1 %v9021_v0  ;;  %v8974_v20 = vpop.permute.xlu1 %8973  ;;  %v8981_v23 = vunpack.i.h.bf16 %v8979_v9  ;;  %v8980_v29 = vunpack.i.l.bf16 %v8979_v9  ;;  %3554 = vrot.lane.b32.xlu1 %v3336_v8, %s9292_s20  ;;  %v10581_v0 = vpack.c.bf16 %v10456_v31, %v10453_v30  ;;  %v10599_v30 = vpack.c.bf16 %v10486_v37, %v10483_v36 }
 0x365   : >> { %v8976_v22 = vunpack.i.h.bf16 %v8974_v20  ;;  %v8975_v24 = vunpack.i.l.bf16 %v8974_v20  ;;  %2927 = vmatprep.mubr.bf16.mxu1 %v9024_v3  ;;  %7875 = vmatprep.subr.bf16.mxu0 %v3336_v8 }
 0x366   : >> { %v10538_v32 = vpack.c.bf16 %v8981_v23, %v8980_v29  ;;  %8462 = vmatpush3.msk.msra.mxu1 %vm2985_vm10, %v10205_v10 }
 0x367   : >> { %v10542_v26 = vpack.c.bf16 %v8976_v22, %v8975_v24  ;;  %v8989_v35 = vpop.permute.xlu0 %8988 }
 0x368   : >> { %v8984_v28 = vpop.permute.xlu1 %8983  ;;  %v8991_v38 = vunpack.i.h.bf16 %v8989_v35  ;;  %v8990_v39 = vunpack.i.l.bf16 %v8989_v35  ;;  %3552 = vrot.lane.b32.xlu1 %v10538_v32, %s9292_s20 }
 0x369   : >> { %v8986_v40 = vunpack.i.h.bf16 %v8984_v28  ;;  %v8985_v54 = vunpack.i.l.bf16 %v8984_v28  ;;  %3538 = vrot.lane.b32.xlu0 %v10542_v26, %s9292_s20 }
 0x36a   : >> { %v10554_v41 = vpack.c.bf16 %v8991_v38, %v8990_v39 }
 0x36b   : >> { %v10556_v42 = vpack.c.bf16 %v8986_v40, %v8985_v54  ;;  %v8999_v43 = vpop.permute.xlu0 %8998 }
 0x36c   : >> { %2928 = vmatmul.mubr.bf16.gmra.mxu1 %v9026_v48  ;;  %v8994_v44 = vpop.permute.xlu1 %8993  ;;  %v9001_v45 = vunpack.i.h.bf16 %v8999_v43  ;;  %v9000_v46 = vunpack.i.l.bf16 %v8999_v43  ;;  %3550 = vrot.lane.b32.xlu1 %v10554_v41, %s9292_s20 }
 0x36d   : >> { %v8996_v47 = vunpack.i.h.bf16 %v8994_v44  ;;  %v8995_v50 = vunpack.i.l.bf16 %v8994_v44  ;;  %3536 = vrot.lane.b32.xlu0 %v10556_v42, %s9292_s20  ;;  %2935 = vmatprep.mubr.bf16.mxu1 %v9027_v21 }
 0x36e   : >> { %v10562_v51 = vpack.c.bf16 %v9001_v45, %v9000_v46 }
 0x36f   : >> { %v10564_v53 = vpack.c.bf16 %v8996_v47, %v8995_v50 }
 0x370   : >> { %v9004_v57 = vpop.permute.xlu1 %9003  ;;  %3548 = vrot.lane.b32.xlu1 %v10562_v51, %s9292_s20 }
 0x371   : >> { %v9006_v59 = vunpack.i.h.bf16 %v9004_v57  ;;  %v9005_v60 = vunpack.i.l.bf16 %v9004_v57  ;;  %3534 = vrot.lane.b32.xlu0 %v10564_v53, %s9292_s20 }
 0x373   : >> { %v10576_v62 = vpack.c.bf16 %v9006_v59, %v9005_v60 }
 0x374   : >> { %2936 = vmatmul.mubr.bf16.gmra.mxu1 %v9029_v58  ;;  %2653 = vperm.xlu1 %9008, %v10279_v18  }
 0x375   : >> { %3532 = vrot.lane.b32.xlu0 %v10576_v62, %s9292_s20  ;;  %2943 = vmatprep.mubr.bf16.mxu1 %v9030_v61 }
 0x378   : >> { %3544 = vrot.lane.b32.xlu1 %v10581_v0, %s9292_s20  ;;  %v10609_v3 = vpop.permute.xlu0 %2623 }
 0x379   : >> { %2658 = vperm.xlu0 %9007, %v10284_v19  }
 0x37c   : >> { %2944 = vmatmul.mubr.bf16.gmra.mxu1 %v9032_v1  ;;  %3542 = vrot.lane.b32.xlu1 %v10592_v2, %s9292_s20  ;;  %v10620_v43 = vpop.permute.xlu0 %2638 }
 0x37d   : >> { %3528 = vrot.lane.b32.xlu0 %v10376_v56, %s9292_s20  ;;  %v10612_v37 = vpop.permute.xlu1 %2628 }
 0x380   : >> { %3540 = vrot.lane.b32.xlu1 %v10599_v30, %s9292_s20 }
 0x381   : >> { %3526 = vrot.lane.b32.xlu0 %v10408_v25, %s9292_s20  ;;  %v10616_v38 = vpop.permute.xlu1 %2633 }
 0x385   : >> { %3524 = vrot.lane.b32.xlu0 %v10412_v27, %s9292_s20  ;;  %v10624_v57 = vpop.permute.xlu1 %2643 }
 0x3b0   : >> { %v7793_v31 = vpop.f32.mrf.mxu0 }
 0x3b2   : >> { %v7794_v33 = vpop.f32.mrf.mxu0 }
 0x3b3   : >> { %v7795_v34 = vadd.f32 %v7794_v33, %v7793_v31  ;;  %v10628_v31 = vpop.permute.xlu0 %2648 }
 0x3b4   : >> { %v7796_v8 = vpop.f32.mrf.mxu0 }
 0x3b5   : >> { %v2736_v36 = vadd.f32 %v7795_v34, %v10609_v3 }
 0x3b6   : >> { %v7797_v9 = vpop.f32.mrf.mxu0 }
 0x3b7   : >> { %v2766_v20 = vmax.f32 %v2736_v36, 0.0  ;;  %v7798_v23 = vadd.f32 %v7797_v9, %v7796_v8  ;;  %v3547_v8 = vpop.permute.xlu1 %3546  ;;  %v3531_v36 = vpop.permute.xlu0 %3530 }
 0x3b8   : >> { %v7799_v29 = vpop.f32.mrf.mxu0 }
 0x3b9   : >> { %v2739_v22 = vadd.f32 %v7798_v23, %v10612_v37  ;;  %8463 = vmatprep.mubr.msk.f32.mxu1 %vm2960_vm11, %v2766_v20 }
 0x3ba   : >> { %v7800_v24 = vpop.f32.mrf.mxu0 }
 0x3bb   : >> { %v2767_v35 = vmax.f32 %v2739_v22, 0.0  ;;  %v7801_v28 = vadd.f32 %v7800_v24, %v7799_v29 }
 0x3bc   : >> { %v7802_v39 = vpop.f32.mrf.mxu0 }
 0x3bd   : >> { %v2744_v48 = vadd.f32 %v7801_v28, %v10616_v38  ;;  %8464 = vmatmul.mubr.msk.f32.vlgmr.msra.gmra.mxu1 %vm2960_vm11, %v2767_v35 }
 0x3be   : >> { %v7803_v40 = vpop.f32.mrf.mxu0 }
 0x3bf   : >> { %v2768_v54 = vmax.f32 %v2744_v48, 0.0  ;;  %v7804_v21 = vadd.f32 %v7803_v40, %v7802_v39 }
 0x3c0   : >> { %v7805_v44 = vpop.f32.mrf.mxu0 }
 0x3c1   : >> { %v2747_v45 = vadd.f32 %v7804_v21, %v10620_v43  ;;  %8466 = vmatprep.mubr.msk.f32.mxu1 %vm2960_vm11, %v2768_v54 }
 0x3c2   : >> { %v7806_v46 = vpop.f32.mrf.mxu0 }
 0x3c3   : >> { %v2769_v47 = vmax.f32 %v2747_v45, 0.0  ;;  %v7807_v50 = vadd.f32 %v7806_v46, %v7805_v44 }
 0x3c4   : >> { %v7808_v58 = vpop.f32.mrf.mxu0 }
 0x3c5   : >> { %v2752_v59 = vadd.f32 %v7807_v50, %v10624_v57  ;;  %8467 = vmatmul.mubr.msk.f32.gmra.mxu1 %vm2960_vm11, %v2769_v47 }
 0x3c6   : >> { %v7809_v60 = vpop.f32.mrf.mxu0 }
 0x3c7   : >> { %v2770_v61 = vmax.f32 %v2752_v59, 0.0  ;;  %v7810_v1 = vadd.f32 %v7809_v60, %v7808_v58 }
 0x3c8   : >> { %v7811_v35 = vpop.f32.mrf.mxu0 }
 0x3c9   : >> { %v2755_v33 = vadd.f32 %v7810_v1, %v10628_v31  ;;  %8469 = vmatprep.mubr.msk.f32.mxu1 %vm2960_vm11, %v2770_v61  ;;  %v9035_v1 = vld [vmem:[%s11954_s2 + $0xc4] ss:$8 sps:$4 sm:$0xff]  }
 0x3ca   : >> { %v7812_v39 = vpop.f32.mrf.mxu0 }
 0x3cb   : >> { %v2771_v34 = vmax.f32 %v2755_v33, 0.0  ;;  %v7813_v54 = vadd.f32 %v7812_v39, %v7811_v35  ;;  %v9044_v35 = vld [vmem:[%s11954_s2 + $0xf0] ss:$8 sps:$4 sm:$0xff]  }
 0x3cc   : >> { %v7814_v40 = vpop.f32.mrf.mxu0 }
 0x3cd   : >> { %8470 = vmatmul.mubr.msk.f32.gmra.mxu1 %vm2960_vm11, %v2771_v34 }
 0x3ce   : >> { %v7815_v21 = vpop.f32.mrf.mxu0 }
 0x3cf   : >> { %v7816_v46 = vadd.f32 %v7815_v21, %v7814_v40 }
 0x3d6   : >> { %v3555_v9 = vpop.permute.xlu1 %3554 }
 0x3d7   : >> { %7915 = vmatprep.subr.bf16.mxu1 %v3555_v9  ;;  %v9033_v9 = vld [vmem:[%s11954_s2 + $0xc0] ss:$8 sps:$4 sm:$0xff]  }
 0x3da   : >> { %v3553_v20 = vpop.permute.xlu1 %3552 }
 0x3db   : >> { %v3539_v23 = vpop.permute.xlu0 %3538 }
 0x3dc   : >> { %7916 = vmatpush3.bf16.msra.mxu1 %v3539_v23  ;;  %v9038_v23 = vld [vmem:[%s11954_s2 + $0xd0] ss:$8 sps:$4 sm:$0xff]  }
 0x3dd   : >> { %7917 = vmatprep.subr.bf16.mxu1 %v3553_v20  ;;  %v9036_v20 = vld [vmem:[%s11954_s2 + $0xd4] ss:$8 sps:$4 sm:$0xff]  }
 0x3de   : >> { %v3551_v29 = vpop.permute.xlu1 %3550 }
 0x3df   : >> { %v3537_v22 = vpop.permute.xlu0 %3536 }
 0x3e0   : >> { %7918 = vmatpush3.bf16.msra.mxu1 %v3537_v22  ;;  %v9041_v22 = vld [vmem:[%s11954_s2 + $0xe0] ss:$8 sps:$4 sm:$0xff]  }
 0x3e1   : >> { %7919 = vmatprep.subr.bf16.mxu1 %v3551_v29  ;;  %v9039_v29 = vld [vmem:[%s11954_s2 + $0xe4] ss:$8 sps:$4 sm:$0xff]  }
 0x3e2   : >> { %v3549_v24 = vpop.permute.xlu1 %3548 }
 0x3e3   : >> { %v3535_v28 = vpop.permute.xlu0 %3534 }
 0x3e4   : >> { %7920 = vmatpush3.bf16.msra.mxu1 %v3535_v28 }
 0x3e5   : >> { %7921 = vmatprep.subr.bf16.mxu1 %v3549_v24  ;;  %v9042_v24 = vld [vmem:[%s11954_s2 + $0xf4] ss:$8 sps:$4 sm:$0xff]  }
 0x3e7   : >> { %v3533_v48 = vpop.permute.xlu0 %3532 }
 0x3e8   : >> { %7922 = vmatpush3.bf16.msra.mxu1 %v3533_v48 }
 0x3e9   : >> { %7923 = vmatprep.subr.bf16.mxu1 %v3547_v8 }
 0x3ec   : >> { %7924 = vmatpush3.bf16.msra.mxu1 %v3531_v36 }
 0x3ef   : >> { %v10633_v44 = vpop.permute.xlu1 %2653 }
 0x3f0   : >> { %v2760_v45 = vadd.f32 %v7813_v54, %v10633_v44 }
 0x3f2   : >> { %v2772_v47 = vmax.f32 %v2760_v45, 0.0 }
 0x3f3   : >> { %v3545_v50 = vpop.permute.xlu1 %3544 }
 0x3f4   : >> { %v10636_v58 = vpop.permute.xlu0 %2658  ;;  %7925 = vmatprep.subr.bf16.mxu1 %v3545_v50  ;;  %8472 = vmatprep.mubr.msk.f32.mxu1 %vm2960_vm11, %v2772_v47 }
 0x3f5   : >> { %v2763_v59 = vadd.f32 %v7816_v46, %v10636_v58 }
 0x3f7   : >> { %v2773_v60 = vmax.f32 %v2763_v59, 0.0  ;;  %v3543_v61 = vpop.permute.xlu1 %3542 }
 0x3f8   : >> { %v3529_v33 = vpop.permute.xlu0 %3528 }
 0x3f9   : >> { %7926 = vmatpush3.bf16.msra.mxu1 %v3529_v33 }
 0x3fa   : >> { %7927 = vmatprep.subr.bf16.mxu1 %v3543_v61  ;;  %8473 = vmatmul.mubr.msk.f32.gmra.mxu1 %vm2960_vm11, %v2773_v60 }
 0x3fb   : >> { %v3541_v34 = vpop.permute.xlu1 %3540  ;;  %3604 = vmatprep.mubr.bf16.mxu1 %v9035_v1 }
 0x3fc   : >> { %v3527_v8 = vpop.permute.xlu0 %3526 }
 0x3fd   : >> { %7928 = vmatpush3.bf16.msra.mxu1 %v3527_v8 }
 0x3fe   : >> { %7929 = vmatprep.subr.bf16.mxu1 %v3541_v34 }
 0x400   : >> { %v3525_v36 = vpop.permute.xlu0 %3524 }
 0x401   : >> { %7930 = vmatpush3.bf16.msra.mxu1 %v3525_v36 }
 0x402   : >> { %8489 = vmatprep.subr.msk.mxu1 %vm2985_vm10, %v10205_v10 }
 0x404   : >> { %3605 = vmatmul.mubr.bf16.vlgmr.msra.gmra.mxu1 %v9033_v9 }
 0x405   : >> { %3612 = vmatprep.mubr.bf16.mxu1 %v9036_v20  ;;  %8490 = vmatpush3.msk.msra.mxu1 %vm2985_vm10, %v10205_v10 }
 0x40c   : >> { %3613 = vmatmul.mubr.bf16.gmra.mxu1 %v9038_v23 }
 0x40d   : >> { %3620 = vmatprep.mubr.bf16.mxu1 %v9039_v29 }
 0x414   : >> { %3621 = vmatmul.mubr.bf16.gmra.mxu1 %v9041_v22 }
 0x415   : >> { %3628 = vmatprep.mubr.bf16.mxu1 %v9042_v24 }
 0x41c   : >> { %3629 = vmatmul.mubr.bf16.gmra.mxu1 %v9044_v35 }
 0x424   : >> { %v7833_v28 = vpop.f32.mrf.mxu1 }
 0x426   : >> { %v7834_v39 = vpop.f32.mrf.mxu1 }
 0x427   : >> { %v7835_v48 = vadd.f32 %v7834_v39, %v7833_v28 }
 0x428   : >> { %v7836_v40 = vpop.f32.mrf.mxu1 }
 0x429   : >> { %v2922_v54 = vadd.f32 %v7835_v48, %v10609_v3 }
 0x42a   : >> { %v7837_v21 = vpop.f32.mrf.mxu1 }
 0x42b   : >> { %v2952_v45 = vmax.f32 %v2922_v54, 0.0  ;;  %v7838_v46 = vadd.f32 %v7837_v21, %v7836_v40 }
 0x42c   : >> { %v7839_v47 = vpop.f32.mrf.mxu1 }
 0x42d   : >> { %v2925_v50 = vadd.f32 %v7838_v46, %v10612_v37  ;;  %8449 = vmatprep.mubr.msk.f32.mxu0 %vm2960_vm11, %v2952_v45 }
 0x42e   : >> { %v7840_v59 = vpop.f32.mrf.mxu1 }
 0x42f   : >> { %v2953_v60 = vmax.f32 %v2925_v50, 0.0  ;;  %v7841_v61 = vadd.f32 %v7840_v59, %v7839_v47 }
 0x430   : >> { %v7842_v1 = vpop.f32.mrf.mxu1 }
 0x431   : >> { %v2930_v33 = vadd.f32 %v7841_v61, %v10616_v38  ;;  %8450 = vmatmul.mubr.msk.f32.vlgmr.msra.gmra.mxu0 %vm2960_vm11, %v2953_v60 }
 0x432   : >> { %7876 = vmatpush3.bf16.msra.mxu0 %v10542_v26  ;;  %v7843_v34 = vpop.f32.mrf.mxu1 }
 0x433   : >> { %v2954_v8 = vmax.f32 %v2930_v33, 0.0  ;;  %v7844_v36 = vadd.f32 %v7843_v34, %v7842_v1  ;;  %7877 = vmatprep.subr.bf16.mxu0 %v10538_v32 }
 0x434   : >> { %v7845_v9 = vpop.f32.mrf.mxu1 }
 0x435   : >> { %v2933_v20 = vadd.f32 %v7844_v36, %v10620_v43  ;;  %8452 = vmatprep.mubr.msk.f32.mxu0 %vm2960_vm11, %v2954_v8 }
 0x436   : >> { %7878 = vmatpush3.bf16.msra.mxu0 %v10556_v42  ;;  %v7846_v23 = vpop.f32.mrf.mxu1 }
 0x437   : >> { %v2955_v29 = vmax.f32 %v2933_v20, 0.0  ;;  %v7847_v22 = vadd.f32 %v7846_v23, %v7845_v9  ;;  %7879 = vmatprep.subr.bf16.mxu0 %v10554_v41 }
 0x438   : >> { %v7848_v24 = vpop.f32.mrf.mxu1 }
 0x439   : >> { %v2938_v26 = vadd.f32 %v7847_v22, %v10624_v57  ;;  %8453 = vmatmul.mubr.msk.f32.gmra.mxu0 %vm2960_vm11, %v2955_v29 }
 0x43a   : >> { %7880 = vmatpush3.bf16.msra.mxu0 %v10564_v53  ;;  %v7849_v32 = vpop.f32.mrf.mxu1 }
 0x43b   : >> { %v2956_v35 = vmax.f32 %v2938_v26, 0.0  ;;  %v7850_v28 = vadd.f32 %v7849_v32, %v7848_v24  ;;  %7881 = vmatprep.subr.bf16.mxu0 %v10562_v51 }
 0x43c   : >> { %v7851_v39 = vpop.f32.mrf.mxu1 }
 0x43d   : >> { %v2941_v42 = vadd.f32 %v7850_v28, %v10628_v31  ;;  %8455 = vmatprep.mubr.msk.f32.mxu0 %vm2960_vm11, %v2956_v35 }
 0x43e   : >> { %7882 = vmatpush3.bf16.msra.mxu0 %v10576_v62  ;;  %v7852_v41 = vpop.f32.mrf.mxu1 }
 0x43f   : >> { %v2957_v48 = vmax.f32 %v2941_v42, 0.0  ;;  %v7853_v40 = vadd.f32 %v7852_v41, %v7851_v39  ;;  %7883 = vmatprep.subr.bf16.mxu0 %v10525_v4  ;;  %v9047_v4 = vld [vmem:[%s11954_s2 + $0x84] ss:$8 sps:$4 sm:$0xff]  }
 0x440   : >> { %v7854_v54 = vpop.f32.mrf.mxu1 }
 0x441   : >> { %v2946_v53 = vadd.f32 %v7853_v40, %v10633_v44  ;;  %8456 = vmatmul.mubr.msk.f32.gmra.mxu0 %vm2960_vm11, %v2957_v48 }
 0x442   : >> { %7884 = vmatpush3.bf16.msra.mxu0 %v10369_v49  ;;  %v7855_v51 = vpop.f32.mrf.mxu1  ;;  %v9045_v49 = vld [vmem:[%s11954_s2 + $0x80] ss:$8 sps:$4 sm:$0xff]  }
 0x443   : >> { %v2958_v21 = vmax.f32 %v2946_v53, 0.0  ;;  %v7856_v45 = vadd.f32 %v7855_v51, %v7854_v54  ;;  %7885 = vmatprep.subr.bf16.mxu0 %v10581_v0  ;;  %v9053_v0 = vld [vmem:[%s11954_s2 + $0xa0] ss:$8 sps:$4 sm:$0xff]  }
 0x445   : >> { %v2949_v46 = vadd.f32 %v7856_v45, %v10636_v58  ;;  %8458 = vmatprep.mubr.msk.f32.mxu0 %vm2960_vm11, %v2958_v21 }
 0x446   : >> { %7886 = vmatpush3.bf16.msra.mxu0 %v10376_v56  ;;  %v9048_v56 = vld [vmem:[%s11954_s2 + $0x94] ss:$8 sps:$4 sm:$0xff]  }
 0x447   : >> { %v2959_v62 = vmax.f32 %v2949_v46, 0.0  ;;  %7887 = vmatprep.subr.bf16.mxu0 %v10592_v2  ;;  %v9054_v2 = vld [vmem:[%s11954_s2 + $0xb4] ss:$8 sps:$4 sm:$0xff]  }
 0x449   : >> { %8459 = vmatmul.mubr.msk.f32.gmra.mxu0 %vm2960_vm11, %v2959_v62 }
 0x44a   : >> { %7888 = vmatpush3.bf16.msra.mxu0 %v10408_v25  ;;  %3418 = vmatprep.mubr.bf16.mxu0 %v9047_v4  ;;  %v9050_v25 = vld [vmem:[%s11954_s2 + $0x90] ss:$8 sps:$4 sm:$0xff]  }
 0x44b   : >> { %7889 = vmatprep.subr.bf16.mxu0 %v10599_v30  ;;  %v9056_v30 = vld [vmem:[%s11954_s2 + $0xb0] ss:$8 sps:$4 sm:$0xff]  }
 0x44e   : >> { %7890 = vmatpush3.bf16.msra.mxu0 %v10412_v27  ;;  %v9051_v27 = vld [vmem:[%s11954_s2 + $0xa4] ss:$8 sps:$4 sm:$0xff]  }
 0x44f   : >> { %8475 = vmatprep.subr.msk.mxu0 %vm2985_vm10, %v10210_v11 }
 0x451   : >> { %3419 = vmatmul.mubr.bf16.vlgmr.msra.gmra.mxu0 %v9045_v49 }
 0x452   : >> { %3426 = vmatprep.mubr.bf16.mxu0 %v9048_v56  ;;  %8476 = vmatpush3.msk.msra.mxu0 %vm2985_vm10, %v10210_v11 }
 0x459   : >> { %3427 = vmatmul.mubr.bf16.gmra.mxu0 %v9050_v25 }
 0x45a   : >> { %3434 = vmatprep.mubr.bf16.mxu0 %v9051_v27 }
 0x461   : >> { %3435 = vmatmul.mubr.bf16.gmra.mxu0 %v9053_v0 }
 0x462   : >> { %3442 = vmatprep.mubr.bf16.mxu0 %v9054_v2 }
 0x469   : >> { %3443 = vmatmul.mubr.bf16.gmra.mxu0 %v9056_v30 }
 0x47d   : >> { %v8465_v47 = vpop.f32.mrf.mxu1 }
 0x47f   : >> { %v3187_v50 = vpop.f32.mrf.mxu1 }
 0x485   : >> { %v10728_v59 = vpop.f32.mrf.mxu1 }
 0x487   : >> { %v10730_v60 = vpop.f32.mrf.mxu1 }
 0x48d   : >> { %v10732_v61 = vpop.f32.mrf.mxu1 }
 0x48f   : >> { %v10734_v1 = vpop.f32.mrf.mxu1 }
 0x4ba   : >> { %v10736_v33 = vpop.f32.mrf.mxu1 }
 0x4bc   : >> { %v10738_v34 = vpop.f32.mrf.mxu1 }
 0x4c4   : >> { %v7931_v8 = vpop.f32.mrf.mxu1 }
 0x4c6   : >> { %v7932_v36 = vpop.f32.mrf.mxu1 }
 0x4c7   : >> { %v7933_v9 = vadd.f32 %v7932_v36, %v7931_v8 }
 0x4c8   : >> { %v7934_v20 = vpop.f32.mrf.mxu1 }
 0x4c9   : >> { %v3607_v23 = vadd.f32 %v7933_v9, %v10609_v3 }
 0x4ca   : >> { %v7935_v29 = vpop.f32.mrf.mxu1 }
 0x4cb   : >> { %v3637_v22 = vmax.f32 %v3607_v23, 0.0  ;;  %v7936_v24 = vadd.f32 %v7935_v29, %v7934_v20 }
 0x4cc   : >> { %v7937_v26 = vpop.f32.mrf.mxu1 }
 0x4cd   : >> { %v3610_v32 = vadd.f32 %v7936_v24, %v10612_v37  ;;  %8477 = vmatprep.mubr.msk.f32.mxu0 %vm2960_vm11, %v3637_v22 }
 0x4ce   : >> { %v7938_v35 = vpop.f32.mrf.mxu1 }
 0x4cf   : >> { %v3638_v28 = vmax.f32 %v3610_v32, 0.0  ;;  %v7939_v39 = vadd.f32 %v7938_v35, %v7937_v26 }
 0x4d0   : >> { %v7940_v42 = vpop.f32.mrf.mxu1 }
 0x4d1   : >> { %v3615_v41 = vadd.f32 %v7939_v39, %v10616_v38  ;;  %8478 = vmatmul.mubr.msk.f32.vlgmr.msra.gmra.mxu0 %vm2960_vm11, %v3638_v28 }
 0x4d2   : >> { %v7941_v48 = vpop.f32.mrf.mxu1 }
 0x4d3   : >> { %v3639_v40 = vmax.f32 %v3615_v41, 0.0  ;;  %v7942_v54 = vadd.f32 %v7941_v48, %v7940_v42 }
 0x4d4   : >> { %v7943_v53 = vpop.f32.mrf.mxu1 }
 0x4d5   : >> { %v3618_v51 = vadd.f32 %v7942_v54, %v10620_v43  ;;  %8480 = vmatprep.mubr.msk.f32.mxu0 %vm2960_vm11, %v3639_v40 }
 0x4d6   : >> { %v7944_v21 = vpop.f32.mrf.mxu1 }
 0x4d7   : >> { %v3640_v45 = vmax.f32 %v3618_v51, 0.0  ;;  %v7945_v46 = vadd.f32 %v7944_v21, %v7943_v53 }
 0x4d8   : >> { %v7946_v4 = vpop.f32.mrf.mxu1 }
 0x4d9   : >> { %v3623_v62 = vadd.f32 %v7945_v46, %v10624_v57  ;;  %8481 = vmatmul.mubr.msk.f32.gmra.mxu0 %vm2960_vm11, %v3640_v45 }
 0x4da   : >> { %v7947_v49 = vpop.f32.mrf.mxu1 }
 0x4db   : >> { %v3641_v56 = vmax.f32 %v3623_v62, 0.0  ;;  %v7948_v25 = vadd.f32 %v7947_v49, %v7946_v4 }
 0x4dc   : >> { %v7949_v27 = vpop.f32.mrf.mxu1 }
 0x4dd   : >> { %v3626_v0 = vadd.f32 %v7948_v25, %v10628_v31  ;;  %8483 = vmatprep.mubr.msk.f32.mxu0 %vm2960_vm11, %v3641_v56 }
 0x4de   : >> { %v7950_v2 = vpop.f32.mrf.mxu1 }
 0x4df   : >> { %v3642_v30 = vmax.f32 %v3626_v0, 0.0  ;;  %v7951_v8 = vadd.f32 %v7950_v2, %v7949_v27 }
 0x4e0   : >> { %v7952_v36 = vpop.f32.mrf.mxu1 }
 0x4e1   : >> { %v3631_v9 = vadd.f32 %v7951_v8, %v10633_v44  ;;  %8484 = vmatmul.mubr.msk.f32.gmra.mxu0 %vm2960_vm11, %v3642_v30 }
 0x4e2   : >> { %v7953_v20 = vpop.f32.mrf.mxu1 }
 0x4e3   : >> { %v3643_v23 = vmax.f32 %v3631_v9, 0.0  ;;  %v7954_v29 = vadd.f32 %v7953_v20, %v7952_v36 }
 0x4e5   : >> { %v3634_v22 = vadd.f32 %v7954_v29, %v10636_v58  ;;  %8486 = vmatprep.mubr.msk.f32.mxu0 %vm2960_vm11, %v3643_v23 }
 0x4e7   : >> { %v3644_v24 = vmax.f32 %v3634_v22, 0.0 }
 0x4e9   : >> { %8487 = vmatmul.mubr.msk.f32.gmra.mxu0 %vm2960_vm11, %v3644_v24 }
 0x4f1   : >> { %v8451_v26 = vpop.f32.mrf.mxu0 }
 0x4f2   : >> { %v3193_v32 = vadd.f32 %v8465_v47, %v8451_v26 }
 0x4f3   : >> { %v3055_v35 = vpop.f32.mrf.mxu0 }
 0x4f4   : >> { %7297 = vst.msk [vmem:[%s10757_s28 + $0x48] sm:$0xff] %vm2488_vm9, %v3193_v32  ;;  %v3188_v28 = vadd.f32 %v3187_v50, %v3055_v35 }
 0x4f6   : >> { %7296 = vst.msk [vmem:[%s10757_s28 + $0x40] sm:$0xff] %vm2488_vm9, %v3188_v28 }
 0x4f9   : >> { %v8454_v39 = vpop.f32.mrf.mxu0 }
 0x4fa   : >> { %v3203_v42 = vadd.f32 %v10728_v59, %v8454_v39 }
 0x4fb   : >> { %v3065_v47 = vpop.f32.mrf.mxu0 }
 0x4fc   : >> { %7299 = vst.msk [vmem:[%s10757_s28 + $0x58] sm:$0xff] %vm2488_vm9, %v3203_v42  ;;  %v3198_v41 = vadd.f32 %v10730_v60, %v3065_v47 }
 0x4fe   : >> { %7298 = vst.msk [vmem:[%s10757_s28 + $0x50] sm:$0xff] %vm2488_vm9, %v3198_v41 }
 0x501   : >> { %v8457_v48 = vpop.f32.mrf.mxu0 }
 0x502   : >> { %v3213_v40 = vadd.f32 %v10732_v61, %v8457_v48 }
 0x503   : >> { %v3075_v54 = vpop.f32.mrf.mxu0 }
 0x504   : >> { %7301 = vst.msk [vmem:[%s10757_s28 + $0x68] sm:$0xff] %vm2488_vm9, %v3213_v40  ;;  %v3208_v50 = vadd.f32 %v10734_v1, %v3075_v54 }
 0x506   : >> { %7300 = vst.msk [vmem:[%s10757_s28 + $0x60] sm:$0xff] %vm2488_vm9, %v3208_v50 }
 0x509   : >> { %v8460_v53 = vpop.f32.mrf.mxu0 }
 0x50a   : >> { %v3223_v59 = vadd.f32 %v10736_v33, %v8460_v53 }
 0x50b   : >> { %v3085_v51 = vpop.f32.mrf.mxu0 }
 0x50c   : >> { %7303 = vst.msk [vmem:[%s10757_s28 + $0x78] sm:$0xff] %vm2488_vm9, %v3223_v59  ;;  %v3218_v60 = vadd.f32 %v10738_v34, %v3085_v51 }
 0x50e   : >> { %7302 = vst.msk [vmem:[%s10757_s28 + $0x70] sm:$0xff] %vm2488_vm9, %v3218_v60 }
 0x511   : >> { %v7891_v21 = vpop.f32.mrf.mxu0 }
 0x513   : >> { %v7892_v45 = vpop.f32.mrf.mxu0 }
 0x514   : >> { %v7893_v61 = vadd.f32 %v7892_v45, %v7891_v21 }
 0x515   : >> { %v7894_v46 = vpop.f32.mrf.mxu0 }
 0x516   : >> { %v3421_v4 = vadd.f32 %v7893_v61, %v10609_v3 }
 0x517   : >> { %v7895_v62 = vpop.f32.mrf.mxu0 }
 0x518   : >> { %v3451_v1 = vmax.f32 %v3421_v4, 0.0  ;;  %v7896_v49 = vadd.f32 %v7895_v62, %v7894_v46 }
 0x519   : >> { %v7897_v56 = vpop.f32.mrf.mxu0 }
 0x51a   : >> { %v3424_v25 = vadd.f32 %v7896_v49, %v10612_v37  ;;  %8491 = vmatprep.mubr.msk.f32.mxu1 %vm2960_vm11, %v3451_v1 }
 0x51b   : >> { %v7898_v33 = vpop.f32.mrf.mxu0 }
 0x51c   : >> { %v3452_v27 = vmax.f32 %v3424_v25, 0.0  ;;  %v7899_v0 = vadd.f32 %v7898_v33, %v7897_v56 }
 0x51d   : >> { %v7900_v34 = vpop.f32.mrf.mxu0 }
 0x51e   : >> { %v3429_v2 = vadd.f32 %v7899_v0, %v10616_v38  ;;  %8492 = vmatmul.mubr.msk.f32.vlgmr.msra.gmra.mxu1 %vm2960_vm11, %v3452_v27 }
 0x51f   : >> { %v7901_v30 = vpop.f32.mrf.mxu0 }
 0x520   : >> { %v3453_v8 = vmax.f32 %v3429_v2, 0.0  ;;  %v7902_v36 = vadd.f32 %v7901_v30, %v7900_v34 }
 0x521   : >> { %v7903_v3 = vpop.f32.mrf.mxu0 }
 0x522   : >> { %v3432_v9 = vadd.f32 %v7902_v36, %v10620_v43  ;;  %8494 = vmatprep.mubr.msk.f32.mxu1 %vm2960_vm11, %v3453_v8  ;;  %v10819_v8 = vld [vmem:[%s11957_s5] sm:$0xff] (%p2508_p4)  ;;  %v10824_v36 = vld [vmem:[%s11957_s5 + $0x8] sm:$0xff] (%p2508_p4) }
 0x523   : >> { %v7904_v20 = vpop.f32.mrf.mxu0 }
 0x524   : >> { %v3454_v37 = vmax.f32 %v3432_v9, 0.0  ;;  %v7905_v23 = vadd.f32 %v7904_v20, %v7903_v3  ;;  %v10829_v3 = vld [vmem:[%s11957_s5 + $0x10] sm:$0xff] (%p2508_p4)  ;;  %v10834_v9 = vld [vmem:[%s11957_s5 + $0x18] sm:$0xff] (%p2508_p4) }
 0x525   : >> { %v7906_v29 = vpop.f32.mrf.mxu0 }
 0x526   : >> { %v3437_v22 = vadd.f32 %v7905_v23, %v10624_v57  ;;  %8495 = vmatmul.mubr.msk.f32.gmra.mxu1 %vm2960_vm11, %v3454_v37 }
 0x527   : >> { %v7907_v24 = vpop.f32.mrf.mxu0 }
 0x528   : >> { %v3455_v38 = vmax.f32 %v3437_v22, 0.0  ;;  %v7908_v26 = vadd.f32 %v7907_v24, %v7906_v29 }
 0x529   : >> { %v7909_v32 = vpop.f32.mrf.mxu0 }
 0x52a   : >> { %v3440_v35 = vadd.f32 %v7908_v26, %v10628_v31  ;;  %8497 = vmatprep.mubr.msk.f32.mxu1 %vm2960_vm11, %v3455_v38 }
 0x52b   : >> { %v7910_v28 = vpop.f32.mrf.mxu0 }
 0x52c   : >> { %v3456_v43 = vmax.f32 %v3440_v35, 0.0  ;;  %v7911_v39 = vadd.f32 %v7910_v28, %v7909_v32 }
 0x52d   : >> { %v7912_v42 = vpop.f32.mrf.mxu0 }
 0x52e   : >> { %v3445_v47 = vadd.f32 %v7911_v39, %v10633_v44  ;;  %8498 = vmatmul.mubr.msk.f32.gmra.mxu1 %vm2960_vm11, %v3456_v43 }
 0x52f   : >> { %v7913_v57 = vpop.f32.mrf.mxu0 }
 0x530   : >> { %v3457_v41 = vmax.f32 %v3445_v47, 0.0  ;;  %v7914_v48 = vadd.f32 %v7913_v57, %v7912_v42 }
 0x532   : >> { %v3448_v40 = vadd.f32 %v7914_v48, %v10636_v58  ;;  %8500 = vmatprep.mubr.msk.f32.mxu1 %vm2960_vm11, %v3457_v41 }
 0x534   : >> { %v3458_v31 = vmax.f32 %v3448_v40, 0.0 }
 0x536   : >> { %8501 = vmatmul.mubr.msk.f32.gmra.mxu1 %vm2960_vm11, %v3458_v31 }
 0x591   : >> { %v8479_v54 = vpop.f32.mrf.mxu0 }
 0x593   : >> { %v3735_v59 = vpop.f32.mrf.mxu0 }
 0x599   : >> { %v8482_v58 = vpop.f32.mrf.mxu0 }
 0x59b   : >> { %v3745_v45 = vpop.f32.mrf.mxu0 }
 0x5a1   : >> { %v8485_v4 = vpop.f32.mrf.mxu0 }
 0x5a3   : >> { %v3755_v49 = vpop.f32.mrf.mxu0 }
 0x5a9   : >> { %v8488_v33 = vpop.f32.mrf.mxu0 }
 0x5ab   : >> { %v3765_v34 = vpop.f32.mrf.mxu0 }
 0x5de   : >> { %v8493_v50 = vpop.f32.mrf.mxu1 }
 0x5df   : >> { %v3870_v53 = vadd.f32 %v8493_v50, %v8479_v54 }
 0x5e0   : >> { %v3864_v44 = vpop.f32.mrf.mxu1 }
 0x5e1   : >> { %7374 = vst.msk [vmem:[%s10757_s28 + $0x88] sm:$0xff] %vm2488_vm9, %v3870_v53  ;;  %v3865_v51 = vadd.f32 %v3864_v44, %v3735_v59 }
 0x5e3   : >> { %7373 = vst.msk [vmem:[%s10757_s28 + $0x80] sm:$0xff] %vm2488_vm9, %v3865_v51 }
 0x5e6   : >> { %v8496_v60 = vpop.f32.mrf.mxu1 }
 0x5e7   : >> { %v3880_v21 = vadd.f32 %v8496_v60, %v8482_v58 }
 0x5e8   : >> { %v3874_v61 = vpop.f32.mrf.mxu1 }
 0x5e9   : >> { %7376 = vst.msk [vmem:[%s10757_s28 + $0x98] sm:$0xff] %vm2488_vm9, %v3880_v21  ;;  %v3875_v46 = vadd.f32 %v3874_v61, %v3745_v45 }
 0x5eb   : >> { %7375 = vst.msk [vmem:[%s10757_s28 + $0x90] sm:$0xff] %vm2488_vm9, %v3875_v46 }
 0x5ee   : >> { %v8499_v62 = vpop.f32.mrf.mxu1 }
 0x5ef   : >> { %v3890_v1 = vadd.f32 %v8499_v62, %v8485_v4 }
 0x5f0   : >> { %v3884_v56 = vpop.f32.mrf.mxu1 }
 0x5f1   : >> { %7378 = vst.msk [vmem:[%s10757_s28 + $0xa8] sm:$0xff] %vm2488_vm9, %v3890_v1  ;;  %v3885_v25 = vadd.f32 %v3884_v56, %v3755_v49 }
 0x5f3   : >> { %7377 = vst.msk [vmem:[%s10757_s28 + $0xa0] sm:$0xff] %vm2488_vm9, %v3885_v25 }
 0x5f6   : >> { %v8502_v27 = vpop.f32.mrf.mxu1 }
 0x5f7   : >> { %v3900_v0 = vadd.f32 %v8502_v27, %v8488_v33  ;;  %2510 = sbr.rel (!%p2508_p4) target bundleno = 589 (0x24d), region = 181 }
 0x5f8   : >> { %v3894_v2 = vpop.f32.mrf.mxu1 }
 0x5f9   : >> { %7380 = vst.msk [vmem:[%s10757_s28 + $0xb8] sm:$0xff] %vm2488_vm9, %v3900_v0  ;;  %v3895_v30 = vadd.f32 %v3894_v2, %v3765_v34 }
 0x5fb   : >> { %7379 = vst.msk [vmem:[%s10757_s28 + $0xb0] sm:$0xff] %vm2488_vm9, %v3895_v30 }
 0x5fc LB: >> { %s7381_s23 = sshll.u32 %s9273_s16, 6  ;;  %s9294_s25 = smov 127   ;;  %v9141_v53 = vld [vmem:[%s11956_s4 + $0x4] ss:$8 sps:$4 sm:$0xff]   ;;  %vm4274_vm13 = vcmask 64512   ;;  %s9273_s16 = sphi %s10852_s16, %s3933_s16  }
 0x5fd   : >> { %s10860_s24 = scalar_lea.vmem [#allocation3], %s7381_s23  ;;  %4111 = vmatprep.mubr.bf16.mxu0 %v9141_v53  ;;  %s11168_s29 = scalar_lea.vmem [#allocation4], %s7381_s23 }
 0x5fe   : >> { %s3933_s16 = sadd.s32 1, %s9273_s16  }
 0x5ff   : >> { %p3930_p5 = scmp.ge.s32.totalorder %s3933_s16, 8  }
 0x600   : > { %vm5009_vm14 = vcmask (%p3930_p5), 277504   ;;  %s11231_s16 = smov (%p3930_p5), 0  }
 0x601   : > { %5010 = vst.msk [vmem:[#allocation5] sm:$0xff] (%p3930_p5), %vm5009_vm14, %v9287_v5  ;;  %5011 = vst.msk [vmem:[#allocation5 + $0x8] sm:$0xff] (%p3930_p5), %vm5009_vm14, %v9287_v5 }
 0x602   : >> { %v7389_v10 = vld [vmem:[%s10860_s24 + $0x70] sm:$0xff]  ;;  %v7390_v11 = vld [vmem:[%s10860_s24 + $0x78] sm:$0xff]  ;;  %v7387_v12 = vld [vmem:[%s10860_s24 + $0x60] sm:$0xff]  ;;  %5013 = vst.msk [vmem:[#allocation5 + $0x210] sm:$0xff] (%p3930_p5), %vm5009_vm14, %v9287_v5 }
 0x603   : >> { %v10865_v13 = vpack.i.bf16 %v7390_v11, %v7389_v10  ;;  %v10867_v14 = vpack.c.bf16 %v7390_v11, %v7389_v10  ;;  %v7388_v15 = vld [vmem:[%s10860_s24 + $0x68] sm:$0xff]  ;;  %v3942_v16 = vld [vmem:[%s10860_s24 + $0x30] sm:$0xff]  ;;  %v3943_v17 = vld [vmem:[%s10860_s24 + $0x38] sm:$0xff]  ;;  %5014 = vst.msk [vmem:[#allocation5 + $0x218] sm:$0xff] (%p3930_p5), %vm5009_vm14, %v9287_v5 }
 0x604   : >> { %v10872_v18 = vpack.i.bf16 %v7388_v15, %v7387_v12  ;;  %v10874_v19 = vpack.c.bf16 %v7388_v15, %v7387_v12  ;;  %v3940_v20 = vld [vmem:[%s10860_s24 + $0x20] sm:$0xff]  ;;  %v3941_v37 = vld [vmem:[%s10860_s24 + $0x28] sm:$0xff]  ;;  %v9062_v23 = vpack.i.bf16 %v3943_v17, %v3942_v16  ;;  %v7385_v22 = vld [vmem:[%s10860_s24 + $0x50] sm:$0xff]  ;;  %v10898_v57 = vpack.c.bf16 %v3943_v17, %v3942_v16 }
 0x605   : >> { %9058 = vrot.lane.b32.xlu0 %v10865_v13, %s9294_s25  ;;  %v9072_v29 = vpack.i.bf16 %v3941_v37, %v3940_v20  ;;  %v7386_v24 = vld [vmem:[%s10860_s24 + $0x58] sm:$0xff]  ;;  %v3938_v38 = vld [vmem:[%s10860_s24 + $0x10] sm:$0xff]  ;;  %v7383_v28 = vld [vmem:[%s10860_s24 + $0x40] sm:$0xff]  ;;  %v10903_v48 = vpack.c.bf16 %v3941_v37, %v3940_v20 }
 0x606   : >> { %9068 = vrot.lane.b32.xlu1 %v10872_v18, %s9294_s25  ;;  %v3939_v26 = vld [vmem:[%s10860_s24 + $0x18] sm:$0xff]  ;;  %v10887_v32 = vpack.i.bf16 %v7386_v24, %v7385_v22  ;;  %v7384_v43 = vld [vmem:[%s10860_s24 + $0x48] sm:$0xff]  ;;  %v3936_v39 = vld [vmem:[%s10860_s24] sm:$0xff]  ;;  %v10906_v40 = vpack.c.bf16 %v7386_v24, %v7385_v22  ;;  %v9295_v24 = vmov 0  }
 0x607   : >> { %v9082_v35 = vpack.i.bf16 %v3939_v26, %v3938_v38  ;;  %v3937_v42 = vld [vmem:[%s10860_s24 + $0x8] sm:$0xff]  ;;  %v10896_v47 = vpack.i.bf16 %v7384_v43, %v7383_v28  ;;  %v10908_v31 = vpack.c.bf16 %v3939_v26, %v3938_v38  ;;  %v10910_v54 = vpack.c.bf16 %v7384_v43, %v7383_v28  ;;  %9138 = vset.pattern.permute.xlu1 %v9295_v24  ;;  %v7434_v26 = vld [vmem:[%s10860_s24 + $0xb0] sm:$0xff]  ;;  %v10951_v43 = vld [vmem:[%s10860_s24 + $0xa0] sm:$0xff] }
 0x608   : >> { %v9092_v41 = vpack.i.bf16 %v3937_v42, %v3936_v39  ;;  %v10912_v50 = vpack.c.bf16 %v3937_v42, %v3936_v39  ;;  %9137 = vset.pattern.permute.xlu0 %v9295_v24  ;;  %v9147_v38 = vld [vmem:[%s11956_s4 + $0x24] ss:$8 sps:$4 sm:$0xff]   ;;  %v9139_v42 = vld [vmem:[%s11956_s4] ss:$8 sps:$4 sm:$0xff]  }
 0x609   : >> { %9063 = vrot.lane.b32.xlu0 %v9062_v23, %s9294_s25  ;;  %4253 = vmatprep.mubr.bf16.mxu1 %v9147_v38  ;;  %v10954_v39 = vld [vmem:[%s10860_s24 + $0xa8] sm:$0xff] }
 0x60a   : >> { %9073 = vrot.lane.b32.xlu1 %v9072_v29, %s9294_s25 }
 0x60d   : >> { %9078 = vrot.lane.b32.xlu0 %v10887_v32, %s9294_s25 }
 0x60e   : >> { %9083 = vrot.lane.b32.xlu1 %v9082_v35, %s9294_s25  ;;  %v7435_v35 = vld [vmem:[%s10860_s24 + $0xb8] sm:$0xff] }
 0x60f   : >> { %v9097_v28 = vpack.i.bf16 %v7435_v35, %v7434_v26 }
 0x611   : >> { %9088 = vrot.lane.b32.xlu0 %v10896_v47, %s9294_s25 }
 0x612   : >> { %9093 = vrot.lane.b32.xlu1 %v9092_v41, %s9294_s25  ;;  %v9142_v41 = vld [vmem:[%s11956_s4 + $0x14] ss:$8 sps:$4 sm:$0xff]  }
 0x677   : >> { %v9059_v59 = vpop.permute.xlu0 %9058 }
 0x678   : >> { %v9061_v44 = vunpack.i.h.bf16 %v9059_v59  ;;  %v9060_v51 = vunpack.i.l.bf16 %v9059_v59  ;;  %v9069_v58 = vpop.permute.xlu1 %9068  ;;  %v10981_v59 = vld [vmem:[%s10860_s24 + $0x80] sm:$0xff] }
 0x679   : >> { %v9071_v60 = vunpack.i.h.bf16 %v9069_v58  ;;  %v9070_v21 = vunpack.i.l.bf16 %v9069_v58 }
 0x67a   : >> { %v4034_v45 = vpack.c.bf16 %v9061_v44, %v9060_v51  ;;  %v10984_v44 = vld [vmem:[%s10860_s24 + $0x88] sm:$0xff] }
 0x67b   : >> { %v9064_v61 = vpop.permute.xlu0 %9063  ;;  %v4033_v46 = vpack.c.bf16 %v9071_v60, %v9070_v21  ;;  %v9127_v51 = vpack.i.bf16 %v10984_v44, %v10981_v59 }
 0x67c   : >> { %v9066_v4 = vunpack.i.h.bf16 %v9064_v61  ;;  %v9065_v62 = vunpack.i.l.bf16 %v9064_v61  ;;  %7973 = vmatprep.subr.bf16.mxu0 %v4034_v45  ;;  %4203 = vrot.lane.b32.xlu0 %v4034_v45, %s9294_s25  ;;  %v9074_v1 = vpop.permute.xlu1 %9073 }
 0x67d   : >> { %v9076_v49 = vunpack.i.h.bf16 %v9074_v1  ;;  %v9075_v56 = vunpack.i.l.bf16 %v9074_v1 }
 0x67e   : >> { %v4026_v25 = vpack.c.bf16 %v9066_v4, %v9065_v62 }
 0x67f   : >> { %v9079_v33 = vpop.permute.xlu0 %9078  ;;  %v4025_v27 = vpack.c.bf16 %v9076_v49, %v9075_v56 }
 0x680   : >> { %4201 = vrot.lane.b32.xlu0 %v4033_v46, %s9294_s25  ;;  %7974 = vmatpush3.bf16.msra.mxu0 %v4026_v25  ;;  %v9081_v0 = vunpack.i.h.bf16 %v9079_v33  ;;  %v9080_v34 = vunpack.i.l.bf16 %v9079_v33  ;;  %v9084_v2 = vpop.permute.xlu1 %9083 }
 0x681   : >> { %4187 = vrot.lane.b32.xlu1 %v4026_v25, %s9294_s25  ;;  %7975 = vmatprep.subr.bf16.mxu0 %v4033_v46  ;;  %v9086_v30 = vunpack.i.h.bf16 %v9084_v2  ;;  %v9085_v10 = vunpack.i.l.bf16 %v9084_v2 }
 0x682   : >> { %v4032_v11 = vpack.c.bf16 %v9081_v0, %v9080_v34  ;;  %v9145_v34 = vld [vmem:[%s11956_s4 + $0x20] ss:$8 sps:$4 sm:$0xff]  }
 0x683   : >> { %v9089_v12 = vpop.permute.xlu0 %9088  ;;  %v4024_v15 = vpack.c.bf16 %v9086_v30, %v9085_v10  ;;  %v9148_v10 = vld [vmem:[%s11956_s4 + $0x34] ss:$8 sps:$4 sm:$0xff]  }
 0x684   : >> { %7976 = vmatpush3.bf16.msra.mxu0 %v4025_v27  ;;  %v9091_v16 = vunpack.i.h.bf16 %v9089_v12  ;;  %v9090_v17 = vunpack.i.l.bf16 %v9089_v12  ;;  %4199 = vrot.lane.b32.xlu0 %v4032_v11, %s9294_s25  ;;  %v9094_v20 = vpop.permute.xlu1 %9093 }
 0x685   : >> { %4185 = vrot.lane.b32.xlu1 %v4025_v27, %s9294_s25  ;;  %7977 = vmatprep.subr.bf16.mxu0 %v4032_v11  ;;  %v9096_v37 = vunpack.i.h.bf16 %v9094_v20  ;;  %v9095_v23 = vunpack.i.l.bf16 %v9094_v20 }
 0x686   : >> { %v4031_v29 = vpack.c.bf16 %v9091_v16, %v9090_v17 }
 0x687   : >> { %v4023_v22 = vpack.c.bf16 %v9096_v37, %v9095_v23 }
 0x688   : >> { %7978 = vmatpush3.bf16.msra.mxu0 %v4024_v15  ;;  %4197 = vrot.lane.b32.xlu0 %v4031_v29, %s9294_s25 }
 0x689   : >> { %4183 = vrot.lane.b32.xlu1 %v4024_v15, %s9294_s25  ;;  %7979 = vmatprep.subr.bf16.mxu0 %v4031_v29 }
 0x68c   : >> { %7980 = vmatpush3.bf16.msra.mxu0 %v4023_v22  ;;  %4195 = vrot.lane.b32.xlu0 %v10867_v14, %s9294_s25 }
 0x68d   : >> { %4181 = vrot.lane.b32.xlu1 %v4023_v22, %s9294_s25  ;;  %7981 = vmatprep.subr.bf16.mxu0 %v10867_v14 }
 0x690   : >> { %4193 = vrot.lane.b32.xlu0 %v10874_v19, %s9294_s25  ;;  %7982 = vmatpush3.bf16.msra.mxu0 %v10898_v57 }
 0x691   : >> { %4179 = vrot.lane.b32.xlu1 %v10898_v57, %s9294_s25  ;;  %7983 = vmatprep.subr.bf16.mxu0 %v10874_v19  ;;  %v9107_v57 = vpack.i.bf16 %v10954_v39, %v10951_v43 }
 0x694   : >> { %4191 = vrot.lane.b32.xlu0 %v10906_v40, %s9294_s25  ;;  %7984 = vmatpush3.bf16.msra.mxu0 %v10903_v48 }
 0x695   : >> { %4177 = vrot.lane.b32.xlu1 %v10903_v48, %s9294_s25  ;;  %7985 = vmatprep.subr.bf16.mxu0 %v10906_v40  ;;  %v10970_v48 = vld [vmem:[%s10860_s24 + $0x90] sm:$0xff] }
 0x698   : >> { %4189 = vrot.lane.b32.xlu0 %v10910_v54, %s9294_s25  ;;  %7986 = vmatpush3.bf16.msra.mxu0 %v10908_v31 }
 0x699   : >> { %4175 = vrot.lane.b32.xlu1 %v10908_v31, %s9294_s25  ;;  %7987 = vmatprep.subr.bf16.mxu0 %v10910_v54  ;;  %v10973_v31 = vld [vmem:[%s10860_s24 + $0x98] sm:$0xff] }
 0x69a   : >> { %v9117_v53 = vpack.i.bf16 %v10973_v31, %v10970_v48 }
 0x69c   : >> { %9098 = vrot.lane.b32.xlu0 %v9097_v28, %s9294_s25  ;;  %7988 = vmatpush3.bf16.msra.mxu0 %v10912_v50 }
 0x69d   : >> { %4173 = vrot.lane.b32.xlu1 %v10912_v50, %s9294_s25  ;;  %v9144_v50 = vld [vmem:[%s11956_s4 + $0x10] ss:$8 sps:$4 sm:$0xff]  }
 0x69f   : >> { %4112 = vmatmul.mubr.bf16.vlgmr.msra.gmra.mxu0 %v9139_v42 }
 0x6a0   : >> { %9108 = vrot.lane.b32.xlu0 %v9107_v57, %s9294_s25  ;;  %4119 = vmatprep.mubr.bf16.mxu0 %v9142_v41 }
 0x6a1   : >> { %9103 = vrot.lane.b32.xlu1 %v10865_v13, %s9294_s25  ;;  %v11003_v13 = vpack.c.bf16 %v7435_v35, %v7434_v26  ;;  %v9150_v35 = vld [vmem:[%s11956_s4 + $0x30] ss:$8 sps:$4 sm:$0xff]  }
 0x6a4   : >> { %9118 = vrot.lane.b32.xlu0 %v9117_v53, %s9294_s25 }
 0x6a5   : >> { %9113 = vrot.lane.b32.xlu1 %v10872_v18, %s9294_s25  ;;  %v9296_v18 = vmov 1.0  }
 0x6a6   : >> { %8503 = vmatprep.subr.msk.mxu0 %vm10196_vm8, %v9296_v18 }
 0x6a7   : >> { %4120 = vmatmul.mubr.bf16.gmra.mxu0 %v9144_v50 }
 0x6a8   : >> { %9128 = vrot.lane.b32.xlu0 %v9127_v51, %s9294_s25  ;;  %8504 = vmatpush3.msk.msra.mxu0 %vm10196_vm8, %v9296_v18 }
 0x6a9   : >> { %9123 = vrot.lane.b32.xlu1 %v10887_v32, %s9294_s25 }
 0x6ac   : >> { %4041 = vperm.xlu0 %9137, %v10819_v8  }
 0x6ad   : >> { %9133 = vrot.lane.b32.xlu1 %v10896_v47, %s9294_s25 }
 0x6b0   : >> { %4701 = vrot.lane.b32.xlu0 %v10867_v14, %s9294_s25 }
 0x6b1   : >> { %4046 = vperm.xlu1 %9138, %v10824_v36  }
 0x6b5   : >> { %4717 = vrot.lane.b32.xlu1 %v11003_v13, %s9294_s25 }
 0x6ee   : >> { %v4204_v32 = vpop.permute.xlu0 %4203 }
 0x6ef   : >> { %8001 = vmatprep.subr.bf16.mxu1 %v4204_v32 }
 0x6f2   : >> { %v4202_v47 = vpop.permute.xlu0 %4201 }
 0x6f3   : >> { %v4188_v58 = vpop.permute.xlu1 %4187 }
 0x6f4   : >> { %8002 = vmatpush3.bf16.msra.mxu1 %v4188_v58 }
 0x6f5   : >> { %8003 = vmatprep.subr.bf16.mxu1 %v4202_v47 }
 0x6f6   : >> { %v4200_v60 = vpop.permute.xlu0 %4199 }
 0x6f7   : >> { %v4186_v21 = vpop.permute.xlu1 %4185 }
 0x6f8   : >> { %8004 = vmatpush3.bf16.msra.mxu1 %v4186_v21 }
 0x6f9   : >> { %8005 = vmatprep.subr.bf16.mxu1 %v4200_v60 }
 0x6fa   : >> { %v4198_v45 = vpop.permute.xlu0 %4197 }
 0x6fb   : >> { %v4184_v61 = vpop.permute.xlu1 %4183 }
 0x6fc   : >> { %8006 = vmatpush3.bf16.msra.mxu1 %v4184_v61 }
 0x6fd   : >> { %8007 = vmatprep.subr.bf16.mxu1 %v4198_v45 }
 0x6fe   : >> { %v4196_v46 = vpop.permute.xlu0 %4195 }
 0x6ff   : >> { %v4182_v4 = vpop.permute.xlu1 %4181 }
 0x700   : >> { %8008 = vmatpush3.bf16.msra.mxu1 %v4182_v4 }
 0x701   : >> { %8009 = vmatprep.subr.bf16.mxu1 %v4196_v46 }
 0x702   : >> { %v4194_v62 = vpop.permute.xlu0 %4193 }
 0x703   : >> { %v4180_v1 = vpop.permute.xlu1 %4179 }
 0x704   : >> { %8010 = vmatpush3.bf16.msra.mxu1 %v4180_v1  ;;  %v11066_v1 = vpack.c.bf16 %v10973_v31, %v10970_v48 }
 0x705   : >> { %8011 = vmatprep.subr.bf16.mxu1 %v4194_v62  ;;  %v11058_v62 = vpack.c.bf16 %v10954_v39, %v10951_v43 }
 0x706   : >> { %v4192_v49 = vpop.permute.xlu0 %4191 }
 0x707   : >> { %v4178_v56 = vpop.permute.xlu1 %4177 }
 0x708   : >> { %8012 = vmatpush3.bf16.msra.mxu1 %v4178_v56 }
 0x709   : >> { %8013 = vmatprep.subr.bf16.mxu1 %v4192_v49  ;;  %v11073_v49 = vpack.c.bf16 %v10984_v44, %v10981_v59 }
 0x70a   : >> { %v4190_v25 = vpop.permute.xlu0 %4189 }
 0x70b   : >> { %v4176_v33 = vpop.permute.xlu1 %4175 }
 0x70c   : >> { %8014 = vmatpush3.bf16.msra.mxu1 %v4176_v33 }
 0x70d   : >> { %8015 = vmatprep.subr.bf16.mxu1 %v4190_v25 }
 0x70e   : >> { %v9099_v27 = vpop.permute.xlu0 %9098 }
 0x70f   : >> { %v4174_v0 = vpop.permute.xlu1 %4173  ;;  %v9101_v2 = vunpack.i.h.bf16 %v9099_v27  ;;  %v9100_v30 = vunpack.i.l.bf16 %v9099_v27 }
 0x710   : >> { %8016 = vmatpush3.bf16.msra.mxu1 %v4174_v0 }
 0x711   : >> { %v4575_v11 = vpack.c.bf16 %v9101_v2, %v9100_v30  ;;  %8511 = vmatprep.subr.msk.mxu1 %vm10191_vm7, %v9296_v18 }
 0x712   : >> { %v9109_v12 = vpop.permute.xlu0 %9108 }
 0x713   : >> { %4254 = vmatmul.mubr.bf16.vlgmr.msra.gmra.mxu1 %v9145_v34  ;;  %v9104_v15 = vpop.permute.xlu1 %9103  ;;  %v9111_v16 = vunpack.i.h.bf16 %v9109_v12  ;;  %v9110_v17 = vunpack.i.l.bf16 %v9109_v12  ;;  %4725 = vrot.lane.b32.xlu1 %v4575_v11, %s9294_s25 }
 0x714   : >> { %v9106_v20 = vunpack.i.h.bf16 %v9104_v15  ;;  %v9105_v37 = vunpack.i.l.bf16 %v9104_v15  ;;  %4261 = vmatprep.mubr.bf16.mxu1 %v9148_v10  ;;  %8039 = vmatprep.subr.bf16.mxu0 %v4575_v11 }
 0x715   : >> { %v11023_v23 = vpack.c.bf16 %v9111_v16, %v9110_v17  ;;  %8512 = vmatpush3.msk.msra.mxu1 %vm10191_vm7, %v9296_v18 }
 0x716   : >> { %v11028_v29 = vpack.c.bf16 %v9106_v20, %v9105_v37  ;;  %v9119_v22 = vpop.permute.xlu0 %9118 }
 0x717   : >> { %v9114_v24 = vpop.permute.xlu1 %9113  ;;  %v9121_v38 = vunpack.i.h.bf16 %v9119_v22  ;;  %v9120_v26 = vunpack.i.l.bf16 %v9119_v22  ;;  %4723 = vrot.lane.b32.xlu1 %v11023_v23, %s9294_s25 }
 0x718   : >> { %v9116_v28 = vunpack.i.h.bf16 %v9114_v24  ;;  %v9115_v42 = vunpack.i.l.bf16 %v9114_v24  ;;  %4709 = vrot.lane.b32.xlu0 %v11028_v29, %s9294_s25 }
 0x719   : >> { %v11037_v57 = vpack.c.bf16 %v9121_v38, %v9120_v26 }
 0x71a   : >> { %v11039_v41 = vpack.c.bf16 %v9116_v28, %v9115_v42  ;;  %v9129_v53 = vpop.permute.xlu0 %9128 }
 0x71b   : >> { %4262 = vmatmul.mubr.bf16.gmra.mxu1 %v9150_v35  ;;  %v9124_v50 = vpop.permute.xlu1 %9123  ;;  %v9131_v51 = vunpack.i.h.bf16 %v9129_v53  ;;  %v9130_v32 = vunpack.i.l.bf16 %v9129_v53  ;;  %4721 = vrot.lane.b32.xlu1 %v11037_v57, %s9294_s25 }
 0x71c   : >> { %v9126_v47 = vunpack.i.h.bf16 %v9124_v50  ;;  %v9125_v58 = vunpack.i.l.bf16 %v9124_v50  ;;  %4707 = vrot.lane.b32.xlu0 %v11039_v41, %s9294_s25 }
 0x71d   : >> { %v11045_v60 = vpack.c.bf16 %v9131_v51, %v9130_v32 }
 0x71e   : >> { %v11047_v21 = vpack.c.bf16 %v9126_v47, %v9125_v58 }
 0x71f   : >> { %v9134_v45 = vpop.permute.xlu1 %9133  ;;  %4719 = vrot.lane.b32.xlu1 %v11045_v60, %s9294_s25 }
 0x720   : >> { %v9136_v61 = vunpack.i.h.bf16 %v9134_v45  ;;  %v9135_v46 = vunpack.i.l.bf16 %v9134_v45  ;;  %4705 = vrot.lane.b32.xlu0 %v11047_v21, %s9294_s25 }
 0x722   : >> { %v11053_v4 = vpack.c.bf16 %v9136_v61, %v9135_v46  ;;  %v9153_v61 = vld [vmem:[%s11956_s4 + $0x64] ss:$8 sps:$4 sm:$0xff]  }
 0x723   : >> { %4051 = vperm.xlu1 %9138, %v10829_v3  }
 0x724   : >> { %4703 = vrot.lane.b32.xlu0 %v11053_v4, %s9294_s25 }
 0x727   : >> { %4715 = vrot.lane.b32.xlu1 %v11058_v62, %s9294_s25  ;;  %v11083_v31 = vpop.permute.xlu0 %4041 }
 0x728   : >> { %4056 = vperm.xlu0 %9137, %v10834_v9  }
 0x72b   : >> { %4713 = vrot.lane.b32.xlu1 %v11066_v1, %s9294_s25  ;;  %v4702_v30 = vpop.permute.xlu0 %4701 }
 0x72c   : >> { %4699 = vrot.lane.b32.xlu0 %v10874_v19, %s9294_s25  ;;  %v11086_v27 = vpop.permute.xlu1 %4046 }
 0x72f   : >> { %4711 = vrot.lane.b32.xlu1 %v11073_v49, %s9294_s25 }
 0x730   : >> { %4697 = vrot.lane.b32.xlu0 %v10906_v40, %s9294_s25  ;;  %v4718_v2 = vpop.permute.xlu1 %4717 }
 0x734   : >> { %4695 = vrot.lane.b32.xlu0 %v10910_v54, %s9294_s25 }
 0x75f   : >> { %v7989_v43 = vpop.f32.mrf.mxu0 }
 0x761   : >> { %v7990_v39 = vpop.f32.mrf.mxu0 }
 0x762   : >> { %v7991_v48 = vadd.f32 %v7990_v39, %v7989_v43 }
 0x763   : >> { %v7992_v56 = vpop.f32.mrf.mxu0 }
 0x764   : >> { %v4114_v59 = vadd.f32 %v7991_v48, %v11083_v31 }
 0x765   : >> { %v7993_v44 = vpop.f32.mrf.mxu0 }
 0x766   : >> { %v4128_v25 = vmax.f32 %v4114_v59, 0.0  ;;  %v7994_v33 = vadd.f32 %v7993_v44, %v7992_v56  ;;  %v9151_v56 = vld [vmem:[%s11956_s4 + $0x60] ss:$8 sps:$4 sm:$0xff]   ;;  %v9154_v59 = vld [vmem:[%s11956_s4 + $0x74] ss:$8 sps:$4 sm:$0xff]  }
 0x767   : >> { %v7995_v20 = vpop.f32.mrf.mxu0  ;;  %v9156_v44 = vld [vmem:[%s11956_s4 + $0x70] ss:$8 sps:$4 sm:$0xff]  }
 0x768   : >> { %v4117_v0 = vadd.f32 %v7994_v33, %v11086_v27  ;;  %8513 = vmatprep.mubr.msk.f32.mxu1 %vm4274_vm13, %v4128_v25 }
 0x769   : >> { %v7996_v22 = vpop.f32.mrf.mxu0 }
 0x76a   : >> { %v4129_v34 = vmax.f32 %v4117_v0, 0.0  ;;  %v7997_v26 = vadd.f32 %v7996_v22, %v7995_v20 }
 0x76b   : >> { %v7998_v38 = vpop.f32.mrf.mxu0 }
 0x76c   : >> { %8514 = vmatmul.mubr.msk.f32.vlgmr.msra.gmra.mxu1 %vm4274_vm13, %v4129_v34 }
 0x76d   : >> { %v7999_v35 = vpop.f32.mrf.mxu0 }
 0x76e   : >> { %v8000_v53 = vadd.f32 %v7999_v35, %v7998_v38 }
 0x785   : >> { %v4726_v10 = vpop.permute.xlu1 %4725 }
 0x786   : >> { %8067 = vmatprep.subr.bf16.mxu1 %v4726_v10 }
 0x789   : >> { %v4724_v11 = vpop.permute.xlu1 %4723 }
 0x78a   : >> { %v4710_v12 = vpop.permute.xlu0 %4709 }
 0x78b   : >> { %8068 = vmatpush3.bf16.msra.mxu1 %v4710_v12 }
 0x78c   : >> { %8069 = vmatprep.subr.bf16.mxu1 %v4724_v11 }
 0x78d   : >> { %v4722_v15 = vpop.permute.xlu1 %4721 }
 0x78e   : >> { %v4708_v16 = vpop.permute.xlu0 %4707 }
 0x78f   : >> { %8070 = vmatpush3.bf16.msra.mxu1 %v4708_v16 }
 0x790   : >> { %8071 = vmatprep.subr.bf16.mxu1 %v4722_v15 }
 0x791   : >> { %v4720_v17 = vpop.permute.xlu1 %4719 }
 0x792   : >> { %v4706_v37 = vpop.permute.xlu0 %4705 }
 0x793   : >> { %8072 = vmatpush3.bf16.msra.mxu1 %v4706_v37 }
 0x794   : >> { %8073 = vmatprep.subr.bf16.mxu1 %v4720_v17 }
 0x796   : >> { %v4704_v24 = vpop.permute.xlu0 %4703 }
 0x797   : >> { %8074 = vmatpush3.bf16.msra.mxu1 %v4704_v24 }
 0x798   : >> { %8075 = vmatprep.subr.bf16.mxu1 %v4718_v2 }
 0x79b   : >> { %8076 = vmatpush3.bf16.msra.mxu1 %v4702_v30 }
 0x79e   : >> { %v11091_v28 = vpop.permute.xlu1 %4051 }
 0x79f   : >> { %v4122_v42 = vadd.f32 %v7997_v26, %v11091_v28 }
 0x7a1   : >> { %v4130_v50 = vmax.f32 %v4122_v42, 0.0  ;;  %v9159_v42 = vld [vmem:[%s11956_s4 + $0x44] ss:$8 sps:$4 sm:$0xff]  }
 0x7a2   : >> { %v4716_v51 = vpop.permute.xlu1 %4715 }
 0x7a3   : >> { %v11094_v32 = vpop.permute.xlu0 %4056  ;;  %8077 = vmatprep.subr.bf16.mxu1 %v4716_v51  ;;  %8516 = vmatprep.mubr.msk.f32.mxu1 %vm4274_vm13, %v4130_v50 }
 0x7a4   : >> { %v4125_v47 = vadd.f32 %v8000_v53, %v11094_v32 }
 0x7a6   : >> { %v4131_v58 = vmax.f32 %v4125_v47, 0.0  ;;  %v4714_v45 = vpop.permute.xlu1 %4713 }
 0x7a7   : >> { %v4700_v46 = vpop.permute.xlu0 %4699 }
 0x7a8   : >> { %8078 = vmatpush3.bf16.msra.mxu1 %v4700_v46 }
 0x7a9   : >> { %8079 = vmatprep.subr.bf16.mxu1 %v4714_v45  ;;  %8517 = vmatmul.mubr.msk.f32.gmra.mxu1 %vm4274_vm13, %v4131_v58 }
 0x7aa   : >> { %v4712_v43 = vpop.permute.xlu1 %4711  ;;  %4775 = vmatprep.mubr.bf16.mxu1 %v9153_v61 }
 0x7ab   : >> { %v4698_v39 = vpop.permute.xlu0 %4697 }
 0x7ac   : >> { %8080 = vmatpush3.bf16.msra.mxu1 %v4698_v39 }
 0x7ad   : >> { %8081 = vmatprep.subr.bf16.mxu1 %v4712_v43 }
 0x7af   : >> { %v4696_v48 = vpop.permute.xlu0 %4695 }
 0x7b0   : >> { %8082 = vmatpush3.bf16.msra.mxu1 %v4696_v48 }
 0x7b1   : >> { %8527 = vmatprep.subr.msk.mxu1 %vm10191_vm7, %v9296_v18 }
 0x7b3   : >> { %4776 = vmatmul.mubr.bf16.vlgmr.msra.gmra.mxu1 %v9151_v56 }
 0x7b4   : >> { %4783 = vmatprep.mubr.bf16.mxu1 %v9154_v59  ;;  %8528 = vmatpush3.msk.msra.mxu1 %vm10191_vm7, %v9296_v18 }
 0x7bb   : >> { %4784 = vmatmul.mubr.bf16.gmra.mxu1 %v9156_v44 }
 0x7d3   : >> { %v8017_v25 = vpop.f32.mrf.mxu1 }
 0x7d5   : >> { %v8018_v33 = vpop.f32.mrf.mxu1 }
 0x7d6   : >> { %v8019_v0 = vadd.f32 %v8018_v33, %v8017_v25 }
 0x7d7   : >> { %v8020_v34 = vpop.f32.mrf.mxu1 }
 0x7d8   : >> { %v4256_v2 = vadd.f32 %v8019_v0, %v11083_v31 }
 0x7d9   : >> { %v8021_v30 = vpop.f32.mrf.mxu1 }
 0x7da   : >> { %v4270_v10 = vmax.f32 %v4256_v2, 0.0  ;;  %v8022_v11 = vadd.f32 %v8021_v30, %v8020_v34 }
 0x7db   : >> { %v8023_v12 = vpop.f32.mrf.mxu1 }
 0x7dc   : >> { %v4259_v15 = vadd.f32 %v8022_v11, %v11086_v27  ;;  %8505 = vmatprep.mubr.msk.f32.mxu0 %vm4274_vm13, %v4270_v10 }
 0x7dd   : >> { %v8024_v16 = vpop.f32.mrf.mxu1 }
 0x7de   : >> { %v4271_v17 = vmax.f32 %v4259_v15, 0.0  ;;  %v8025_v20 = vadd.f32 %v8024_v16, %v8023_v12 }
 0x7df   : >> { %v8026_v37 = vpop.f32.mrf.mxu1 }
 0x7e0   : >> { %v4264_v22 = vadd.f32 %v8025_v20, %v11091_v28  ;;  %8506 = vmatmul.mubr.msk.f32.vlgmr.msra.gmra.mxu0 %vm4274_vm13, %v4271_v17 }
 0x7e1   : >> { %8040 = vmatpush3.bf16.msra.mxu0 %v11028_v29  ;;  %v8027_v24 = vpop.f32.mrf.mxu1 }
 0x7e2   : >> { %v4272_v38 = vmax.f32 %v4264_v22, 0.0  ;;  %v8028_v26 = vadd.f32 %v8027_v24, %v8026_v37  ;;  %8041 = vmatprep.subr.bf16.mxu0 %v11023_v23  ;;  %v9157_v23 = vld [vmem:[%s11956_s4 + $0x40] ss:$8 sps:$4 sm:$0xff]  }
 0x7e4   : >> { %v4267_v35 = vadd.f32 %v8028_v26, %v11094_v32  ;;  %8508 = vmatprep.mubr.msk.f32.mxu0 %vm4274_vm13, %v4272_v38 }
 0x7e5   : >> { %8042 = vmatpush3.bf16.msra.mxu0 %v11039_v41 }
 0x7e6   : >> { %v4273_v53 = vmax.f32 %v4267_v35, 0.0  ;;  %8043 = vmatprep.subr.bf16.mxu0 %v11037_v57 }
 0x7e8   : >> { %8509 = vmatmul.mubr.msk.f32.gmra.mxu0 %vm4274_vm13, %v4273_v53 }
 0x7e9   : >> { %8044 = vmatpush3.bf16.msra.mxu0 %v11047_v21  ;;  %4633 = vmatprep.mubr.bf16.mxu0 %v9159_v42 }
 0x7ea   : >> { %8045 = vmatprep.subr.bf16.mxu0 %v11045_v60 }
 0x7ed   : >> { %8046 = vmatpush3.bf16.msra.mxu0 %v11053_v4 }
 0x7ee   : >> { %8047 = vmatprep.subr.bf16.mxu0 %v11003_v13 }
 0x7f1   : >> { %8048 = vmatpush3.bf16.msra.mxu0 %v10867_v14  ;;  %v9160_v14 = vld [vmem:[%s11956_s4 + $0x54] ss:$8 sps:$4 sm:$0xff]  }
 0x7f2   : >> { %8049 = vmatprep.subr.bf16.mxu0 %v11058_v62 }
 0x7f5   : >> { %8050 = vmatpush3.bf16.msra.mxu0 %v10874_v19  ;;  %v9162_v19 = vld [vmem:[%s11956_s4 + $0x50] ss:$8 sps:$4 sm:$0xff]  }
 0x7f6   : >> { %8051 = vmatprep.subr.bf16.mxu0 %v11066_v1 }
 0x7f9   : >> { %8052 = vmatpush3.bf16.msra.mxu0 %v10906_v40 }
 0x7fa   : >> { %8053 = vmatprep.subr.bf16.mxu0 %v11073_v49 }
 0x7fd   : >> { %8054 = vmatpush3.bf16.msra.mxu0 %v10910_v54 }
 0x7fe   : >> { %8519 = vmatprep.subr.msk.mxu0 %vm10196_vm8, %v9296_v18 }
 0x800   : >> { %4634 = vmatmul.mubr.bf16.vlgmr.msra.gmra.mxu0 %v9157_v23 }
 0x801   : >> { %4641 = vmatprep.mubr.bf16.mxu0 %v9160_v14  ;;  %8520 = vmatpush3.msk.msra.mxu0 %vm10196_vm8, %v9296_v18 }
 0x808   : >> { %4642 = vmatmul.mubr.bf16.gmra.mxu0 %v9162_v19 }
 0x82c   : >> { %v8515_v40 = vpop.f32.mrf.mxu1 }
 0x82e   : >> { %v4450_v54 = vpop.f32.mrf.mxu1 }
 0x869   : >> { %v8518_v13 = vpop.f32.mrf.mxu1 }
 0x86b   : >> { %v4460_v29 = vpop.f32.mrf.mxu1 }
 0x873   : >> { %v8083_v57 = vpop.f32.mrf.mxu1 }
 0x875   : >> { %v8084_v41 = vpop.f32.mrf.mxu1 }
 0x876   : >> { %v8085_v60 = vadd.f32 %v8084_v41, %v8083_v57 }
 0x877   : >> { %v8086_v21 = vpop.f32.mrf.mxu1 }
 0x878   : >> { %v4778_v4 = vadd.f32 %v8085_v60, %v11083_v31 }
 0x879   : >> { %v8087_v62 = vpop.f32.mrf.mxu1 }
 0x87a   : >> { %v4792_v1 = vmax.f32 %v4778_v4, 0.0  ;;  %v8088_v49 = vadd.f32 %v8087_v62, %v8086_v21 }
 0x87b   : >> { %v8089_v50 = vpop.f32.mrf.mxu1 }
 0x87c   : >> { %v4781_v18 = vadd.f32 %v8088_v49, %v11086_v27  ;;  %8521 = vmatprep.mubr.msk.f32.mxu0 %vm4274_vm13, %v4792_v1  ;;  %v11198_v1 = vadd.s32 (%p3930_p5), 8, %v10175_v52  ;;  %v11203_v49 = vld [vmem:[%s11959_s7] sm:$0xff] (%p3930_p5) }
 0x87d   : >> { %v8090_v51 = vpop.f32.mrf.mxu1 }
 0x87e   : >> { %v4793_v47 = vmax.f32 %v4781_v18, 0.0  ;;  %v8091_v58 = vadd.f32 %v8090_v51, %v8089_v50  ;;  %v11208_v50 = vld [vmem:[%s11959_s7 + $0x8] sm:$0xff] (%p3930_p5)  ;;  %v4998_v8 = vmul.u32 (%p3930_p5), 2, %v11198_v1 }
 0x87f   : >> { %v8092_v45 = vpop.f32.mrf.mxu1 }
 0x880   : >> { %v4786_v61 = vadd.f32 %v8091_v58, %v11091_v28  ;;  %8522 = vmatmul.mubr.msk.f32.vlgmr.msra.gmra.mxu0 %vm4274_vm13, %v4793_v47  ;;  %v4999_v36 = vadd.s32 (%p3930_p5), 1, %v4998_v8 }
 0x881   : >> { %v8093_v46 = vpop.f32.mrf.mxu1 }
 0x882   : >> { %v4794_v43 = vmax.f32 %v4786_v61, 0.0  ;;  %v8094_v39 = vadd.f32 %v8093_v46, %v8092_v45  ;;  %vm11222_vm15 = vcmp.eq.s32.totalorder (%p3930_p5), %v10188_v63, %v4999_v36  ;;  %v5003_v9 = vadd.s32 (%p3930_p5), 1, %v4999_v36 }
 0x884   : >> { %v4789_v48 = vadd.f32 %v8094_v39, %v11094_v32  ;;  %8524 = vmatprep.mubr.msk.f32.mxu0 %vm4274_vm13, %v4794_v43  ;;  %vm11227_vm0 = vcmp.eq.s32.totalorder (%p3930_p5), %v10188_v63, %v5003_v9 }
 0x886   : >> { %v4795_v56 = vmax.f32 %v4789_v48, 0.0 }
 0x888   : >> { %8525 = vmatmul.mubr.msk.f32.gmra.mxu0 %vm4274_vm13, %v4795_v56 }
 0x8a0   : >> { %v8507_v59 = vpop.f32.mrf.mxu0 }
 0x8a1   : >> { %v4456_v44 = vadd.f32 %v8515_v40, %v8507_v59 }
 0x8a2   : >> { %v4353_v25 = vpop.f32.mrf.mxu0 }
 0x8a3   : >> { %7416 = vst.msk [vmem:[%s11168_s29 + $0x28] sm:$0xff] %vm3918_vm12, %v4456_v44  ;;  %v4451_v33 = vadd.f32 %v4450_v54, %v4353_v25 }
 0x8a5   : >> { %7415 = vst.msk [vmem:[%s11168_s29 + $0x20] sm:$0xff] %vm3918_vm12, %v4451_v33 }
 0x8a8   : >> { %v8510_v0 = vpop.f32.mrf.mxu0 }
 0x8a9   : >> { %v4466_v34 = vadd.f32 %v8518_v13, %v8510_v0 }
 0x8aa   : >> { %v4363_v2 = vpop.f32.mrf.mxu0 }
 0x8ab   : >> { %7418 = vst.msk [vmem:[%s11168_s29 + $0x38] sm:$0xff] %vm3918_vm12, %v4466_v34  ;;  %v4461_v30 = vadd.f32 %v4460_v29, %v4363_v2 }
 0x8ad   : >> { %7417 = vst.msk [vmem:[%s11168_s29 + $0x30] sm:$0xff] %vm3918_vm12, %v4461_v30 }
 0x8c0   : >> { %v8055_v10 = vpop.f32.mrf.mxu0 }
 0x8c2   : >> { %v8056_v11 = vpop.f32.mrf.mxu0 }
 0x8c3   : >> { %v8057_v12 = vadd.f32 %v8056_v11, %v8055_v10 }
 0x8c4   : >> { %v8058_v15 = vpop.f32.mrf.mxu0 }
 0x8c5   : >> { %v4636_v16 = vadd.f32 %v8057_v12, %v11083_v31 }
 0x8c6   : >> { %v8059_v17 = vpop.f32.mrf.mxu0 }
 0x8c7   : >> { %v4650_v20 = vmax.f32 %v4636_v16, 0.0  ;;  %v8060_v37 = vadd.f32 %v8059_v17, %v8058_v15 }
 0x8c8   : >> { %v8061_v22 = vpop.f32.mrf.mxu0 }
 0x8c9   : >> { %v4639_v24 = vadd.f32 %v8060_v37, %v11086_v27  ;;  %8529 = vmatprep.mubr.msk.f32.mxu1 %vm4274_vm13, %v4650_v20 }
 0x8ca   : >> { %v8062_v38 = vpop.f32.mrf.mxu0 }
 0x8cb   : >> { %v4651_v26 = vmax.f32 %v4639_v24, 0.0  ;;  %v8063_v35 = vadd.f32 %v8062_v38, %v8061_v22 }
 0x8cc   : >> { %v8064_v42 = vpop.f32.mrf.mxu0 }
 0x8cd   : >> { %v4644_v53 = vadd.f32 %v8063_v35, %v11091_v28  ;;  %8530 = vmatmul.mubr.msk.f32.vlgmr.msra.gmra.mxu1 %vm4274_vm13, %v4651_v26 }
 0x8ce   : >> { %v8065_v23 = vpop.f32.mrf.mxu0 }
 0x8cf   : >> { %v4652_v31 = vmax.f32 %v4644_v53, 0.0  ;;  %v8066_v14 = vadd.f32 %v8065_v23, %v8064_v42 }
 0x8d1   : >> { %v4647_v19 = vadd.f32 %v8066_v14, %v11094_v32  ;;  %8532 = vmatprep.mubr.msk.f32.mxu1 %vm4274_vm13, %v4652_v31 }
 0x8d3   : >> { %v4653_v27 = vmax.f32 %v4647_v19, 0.0 }
 0x8d5   : >> { %8533 = vmatmul.mubr.msk.f32.gmra.mxu1 %vm4274_vm13, %v4653_v27 }
 0x940   : >> { %v8523_v40 = vpop.f32.mrf.mxu0 }
 0x942   : >> { %v4874_v29 = vpop.f32.mrf.mxu0 }
 0x948   : >> { %v8526_v41 = vpop.f32.mrf.mxu0 }
 0x94a   : >> { %v4884_v21 = vpop.f32.mrf.mxu0 }
 0x98d   : >> { %v8531_v54 = vpop.f32.mrf.mxu1 }
 0x98e   : >> { %v4977_v13 = vadd.f32 %v8531_v54, %v8523_v40 }
 0x98f   : >> { %v4971_v28 = vpop.f32.mrf.mxu1 }
 0x990   : >> { %7465 = vst.msk [vmem:[%s11168_s29 + $0x48] sm:$0xff] %vm3918_vm12, %v4977_v13  ;;  %v4972_v57 = vadd.f32 %v4971_v28, %v4874_v29 }
 0x992   : >> { %7464 = vst.msk [vmem:[%s11168_s29 + $0x40] sm:$0xff] %vm3918_vm12, %v4972_v57 }
 0x995   : >> { %v8534_v60 = vpop.f32.mrf.mxu1 }
 0x996   : >> { %v4987_v32 = vadd.f32 %v8534_v60, %v8526_v41  ;;  %3932 = sbr.rel (!%p3930_p5) target bundleno = 1532 (0x5fc), region = 192 }
 0x997   : >> { %v4981_v4 = vpop.f32.mrf.mxu1 }
 0x998   : >> { %7467 = vst.msk [vmem:[%s11168_s29 + $0x58] sm:$0xff] %vm3918_vm12, %v4987_v32  ;;  %v4982_v62 = vadd.f32 %v4981_v4, %v4884_v21 }
 0x99a   : >> { %7466 = vst.msk [vmem:[%s11168_s29 + $0x50] sm:$0xff] %vm3918_vm12, %v4982_v62 }
 0x99b LB: >> { %v9297_v51 = vmov 0.0   ;;  %s7470_s17 = sshll.u32 %s9277_s16, 5  ;;  %s9298_s19 = smov 127   ;;  %vm9299_vm1 = vmmov 0   ;;  %v9300_v30 = vmov 0   ;;  %v9205_v13 = vld [vmem:[%s11958_s6] sm:$0xff]   ;;  %s9277_s16 = sphi %s11231_s16, %s5020_s16  }
 0x99c   : >> { %8535 = vmatprep.subr.bf16.mxu0 %v9297_v51  ;;  %8555 = vmatprep.subr.bf16.mxu1 %v9297_v51  ;;  %s11241_s18 = scalar_lea.vmem [#allocation4], %s7470_s17  ;;  %v9301_v29 = vmov 1.0   ;;  %vm5219_vm2 = vcmask 130048   ;;  %s7015_s23 = scalar_lea.vmem [#allocation5], %s7470_s17 }
 0x99d   : >> { %8551 = vmatprep.mubr.msk.bf16.mxu0 %vm9299_vm1, %v9297_v51  ;;  %8571 = vmatprep.mubr.msk.bf16.mxu1 %vm9299_vm1, %v9297_v51  ;;  %s5020_s16 = sadd.s32 1, %s9277_s16  }
 0x99e   : >> { %9203 = vset.pattern.permute.xlu0 %v9300_v30  ;;  %9204 = vset.pattern.permute.xlu1 %v9300_v30  ;;  %p5017_p6 = scmp.ge.s32.totalorder %s5020_s16, 16  }
 0x99f   : > { %vm5763_vm3 = vcmask (%p5017_p6), 539648   ;;  %s11491_s15 = smov (%p5017_p6), 0  }
 0x9a0   : > { %5764 = vst.msk [vmem:[#allocation6] sm:$0xff] (%p5017_p6), %vm5763_vm3, %v9287_v5  ;;  %5766 = vst.msk [vmem:[#allocation6 + $0x208] sm:$0xff] (%p5017_p6), %vm5763_vm3, %v9287_v5 }
 0x9a1   : >> { %v7474_v47 = vld [vmem:[%s11241_s18 + $0x30] sm:$0xff]  ;;  %v7475_v58 = vld [vmem:[%s11241_s18 + $0x38] sm:$0xff]  ;;  %v7472_v45 = vld [vmem:[%s11241_s18 + $0x20] sm:$0xff] }
 0x9a2   : >> { %v11246_v61 = vpack.i.bf16 %v7475_v58, %v7474_v47  ;;  %v11248_v46 = vpack.c.bf16 %v7475_v58, %v7474_v47  ;;  %v7473_v43 = vld [vmem:[%s11241_s18 + $0x28] sm:$0xff]  ;;  %v5025_v39 = vld [vmem:[%s11241_s18 + $0x10] sm:$0xff]  ;;  %v5026_v48 = vld [vmem:[%s11241_s18 + $0x18] sm:$0xff] }
 0x9a3   : >> { %v9173_v56 = vpack.i.bf16 %v5026_v48, %v5025_v39  ;;  %v5067_v59 = vpack.c.bf16 %v5026_v48, %v5025_v39  ;;  %v5023_v44 = vld [vmem:[%s11241_s18] sm:$0xff]  ;;  %v5024_v25 = vld [vmem:[%s11241_s18 + $0x8] sm:$0xff]  ;;  %v11255_v33 = vpack.c.bf16 %v7473_v43, %v7472_v45  ;;  %v9168_v0 = vpack.i.bf16 %v7473_v43, %v7472_v45  ;;  %v7499_v31 = vld [vmem:[%s11241_s18 + $0x50] sm:$0xff] }
 0x9a4   : >> { %9164 = vrot.lane.b32.xlu0 %v11246_v61, %s9298_s19  ;;  %v9178_v34 = vpack.i.bf16 %v5024_v25, %v5023_v44  ;;  %v5066_v2 = vpack.c.bf16 %v5024_v25, %v5023_v44  ;;  %v7500_v14 = vld [vmem:[%s11241_s18 + $0x58] sm:$0xff]  ;;  %v11284_v27 = vld [vmem:[%s11241_s18 + $0x40] sm:$0xff]  ;;  %v7498_v40 = vld [vmem:[%s11241_s18 + $0x48] sm:$0xff] }
 0x9a5   : >> { %9174 = vrot.lane.b32.xlu1 %v9173_v56, %s9298_s19  ;;  %v9183_v19 = vpack.i.bf16 %v7500_v14, %v7499_v31  ;;  %v9188_v54 = vpack.i.bf16 %v7498_v40, %v11284_v27  ;;  %v11324_v43 = vpack.c.bf16 %v7500_v14, %v7499_v31 }
 0x9a8   : >> { %9169 = vrot.lane.b32.xlu0 %v9168_v0, %s9298_s19 }
 0x9a9   : >> { %9179 = vrot.lane.b32.xlu1 %v9178_v34, %s9298_s19  ;;  %v11336_v34 = vpack.c.bf16 %v7498_v40, %v11284_v27  ;;  %v9207_v40 = vld [vmem:[%s11958_s6 + $0x18] sm:$0xff]  }
 0xa16   : >> { %v9165_v10 = vpop.permute.xlu0 %9164 }
 0xa17   : >> { %v9167_v11 = vunpack.i.h.bf16 %v9165_v10  ;;  %v9166_v12 = vunpack.i.l.bf16 %v9165_v10  ;;  %v9175_v15 = vpop.permute.xlu1 %9174  ;;  %v9206_v10 = vld [vmem:[%s11958_s6 + $0x8] sm:$0xff]  }
 0xa18   : >> { %v9177_v22 = vunpack.i.h.bf16 %v9175_v15  ;;  %v9176_v24 = vunpack.i.l.bf16 %v9175_v15 }
 0xa19   : >> { %v5073_v16 = vpack.c.bf16 %v9167_v11, %v9166_v12 }
 0xa1a   : >> { %v9170_v17 = vpop.permute.xlu0 %9169  ;;  %v5069_v35 = vpack.c.bf16 %v9177_v22, %v9176_v24 }
 0xa1b   : >> { %v9172_v20 = vunpack.i.h.bf16 %v9170_v17  ;;  %v9171_v37 = vunpack.i.l.bf16 %v9170_v17  ;;  %8536 = vmatpush3.bf16.msra.mxu0 %v5073_v16  ;;  %5166 = vrot.lane.b32.xlu0 %v5073_v16, %s9298_s19  ;;  %v9180_v26 = vpop.permute.xlu1 %9179 }
 0xa1c   : >> { %8537 = vmatprep.subr.bf16.mxu0 %v9297_v51  ;;  %v9182_v42 = vunpack.i.h.bf16 %v9180_v26  ;;  %v9181_v53 = vunpack.i.l.bf16 %v9180_v26 }
 0xa1d   : >> { %v5072_v38 = vpack.c.bf16 %v9172_v20, %v9171_v37 }
 0xa1e   : >> { %v5068_v23 = vpack.c.bf16 %v9182_v42, %v9181_v53 }
 0xa1f   : >> { %5162 = vrot.lane.b32.xlu0 %v11248_v46, %s9298_s19  ;;  %8538 = vmatpush3.bf16.msra.mxu0 %v5072_v38 }
 0xa20   : >> { %5164 = vrot.lane.b32.xlu1 %v5072_v38, %s9298_s19  ;;  %8539 = vmatprep.subr.bf16.mxu0 %v9297_v51 }
 0xa23   : >> { %8540 = vmatpush3.bf16.msra.mxu0 %v11248_v46  ;;  %5158 = vrot.lane.b32.xlu0 %v5069_v35, %s9298_s19 }
 0xa24   : >> { %5160 = vrot.lane.b32.xlu1 %v11255_v33, %s9298_s19  ;;  %8541 = vmatprep.subr.bf16.mxu0 %v9297_v51 }
 0xa27   : >> { %8542 = vmatpush3.bf16.msra.mxu0 %v11255_v33  ;;  %5154 = vrot.lane.b32.xlu0 %v5067_v59, %s9298_s19 }
 0xa28   : >> { %5156 = vrot.lane.b32.xlu1 %v5068_v23, %s9298_s19  ;;  %8543 = vmatprep.subr.bf16.mxu0 %v9297_v51 }
 0xa2b   : >> { %8544 = vmatpush3.bf16.msra.mxu0 %v5069_v35  ;;  %9184 = vrot.lane.b32.xlu0 %v9183_v19, %s9298_s19 }
 0xa2c   : >> { %5152 = vrot.lane.b32.xlu1 %v5066_v2, %s9298_s19  ;;  %8545 = vmatprep.subr.bf16.mxu0 %v9297_v51 }
 0xa2f   : >> { %8546 = vmatpush3.bf16.msra.mxu0 %v5068_v23  ;;  %9194 = vrot.lane.b32.xlu0 %v11246_v61, %s9298_s19 }
 0xa30   : >> { %9189 = vrot.lane.b32.xlu1 %v9188_v54, %s9298_s19  ;;  %8547 = vmatprep.subr.bf16.mxu0 %v9297_v51 }
 0xa33   : >> { %8548 = vmatpush3.bf16.msra.mxu0 %v5067_v59  ;;  %5078 = vperm.xlu0 %9203, %v11203_v49  }
 0xa34   : >> { %9199 = vrot.lane.b32.xlu1 %v9168_v0, %s9298_s19  ;;  %8549 = vmatprep.subr.bf16.mxu0 %v9297_v51 }
 0xa37   : >> { %8550 = vmatpush3.bf16.msra.mxu0 %v5066_v2 }
 0xa38   : >> { %5083 = vperm.xlu1 %9204, %v11208_v50   ;;  %8575 = vmatprep.subr.msk.mxu0 %vm11227_vm0, %v9301_v29 }
 0xa3a   : >> { %8552 = vmatmul.mubr.bf16.vlgmr.msra.gmra.mxu0 %v9205_v13 }
 0xa3b   : >> { %8576 = vmatpush3.msk.msra.mxu0 %vm11227_vm0, %v9301_v29 }
 0xa3c   : >> { %8577 = vmatprep.subr.msk.mxu0 %vm10196_vm8, %v9301_v29 }
 0xa3d   : >> { %8578 = vmatpush3.msk.msra.mxu0 %vm10196_vm8, %v9301_v29 }
 0xa3e   : >> { %8589 = vmatprep.subr.bf16.mxu0 %v9297_v51 }
 0xa8d   : >> { %v5167_v28 = vpop.permute.xlu0 %5166 }
 0xa8e   : >> { %8556 = vmatpush3.bf16.msra.mxu1 %v5167_v28 }
 0xa8f   : >> { %8557 = vmatprep.subr.bf16.mxu1 %v9297_v51 }
 0xa91   : >> { %v5163_v57 = vpop.permute.xlu0 %5162 }
 0xa92   : >> { %v5165_v41 = vpop.permute.xlu1 %5164 }
 0xa93   : >> { %8558 = vmatpush3.bf16.msra.mxu1 %v5165_v41 }
 0xa94   : >> { %8559 = vmatprep.subr.bf16.mxu1 %v9297_v51 }
 0xa95   : >> { %v5159_v60 = vpop.permute.xlu0 %5158 }
 0xa96   : >> { %v5161_v32 = vpop.permute.xlu1 %5160 }
 0xa97   : >> { %8560 = vmatpush3.bf16.msra.mxu1 %v5163_v57 }
 0xa98   : >> { %8561 = vmatprep.subr.bf16.mxu1 %v9297_v51 }
 0xa99   : >> { %v5155_v21 = vpop.permute.xlu0 %5154 }
 0xa9a   : >> { %v5157_v4 = vpop.permute.xlu1 %5156 }
 0xa9b   : >> { %8562 = vmatpush3.bf16.msra.mxu1 %v5161_v32 }
 0xa9c   : >> { %8563 = vmatprep.subr.bf16.mxu1 %v9297_v51 }
 0xa9d   : >> { %v9185_v62 = vpop.permute.xlu0 %9184 }
 0xa9e   : >> { %v9187_v36 = vunpack.i.h.bf16 %v9185_v62  ;;  %v9186_v9 = vunpack.i.l.bf16 %v9185_v62  ;;  %v5153_v47 = vpop.permute.xlu1 %5152 }
 0xa9f   : >> { %8564 = vmatpush3.bf16.msra.mxu1 %v5159_v60 }
 0xaa0   : >> { %v11319_v58 = vpack.c.bf16 %v9187_v36, %v9186_v9  ;;  %8565 = vmatprep.subr.bf16.mxu1 %v9297_v51 }
 0xaa1   : >> { %v9195_v45 = vpop.permute.xlu0 %9194 }
 0xaa2   : >> { %v9190_v61 = vpop.permute.xlu1 %9189  ;;  %5522 = vrot.lane.b32.xlu1 %v11319_v58, %s9298_s19  ;;  %v9197_v39 = vunpack.i.h.bf16 %v9195_v45  ;;  %v9196_v48 = vunpack.i.l.bf16 %v9195_v45 }
 0xaa3   : >> { %v9192_v56 = vunpack.i.h.bf16 %v9190_v61  ;;  %v9191_v59 = vunpack.i.l.bf16 %v9190_v61  ;;  %8566 = vmatpush3.bf16.msra.mxu1 %v5157_v4  ;;  %v9208_v4 = vld [vmem:[%s11958_s6 + $0x10] sm:$0xff]  }
 0xaa4   : >> { %8567 = vmatprep.subr.bf16.mxu1 %v9297_v51  ;;  %v11331_v25 = vpack.c.bf16 %v9197_v39, %v9196_v48 }
 0xaa5   : >> { %v11327_v44 = vpack.c.bf16 %v9192_v56, %v9191_v59 }
 0xaa6   : >> { %5518 = vrot.lane.b32.xlu1 %v11324_v43, %s9298_s19  ;;  %v9200_v0 = vpop.permute.xlu1 %9199 }
 0xaa7   : >> { %8568 = vmatpush3.bf16.msra.mxu1 %v5155_v21  ;;  %5520 = vrot.lane.b32.xlu0 %v11327_v44, %s9298_s19  ;;  %v9202_v2 = vunpack.i.h.bf16 %v9200_v0  ;;  %v9201_v30 = vunpack.i.l.bf16 %v9200_v0 }
 0xaa8   : >> { %8569 = vmatprep.subr.bf16.mxu1 %v9297_v51 }
 0xaa9   : >> { %v11346_v11 = vpack.c.bf16 %v9202_v2, %v9201_v30 }
 0xaaa   : >> { %5514 = vrot.lane.b32.xlu1 %v11331_v25, %s9298_s19 }
 0xaab   : >> { %8570 = vmatpush3.bf16.msra.mxu1 %v5153_v47  ;;  %5516 = vrot.lane.b32.xlu0 %v11336_v34, %s9298_s19 }
 0xaac   : >> { %8582 = vmatprep.subr.msk.mxu1 %vm11222_vm15, %v9301_v29 }
 0xaae   : >> { %8572 = vmatmul.mubr.bf16.vlgmr.msra.gmra.mxu1 %v9206_v10  ;;  %5510 = vrot.lane.b32.xlu1 %v11248_v46, %s9298_s19  ;;  %v11367_v12 = vpop.permute.xlu0 %5078 }
 0xaaf   : >> { %5512 = vrot.lane.b32.xlu0 %v11346_v11, %s9298_s19  ;;  %8583 = vmatpush3.msk.msra.mxu1 %vm11222_vm15, %v9301_v29 }
 0xab0   : >> { %8584 = vmatprep.subr.msk.mxu1 %vm10191_vm7, %v9301_v29 }
 0xab1   : >> { %8585 = vmatpush3.msk.msra.mxu1 %vm10191_vm7, %v9301_v29 }
 0xab2   : >> { %8609 = vmatprep.subr.bf16.mxu1 %v9297_v51 }
 0xab3   : >> { %5508 = vrot.lane.b32.xlu0 %v11255_v33, %s9298_s19  ;;  %v11370_v20 = vpop.permute.xlu1 %5083 }
 0xafa   : >> { %v5126_v15 = vpop.f32.mrf.mxu0 }
 0xafb   : >> { %v5127_v16 = vadd.f32 %v5126_v15, %v11367_v12 }
 0xafc   : >> { %v8553_v17 = vpop.f32.mrf.mxu0 }
 0xafd   : >> { %v5133_v37 = vmax.f32 %v5127_v16, 0.0 }
 0xafe   : >> { %v5129_v22 = vpop.f32.mrf.mxu0 }
 0xaff   : >> { %v5130_v24 = vadd.f32 %v5129_v22, %v11370_v20  ;;  %8586 = vmatprep.mubr.msk.f32.mxu1 %vm5219_vm2, %v5133_v37  ;;  %v11461_v22 = vld [vmem:[%s11961_s9] sm:$0xff] (%p5017_p6) }
 0xb00   : >> { %v8554_v38 = vpop.f32.mrf.mxu0 }
 0xb01   : >> { %v5134_v26 = vmax.f32 %v5130_v24, 0.0 }
 0xb03   : >> { %8587 = vmatmul.mubr.msk.f32.vlgmr.msra.gmra.mxu1 %vm5219_vm2, %v5134_v26 }
 0xb04   : >> { %8625 = vmatprep.mubr.msk.bf16.mxu1 %vm9299_vm1, %v9297_v51 }
 0xb14   : >> { %v5523_v35 = vpop.permute.xlu1 %5522 }
 0xb15   : >> { %8610 = vmatpush3.bf16.msra.mxu1 %v5523_v35 }
 0xb16   : >> { %8611 = vmatprep.subr.bf16.mxu1 %v9297_v51 }
 0xb18   : >> { %v5519_v53 = vpop.permute.xlu1 %5518 }
 0xb19   : >> { %v5521_v42 = vpop.permute.xlu0 %5520 }
 0xb1a   : >> { %8612 = vmatpush3.bf16.msra.mxu1 %v5521_v42 }
 0xb1b   : >> { %8613 = vmatprep.subr.bf16.mxu1 %v9297_v51 }
 0xb1c   : >> { %v5515_v31 = vpop.permute.xlu1 %5514 }
 0xb1d   : >> { %v5517_v23 = vpop.permute.xlu0 %5516 }
 0xb1e   : >> { %8614 = vmatpush3.bf16.msra.mxu1 %v5519_v53 }
 0xb1f   : >> { %8615 = vmatprep.subr.bf16.mxu1 %v9297_v51 }
 0xb20   : >> { %v5511_v19 = vpop.permute.xlu1 %5510 }
 0xb21   : >> { %v5513_v14 = vpop.permute.xlu0 %5512 }
 0xb22   : >> { %8616 = vmatpush3.bf16.msra.mxu1 %v5517_v23 }
 0xb23   : >> { %8617 = vmatprep.subr.bf16.mxu1 %v9297_v51 }
 0xb25   : >> { %v5509_v27 = vpop.permute.xlu0 %5508 }
 0xb26   : >> { %8618 = vmatpush3.bf16.msra.mxu1 %v5515_v31 }
 0xb27   : >> { %8619 = vmatprep.subr.bf16.mxu1 %v9297_v51 }
 0xb2a   : >> { %8620 = vmatpush3.bf16.msra.mxu1 %v5513_v14 }
 0xb2b   : >> { %8621 = vmatprep.subr.bf16.mxu1 %v9297_v51 }
 0xb2e   : >> { %8622 = vmatpush3.bf16.msra.mxu1 %v5511_v19 }
 0xb2f   : >> { %8623 = vmatprep.subr.bf16.mxu1 %v9297_v51 }
 0xb32   : >> { %8624 = vmatpush3.bf16.msra.mxu1 %v5509_v27 }
 0xb33   : >> { %8636 = vmatprep.subr.msk.mxu1 %vm11222_vm15, %v9301_v29 }
 0xb35   : >> { %8626 = vmatmul.mubr.bf16.vlgmr.msra.gmra.mxu1 %v9207_v40 }
 0xb36   : >> { %8637 = vmatpush3.msk.msra.mxu1 %vm11222_vm15, %v9301_v29 }
 0xb37   : >> { %8638 = vmatprep.subr.msk.mxu1 %vm10191_vm7, %v9301_v29 }
 0xb38   : >> { %8639 = vmatpush3.msk.msra.mxu1 %vm10191_vm7, %v9301_v29 }
 0xb6e   : >> { %v5210_v54 = vpop.f32.mrf.mxu1 }
 0xb6f   : >> { %v5211_v13 = vadd.f32 %v5210_v54, %v11367_v12 }
 0xb70   : >> { %v8573_v28 = vpop.f32.mrf.mxu1 }
 0xb71   : >> { %v5217_v57 = vmax.f32 %v5211_v13, 0.0 }
 0xb72   : >> { %v5213_v41 = vpop.f32.mrf.mxu1 }
 0xb73   : >> { %v5214_v60 = vadd.f32 %v5213_v41, %v11370_v20  ;;  %8579 = vmatprep.mubr.msk.f32.mxu0 %vm5219_vm2, %v5217_v57 }
 0xb74   : >> { %v8574_v32 = vpop.f32.mrf.mxu1 }
 0xb75   : >> { %v5218_v21 = vmax.f32 %v5214_v60, 0.0 }
 0xb77   : >> { %8580 = vmatmul.mubr.msk.f32.vlgmr.msra.gmra.mxu0 %vm5219_vm2, %v5218_v21 }
 0xb78   : >> { %8590 = vmatpush3.bf16.msra.mxu0 %v11319_v58  ;;  %8605 = vmatprep.mubr.msk.bf16.mxu0 %vm9299_vm1, %v9297_v51 }
 0xb79   : >> { %8591 = vmatprep.subr.bf16.mxu0 %v9297_v51 }
 0xb7c   : >> { %8592 = vmatpush3.bf16.msra.mxu0 %v11327_v44 }
 0xb7d   : >> { %8593 = vmatprep.subr.bf16.mxu0 %v9297_v51 }
 0xb80   : >> { %8594 = vmatpush3.bf16.msra.mxu0 %v11324_v43 }
 0xb81   : >> { %8595 = vmatprep.subr.bf16.mxu0 %v9297_v51 }
 0xb84   : >> { %8596 = vmatpush3.bf16.msra.mxu0 %v11336_v34 }
 0xb85   : >> { %8597 = vmatprep.subr.bf16.mxu0 %v9297_v51 }
 0xb88   : >> { %8598 = vmatpush3.bf16.msra.mxu0 %v11331_v25 }
 0xb89   : >> { %8599 = vmatprep.subr.bf16.mxu0 %v9297_v51 }
 0xb8c   : >> { %8600 = vmatpush3.bf16.msra.mxu0 %v11346_v11 }
 0xb8d   : >> { %8601 = vmatprep.subr.bf16.mxu0 %v9297_v51 }
 0xb90   : >> { %8602 = vmatpush3.bf16.msra.mxu0 %v11248_v46 }
 0xb91   : >> { %8603 = vmatprep.subr.bf16.mxu0 %v9297_v51 }
 0xb94   : >> { %8604 = vmatpush3.bf16.msra.mxu0 %v11255_v33 }
 0xb95   : >> { %8629 = vmatprep.subr.msk.mxu0 %vm11227_vm0, %v9301_v29 }
 0xb97   : >> { %8606 = vmatmul.mubr.bf16.vlgmr.msra.gmra.mxu0 %v9208_v4 }
 0xb98   : >> { %8630 = vmatpush3.msk.msra.mxu0 %vm11227_vm0, %v9301_v29 }
 0xb99   : >> { %8631 = vmatprep.subr.msk.mxu0 %vm10196_vm8, %v9301_v29 }
 0xb9a   : >> { %8632 = vmatpush3.msk.msra.mxu0 %vm10196_vm8, %v9301_v29 }
 0xbc3   : >> { %v8588_v51 = vpop.f32.mrf.mxu1 }
 0xbc5   : >> { %v5373_v46 = vpop.f32.mrf.mxu1 }
 0xbf5   : >> { %v5566_v33 = vpop.f32.mrf.mxu1 }
 0xbf6   : >> { %v5567_v62 = vadd.f32 %v5566_v33, %v11367_v12 }
 0xbf7   : >> { %v8627_v36 = vpop.f32.mrf.mxu1 }
 0xbf8   : >> { %v5573_v9 = vmax.f32 %v5567_v62, 0.0 }
 0xbf9   : >> { %v5569_v47 = vpop.f32.mrf.mxu1 }
 0xbfa   : >> { %v5570_v58 = vadd.f32 %v5569_v47, %v11370_v20  ;;  %8633 = vmatprep.mubr.msk.f32.mxu0 %vm5219_vm2, %v5573_v9 }
 0xbfb   : >> { %v8628_v45 = vpop.f32.mrf.mxu1 }
 0xbfc   : >> { %v5574_v61 = vmax.f32 %v5570_v58, 0.0 }
 0xbfe   : >> { %8634 = vmatmul.mubr.msk.f32.vlgmr.msra.gmra.mxu0 %vm5219_vm2, %v5574_v61 }
 0xc37   : >> { %v8581_v43 = vpop.f32.mrf.mxu0 }
 0xc38   : >> { %v5379_v39 = vadd.f32 %v8588_v51, %v8581_v43 }
 0xc39   : >> { %v5292_v29 = vpop.f32.mrf.mxu0 }
 0xc3a   : >> { %7491 = vst.msk [vmem:[%s7015_s23 + $0x18] sm:$0xff] %vm5009_vm14, %v5379_v39  ;;  %v5374_v48 = vadd.f32 %v5373_v46, %v5292_v29 }
 0xc3c   : >> { %7490 = vst.msk [vmem:[%s7015_s23 + $0x10] sm:$0xff] %vm5009_vm14, %v5374_v48 }
 0xc57   : >> { %v5482_v56 = vpop.f32.mrf.mxu0 }
 0xc58   : >> { %v5483_v59 = vadd.f32 %v5482_v56, %v11367_v12  ;;  %v11453_v12 = vadd.s32 (%p5017_p6), 16, %v10175_v52 }
 0xc59   : >> { %v8607_v44 = vpop.f32.mrf.mxu0 }
 0xc5a   : >> { %v5489_v25 = vmax.f32 %v5483_v59, 0.0  ;;  %v5744_v24 = vmul.u32 (%p5017_p6), 2, %v11453_v12 }
 0xc5b   : >> { %v5485_v0 = vpop.f32.mrf.mxu0 }
 0xc5c   : >> { %v5486_v34 = vadd.f32 %v5485_v0, %v11370_v20  ;;  %8640 = vmatprep.mubr.msk.f32.mxu1 %vm5219_vm2, %v5489_v25  ;;  %v11456_v20 = vadd.s32 (%p5017_p6), 24, %v10175_v52  ;;  %v11471_v50 = vadd.s32 (%p5017_p6), 1, %v5744_v24 }
 0xc5d   : >> { %v8608_v2 = vpop.f32.mrf.mxu0 }
 0xc5e   : >> { %v5490_v30 = vmax.f32 %v5486_v34, 0.0  ;;  %v5745_v49 = vmul.u32 (%p5017_p6), 2, %v11456_v20  ;;  %vm11966_vm4 = vcmp.eq.s32.totalorder (%p5017_p6), %v10188_v63, %v11471_v50  ;;  %v11482_v5 = vadd.s32 (%p5017_p6), 1, %v11471_v50 }
 0xc60   : >> { %8641 = vmatmul.mubr.msk.f32.vlgmr.msra.gmra.mxu1 %vm5219_vm2, %v5490_v30  ;;  %v11475_v38 = vadd.s32 (%p5017_p6), 1, %v5745_v49  ;;  %vm5756_vm6 = vcmp.eq.s32.totalorder (%p5017_p6), %v10188_v63, %v11482_v5 }
 0xc62   : > { %vm11967_vm5 = vcmp.eq.s32.totalorder (%p5017_p6), %v10188_v63, %v11475_v38  ;;  %v11485_v26 = vadd.s32 (%p5017_p6), 1, %v11475_v38 }
 0xc64   : > { %vm5757_vm9 = vcmp.eq.s32.totalorder (%p5017_p6), %v10188_v63, %v11485_v26 }
 0xcbe   : >> { %v8635_v10 = vpop.f32.mrf.mxu0 }
 0xcc0   : >> { %v5647_v16 = vpop.f32.mrf.mxu0 }
 0xd20   : >> { %v8642_v11 = vpop.f32.mrf.mxu1 }
 0xd21   : >> { %v5734_v15 = vadd.f32 %v8642_v11, %v8635_v10  ;;  %5019 = sbr.rel (!%p5017_p6) target bundleno = 2459 (0x99b), region = 203 }
 0xd22   : >> { %v5728_v17 = vpop.f32.mrf.mxu1 }
 0xd23   : >> { %7518 = vst.msk [vmem:[%s7015_s23 + $0x28] sm:$0xff] %vm5009_vm14, %v5734_v15  ;;  %v5729_v37 = vadd.f32 %v5728_v17, %v5647_v16 }
 0xd25   : >> { %7517 = vst.msk [vmem:[%s7015_s23 + $0x20] sm:$0xff] %vm5009_vm14, %v5729_v37 }
 0xd26 LB: >> { %v9302_v35 = vmov 0.0   ;;  %s7523_s16 = sshll.u32 %s9281_s15, 4  ;;  %s9303_s18 = smov 127   ;;  %vm9304_vm10 = vmmov 0   ;;  %v9305_v54 = vmov 0   ;;  %vm11965_vm11 = vcmask 523264   ;;  %s9281_s15 = sphi %s11491_s15, %s5772_s15  }
 0xd27   : >> { %8643 = vmatprep.subr.bf16.mxu0 %v9302_v35  ;;  %8655 = vmatprep.subr.bf16.mxu1 %v9302_v35  ;;  %s5774_s17 = scalar_lea.vmem [#allocation5], %s7523_s16  ;;  %v5802_v62 = vld [vmem:[%s11960_s8] sm:$0xf]  ;;  %v9306_v36 = vmov 1.0   ;;  %v7528_v56 = vld [vmem:[%s11960_s8 + $0x4] sm:$0xf] }
 0xd28   : >> { %8651 = vmatprep.mubr.msk.bf16.mxu0 %vm9304_vm10, %v9302_v35  ;;  %8663 = vmatprep.mubr.msk.bf16.mxu1 %vm9304_vm10, %v9302_v35  ;;  %vm5915_vm12 = vcmask 261120   ;;  %s7031_s29 = scalar_lea.vmem [#allocation6], %s7523_s16  ;;  %s5772_s15 = sadd.s32 1, %s9281_s15  }
 0xd29   : >> { %9229 = vset.pattern.permute.xlu0 %v9305_v54  ;;  %p5769_p7 = scmp.ge.s32.totalorder %s5772_s15, 32  }
 0xd2a   : > { %vm11667_vm13 = vcmp.eq.s32.totalorder (%p5769_p7), %v10188_v63, %v2471_v55  ;;  %vm11681_vm14 = vcmp.eq.s32.totalorder (%p5769_p7), %v10188_v63, %v5744_v24  ;;  %s11728_s14 = smov (%p5769_p7), 0  }
 0xd2c   : >> { %v7525_v42 = vld [vmem:[%s5774_s17 + $0x10] sm:$0xff]  ;;  %v7526_v53 = vld [vmem:[%s5774_s17 + $0x18] sm:$0xff]  ;;  %v5775_v23 = vld [vmem:[%s5774_s17] sm:$0xff] }
 0xd2d   : >> { %v9209_v31 = vpack.i.bf16 %v7526_v53, %v7525_v42  ;;  %v11501_v14 = vpack.c.bf16 %v7526_v53, %v7525_v42  ;;  %v5776_v19 = vld [vmem:[%s5774_s17 + $0x8] sm:$0xff]  ;;  %v7546_v51 = vld [vmem:[%s5774_s17 + $0x20] sm:$0xff] }
 0xd2e   : >> { %v9214_v27 = vpack.i.bf16 %v5776_v19, %v5775_v23  ;;  %v5798_v40 = vpack.c.bf16 %v5776_v19, %v5775_v23  ;;  %v7547_v46 = vld [vmem:[%s5774_s17 + $0x28] sm:$0xff] }
 0xd2f   : >> { %9210 = vrot.lane.b32.xlu0 %v9209_v31, %s9303_s18  ;;  %v9219_v33 = vpack.i.bf16 %v7547_v46, %v7546_v51  ;;  %v6092_v25 = vpack.c.bf16 %v7547_v46, %v7546_v51  ;;  %v7550_v23 = vld [vmem:[%s11960_s8 + $0xc] sm:$0xf] }
 0xd33   : >> { %9215 = vrot.lane.b32.xlu0 %v9214_v27, %s9303_s18 }
 0xda1   : >> { %v9211_v13 = vpop.permute.xlu0 %9210 }
 0xda2   : >> { %v9213_v28 = vunpack.i.h.bf16 %v9211_v13  ;;  %v9212_v57 = vunpack.i.l.bf16 %v9211_v13 }
 0xda4   : >> { %v5801_v41 = vpack.c.bf16 %v9213_v28, %v9212_v57  ;;  %v7548_v28 = vld [vmem:[%s11960_s8 + $0x8] sm:$0xf] }
 0xda5   : >> { %v9216_v60 = vpop.permute.xlu0 %9215 }
 0xda6   : >> { %v9218_v32 = vunpack.i.h.bf16 %v9216_v60  ;;  %v9217_v21 = vunpack.i.l.bf16 %v9216_v60  ;;  %5865 = vrot.lane.b32.xlu1 %v5801_v41, %s9303_s18  ;;  %8644 = vmatpush3.bf16.msra.mxu0 %v5801_v41 }
 0xda7   : >> { %8645 = vmatprep.subr.bf16.mxu0 %v9302_v35 }
 0xda8   : >> { %v5799_v4 = vpack.c.bf16 %v9218_v32, %v9217_v21 }
 0xdaa   : >> { %5863 = vrot.lane.b32.xlu1 %v11501_v14, %s9303_s18  ;;  %8646 = vmatpush3.bf16.msra.mxu0 %v11501_v14 }
 0xdab   : >> { %5861 = vrot.lane.b32.xlu0 %v5799_v4, %s9303_s18  ;;  %8647 = vmatprep.subr.bf16.mxu0 %v9302_v35 }
 0xdae   : >> { %8648 = vmatpush3.bf16.msra.mxu0 %v5799_v4  ;;  %5859 = vrot.lane.b32.xlu1 %v5798_v40, %s9303_s18 }
 0xdaf   : >> { %9220 = vrot.lane.b32.xlu0 %v9219_v33, %s9303_s18  ;;  %8649 = vmatprep.subr.bf16.mxu0 %v9302_v35 }
 0xdb2   : >> { %9225 = vrot.lane.b32.xlu1 %v9209_v31, %s9303_s18  ;;  %8650 = vmatpush3.bf16.msra.mxu0 %v5798_v40 }
 0xdb3   : >> { %5805 = vperm.xlu0 %9229, %v11461_v22   ;;  %8667 = vmatprep.subr.mxu0 %v9302_v35 }
 0xdb5   : >> { %8652 = vmatmul.mubr.msk.bf16.vlgmr.msra.gmra.mxu0 %vm11965_vm11, %v5802_v62 }
 0xdb6   : >> { %8668 = vmatpush3.msk.msra.mxu0 %vm5757_vm9, %v9306_v36  ;;  %8675 = vmatprep.mubr.msk.f32.mxu0 %vm9304_vm10, %v9302_v35 }
 0xdb7   : >> { %8669 = vmatprep.subr.mxu0 %v9302_v35 }
 0xdb8   : >> { %8670 = vmatpush3.msk.msra.mxu0 %vm5756_vm6, %v9306_v36 }
 0xdb9   : >> { %8671 = vmatprep.subr.mxu0 %v9302_v35 }
 0xdba   : >> { %8672 = vmatpush3.msk.msra.mxu0 %vm11227_vm0, %v9306_v36 }
 0xdbb   : >> { %8673 = vmatprep.subr.mxu0 %v9302_v35 }
 0xdbc   : >> { %8674 = vmatpush3.msk.msra.mxu0 %vm10196_vm8, %v9306_v36 }
 0xdbd   : >> { %8689 = vmatprep.subr.bf16.mxu0 %v9302_v35 }
 0xe18   : >> { %v5866_v9 = vpop.permute.xlu1 %5865 }
 0xe19   : >> { %8656 = vmatpush3.bf16.msra.mxu1 %v5866_v9 }
 0xe1a   : >> { %8657 = vmatprep.subr.bf16.mxu1 %v9302_v35 }
 0xe1c   : >> { %v5864_v47 = vpop.permute.xlu1 %5863 }
 0xe1d   : >> { %v5862_v58 = vpop.permute.xlu0 %5861  ;;  %8658 = vmatpush3.bf16.msra.mxu1 %v5864_v47 }
 0xe1e   : >> { %8659 = vmatprep.subr.bf16.mxu1 %v9302_v35 }
 0xe20   : >> { %v5860_v45 = vpop.permute.xlu1 %5859 }
 0xe21   : >> { %v9221_v61 = vpop.permute.xlu0 %9220  ;;  %8660 = vmatpush3.bf16.msra.mxu1 %v5862_v58 }
 0xe22   : >> { %v9223_v43 = vunpack.i.h.bf16 %v9221_v61  ;;  %v9222_v39 = vunpack.i.l.bf16 %v9221_v61  ;;  %8661 = vmatprep.subr.bf16.mxu1 %v9302_v35 }
 0xe24   : >> { %v6093_v29 = vpack.c.bf16 %v9223_v43, %v9222_v39  ;;  %v9226_v48 = vpop.permute.xlu1 %9225 }
 0xe25   : >> { %8662 = vmatpush3.bf16.msra.mxu1 %v5860_v45  ;;  %v9228_v59 = vunpack.i.h.bf16 %v9226_v48  ;;  %v9227_v44 = vunpack.i.l.bf16 %v9226_v48 }
 0xe26   : >> { %6152 = vrot.lane.b32.xlu1 %v6093_v29, %s9303_s18  ;;  %8678 = vmatprep.subr.mxu1 %v9302_v35 }
 0xe27   : >> { %v6091_v0 = vpack.c.bf16 %v9228_v59, %v9227_v44  ;;  %v6353_v59 = vadd.s32 (%p5769_p7), 40, %v10175_v52  ;;  %v6354_v44 = vadd.s32 (%p5769_p7), 48, %v10175_v52 }
 0xe28   : >> { %8664 = vmatmul.mubr.msk.bf16.vlgmr.msra.gmra.mxu1 %vm11965_vm11, %v7528_v56  ;;  %v6352_v56 = vadd.s32 (%p5769_p7), 32, %v10175_v52 }
 0xe29   : >> { %6148 = vrot.lane.b32.xlu0 %v6091_v0, %s9303_s18  ;;  %8679 = vmatpush3.msk.msra.mxu1 %vm11967_vm5, %v9306_v36  ;;  %v6357_v1 = vmul.u32 (%p5769_p7), 2, %v6353_v59 }
 0xe2a   : >> { %6150 = vrot.lane.b32.xlu1 %v6092_v25, %s9303_s18  ;;  %8680 = vmatprep.subr.mxu1 %v9302_v35  ;;  %v6356_v55 = vmul.u32 (%p5769_p7), 2, %v6352_v56 }
 0xe2b   : >> { %8681 = vmatpush3.msk.msra.mxu1 %vm11966_vm4, %v9306_v36  ;;  %8686 = vmatprep.mubr.msk.f32.mxu1 %vm9304_vm10, %v9302_v35  ;;  %vm11698_vm2 = vcmp.eq.s32.totalorder (%p5769_p7), %v10188_v63, %v6357_v1  ;;  %v11704_v24 = vadd.s32 (%p5769_p7), 1, %v6357_v1 }
 0xe2c   : >> { %8682 = vmatprep.subr.mxu1 %v9302_v35  ;;  %vm11693_vm1 = vcmp.eq.s32.totalorder (%p5769_p7), %v10188_v63, %v6356_v55  ;;  %v11702_v20 = vadd.s32 (%p5769_p7), 1, %v6356_v55 }
 0xe2d   : >> { %8683 = vmatpush3.msk.msra.mxu1 %vm11222_vm15, %v9306_v36 }
 0xe2e   : >> { %6146 = vrot.lane.b32.xlu1 %v11501_v14, %s9303_s18  ;;  %8684 = vmatprep.subr.mxu1 %v9302_v35  ;;  %v11579_v34 = vpop.permute.xlu0 %5805 }
 0xe2f   : >> { %8685 = vmatpush3.msk.msra.mxu1 %vm10191_vm7, %v9306_v36 }
 0xe30   : >> { %8701 = vmatprep.subr.bf16.mxu1 %v9302_v35 }
 0xe75   : >> { %v5846_v2 = vpop.f32.mrf.mxu0 }
 0xe76   : >> { %v5847_v30 = vadd.f32 %v5846_v2, %v11579_v34 }
 0xe77   : >> { %v8653_v10 = vpop.f32.mrf.mxu0 }
 0xe78   : >> { %v5852_v11 = vmax.f32 %v5847_v30, 0.0 }
 0xe79   : >> { %v5849_v15 = vpop.f32.mrf.mxu0 }
 0xe7a   : >> { %8687 = vmatmul.mubr.msk.f32.vlgmr.msra.gmra.mxu1 %vm5915_vm12, %v5852_v11 }
 0xe7b   : >> { %8709 = vmatprep.mubr.msk.bf16.mxu1 %vm9304_vm10, %v9302_v35  ;;  %v8654_v16 = vpop.f32.mrf.mxu0 }
 0xe98   : >> { %v6153_v17 = vpop.permute.xlu1 %6152 }
 0xe99   : >> { %8702 = vmatpush3.bf16.msra.mxu1 %v6153_v17 }
 0xe9a   : >> { %8703 = vmatprep.subr.bf16.mxu1 %v9302_v35 }
 0xe9b   : >> { %v6149_v42 = vpop.permute.xlu0 %6148 }
 0xe9c   : >> { %v6151_v37 = vpop.permute.xlu1 %6150 }
 0xe9d   : >> { %8704 = vmatpush3.bf16.msra.mxu1 %v6151_v37 }
 0xe9e   : >> { %8705 = vmatprep.subr.bf16.mxu1 %v9302_v35 }
 0xea0   : >> { %v6147_v53 = vpop.permute.xlu1 %6146 }
 0xea1   : >> { %8706 = vmatpush3.bf16.msra.mxu1 %v6149_v42 }
 0xea2   : >> { %8707 = vmatprep.subr.bf16.mxu1 %v9302_v35 }
 0xea5   : >> { %8708 = vmatpush3.bf16.msra.mxu1 %v6147_v53 }
 0xea6   : >> { %8724 = vmatprep.subr.mxu1 %v9302_v35 }
 0xea8   : >> { %8710 = vmatmul.mubr.msk.bf16.vlgmr.msra.gmra.mxu1 %vm11965_vm11, %v7550_v23 }
 0xea9   : >> { %8725 = vmatpush3.msk.msra.mxu1 %vm11967_vm5, %v9306_v36  ;;  %8732 = vmatprep.mubr.msk.f32.mxu1 %vm9304_vm10, %v9302_v35 }
 0xeaa   : >> { %8726 = vmatprep.subr.mxu1 %v9302_v35 }
 0xeab   : >> { %8727 = vmatpush3.msk.msra.mxu1 %vm11966_vm4, %v9306_v36 }
 0xeac   : >> { %8728 = vmatprep.subr.mxu1 %v9302_v35 }
 0xead   : >> { %8729 = vmatpush3.msk.msra.mxu1 %vm11222_vm15, %v9306_v36 }
 0xeae   : >> { %8730 = vmatprep.subr.mxu1 %v9302_v35 }
 0xeaf   : >> { %8731 = vmatpush3.msk.msra.mxu1 %vm10191_vm7, %v9306_v36 }
 0xee8   : >> { %v5908_v31 = vpop.f32.mrf.mxu1 }
 0xee9   : >> { %v5909_v19 = vadd.f32 %v5908_v31, %v11579_v34 }
 0xeea   : >> { %v8665_v27 = vpop.f32.mrf.mxu1 }
 0xeeb   : >> { %v5914_v40 = vmax.f32 %v5909_v19, 0.0 }
 0xeec   : >> { %v5911_v54 = vpop.f32.mrf.mxu1 }
 0xeed   : >> { %8676 = vmatmul.mubr.msk.f32.vlgmr.msra.gmra.mxu0 %vm5915_vm12, %v5914_v40 }
 0xeee   : >> { %8690 = vmatpush3.bf16.msra.mxu0 %v6093_v29  ;;  %v8666_v13 = vpop.f32.mrf.mxu1  ;;  %8697 = vmatprep.mubr.msk.bf16.mxu0 %vm9304_vm10, %v9302_v35 }
 0xeef   : >> { %8691 = vmatprep.subr.bf16.mxu0 %v9302_v35 }
 0xef2   : >> { %8692 = vmatpush3.bf16.msra.mxu0 %v6092_v25  ;;  %v6355_v25 = vadd.s32 (%p5769_p7), 56, %v10175_v52 }
 0xef3   : >> { %8693 = vmatprep.subr.bf16.mxu0 %v9302_v35 }
 0xef4   : > { %v6359_v22 = vmul.u32 (%p5769_p7), 2, %v6355_v25 }
 0xef6   : >> { %8694 = vmatpush3.bf16.msra.mxu0 %v6091_v0  ;;  %v11662_v0 = vld [vmem:[%s11963_s11] sm:$0x7] (%p5769_p7)  ;;  %v11718_v30 = vadd.s32 (%p5769_p7), 1, %v6359_v22 }
 0xef7   : >> { %8695 = vmatprep.subr.bf16.mxu0 %v9302_v35 }
 0xef8   : > { %vm6391_vm4 = vcmp.eq.s32.totalorder (%p5769_p7), %v10188_v63, %v11718_v30 }
 0xefa   : >> { %8696 = vmatpush3.bf16.msra.mxu0 %v11501_v14 }
 0xefb   : >> { %8713 = vmatprep.subr.mxu0 %v9302_v35 }
 0xefd   : >> { %8698 = vmatmul.mubr.msk.bf16.vlgmr.msra.gmra.mxu0 %vm11965_vm11, %v7548_v28 }
 0xefe   : >> { %8714 = vmatpush3.msk.msra.mxu0 %vm5757_vm9, %v9306_v36  ;;  %8721 = vmatprep.mubr.msk.f32.mxu0 %vm9304_vm10, %v9302_v35  ;;  %vm6388_vm9 = vcmp.eq.s32.totalorder (%p5769_p7), %v10188_v63, %v11702_v20 }
 0xeff   : >> { %8715 = vmatprep.subr.mxu0 %v9302_v35 }
 0xf00   : >> { %8716 = vmatpush3.msk.msra.mxu0 %vm5756_vm6, %v9306_v36  ;;  %vm11712_vm6 = vcmp.eq.s32.totalorder (%p5769_p7), %v10188_v63, %v6359_v22 }
 0xf01   : >> { %8717 = vmatprep.subr.mxu0 %v9302_v35 }
 0xf02   : >> { %8718 = vmatpush3.msk.msra.mxu0 %vm11227_vm0, %v9306_v36  ;;  %vm11688_vm0 = vcmp.eq.s32.totalorder (%p5769_p7), %v10188_v63, %v5745_v49 }
 0xf03   : >> { %8719 = vmatprep.subr.mxu0 %v9302_v35 }
 0xf04   : >> { %8720 = vmatpush3.msk.msra.mxu0 %vm10196_vm8, %v9306_v36  ;;  %vm11674_vm8 = vcmp.eq.s32.totalorder (%p5769_p7), %v10188_v63, %v4998_v8  ;;  %v6358_v8 = vmul.u32 (%p5769_p7), 2, %v6354_v44 }
 0xf06   : > { %v11716_v2 = vadd.s32 (%p5769_p7), 1, %v6358_v8 }
 0xf3a   : >> { %v6058_v14 = vpop.f32.mrf.mxu1 }
 0xf3c   : >> { %v8688_v57 = vpop.f32.mrf.mxu1 }
 0xf68   : >> { %v6195_v41 = vpop.f32.mrf.mxu1 }
 0xf69   : >> { %v6196_v60 = vadd.f32 %v6195_v41, %v11579_v34 }
 0xf6a   : >> { %v8711_v32 = vpop.f32.mrf.mxu1 }
 0xf6b   : >> { %v6201_v21 = vmax.f32 %v6196_v60, 0.0 }
 0xf6c   : >> { %v6198_v4 = vpop.f32.mrf.mxu1 }
 0xf6d   : >> { %8722 = vmatmul.mubr.msk.f32.vlgmr.msra.gmra.mxu0 %vm5915_vm12, %v6201_v21 }
 0xf6e   : >> { %v8712_v51 = vpop.f32.mrf.mxu1 }
 0xfad   : >> { %v5985_v46 = vpop.f32.mrf.mxu0 }
 0xfae   : >> { %v6059_v33 = vadd.f32 %v6058_v14, %v5985_v46 }
 0xfaf   : >> { %v8677_v62 = vpop.f32.mrf.mxu0 }
 0xfb0   : >> { %7542 = vst.msk [vmem:[%s7031_s29 + $0x8] sm:$0xff] %vm5763_vm3, %v6059_v33 }
 0xfbd   : >> { %v6133_v35 = vpop.f32.mrf.mxu0 }
 0xfbe   : >> { %v6134_v36 = vadd.f32 %v6133_v35, %v11579_v34 }
 0xfbf   : >> { %v8699_v9 = vpop.f32.mrf.mxu0 }
 0xfc0   : >> { %v6139_v47 = vmax.f32 %v6134_v36, 0.0 }
 0xfc1   : >> { %v6136_v58 = vpop.f32.mrf.mxu0 }
 0xfc2   : >> { %8733 = vmatmul.mubr.msk.f32.vlgmr.msra.gmra.mxu1 %vm5915_vm12, %v6139_v47 }
 0xfc3   : >> { %v8700_v45 = vpop.f32.mrf.mxu0 }
0x102d   : >> { %v6271_v61 = vpop.f32.mrf.mxu0 }
0x102f   : >> { %v8723_v43 = vpop.f32.mrf.mxu0 }
0x1081   : > { %5771 = sbr.rel (!%p5769_p7) target bundleno = 3366 (0xd26), region = 214 }
0x1082   : >> { %v6344_v39 = vpop.f32.mrf.mxu1 }
0x1083   : >> { %v6345_v29 = vadd.f32 %v6344_v39, %v6271_v61 }
0x1084   : >> { %v8734_v48 = vpop.f32.mrf.mxu1 }
0x1085   : >> { %7564 = vst.msk [vmem:[%s7031_s29 + $0x10] sm:$0xff] %vm5763_vm3, %v6345_v29  ;;  %vm11707_vm3 = vcmp.eq.s32.totalorder (%p5769_p7), %v10188_v63, %v6358_v8 }
0x1086 LB: >> { %v9307_v10 = vmov 0.0   ;;  %s7577_s15 = sshll.u32 %s9285_s14, 3  ;;  %vm9308_vm5 = vmmov 0   ;;  %v9309_v11 = vmov 0   ;;  %s9310_s17 = smov 127   ;;  %v9311_v40 = vmov 1.0   ;;  %s9285_s14 = sphi %s11728_s14, %s6406_s14  }
0x1087   : >> { %8735 = vmatprep.subr.bf16.mxu0 %v9307_v10  ;;  %8743 = vmatprep.subr.bf16.mxu1 %v9307_v10  ;;  %s6408_s16 = scalar_lea.vmem [#allocation6], %s7577_s15  ;;  %v6424_v31 = vld [vmem:[%s11962_s10] sm:$0x3]  ;;  %vm11992_vm11 = vcmp.eq.s32.totalorder %v10188_v63, %v11716_v2  ;;  %vm11993_vm10 = vcmp.eq.s32.totalorder %v10188_v63, %v11704_v24  ;;  %v7581_v28 = vld [vmem:[%s11962_s10 + $0x2] sm:$0x3]  ;;  %s6678_s28 = scalar_lea.vmem %s9396_s13, %s7577_s15 }
0x1088   : >> { %8739 = vmatprep.mubr.msk.bf16.mxu0 %vm9308_vm5, %v9307_v10  ;;  %9230 = vset.pattern.permute.xlu0 %v9309_v11  ;;  %v7608_v35 = vld [vmem:[%s11962_s10 + $0x6] sm:$0x3]  ;;  %v7606_v43 = vld [vmem:[%s11962_s10 + $0x4] sm:$0x3]  ;;  %s6406_s14 = sadd.s32 1, %s9285_s14  }
0x1089   : >> { %8747 = vmatprep.mubr.msk.bf16.mxu1 %vm9308_vm5, %v9307_v10  ;;  %p6403_p8 = scmp.ge.s32.totalorder %s6406_s14, 64  }
0x108c   : >> { %v7579_v15 = vld [vmem:[%s6408_s16 + $0x8] sm:$0xff]  ;;  %v6409_v16 = vld [vmem:[%s6408_s16] sm:$0xff]  ;;  %v7605_v17 = vld [vmem:[%s6408_s16 + $0x10] sm:$0xff] }
0x108d   : >> { %6419 = vrot.lane.b32.xlu0 %v7579_v15, %s9310_s17 }
0x1091   : >> { %6415 = vrot.lane.b32.xlu0 %v6409_v16, %s9310_s17 }
0x1095   : >> { %6690 = vrot.lane.b32.xlu0 %v7605_v17, %s9310_s17 }
0x1099   : >> { %6427 = vperm.xlu0 %9230, %v11662_v0  }
0x10ff   : >> { %v6420_v37 = vpop.permute.xlu0 %6419 }
0x1100   : >> { %v6423_v42 = vpack.c.bf16 %v6420_v37, %v7579_v15 }
0x1102   : >> { %6481 = vrot.lane.b32.xlu1 %v6423_v42, %s9310_s17  ;;  %8736 = vmatpush3.bf16.msra.mxu0 %v6423_v42 }
0x1103   : >> { %v6416_v53 = vpop.permute.xlu0 %6415  ;;  %8737 = vmatprep.subr.bf16.mxu0 %v9307_v10 }
0x1104   : >> { %v6422_v23 = vpack.c.bf16 %v6416_v53, %v6409_v16 }
0x1106   : >> { %6479 = vrot.lane.b32.xlu1 %v6422_v23, %s9310_s17  ;;  %8738 = vmatpush3.bf16.msra.mxu0 %v6422_v23 }
0x1107   : >> { %v6691_v19 = vpop.permute.xlu0 %6690  ;;  %8751 = vmatprep.subr.mxu0 %v9307_v10 }
0x1108   : >> { %v11755_v27 = vpack.c.bf16 %v6691_v19, %v7605_v17 }
0x1109   : >> { %8740 = vmatmul.mubr.msk.bf16.vlgmr.msra.gmra.mxu0 %vm5915_vm12, %v6424_v31 }
0x110a   : >> { %6686 = vrot.lane.b32.xlu1 %v7579_v15, %s9310_s17  ;;  %8767 = vmatprep.mubr.msk.f32.mxu0 %vm9308_vm5, %v9307_v10 }
0x110b   : >> { %8752 = vmatpush3.msk.msra.mxu0 %vm6391_vm4, %v9311_v40 }
0x110c   : >> { %8753 = vmatprep.subr.mxu0 %v9307_v10 }
0x110d   : >> { %8754 = vmatpush3.msk.msra.mxu0 %vm11992_vm11, %v9311_v40  ;;  %vm11994_vm11 = vcmp.eq.s32.totalorder %v10188_v63, %v11475_v38 }
0x110e   : >> { %6747 = vrot.lane.b32.xlu1 %v11755_v27, %s9310_s17  ;;  %8755 = vmatprep.subr.mxu0 %v9307_v10 }
0x110f   : >> { %8756 = vmatpush3.msk.msra.mxu0 %vm11993_vm10, %v9311_v40  ;;  %vm11995_vm10 = vcmp.eq.s32.totalorder %v10188_v63, %v11471_v50 }
0x1110   : >> { %8757 = vmatprep.subr.mxu0 %v9307_v10 }
0x1111   : >> { %8758 = vmatpush3.msk.msra.mxu0 %vm6388_vm9, %v9311_v40 }
0x1112   : >> { %8759 = vmatprep.subr.mxu0 %v9307_v10 }
0x1113   : >> { %8760 = vmatpush3.msk.msra.mxu0 %vm11994_vm11, %v9311_v40  ;;  %vm11996_vm11 = vcmask 523264  }
0x1114   : >> { %8761 = vmatprep.subr.mxu0 %v9307_v10  ;;  %v11843_v41 = vpop.permute.xlu0 %6427 }
0x1115   : >> { %8762 = vmatpush3.msk.msra.mxu0 %vm11995_vm10, %v9311_v40  ;;  %vm11997_vm10 = vmmov %vm11996_vm11 }
0x1116   : >> { %8763 = vmatprep.subr.mxu0 %v9307_v10 }
0x1117   : >> { %8764 = vmatpush3.msk.msra.mxu0 %vm11222_vm15, %v9311_v40 }
0x1118   : >> { %8765 = vmatprep.subr.mxu0 %v9307_v10 }
0x1119   : >> { %8766 = vmatpush3.msk.msra.mxu0 %vm10191_vm7, %v9311_v40 }
0x111a   : >> { %8789 = vmatprep.subr.bf16.mxu0 %v9307_v10 }
0x1174   : >> { %v6482_v54 = vpop.permute.xlu1 %6481 }
0x1175   : >> { %8744 = vmatpush3.bf16.msra.mxu1 %v6482_v54 }
0x1176   : >> { %8745 = vmatprep.subr.bf16.mxu1 %v9307_v10 }
0x1178   : >> { %v6480_v13 = vpop.permute.xlu1 %6479 }
0x1179   : >> { %8746 = vmatpush3.bf16.msra.mxu1 %v6480_v13 }
0x117a   : >> { %8770 = vmatprep.subr.mxu1 %v9307_v10 }
0x117c   : >> { %8748 = vmatmul.mubr.msk.bf16.vlgmr.msra.gmra.mxu1 %vm5915_vm12, %v7581_v28  ;;  %v6687_v14 = vpop.permute.xlu1 %6686 }
0x117d   : >> { %v11805_v57 = vpack.c.bf16 %v6687_v14, %v7579_v15  ;;  %8771 = vmatpush3.msk.msra.mxu1 %vm11712_vm6, %v9311_v40  ;;  %8786 = vmatprep.mubr.msk.f32.mxu1 %vm9308_vm5, %v9307_v10 }
0x117e   : >> { %8772 = vmatprep.subr.mxu1 %v9307_v10 }
0x117f   : >> { %6745 = vrot.lane.b32.xlu1 %v11805_v57, %s9310_s17  ;;  %8773 = vmatpush3.msk.msra.mxu1 %vm11707_vm3, %v9311_v40 }
0x1180   : >> { %8774 = vmatprep.subr.mxu1 %v9307_v10  ;;  %v6748_v46 = vpop.permute.xlu1 %6747 }
0x1181   : >> { %8775 = vmatpush3.msk.msra.mxu1 %vm11698_vm2, %v9311_v40 }
0x1182   : >> { %8776 = vmatprep.subr.mxu1 %v9307_v10 }
0x1183   : >> { %8777 = vmatpush3.msk.msra.mxu1 %vm11693_vm1, %v9311_v40 }
0x1184   : >> { %8778 = vmatprep.subr.mxu1 %v9307_v10 }
0x1185   : >> { %8779 = vmatpush3.msk.msra.mxu1 %vm11688_vm0, %v9311_v40 }
0x1186   : >> { %8780 = vmatprep.subr.mxu1 %v9307_v10 }
0x1187   : >> { %8781 = vmatpush3.msk.msra.mxu1 %vm11681_vm14, %v9311_v40 }
0x1188   : >> { %8782 = vmatprep.subr.mxu1 %v9307_v10 }
0x1189   : >> { %8783 = vmatpush3.msk.msra.mxu1 %vm11674_vm8, %v9311_v40 }
0x118a   : >> { %8784 = vmatprep.subr.mxu1 %v9307_v10 }
0x118b   : >> { %8785 = vmatpush3.msk.msra.mxu1 %vm11667_vm13, %v9311_v40 }
0x118c   : >> { %8797 = vmatprep.subr.bf16.mxu1 %v9307_v10 }
0x11c9   : >> { %v6468_v60 = vpop.f32.mrf.mxu0 }
0x11ca   : >> { %v6469_v32 = vadd.f32 %v6468_v60, %v11843_v41 }
0x11cb   : >> { %v8741_v21 = vpop.f32.mrf.mxu0 }
0x11cc   : >> { %9231 = vtanh.f32 %v6469_v32 }
0x11cd   : >> { %v6471_v4 = vpop.f32.mrf.mxu0 }
0x11cf   : >> { %v8742_v51 = vpop.f32.mrf.mxu0 }
0x11d9   : >> { %v9232_v33 = vpop.eup %9231 }
0x11da   : >> { %8787 = vmatmul.mubr.msk.f32.vlgmr.msra.gmra.mxu1 %vm11996_vm11, %v9232_v33  ;;  %vm11998_vm11 = vcmp.eq.s32.totalorder %v10188_v63, %v11716_v2 }
0x11db   : >> { %8798 = vmatpush3.bf16.msra.mxu1 %v6748_v46  ;;  %8801 = vmatprep.mubr.msk.bf16.mxu1 %vm9308_vm5, %v9307_v10 }
0x11dc   : >> { %8799 = vmatprep.subr.bf16.mxu1 %v9307_v10 }
0x11f1   : >> { %v6746_v62 = vpop.permute.xlu1 %6745 }
0x11f2   : >> { %8800 = vmatpush3.bf16.msra.mxu1 %v6746_v62 }
0x11f3   : >> { %8824 = vmatprep.subr.mxu1 %v9307_v10 }
0x11f5   : >> { %8802 = vmatmul.mubr.msk.bf16.vlgmr.msra.gmra.mxu1 %vm5915_vm12, %v7608_v35 }
0x11f6   : >> { %8825 = vmatpush3.msk.msra.mxu1 %vm11712_vm6, %v9311_v40  ;;  %8840 = vmatprep.mubr.msk.f32.mxu1 %vm9308_vm5, %v9307_v10 }
0x11f7   : >> { %8826 = vmatprep.subr.mxu1 %v9307_v10 }
0x11f8   : >> { %8827 = vmatpush3.msk.msra.mxu1 %vm11707_vm3, %v9311_v40 }
0x11f9   : >> { %8828 = vmatprep.subr.mxu1 %v9307_v10 }
0x11fa   : >> { %8829 = vmatpush3.msk.msra.mxu1 %vm11698_vm2, %v9311_v40 }
0x11fb   : >> { %8830 = vmatprep.subr.mxu1 %v9307_v10 }
0x11fc   : >> { %8831 = vmatpush3.msk.msra.mxu1 %vm11693_vm1, %v9311_v40 }
0x11fd   : >> { %8832 = vmatprep.subr.mxu1 %v9307_v10 }
0x11fe   : >> { %8833 = vmatpush3.msk.msra.mxu1 %vm11688_vm0, %v9311_v40 }
0x11ff   : >> { %8834 = vmatprep.subr.mxu1 %v9307_v10 }
0x1200   : >> { %8835 = vmatpush3.msk.msra.mxu1 %vm11681_vm14, %v9311_v40 }
0x1201   : >> { %8836 = vmatprep.subr.mxu1 %v9307_v10 }
0x1202   : >> { %8837 = vmatpush3.msk.msra.mxu1 %vm11674_vm8, %v9311_v40 }
0x1203   : >> { %8838 = vmatprep.subr.mxu1 %v9307_v10 }
0x1204   : >> { %8839 = vmatpush3.msk.msra.mxu1 %vm11667_vm13, %v9311_v40 }
0x123c   : >> { %v6522_v36 = vpop.f32.mrf.mxu1 }
0x123d   : >> { %v6523_v9 = vadd.f32 %v6522_v36, %v11843_v41 }
0x123e   : >> { %v8749_v47 = vpop.f32.mrf.mxu1 }
0x123f   : >> { %9233 = vtanh.f32 %v6523_v9 }
0x1240   : >> { %v6525_v58 = vpop.f32.mrf.mxu1 }
0x1242   : >> { %v8750_v45 = vpop.f32.mrf.mxu1 }
0x124c   : >> { %v9234_v61 = vpop.eup %9233 }
0x124d   : >> { %8768 = vmatmul.mubr.msk.f32.vlgmr.msra.gmra.mxu0 %vm11997_vm10, %v9234_v61  ;;  %vm11999_vm10 = vcmp.eq.s32.totalorder %v10188_v63, %v11704_v24 }
0x124e   : >> { %8790 = vmatpush3.bf16.msra.mxu0 %v11755_v27  ;;  %8793 = vmatprep.mubr.msk.bf16.mxu0 %vm9308_vm5, %v9307_v10 }
0x124f   : >> { %8791 = vmatprep.subr.bf16.mxu0 %v9307_v10 }
0x1252   : >> { %8792 = vmatpush3.bf16.msra.mxu0 %v11805_v57 }
0x1253   : >> { %8805 = vmatprep.subr.mxu0 %v9307_v10 }
0x1255   : >> { %8794 = vmatmul.mubr.msk.bf16.vlgmr.msra.gmra.mxu0 %vm5915_vm12, %v7606_v43 }
0x1256   : >> { %8806 = vmatpush3.msk.msra.mxu0 %vm6391_vm4, %v9311_v40  ;;  %8821 = vmatprep.mubr.msk.f32.mxu0 %vm9308_vm5, %v9307_v10  ;;  %vm12000_vm5 = vcmp.eq.s32.totalorder %v10188_v63, %v11475_v38 }
0x1257   : >> { %8807 = vmatprep.subr.mxu0 %v9307_v10 }
0x1258   : >> { %8808 = vmatpush3.msk.msra.mxu0 %vm11998_vm11, %v9311_v40  ;;  %vm12001_vm11 = vcmp.eq.s32.totalorder %v10188_v63, %v11471_v50 }
0x1259   : >> { %8809 = vmatprep.subr.mxu0 %v9307_v10 }
0x125a   : >> { %8810 = vmatpush3.msk.msra.mxu0 %vm11999_vm10, %v9311_v40  ;;  %vm12002_vm10 = vcmask 523264  }
0x125b   : >> { %8811 = vmatprep.subr.mxu0 %v9307_v10 }
0x125c   : >> { %8812 = vmatpush3.msk.msra.mxu0 %vm6388_vm9, %v9311_v40 }
0x125d   : >> { %8813 = vmatprep.subr.mxu0 %v9307_v10 }
0x125e   : >> { %8814 = vmatpush3.msk.msra.mxu0 %vm12000_vm5, %v9311_v40  ;;  %vm12003_vm5 = vmmov %vm12002_vm10 }
0x125f   : >> { %8815 = vmatprep.subr.mxu0 %v9307_v10 }
0x1260   : >> { %8816 = vmatpush3.msk.msra.mxu0 %vm12001_vm11, %v9311_v40 }
0x1261   : >> { %8817 = vmatprep.subr.mxu0 %v9307_v10 }
0x1262   : >> { %8818 = vmatpush3.msk.msra.mxu0 %vm11222_vm15, %v9311_v40 }
0x1263   : >> { %8819 = vmatprep.subr.mxu0 %v9307_v10 }
0x1264   : >> { %8820 = vmatpush3.msk.msra.mxu0 %vm10191_vm7, %v9311_v40 }
0x129a   : >> { %v6672_v39 = vpop.f32.mrf.mxu1 }
0x129c   : >> { %v8788_v29 = vpop.f32.mrf.mxu1 }
0x12b5   : >> { %v6788_v48 = vpop.f32.mrf.mxu1 }
0x12b6   : >> { %v6789_v56 = vadd.f32 %v6788_v48, %v11843_v41 }
0x12b7   : >> { %v8803_v59 = vpop.f32.mrf.mxu1 }
0x12b8   : >> { %9235 = vtanh.f32 %v6789_v56 }
0x12b9   : >> { %v6791_v44 = vpop.f32.mrf.mxu1 }
0x12bb   : >> { %v8804_v25 = vpop.f32.mrf.mxu1 }
0x12c5   : >> { %v9236_v55 = vpop.eup %9235 }
0x12c6   : >> { %8822 = vmatmul.mubr.msk.f32.vlgmr.msra.gmra.mxu0 %vm12002_vm10, %v9236_v55 }
0x130d   : >> { %v6599_v1 = vpop.f32.mrf.mxu0 }
0x130e   : >> { %v6673_v8 = vadd.f32 %v6672_v39, %v6599_v1 }
0x130f   : >> { %v8769_v22 = vpop.f32.mrf.mxu0 }
0x1310   : >> { %6679 = vst [vmem:[%s6678_s28] sm:$0x7] %v6673_v8 }
0x1315   : >> { %v6734_v10 = vpop.f32.mrf.mxu0 }
0x1316   : >> { %v6735_v11 = vadd.f32 %v6734_v10, %v11843_v41 }
0x1317   : >> { %v8795_v15 = vpop.f32.mrf.mxu0 }
0x1318   : >> { %9237 = vtanh.f32 %v6735_v11 }
0x1319   : >> { %v6737_v16 = vpop.f32.mrf.mxu0 }
0x131b   : >> { %v8796_v17 = vpop.f32.mrf.mxu0 }
0x1325   : >> { %v9238_v37 = vpop.eup %9237 }
0x1326   : >> { %8841 = vmatmul.mubr.msk.f32.vlgmr.msra.gmra.mxu1 %vm12003_vm5, %v9238_v37 }
0x1386   : >> { %v6864_v42 = vpop.f32.mrf.mxu0 }
0x1388   : >> { %v8823_v53 = vpop.f32.mrf.mxu0 }
0x13e5   : > { %6405 = sbr.rel (!%p6403_p8) target bundleno = 4230 (0x1086), region = 225 }
0x13e6   : >> { %v6937_v23 = vpop.f32.mrf.mxu1 }
0x13e7   : >> { %v6938_v31 = vadd.f32 %v6937_v23, %v6864_v42 }
0x13e8   : >> { %v8842_v19 = vpop.f32.mrf.mxu1 }
0x13e9   : >> { %7630 = vst [vmem:[%s6678_s28 + $0x4] sm:$0x7] %v6938_v31 }
0x13ea PF: > { %s22_s21 = sadd.s32 1, %s9265_s21  }
0x13eb   : > { %p19_p9 = scmp.ge.s32.totalorder %s22_s21, 4  }
0x13ed   :  { %21 = sbr.rel (!%p19_p9) target bundleno = 1 (0x1), region = 236 }

</bundles_post_ra>
